<compile_context>
chip_gen: v7x
topology: tpu7x:2x2x1
jax: 0.10.0
libtpu: 0.0.40
codegen_flags: <defaults>
</compile_context>

<pallas_src>
import jax
import jax.numpy as jnp
from jax.experimental import pallas as pl
from jax.experimental.pallas import tpu as pltpu

D_MODEL = 128
N_HEAD = 4
HEAD_DIM = D_MODEL // N_HEAD   # 32
D_FF = 512
LN_EPS = 1e-5
NUM_LAYERS = 4


def _layer_norm(x, gamma, beta):
    # PyTorch LayerNorm: biased variance, eps inside rsqrt.
    mean = jnp.mean(x, axis=-1, keepdims=True)
    var = jnp.mean((x - mean) ** 2, axis=-1, keepdims=True)
    return (x - mean) * jax.lax.rsqrt(var + LN_EPS) * gamma + beta


def transformer_kernel(
    x_ref,                       # (Bt, S, D)
    wqkv_ref, bqkv_ref,          # (L, D, 3D), (L, 1, 3D)  (pre-transposed vs torch)
    wo_ref, bo_ref,              # (L, D, D),  (L, 1, D)
    ln1_g_ref, ln1_b_ref,        # (L, 1, D),  (L, 1, D)
    w1_ref, b1_ref,              # (L, D, FF), (L, 1, FF)
    w2_ref, b2_ref,              # (L, FF, D), (L, 1, D)
    ln2_g_ref, ln2_b_ref,        # (L, 1, D),  (L, 1, D)
    o_ref,                       # (Bt, S, D)
):
    Bt, S, D = x_ref.shape
    scale = jnp.float32(1.0 / (HEAD_DIM ** 0.5))

    # Fold batch into matmul rows: all projections/FFN run on (Bt*S, D).
    x = x_ref[...].reshape(Bt * S, D)

    for l in range(NUM_LAYERS):                    # static unroll over layers
        # ---- fused QKV projection --------------------------------------
        qkv = jnp.dot(x, wqkv_ref[l],
                      preferred_element_type=jnp.float32) + bqkv_ref[l]   # (Bt*S, 3D)
        q = (qkv[:, :D_MODEL] * scale).reshape(Bt, S, D_MODEL)   # scale folded once
        k = qkv[:, D_MODEL:2 * D_MODEL].reshape(Bt, S, D_MODEL)
        v = qkv[:, 2 * D_MODEL:].reshape(Bt, S, D_MODEL)

        # ---- multi-head self attention (batched over Bt, unrolled heads) ----
        head_outs = []
        for h in range(N_HEAD):
            sl = slice(h * HEAD_DIM, (h + 1) * HEAD_DIM)
            qh, kh, vh = q[..., sl], k[..., sl], v[..., sl]          # (Bt, S, 32)
            s = jnp.einsum('bqd,bkd->bqk', qh, kh,
                           preferred_element_type=jnp.float32)        # (Bt, S, S)
            s = s - jnp.max(s, axis=-1, keepdims=True)
            p = jnp.exp(s)
            p = p * pl.reciprocal(jnp.sum(p, axis=-1, keepdims=True), approx=True)
            head_outs.append(jnp.einsum('bqk,bkd->bqd', p, vh,
                                        preferred_element_type=jnp.float32))
        attn = jnp.concatenate(head_outs, axis=-1).reshape(Bt * S, D_MODEL)

        attn = jnp.dot(attn, wo_ref[l],
                       preferred_element_type=jnp.float32) + bo_ref[l]

        # residual + LayerNorm1 (post-norm)
        h1 = _layer_norm(x + attn, ln1_g_ref[l], ln1_b_ref[l])

        # ---- feed-forward: linear -> ReLU -> linear ---------------------
        ff = jnp.dot(h1, w1_ref[l],
                     preferred_element_type=jnp.float32) + b1_ref[l]   # (Bt*S, FF)
        ff = jnp.maximum(ff, 0.0)
        ff = jnp.dot(ff, w2_ref[l],
                     preferred_element_type=jnp.float32) + b2_ref[l]   # (Bt*S, D)

        # residual + LayerNorm2
        x = _layer_norm(h1 + ff, ln2_g_ref[l], ln2_b_ref[l])

    o_ref[...] = x.reshape(Bt, S, D).astype(o_ref.dtype)


def simple_transformer(x, stacked_params, *, batch_block=None,
                       vmem_limit_bytes=32 * 1024 * 1024):
    """Full 4-layer encoder forward in ONE pallas_call.

    stacked_params: 12 arrays, each with leading layer dim L=NUM_LAYERS, in the
    kernel argument order (wqkv, bqkv, wo, bo, ln1_g, ln1_b, w1, b1, w2, b2,
    ln2_g, ln2_b).  Weights are pre-transposed so the kernel computes x @ W + b.
    """
    B, S, D = x.shape
    assert D == D_MODEL
    if batch_block is None:
        batch_block = B                 # whole batch per step at small B
    assert B % batch_block == 0
    grid = (B // batch_block,)          # "parallel" axis -> megacore on v7x if >1

    def _w_spec(p):
        nd = p.ndim
        return pl.BlockSpec(p.shape, lambda i, _nd=nd: (0,) * _nd)

    return pl.pallas_call(
        transformer_kernel,
        out_shape=jax.ShapeDtypeStruct((B, S, D), x.dtype),
        grid_spec=pltpu.PrefetchScalarGridSpec(
            num_scalar_prefetch=0,
            grid=grid,
            in_specs=[pl.BlockSpec((batch_block, S, D), lambda i: (i, 0, 0))]
            + [_w_spec(p) for p in stacked_params],
            out_specs=pl.BlockSpec((batch_block, S, D), lambda i: (i, 0, 0)),
        ),
        compiler_params=pltpu.CompilerParams(
            dimension_semantics=("parallel",),
            vmem_limit_bytes=vmem_limit_bytes,
        ),
    )(x, *stacked_params)


def init_params(key, num_layers=NUM_LAYERS):
    """Deterministic synthetic parameters (shapes match nn.TransformerEncoderLayer).

    Weight matrices are stored pre-transposed relative to torch's
    in_proj_weight / linear.weight so the kernel computes y = x @ W + b.
    Returns each parameter kind stacked over layers (leading dim L)."""
    layers = []
    for _ in range(num_layers):
        key, k1, k2, k3, k4, k5, k6 = jax.random.split(key, 7)
        wqkv = jax.random.normal(k1, (D_MODEL, 3 * D_MODEL), jnp.float32) * 0.05
        bqkv = jax.random.normal(k2, (1, 3 * D_MODEL), jnp.float32) * 0.02
        wo = jax.random.normal(k3, (D_MODEL, D_MODEL), jnp.float32) * 0.05
        bo = jax.random.normal(k4, (1, D_MODEL), jnp.float32) * 0.02
        ln1_g = jnp.ones((1, D_MODEL), jnp.float32)
        ln1_b = jnp.zeros((1, D_MODEL), jnp.float32)
        w1 = jax.random.normal(k5, (D_MODEL, D_FF), jnp.float32) * 0.05
        b1 = jnp.zeros((1, D_FF), jnp.float32)
        w2 = jax.random.normal(k6, (D_FF, D_MODEL), jnp.float32) * 0.05
        b2 = jnp.zeros((1, D_MODEL), jnp.float32)
        ln2_g = jnp.ones((1, D_MODEL), jnp.float32)
        ln2_b = jnp.zeros((1, D_MODEL), jnp.float32)
        layers.append([wqkv, bqkv, wo, bo, ln1_g, ln1_b,
                       w1, b1, w2, b2, ln2_g, ln2_b])
    # stack each parameter kind across layers -> leading L dim
    return [jnp.stack(ps, axis=0) for ps in zip(*layers)]


if __name__ == "__main__":
    key = jax.random.PRNGKey(0)
    key, xk = jax.random.split(key)
    B, S = 2, 8                       # small shapes: batch=2, seq=8, d_model=128
    x = jax.random.normal(xk, (B, S, D_MODEL), jnp.float32)
    params = init_params(key, num_layers=NUM_LAYERS)

    fwd = jax.jit(simple_transformer)
    out = fwd(x, params)
    jax.block_until_ready(out)
    assert out.shape == (B, S, D_MODEL) and out.dtype == jnp.float32
    print("KERNEL_OK")
</pallas_src>

<mosaic_0001>
module attributes {stable_mosaic.version = 11 : i64} {
  func.func @transformer_kernel(%arg0: i32, %arg1: memref<2x8x128xf32, #tpu.memory_space<vmem>>, %arg2: memref<4x128x384xf32, #tpu.memory_space<vmem>>, %arg3: memref<4x1x384xf32, #tpu.memory_space<vmem>>, %arg4: memref<4x128x128xf32, #tpu.memory_space<vmem>>, %arg5: memref<4x1x128xf32, #tpu.memory_space<vmem>>, %arg6: memref<4x1x128xf32, #tpu.memory_space<vmem>>, %arg7: memref<4x1x128xf32, #tpu.memory_space<vmem>>, %arg8: memref<4x128x512xf32, #tpu.memory_space<vmem>>, %arg9: memref<4x1x512xf32, #tpu.memory_space<vmem>>, %arg10: memref<4x512x128xf32, #tpu.memory_space<vmem>>, %arg11: memref<4x1x128xf32, #tpu.memory_space<vmem>>, %arg12: memref<4x1x128xf32, #tpu.memory_space<vmem>>, %arg13: memref<4x1x128xf32, #tpu.memory_space<vmem>>, %arg14: memref<2x8x128xf32, #tpu.memory_space<vmem>>) attributes {dimension_semantics = [#tpu.dimension_semantics<parallel>], iteration_bounds = array<i64: 1>, scalar_prefetch = 0 : i64, scratch_operands = 0 : i64, tpu.core_type = #tpu.core_type<tc>, window_params = [{transform_indices = @transform_0, window_bounds = array<i64: 2, 8, 128>}, {pipeline_mode = #tpu.pipeline_mode<synchronous>, transform_indices = @transform_1, window_bounds = array<i64: 4, 128, 384>}, {pipeline_mode = #tpu.pipeline_mode<synchronous>, transform_indices = @transform_2, window_bounds = array<i64: 4, 1, 384>}, {pipeline_mode = #tpu.pipeline_mode<synchronous>, transform_indices = @transform_3, window_bounds = array<i64: 4, 128, 128>}, {pipeline_mode = #tpu.pipeline_mode<synchronous>, transform_indices = @transform_4, window_bounds = array<i64: 4, 1, 128>}, {pipeline_mode = #tpu.pipeline_mode<synchronous>, transform_indices = @transform_5, window_bounds = array<i64: 4, 1, 128>}, {pipeline_mode = #tpu.pipeline_mode<synchronous>, transform_indices = @transform_6, window_bounds = array<i64: 4, 1, 128>}, {pipeline_mode = #tpu.pipeline_mode<synchronous>, transform_indices = @transform_7, window_bounds = array<i64: 4, 128, 512>}, {pipeline_mode = #tpu.pipeline_mode<synchronous>, transform_indices = @transform_8, window_bounds = array<i64: 4, 1, 512>}, {pipeline_mode = #tpu.pipeline_mode<synchronous>, transform_indices = @transform_9, window_bounds = array<i64: 4, 512, 128>}, {pipeline_mode = #tpu.pipeline_mode<synchronous>, transform_indices = @transform_10, window_bounds = array<i64: 4, 1, 128>}, {pipeline_mode = #tpu.pipeline_mode<synchronous>, transform_indices = @transform_11, window_bounds = array<i64: 4, 1, 128>}, {pipeline_mode = #tpu.pipeline_mode<synchronous>, transform_indices = @transform_12, window_bounds = array<i64: 4, 1, 128>}, {transform_indices = @transform_13, window_bounds = array<i64: 2, 8, 128>}]} {
    %c0 = arith.constant 0 : index
    %c0_0 = arith.constant 0 : index
    %c0_1 = arith.constant 0 : index
    %0 = vector.load %arg1[%c0, %c0_0, %c0_1] : memref<2x8x128xf32, #tpu.memory_space<vmem>>, vector<2x8x128xf32>
    %1 = vector.shape_cast %0 : vector<2x8x128xf32> to vector<16x128xf32>
    %c0_2 = arith.constant 0 : index
    %c0_3 = arith.constant 0 : index
    %c0_4 = arith.constant 0 : index
    %2 = vector.load %arg2[%c0_2, %c0_3, %c0_4] : memref<4x128x384xf32, #tpu.memory_space<vmem>>, vector<1x128x384xf32>
    %3 = vector.shape_cast %2 : vector<1x128x384xf32> to vector<128x384xf32>
    %cst = arith.constant dense<0.000000e+00> : vector<16x384xf32>
    %4 = tpu.matmul %1, %3, %cst {dimension_numbers = #tpu.dot_dimension_numbers<[1], [0], [0], [1], [0, 0, 1, 1], [], []>} : vector<16x128xf32>, vector<128x384xf32>, vector<16x384xf32> -> vector<16x384xf32>
    %c0_5 = arith.constant 0 : index
    %c0_6 = arith.constant 0 : index
    %c0_7 = arith.constant 0 : index
    %5 = vector.load %arg3[%c0_5, %c0_6, %c0_7] : memref<4x1x384xf32, #tpu.memory_space<vmem>>, vector<1x1x384xf32>
    %6 = vector.shape_cast %5 : vector<1x1x384xf32> to vector<1x384xf32>
    %7 = vector.broadcast %6 : vector<1x384xf32> to vector<16x384xf32>
    %8 = arith.addf %4, %7 : vector<16x384xf32>
    %9 = vector.extract_strided_slice %8 {offsets = [0, 0], sizes = [16, 128], strides = [1, 1]} : vector<16x384xf32> to vector<16x128xf32>
    %cst_8 = arith.constant 0.176776692 : f32
    %10 = vector.broadcast %cst_8 : f32 to vector<16x128xf32>
    %11 = arith.mulf %9, %10 : vector<16x128xf32>
    %12 = vector.shape_cast %11 : vector<16x128xf32> to vector<2x8x128xf32>
    %13 = vector.extract_strided_slice %8 {offsets = [0, 128], sizes = [16, 128], strides = [1, 1]} : vector<16x384xf32> to vector<16x128xf32>
    %14 = vector.shape_cast %13 : vector<16x128xf32> to vector<2x8x128xf32>
    %15 = vector.extract_strided_slice %8 {offsets = [0, 256], sizes = [16, 128], strides = [1, 1]} : vector<16x384xf32> to vector<16x128xf32>
    %16 = vector.shape_cast %15 : vector<16x128xf32> to vector<2x8x128xf32>
    %17 = vector.extract_strided_slice %12 {offsets = [0, 0, 0], sizes = [2, 8, 32], strides = [1, 1, 1]} : vector<2x8x128xf32> to vector<2x8x32xf32>
    %18 = vector.extract_strided_slice %14 {offsets = [0, 0, 0], sizes = [2, 8, 32], strides = [1, 1, 1]} : vector<2x8x128xf32> to vector<2x8x32xf32>
    %19 = vector.extract_strided_slice %16 {offsets = [0, 0, 0], sizes = [2, 8, 32], strides = [1, 1, 1]} : vector<2x8x128xf32> to vector<2x8x32xf32>
    "tpu.trace_start"() <{level = 10 : i32, message = "bqd,bkd->bqk"}> : () -> ()
    %cst_9 = arith.constant dense<0.000000e+00> : vector<2x8x8xf32>
    %20 = tpu.matmul %17, %18, %cst_9 {dimension_numbers = #tpu.dot_dimension_numbers<[2], [2], [1], [1], [0, 0, 0, 1, 1, 1], [0], [0]>} : vector<2x8x32xf32>, vector<2x8x32xf32>, vector<2x8x8xf32> -> vector<2x8x8xf32>
    "tpu.trace_stop"() : () -> ()
    %cst_10 = arith.constant dense<0xFF800000> : vector<2x8xf32>
    %21 = vector.multi_reduction <maximumf>, %20, %cst_10 [2] : vector<2x8x8xf32> to vector<2x8xf32>
    %22 = vector.shape_cast %21 : vector<2x8xf32> to vector<2x8x1xf32>
    %23 = vector.broadcast %22 : vector<2x8x1xf32> to vector<2x8x8xf32>
    %24 = arith.subf %20, %23 : vector<2x8x8xf32>
    %25 = math.exp %24 : vector<2x8x8xf32>
    %cst_11 = arith.constant dense<0.000000e+00> : vector<2x8xf32>
    %26 = vector.multi_reduction <add>, %25, %cst_11 [2] : vector<2x8x8xf32> to vector<2x8xf32>
    %27 = vector.shape_cast %26 : vector<2x8xf32> to vector<2x8x1xf32>
    %28 = tpu.reciprocal %27 {approx = true} : vector<2x8x1xf32> -> vector<2x8x1xf32>
    %29 = vector.broadcast %28 : vector<2x8x1xf32> to vector<2x8x8xf32>
    %30 = arith.mulf %25, %29 : vector<2x8x8xf32>
    "tpu.trace_start"() <{level = 10 : i32, message = "bqk,bkd->bqd"}> : () -> ()
    %cst_12 = arith.constant dense<0.000000e+00> : vector<2x8x32xf32>
    %31 = tpu.matmul %30, %19, %cst_12 {dimension_numbers = #tpu.dot_dimension_numbers<[2], [1], [1], [2], [0, 0, 0, 1, 1, 2], [0], [0]>} : vector<2x8x8xf32>, vector<2x8x32xf32>, vector<2x8x32xf32> -> vector<2x8x32xf32>
    "tpu.trace_stop"() : () -> ()
    %32 = vector.extract_strided_slice %12 {offsets = [0, 0, 32], sizes = [2, 8, 32], strides = [1, 1, 1]} : vector<2x8x128xf32> to vector<2x8x32xf32>
    %33 = vector.extract_strided_slice %14 {offsets = [0, 0, 32], sizes = [2, 8, 32], strides = [1, 1, 1]} : vector<2x8x128xf32> to vector<2x8x32xf32>
    %34 = vector.extract_strided_slice %16 {offsets = [0, 0, 32], sizes = [2, 8, 32], strides = [1, 1, 1]} : vector<2x8x128xf32> to vector<2x8x32xf32>
    "tpu.trace_start"() <{level = 10 : i32, message = "bqd,bkd->bqk"}> : () -> ()
    %cst_13 = arith.constant dense<0.000000e+00> : vector<2x8x8xf32>
    %35 = tpu.matmul %32, %33, %cst_13 {dimension_numbers = #tpu.dot_dimension_numbers<[2], [2], [1], [1], [0, 0, 0, 1, 1, 1], [0], [0]>} : vector<2x8x32xf32>, vector<2x8x32xf32>, vector<2x8x8xf32> -> vector<2x8x8xf32>
    "tpu.trace_stop"() : () -> ()
    %cst_14 = arith.constant dense<0xFF800000> : vector<2x8xf32>
    %36 = vector.multi_reduction <maximumf>, %35, %cst_14 [2] : vector<2x8x8xf32> to vector<2x8xf32>
    %37 = vector.shape_cast %36 : vector<2x8xf32> to vector<2x8x1xf32>
    %38 = vector.broadcast %37 : vector<2x8x1xf32> to vector<2x8x8xf32>
    %39 = arith.subf %35, %38 : vector<2x8x8xf32>
    %40 = math.exp %39 : vector<2x8x8xf32>
    %cst_15 = arith.constant dense<0.000000e+00> : vector<2x8xf32>
    %41 = vector.multi_reduction <add>, %40, %cst_15 [2] : vector<2x8x8xf32> to vector<2x8xf32>
    %42 = vector.shape_cast %41 : vector<2x8xf32> to vector<2x8x1xf32>
    %43 = tpu.reciprocal %42 {approx = true} : vector<2x8x1xf32> -> vector<2x8x1xf32>
    %44 = vector.broadcast %43 : vector<2x8x1xf32> to vector<2x8x8xf32>
    %45 = arith.mulf %40, %44 : vector<2x8x8xf32>
    "tpu.trace_start"() <{level = 10 : i32, message = "bqk,bkd->bqd"}> : () -> ()
    %cst_16 = arith.constant dense<0.000000e+00> : vector<2x8x32xf32>
    %46 = tpu.matmul %45, %34, %cst_16 {dimension_numbers = #tpu.dot_dimension_numbers<[2], [1], [1], [2], [0, 0, 0, 1, 1, 2], [0], [0]>} : vector<2x8x8xf32>, vector<2x8x32xf32>, vector<2x8x32xf32> -> vector<2x8x32xf32>
    "tpu.trace_stop"() : () -> ()
    %47 = vector.extract_strided_slice %12 {offsets = [0, 0, 64], sizes = [2, 8, 32], strides = [1, 1, 1]} : vector<2x8x128xf32> to vector<2x8x32xf32>
    %48 = vector.extract_strided_slice %14 {offsets = [0, 0, 64], sizes = [2, 8, 32], strides = [1, 1, 1]} : vector<2x8x128xf32> to vector<2x8x32xf32>
    %49 = vector.extract_strided_slice %16 {offsets = [0, 0, 64], sizes = [2, 8, 32], strides = [1, 1, 1]} : vector<2x8x128xf32> to vector<2x8x32xf32>
    "tpu.trace_start"() <{level = 10 : i32, message = "bqd,bkd->bqk"}> : () -> ()
    %cst_17 = arith.constant dense<0.000000e+00> : vector<2x8x8xf32>
    %50 = tpu.matmul %47, %48, %cst_17 {dimension_numbers = #tpu.dot_dimension_numbers<[2], [2], [1], [1], [0, 0, 0, 1, 1, 1], [0], [0]>} : vector<2x8x32xf32>, vector<2x8x32xf32>, vector<2x8x8xf32> -> vector<2x8x8xf32>
    "tpu.trace_stop"() : () -> ()
    %cst_18 = arith.constant dense<0xFF800000> : vector<2x8xf32>
    %51 = vector.multi_reduction <maximumf>, %50, %cst_18 [2] : vector<2x8x8xf32> to vector<2x8xf32>
    %52 = vector.shape_cast %51 : vector<2x8xf32> to vector<2x8x1xf32>
    %53 = vector.broadcast %52 : vector<2x8x1xf32> to vector<2x8x8xf32>
    %54 = arith.subf %50, %53 : vector<2x8x8xf32>
    %55 = math.exp %54 : vector<2x8x8xf32>
    %cst_19 = arith.constant dense<0.000000e+00> : vector<2x8xf32>
    %56 = vector.multi_reduction <add>, %55, %cst_19 [2] : vector<2x8x8xf32> to vector<2x8xf32>
    %57 = vector.shape_cast %56 : vector<2x8xf32> to vector<2x8x1xf32>
    %58 = tpu.reciprocal %57 {approx = true} : vector<2x8x1xf32> -> vector<2x8x1xf32>
    %59 = vector.broadcast %58 : vector<2x8x1xf32> to vector<2x8x8xf32>
    %60 = arith.mulf %55, %59 : vector<2x8x8xf32>
    "tpu.trace_start"() <{level = 10 : i32, message = "bqk,bkd->bqd"}> : () -> ()
    %cst_20 = arith.constant dense<0.000000e+00> : vector<2x8x32xf32>
    %61 = tpu.matmul %60, %49, %cst_20 {dimension_numbers = #tpu.dot_dimension_numbers<[2], [1], [1], [2], [0, 0, 0, 1, 1, 2], [0], [0]>} : vector<2x8x8xf32>, vector<2x8x32xf32>, vector<2x8x32xf32> -> vector<2x8x32xf32>
    "tpu.trace_stop"() : () -> ()
    %62 = vector.extract_strided_slice %12 {offsets = [0, 0, 96], sizes = [2, 8, 32], strides = [1, 1, 1]} : vector<2x8x128xf32> to vector<2x8x32xf32>
    %63 = vector.extract_strided_slice %14 {offsets = [0, 0, 96], sizes = [2, 8, 32], strides = [1, 1, 1]} : vector<2x8x128xf32> to vector<2x8x32xf32>
    %64 = vector.extract_strided_slice %16 {offsets = [0, 0, 96], sizes = [2, 8, 32], strides = [1, 1, 1]} : vector<2x8x128xf32> to vector<2x8x32xf32>
    "tpu.trace_start"() <{level = 10 : i32, message = "bqd,bkd->bqk"}> : () -> ()
    %cst_21 = arith.constant dense<0.000000e+00> : vector<2x8x8xf32>
    %65 = tpu.matmul %62, %63, %cst_21 {dimension_numbers = #tpu.dot_dimension_numbers<[2], [2], [1], [1], [0, 0, 0, 1, 1, 1], [0], [0]>} : vector<2x8x32xf32>, vector<2x8x32xf32>, vector<2x8x8xf32> -> vector<2x8x8xf32>
    "tpu.trace_stop"() : () -> ()
    %cst_22 = arith.constant dense<0xFF800000> : vector<2x8xf32>
    %66 = vector.multi_reduction <maximumf>, %65, %cst_22 [2] : vector<2x8x8xf32> to vector<2x8xf32>
    %67 = vector.shape_cast %66 : vector<2x8xf32> to vector<2x8x1xf32>
    %68 = vector.broadcast %67 : vector<2x8x1xf32> to vector<2x8x8xf32>
    %69 = arith.subf %65, %68 : vector<2x8x8xf32>
    %70 = math.exp %69 : vector<2x8x8xf32>
    %cst_23 = arith.constant dense<0.000000e+00> : vector<2x8xf32>
    %71 = vector.multi_reduction <add>, %70, %cst_23 [2] : vector<2x8x8xf32> to vector<2x8xf32>
    %72 = vector.shape_cast %71 : vector<2x8xf32> to vector<2x8x1xf32>
    %73 = tpu.reciprocal %72 {approx = true} : vector<2x8x1xf32> -> vector<2x8x1xf32>
    %74 = vector.broadcast %73 : vector<2x8x1xf32> to vector<2x8x8xf32>
    %75 = arith.mulf %70, %74 : vector<2x8x8xf32>
    "tpu.trace_start"() <{level = 10 : i32, message = "bqk,bkd->bqd"}> : () -> ()
    %cst_24 = arith.constant dense<0.000000e+00> : vector<2x8x32xf32>
    %76 = tpu.matmul %75, %64, %cst_24 {dimension_numbers = #tpu.dot_dimension_numbers<[2], [1], [1], [2], [0, 0, 0, 1, 1, 2], [0], [0]>} : vector<2x8x8xf32>, vector<2x8x32xf32>, vector<2x8x32xf32> -> vector<2x8x32xf32>
    "tpu.trace_stop"() : () -> ()
    %77 = tpu.concatenate %31, %46, %61, %76 in 2 : vector<2x8x32xf32>, vector<2x8x32xf32>, vector<2x8x32xf32>, vector<2x8x32xf32> -> vector<2x8x128xf32>
    %78 = vector.shape_cast %77 : vector<2x8x128xf32> to vector<16x128xf32>
    %c0_25 = arith.constant 0 : index
    %c0_26 = arith.constant 0 : index
    %c0_27 = arith.constant 0 : index
    %79 = vector.load %arg4[%c0_25, %c0_26, %c0_27] : memref<4x128x128xf32, #tpu.memory_space<vmem>>, vector<1x128x128xf32>
    %80 = vector.shape_cast %79 : vector<1x128x128xf32> to vector<128x128xf32>
    %cst_28 = arith.constant dense<0.000000e+00> : vector<16x128xf32>
    %81 = tpu.matmul %78, %80, %cst_28 {dimension_numbers = #tpu.dot_dimension_numbers<[1], [0], [0], [1], [0, 0, 1, 1], [], []>} : vector<16x128xf32>, vector<128x128xf32>, vector<16x128xf32> -> vector<16x128xf32>
    %c0_29 = arith.constant 0 : index
    %c0_30 = arith.constant 0 : index
    %c0_31 = arith.constant 0 : index
    %82 = vector.load %arg5[%c0_29, %c0_30, %c0_31] : memref<4x1x128xf32, #tpu.memory_space<vmem>>, vector<1x1x128xf32>
    %83 = vector.shape_cast %82 : vector<1x1x128xf32> to vector<1x128xf32>
    %84 = vector.broadcast %83 : vector<1x128xf32> to vector<16x128xf32>
    %85 = arith.addf %81, %84 : vector<16x128xf32>
    %86 = arith.addf %1, %85 : vector<16x128xf32>
    %c0_32 = arith.constant 0 : index
    %c0_33 = arith.constant 0 : index
    %c0_34 = arith.constant 0 : index
    %87 = vector.load %arg6[%c0_32, %c0_33, %c0_34] : memref<4x1x128xf32, #tpu.memory_space<vmem>>, vector<1x1x128xf32>
    %88 = vector.shape_cast %87 : vector<1x1x128xf32> to vector<1x128xf32>
    %c0_35 = arith.constant 0 : index
    %c0_36 = arith.constant 0 : index
    %c0_37 = arith.constant 0 : index
    %89 = vector.load %arg7[%c0_35, %c0_36, %c0_37] : memref<4x1x128xf32, #tpu.memory_space<vmem>>, vector<1x1x128xf32>
    %90 = vector.shape_cast %89 : vector<1x1x128xf32> to vector<1x128xf32>
    %cst_38 = arith.constant dense<0.000000e+00> : vector<16xf32>
    %91 = vector.multi_reduction <add>, %86, %cst_38 [1] : vector<16x128xf32> to vector<16xf32>
    %92 = vector.shape_cast %91 : vector<16xf32> to vector<16x1xf32>
    %cst_39 = arith.constant 1.280000e+02 : f32
    %93 = vector.broadcast %cst_39 : f32 to vector<16x1xf32>
    %94 = arith.divf %92, %93 : vector<16x1xf32>
    %95 = vector.broadcast %94 : vector<16x1xf32> to vector<16x128xf32>
    %96 = arith.subf %86, %95 : vector<16x128xf32>
    %97 = arith.mulf %96, %96 : vector<16x128xf32>
    %cst_40 = arith.constant dense<0.000000e+00> : vector<16xf32>
    %98 = vector.multi_reduction <add>, %97, %cst_40 [1] : vector<16x128xf32> to vector<16xf32>
    %99 = vector.shape_cast %98 : vector<16xf32> to vector<16x1xf32>
    %cst_41 = arith.constant 1.280000e+02 : f32
    %100 = vector.broadcast %cst_41 : f32 to vector<16x1xf32>
    %101 = arith.divf %99, %100 : vector<16x1xf32>
    %102 = vector.broadcast %94 : vector<16x1xf32> to vector<16x128xf32>
    %103 = arith.subf %86, %102 : vector<16x128xf32>
    %cst_42 = arith.constant 9.99999974E-6 : f32
    %104 = vector.broadcast %cst_42 : f32 to vector<16x1xf32>
    %105 = arith.addf %101, %104 : vector<16x1xf32>
    %106 = math.rsqrt %105 : vector<16x1xf32>
    %107 = vector.broadcast %106 : vector<16x1xf32> to vector<16x128xf32>
    %108 = arith.mulf %103, %107 : vector<16x128xf32>
    %109 = vector.broadcast %88 : vector<1x128xf32> to vector<16x128xf32>
    %110 = arith.mulf %108, %109 : vector<16x128xf32>
    %111 = vector.broadcast %90 : vector<1x128xf32> to vector<16x128xf32>
    %112 = arith.addf %110, %111 : vector<16x128xf32>
    %c0_43 = arith.constant 0 : index
    %c0_44 = arith.constant 0 : index
    %c0_45 = arith.constant 0 : index
    %113 = vector.load %arg8[%c0_43, %c0_44, %c0_45] : memref<4x128x512xf32, #tpu.memory_space<vmem>>, vector<1x128x512xf32>
    %114 = vector.shape_cast %113 : vector<1x128x512xf32> to vector<128x512xf32>
    %cst_46 = arith.constant dense<0.000000e+00> : vector<16x512xf32>
    %115 = tpu.matmul %112, %114, %cst_46 {dimension_numbers = #tpu.dot_dimension_numbers<[1], [0], [0], [1], [0, 0, 1, 1], [], []>} : vector<16x128xf32>, vector<128x512xf32>, vector<16x512xf32> -> vector<16x512xf32>
    %c0_47 = arith.constant 0 : index
    %c0_48 = arith.constant 0 : index
    %c0_49 = arith.constant 0 : index
    %116 = vector.load %arg9[%c0_47, %c0_48, %c0_49] : memref<4x1x512xf32, #tpu.memory_space<vmem>>, vector<1x1x512xf32>
    %117 = vector.shape_cast %116 : vector<1x1x512xf32> to vector<1x512xf32>
    %118 = vector.broadcast %117 : vector<1x512xf32> to vector<16x512xf32>
    %119 = arith.addf %115, %118 : vector<16x512xf32>
    %cst_50 = arith.constant 0.000000e+00 : f32
    %120 = vector.broadcast %cst_50 : f32 to vector<16x512xf32>
    %121 = arith.maximumf %119, %120 : vector<16x512xf32>
    %c0_51 = arith.constant 0 : index
    %c0_52 = arith.constant 0 : index
    %c0_53 = arith.constant 0 : index
    %122 = vector.load %arg10[%c0_51, %c0_52, %c0_53] : memref<4x512x128xf32, #tpu.memory_space<vmem>>, vector<1x512x128xf32>
    %123 = vector.shape_cast %122 : vector<1x512x128xf32> to vector<512x128xf32>
    %cst_54 = arith.constant dense<0.000000e+00> : vector<16x128xf32>
    %124 = tpu.matmul %121, %123, %cst_54 {dimension_numbers = #tpu.dot_dimension_numbers<[1], [0], [0], [1], [0, 0, 1, 1], [], []>} : vector<16x512xf32>, vector<512x128xf32>, vector<16x128xf32> -> vector<16x128xf32>
    %c0_55 = arith.constant 0 : index
    %c0_56 = arith.constant 0 : index
    %c0_57 = arith.constant 0 : index
    %125 = vector.load %arg11[%c0_55, %c0_56, %c0_57] : memref<4x1x128xf32, #tpu.memory_space<vmem>>, vector<1x1x128xf32>
    %126 = vector.shape_cast %125 : vector<1x1x128xf32> to vector<1x128xf32>
    %127 = vector.broadcast %126 : vector<1x128xf32> to vector<16x128xf32>
    %128 = arith.addf %124, %127 : vector<16x128xf32>
    %129 = arith.addf %112, %128 : vector<16x128xf32>
    %c0_58 = arith.constant 0 : index
    %c0_59 = arith.constant 0 : index
    %c0_60 = arith.constant 0 : index
    %130 = vector.load %arg12[%c0_58, %c0_59, %c0_60] : memref<4x1x128xf32, #tpu.memory_space<vmem>>, vector<1x1x128xf32>
    %131 = vector.shape_cast %130 : vector<1x1x128xf32> to vector<1x128xf32>
    %c0_61 = arith.constant 0 : index
    %c0_62 = arith.constant 0 : index
    %c0_63 = arith.constant 0 : index
    %132 = vector.load %arg13[%c0_61, %c0_62, %c0_63] : memref<4x1x128xf32, #tpu.memory_space<vmem>>, vector<1x1x128xf32>
    %133 = vector.shape_cast %132 : vector<1x1x128xf32> to vector<1x128xf32>
    %cst_64 = arith.constant dense<0.000000e+00> : vector<16xf32>
    %134 = vector.multi_reduction <add>, %129, %cst_64 [1] : vector<16x128xf32> to vector<16xf32>
    %135 = vector.shape_cast %134 : vector<16xf32> to vector<16x1xf32>
    %cst_65 = arith.constant 1.280000e+02 : f32
    %136 = vector.broadcast %cst_65 : f32 to vector<16x1xf32>
    %137 = arith.divf %135, %136 : vector<16x1xf32>
    %138 = vector.broadcast %137 : vector<16x1xf32> to vector<16x128xf32>
    %139 = arith.subf %129, %138 : vector<16x128xf32>
    %140 = arith.mulf %139, %139 : vector<16x128xf32>
    %cst_66 = arith.constant dense<0.000000e+00> : vector<16xf32>
    %141 = vector.multi_reduction <add>, %140, %cst_66 [1] : vector<16x128xf32> to vector<16xf32>
    %142 = vector.shape_cast %141 : vector<16xf32> to vector<16x1xf32>
    %cst_67 = arith.constant 1.280000e+02 : f32
    %143 = vector.broadcast %cst_67 : f32 to vector<16x1xf32>
    %144 = arith.divf %142, %143 : vector<16x1xf32>
    %145 = vector.broadcast %137 : vector<16x1xf32> to vector<16x128xf32>
    %146 = arith.subf %129, %145 : vector<16x128xf32>
    %cst_68 = arith.constant 9.99999974E-6 : f32
    %147 = vector.broadcast %cst_68 : f32 to vector<16x1xf32>
    %148 = arith.addf %144, %147 : vector<16x1xf32>
    %149 = math.rsqrt %148 : vector<16x1xf32>
    %150 = vector.broadcast %149 : vector<16x1xf32> to vector<16x128xf32>
    %151 = arith.mulf %146, %150 : vector<16x128xf32>
    %152 = vector.broadcast %131 : vector<1x128xf32> to vector<16x128xf32>
    %153 = arith.mulf %151, %152 : vector<16x128xf32>
    %154 = vector.broadcast %133 : vector<1x128xf32> to vector<16x128xf32>
    %155 = arith.addf %153, %154 : vector<16x128xf32>
    %c1 = arith.constant 1 : index
    %c0_69 = arith.constant 0 : index
    %c0_70 = arith.constant 0 : index
    %156 = vector.load %arg2[%c1, %c0_69, %c0_70] : memref<4x128x384xf32, #tpu.memory_space<vmem>>, vector<1x128x384xf32>
    %157 = vector.shape_cast %156 : vector<1x128x384xf32> to vector<128x384xf32>
    %cst_71 = arith.constant dense<0.000000e+00> : vector<16x384xf32>
    %158 = tpu.matmul %155, %157, %cst_71 {dimension_numbers = #tpu.dot_dimension_numbers<[1], [0], [0], [1], [0, 0, 1, 1], [], []>} : vector<16x128xf32>, vector<128x384xf32>, vector<16x384xf32> -> vector<16x384xf32>
    %c1_72 = arith.constant 1 : index
    %c0_73 = arith.constant 0 : index
    %c0_74 = arith.constant 0 : index
    %159 = vector.load %arg3[%c1_72, %c0_73, %c0_74] : memref<4x1x384xf32, #tpu.memory_space<vmem>>, vector<1x1x384xf32>
    %160 = vector.shape_cast %159 : vector<1x1x384xf32> to vector<1x384xf32>
    %161 = vector.broadcast %160 : vector<1x384xf32> to vector<16x384xf32>
    %162 = arith.addf %158, %161 : vector<16x384xf32>
    %163 = vector.extract_strided_slice %162 {offsets = [0, 0], sizes = [16, 128], strides = [1, 1]} : vector<16x384xf32> to vector<16x128xf32>
    %cst_75 = arith.constant 0.176776692 : f32
    %164 = vector.broadcast %cst_75 : f32 to vector<16x128xf32>
    %165 = arith.mulf %163, %164 : vector<16x128xf32>
    %166 = vector.shape_cast %165 : vector<16x128xf32> to vector<2x8x128xf32>
    %167 = vector.extract_strided_slice %162 {offsets = [0, 128], sizes = [16, 128], strides = [1, 1]} : vector<16x384xf32> to vector<16x128xf32>
    %168 = vector.shape_cast %167 : vector<16x128xf32> to vector<2x8x128xf32>
    %169 = vector.extract_strided_slice %162 {offsets = [0, 256], sizes = [16, 128], strides = [1, 1]} : vector<16x384xf32> to vector<16x128xf32>
    %170 = vector.shape_cast %169 : vector<16x128xf32> to vector<2x8x128xf32>
    %171 = vector.extract_strided_slice %166 {offsets = [0, 0, 0], sizes = [2, 8, 32], strides = [1, 1, 1]} : vector<2x8x128xf32> to vector<2x8x32xf32>
    %172 = vector.extract_strided_slice %168 {offsets = [0, 0, 0], sizes = [2, 8, 32], strides = [1, 1, 1]} : vector<2x8x128xf32> to vector<2x8x32xf32>
    %173 = vector.extract_strided_slice %170 {offsets = [0, 0, 0], sizes = [2, 8, 32], strides = [1, 1, 1]} : vector<2x8x128xf32> to vector<2x8x32xf32>
    "tpu.trace_start"() <{level = 10 : i32, message = "bqd,bkd->bqk"}> : () -> ()
    %cst_76 = arith.constant dense<0.000000e+00> : vector<2x8x8xf32>
    %174 = tpu.matmul %171, %172, %cst_76 {dimension_numbers = #tpu.dot_dimension_numbers<[2], [2], [1], [1], [0, 0, 0, 1, 1, 1], [0], [0]>} : vector<2x8x32xf32>, vector<2x8x32xf32>, vector<2x8x8xf32> -> vector<2x8x8xf32>
    "tpu.trace_stop"() : () -> ()
    %cst_77 = arith.constant dense<0xFF800000> : vector<2x8xf32>
    %175 = vector.multi_reduction <maximumf>, %174, %cst_77 [2] : vector<2x8x8xf32> to vector<2x8xf32>
    %176 = vector.shape_cast %175 : vector<2x8xf32> to vector<2x8x1xf32>
    %177 = vector.broadcast %176 : vector<2x8x1xf32> to vector<2x8x8xf32>
    %178 = arith.subf %174, %177 : vector<2x8x8xf32>
    %179 = math.exp %178 : vector<2x8x8xf32>
    %cst_78 = arith.constant dense<0.000000e+00> : vector<2x8xf32>
    %180 = vector.multi_reduction <add>, %179, %cst_78 [2] : vector<2x8x8xf32> to vector<2x8xf32>
    %181 = vector.shape_cast %180 : vector<2x8xf32> to vector<2x8x1xf32>
    %182 = tpu.reciprocal %181 {approx = true} : vector<2x8x1xf32> -> vector<2x8x1xf32>
    %183 = vector.broadcast %182 : vector<2x8x1xf32> to vector<2x8x8xf32>
    %184 = arith.mulf %179, %183 : vector<2x8x8xf32>
    "tpu.trace_start"() <{level = 10 : i32, message = "bqk,bkd->bqd"}> : () -> ()
    %cst_79 = arith.constant dense<0.000000e+00> : vector<2x8x32xf32>
    %185 = tpu.matmul %184, %173, %cst_79 {dimension_numbers = #tpu.dot_dimension_numbers<[2], [1], [1], [2], [0, 0, 0, 1, 1, 2], [0], [0]>} : vector<2x8x8xf32>, vector<2x8x32xf32>, vector<2x8x32xf32> -> vector<2x8x32xf32>
    "tpu.trace_stop"() : () -> ()
    %186 = vector.extract_strided_slice %166 {offsets = [0, 0, 32], sizes = [2, 8, 32], strides = [1, 1, 1]} : vector<2x8x128xf32> to vector<2x8x32xf32>
    %187 = vector.extract_strided_slice %168 {offsets = [0, 0, 32], sizes = [2, 8, 32], strides = [1, 1, 1]} : vector<2x8x128xf32> to vector<2x8x32xf32>
    %188 = vector.extract_strided_slice %170 {offsets = [0, 0, 32], sizes = [2, 8, 32], strides = [1, 1, 1]} : vector<2x8x128xf32> to vector<2x8x32xf32>
    "tpu.trace_start"() <{level = 10 : i32, message = "bqd,bkd->bqk"}> : () -> ()
    %cst_80 = arith.constant dense<0.000000e+00> : vector<2x8x8xf32>
    %189 = tpu.matmul %186, %187, %cst_80 {dimension_numbers = #tpu.dot_dimension_numbers<[2], [2], [1], [1], [0, 0, 0, 1, 1, 1], [0], [0]>} : vector<2x8x32xf32>, vector<2x8x32xf32>, vector<2x8x8xf32> -> vector<2x8x8xf32>
    "tpu.trace_stop"() : () -> ()
    %cst_81 = arith.constant dense<0xFF800000> : vector<2x8xf32>
    %190 = vector.multi_reduction <maximumf>, %189, %cst_81 [2] : vector<2x8x8xf32> to vector<2x8xf32>
    %191 = vector.shape_cast %190 : vector<2x8xf32> to vector<2x8x1xf32>
    %192 = vector.broadcast %191 : vector<2x8x1xf32> to vector<2x8x8xf32>
    %193 = arith.subf %189, %192 : vector<2x8x8xf32>
    %194 = math.exp %193 : vector<2x8x8xf32>
    %cst_82 = arith.constant dense<0.000000e+00> : vector<2x8xf32>
    %195 = vector.multi_reduction <add>, %194, %cst_82 [2] : vector<2x8x8xf32> to vector<2x8xf32>
    %196 = vector.shape_cast %195 : vector<2x8xf32> to vector<2x8x1xf32>
    %197 = tpu.reciprocal %196 {approx = true} : vector<2x8x1xf32> -> vector<2x8x1xf32>
    %198 = vector.broadcast %197 : vector<2x8x1xf32> to vector<2x8x8xf32>
    %199 = arith.mulf %194, %198 : vector<2x8x8xf32>
    "tpu.trace_start"() <{level = 10 : i32, message = "bqk,bkd->bqd"}> : () -> ()
    %cst_83 = arith.constant dense<0.000000e+00> : vector<2x8x32xf32>
    %200 = tpu.matmul %199, %188, %cst_83 {dimension_numbers = #tpu.dot_dimension_numbers<[2], [1], [1], [2], [0, 0, 0, 1, 1, 2], [0], [0]>} : vector<2x8x8xf32>, vector<2x8x32xf32>, vector<2x8x32xf32> -> vector<2x8x32xf32>
    "tpu.trace_stop"() : () -> ()
    %201 = vector.extract_strided_slice %166 {offsets = [0, 0, 64], sizes = [2, 8, 32], strides = [1, 1, 1]} : vector<2x8x128xf32> to vector<2x8x32xf32>
    %202 = vector.extract_strided_slice %168 {offsets = [0, 0, 64], sizes = [2, 8, 32], strides = [1, 1, 1]} : vector<2x8x128xf32> to vector<2x8x32xf32>
    %203 = vector.extract_strided_slice %170 {offsets = [0, 0, 64], sizes = [2, 8, 32], strides = [1, 1, 1]} : vector<2x8x128xf32> to vector<2x8x32xf32>
    "tpu.trace_start"() <{level = 10 : i32, message = "bqd,bkd->bqk"}> : () -> ()
    %cst_84 = arith.constant dense<0.000000e+00> : vector<2x8x8xf32>
    %204 = tpu.matmul %201, %202, %cst_84 {dimension_numbers = #tpu.dot_dimension_numbers<[2], [2], [1], [1], [0, 0, 0, 1, 1, 1], [0], [0]>} : vector<2x8x32xf32>, vector<2x8x32xf32>, vector<2x8x8xf32> -> vector<2x8x8xf32>
    "tpu.trace_stop"() : () -> ()
    %cst_85 = arith.constant dense<0xFF800000> : vector<2x8xf32>
    %205 = vector.multi_reduction <maximumf>, %204, %cst_85 [2] : vector<2x8x8xf32> to vector<2x8xf32>
    %206 = vector.shape_cast %205 : vector<2x8xf32> to vector<2x8x1xf32>
    %207 = vector.broadcast %206 : vector<2x8x1xf32> to vector<2x8x8xf32>
    %208 = arith.subf %204, %207 : vector<2x8x8xf32>
    %209 = math.exp %208 : vector<2x8x8xf32>
    %cst_86 = arith.constant dense<0.000000e+00> : vector<2x8xf32>
    %210 = vector.multi_reduction <add>, %209, %cst_86 [2] : vector<2x8x8xf32> to vector<2x8xf32>
    %211 = vector.shape_cast %210 : vector<2x8xf32> to vector<2x8x1xf32>
    %212 = tpu.reciprocal %211 {approx = true} : vector<2x8x1xf32> -> vector<2x8x1xf32>
    %213 = vector.broadcast %212 : vector<2x8x1xf32> to vector<2x8x8xf32>
    %214 = arith.mulf %209, %213 : vector<2x8x8xf32>
    "tpu.trace_start"() <{level = 10 : i32, message = "bqk,bkd->bqd"}> : () -> ()
    %cst_87 = arith.constant dense<0.000000e+00> : vector<2x8x32xf32>
    %215 = tpu.matmul %214, %203, %cst_87 {dimension_numbers = #tpu.dot_dimension_numbers<[2], [1], [1], [2], [0, 0, 0, 1, 1, 2], [0], [0]>} : vector<2x8x8xf32>, vector<2x8x32xf32>, vector<2x8x32xf32> -> vector<2x8x32xf32>
    "tpu.trace_stop"() : () -> ()
    %216 = vector.extract_strided_slice %166 {offsets = [0, 0, 96], sizes = [2, 8, 32], strides = [1, 1, 1]} : vector<2x8x128xf32> to vector<2x8x32xf32>
    %217 = vector.extract_strided_slice %168 {offsets = [0, 0, 96], sizes = [2, 8, 32], strides = [1, 1, 1]} : vector<2x8x128xf32> to vector<2x8x32xf32>
    %218 = vector.extract_strided_slice %170 {offsets = [0, 0, 96], sizes = [2, 8, 32], strides = [1, 1, 1]} : vector<2x8x128xf32> to vector<2x8x32xf32>
    "tpu.trace_start"() <{level = 10 : i32, message = "bqd,bkd->bqk"}> : () -> ()
    %cst_88 = arith.constant dense<0.000000e+00> : vector<2x8x8xf32>
    %219 = tpu.matmul %216, %217, %cst_88 {dimension_numbers = #tpu.dot_dimension_numbers<[2], [2], [1], [1], [0, 0, 0, 1, 1, 1], [0], [0]>} : vector<2x8x32xf32>, vector<2x8x32xf32>, vector<2x8x8xf32> -> vector<2x8x8xf32>
    "tpu.trace_stop"() : () -> ()
    %cst_89 = arith.constant dense<0xFF800000> : vector<2x8xf32>
    %220 = vector.multi_reduction <maximumf>, %219, %cst_89 [2] : vector<2x8x8xf32> to vector<2x8xf32>
    %221 = vector.shape_cast %220 : vector<2x8xf32> to vector<2x8x1xf32>
    %222 = vector.broadcast %221 : vector<2x8x1xf32> to vector<2x8x8xf32>
    %223 = arith.subf %219, %222 : vector<2x8x8xf32>
    %224 = math.exp %223 : vector<2x8x8xf32>
    %cst_90 = arith.constant dense<0.000000e+00> : vector<2x8xf32>
    %225 = vector.multi_reduction <add>, %224, %cst_90 [2] : vector<2x8x8xf32> to vector<2x8xf32>
    %226 = vector.shape_cast %225 : vector<2x8xf32> to vector<2x8x1xf32>
    %227 = tpu.reciprocal %226 {approx = true} : vector<2x8x1xf32> -> vector<2x8x1xf32>
    %228 = vector.broadcast %227 : vector<2x8x1xf32> to vector<2x8x8xf32>
    %229 = arith.mulf %224, %228 : vector<2x8x8xf32>
    "tpu.trace_start"() <{level = 10 : i32, message = "bqk,bkd->bqd"}> : () -> ()
    %cst_91 = arith.constant dense<0.000000e+00> : vector<2x8x32xf32>
    %230 = tpu.matmul %229, %218, %cst_91 {dimension_numbers = #tpu.dot_dimension_numbers<[2], [1], [1], [2], [0, 0, 0, 1, 1, 2], [0], [0]>} : vector<2x8x8xf32>, vector<2x8x32xf32>, vector<2x8x32xf32> -> vector<2x8x32xf32>
    "tpu.trace_stop"() : () -> ()
    %231 = tpu.concatenate %185, %200, %215, %230 in 2 : vector<2x8x32xf32>, vector<2x8x32xf32>, vector<2x8x32xf32>, vector<2x8x32xf32> -> vector<2x8x128xf32>
    %232 = vector.shape_cast %231 : vector<2x8x128xf32> to vector<16x128xf32>
    %c1_92 = arith.constant 1 : index
    %c0_93 = arith.constant 0 : index
    %c0_94 = arith.constant 0 : index
    %233 = vector.load %arg4[%c1_92, %c0_93, %c0_94] : memref<4x128x128xf32, #tpu.memory_space<vmem>>, vector<1x128x128xf32>
    %234 = vector.shape_cast %233 : vector<1x128x128xf32> to vector<128x128xf32>
    %cst_95 = arith.constant dense<0.000000e+00> : vector<16x128xf32>
    %235 = tpu.matmul %232, %234, %cst_95 {dimension_numbers = #tpu.dot_dimension_numbers<[1], [0], [0], [1], [0, 0, 1, 1], [], []>} : vector<16x128xf32>, vector<128x128xf32>, vector<16x128xf32> -> vector<16x128xf32>
    %c1_96 = arith.constant 1 : index
    %c0_97 = arith.constant 0 : index
    %c0_98 = arith.constant 0 : index
    %236 = vector.load %arg5[%c1_96, %c0_97, %c0_98] : memref<4x1x128xf32, #tpu.memory_space<vmem>>, vector<1x1x128xf32>
    %237 = vector.shape_cast %236 : vector<1x1x128xf32> to vector<1x128xf32>
    %238 = vector.broadcast %237 : vector<1x128xf32> to vector<16x128xf32>
    %239 = arith.addf %235, %238 : vector<16x128xf32>
    %240 = arith.addf %155, %239 : vector<16x128xf32>
    %c1_99 = arith.constant 1 : index
    %c0_100 = arith.constant 0 : index
    %c0_101 = arith.constant 0 : index
    %241 = vector.load %arg6[%c1_99, %c0_100, %c0_101] : memref<4x1x128xf32, #tpu.memory_space<vmem>>, vector<1x1x128xf32>
    %242 = vector.shape_cast %241 : vector<1x1x128xf32> to vector<1x128xf32>
    %c1_102 = arith.constant 1 : index
    %c0_103 = arith.constant 0 : index
    %c0_104 = arith.constant 0 : index
    %243 = vector.load %arg7[%c1_102, %c0_103, %c0_104] : memref<4x1x128xf32, #tpu.memory_space<vmem>>, vector<1x1x128xf32>
    %244 = vector.shape_cast %243 : vector<1x1x128xf32> to vector<1x128xf32>
    %cst_105 = arith.constant dense<0.000000e+00> : vector<16xf32>
    %245 = vector.multi_reduction <add>, %240, %cst_105 [1] : vector<16x128xf32> to vector<16xf32>
    %246 = vector.shape_cast %245 : vector<16xf32> to vector<16x1xf32>
    %cst_106 = arith.constant 1.280000e+02 : f32
    %247 = vector.broadcast %cst_106 : f32 to vector<16x1xf32>
    %248 = arith.divf %246, %247 : vector<16x1xf32>
    %249 = vector.broadcast %248 : vector<16x1xf32> to vector<16x128xf32>
    %250 = arith.subf %240, %249 : vector<16x128xf32>
    %251 = arith.mulf %250, %250 : vector<16x128xf32>
    %cst_107 = arith.constant dense<0.000000e+00> : vector<16xf32>
    %252 = vector.multi_reduction <add>, %251, %cst_107 [1] : vector<16x128xf32> to vector<16xf32>
    %253 = vector.shape_cast %252 : vector<16xf32> to vector<16x1xf32>
    %cst_108 = arith.constant 1.280000e+02 : f32
    %254 = vector.broadcast %cst_108 : f32 to vector<16x1xf32>
    %255 = arith.divf %253, %254 : vector<16x1xf32>
    %256 = vector.broadcast %248 : vector<16x1xf32> to vector<16x128xf32>
    %257 = arith.subf %240, %256 : vector<16x128xf32>
    %cst_109 = arith.constant 9.99999974E-6 : f32
    %258 = vector.broadcast %cst_109 : f32 to vector<16x1xf32>
    %259 = arith.addf %255, %258 : vector<16x1xf32>
    %260 = math.rsqrt %259 : vector<16x1xf32>
    %261 = vector.broadcast %260 : vector<16x1xf32> to vector<16x128xf32>
    %262 = arith.mulf %257, %261 : vector<16x128xf32>
    %263 = vector.broadcast %242 : vector<1x128xf32> to vector<16x128xf32>
    %264 = arith.mulf %262, %263 : vector<16x128xf32>
    %265 = vector.broadcast %244 : vector<1x128xf32> to vector<16x128xf32>
    %266 = arith.addf %264, %265 : vector<16x128xf32>
    %c1_110 = arith.constant 1 : index
    %c0_111 = arith.constant 0 : index
    %c0_112 = arith.constant 0 : index
    %267 = vector.load %arg8[%c1_110, %c0_111, %c0_112] : memref<4x128x512xf32, #tpu.memory_space<vmem>>, vector<1x128x512xf32>
    %268 = vector.shape_cast %267 : vector<1x128x512xf32> to vector<128x512xf32>
    %cst_113 = arith.constant dense<0.000000e+00> : vector<16x512xf32>
    %269 = tpu.matmul %266, %268, %cst_113 {dimension_numbers = #tpu.dot_dimension_numbers<[1], [0], [0], [1], [0, 0, 1, 1], [], []>} : vector<16x128xf32>, vector<128x512xf32>, vector<16x512xf32> -> vector<16x512xf32>
    %c1_114 = arith.constant 1 : index
    %c0_115 = arith.constant 0 : index
    %c0_116 = arith.constant 0 : index
    %270 = vector.load %arg9[%c1_114, %c0_115, %c0_116] : memref<4x1x512xf32, #tpu.memory_space<vmem>>, vector<1x1x512xf32>
    %271 = vector.shape_cast %270 : vector<1x1x512xf32> to vector<1x512xf32>
    %272 = vector.broadcast %271 : vector<1x512xf32> to vector<16x512xf32>
    %273 = arith.addf %269, %272 : vector<16x512xf32>
    %cst_117 = arith.constant 0.000000e+00 : f32
    %274 = vector.broadcast %cst_117 : f32 to vector<16x512xf32>
    %275 = arith.maximumf %273, %274 : vector<16x512xf32>
    %c1_118 = arith.constant 1 : index
    %c0_119 = arith.constant 0 : index
    %c0_120 = arith.constant 0 : index
    %276 = vector.load %arg10[%c1_118, %c0_119, %c0_120] : memref<4x512x128xf32, #tpu.memory_space<vmem>>, vector<1x512x128xf32>
    %277 = vector.shape_cast %276 : vector<1x512x128xf32> to vector<512x128xf32>
    %cst_121 = arith.constant dense<0.000000e+00> : vector<16x128xf32>
    %278 = tpu.matmul %275, %277, %cst_121 {dimension_numbers = #tpu.dot_dimension_numbers<[1], [0], [0], [1], [0, 0, 1, 1], [], []>} : vector<16x512xf32>, vector<512x128xf32>, vector<16x128xf32> -> vector<16x128xf32>
    %c1_122 = arith.constant 1 : index
    %c0_123 = arith.constant 0 : index
    %c0_124 = arith.constant 0 : index
    %279 = vector.load %arg11[%c1_122, %c0_123, %c0_124] : memref<4x1x128xf32, #tpu.memory_space<vmem>>, vector<1x1x128xf32>
    %280 = vector.shape_cast %279 : vector<1x1x128xf32> to vector<1x128xf32>
    %281 = vector.broadcast %280 : vector<1x128xf32> to vector<16x128xf32>
    %282 = arith.addf %278, %281 : vector<16x128xf32>
    %283 = arith.addf %266, %282 : vector<16x128xf32>
    %c1_125 = arith.constant 1 : index
    %c0_126 = arith.constant 0 : index
    %c0_127 = arith.constant 0 : index
    %284 = vector.load %arg12[%c1_125, %c0_126, %c0_127] : memref<4x1x128xf32, #tpu.memory_space<vmem>>, vector<1x1x128xf32>
    %285 = vector.shape_cast %284 : vector<1x1x128xf32> to vector<1x128xf32>
    %c1_128 = arith.constant 1 : index
    %c0_129 = arith.constant 0 : index
    %c0_130 = arith.constant 0 : index
    %286 = vector.load %arg13[%c1_128, %c0_129, %c0_130] : memref<4x1x128xf32, #tpu.memory_space<vmem>>, vector<1x1x128xf32>
    %287 = vector.shape_cast %286 : vector<1x1x128xf32> to vector<1x128xf32>
    %cst_131 = arith.constant dense<0.000000e+00> : vector<16xf32>
    %288 = vector.multi_reduction <add>, %283, %cst_131 [1] : vector<16x128xf32> to vector<16xf32>
    %289 = vector.shape_cast %288 : vector<16xf32> to vector<16x1xf32>
    %cst_132 = arith.constant 1.280000e+02 : f32
    %290 = vector.broadcast %cst_132 : f32 to vector<16x1xf32>
    %291 = arith.divf %289, %290 : vector<16x1xf32>
    %292 = vector.broadcast %291 : vector<16x1xf32> to vector<16x128xf32>
    %293 = arith.subf %283, %292 : vector<16x128xf32>
    %294 = arith.mulf %293, %293 : vector<16x128xf32>
    %cst_133 = arith.constant dense<0.000000e+00> : vector<16xf32>
    %295 = vector.multi_reduction <add>, %294, %cst_133 [1] : vector<16x128xf32> to vector<16xf32>
    %296 = vector.shape_cast %295 : vector<16xf32> to vector<16x1xf32>
    %cst_134 = arith.constant 1.280000e+02 : f32
    %297 = vector.broadcast %cst_134 : f32 to vector<16x1xf32>
    %298 = arith.divf %296, %297 : vector<16x1xf32>
    %299 = vector.broadcast %291 : vector<16x1xf32> to vector<16x128xf32>
    %300 = arith.subf %283, %299 : vector<16x128xf32>
    %cst_135 = arith.constant 9.99999974E-6 : f32
    %301 = vector.broadcast %cst_135 : f32 to vector<16x1xf32>
    %302 = arith.addf %298, %301 : vector<16x1xf32>
    %303 = math.rsqrt %302 : vector<16x1xf32>
    %304 = vector.broadcast %303 : vector<16x1xf32> to vector<16x128xf32>
    %305 = arith.mulf %300, %304 : vector<16x128xf32>
    %306 = vector.broadcast %285 : vector<1x128xf32> to vector<16x128xf32>
    %307 = arith.mulf %305, %306 : vector<16x128xf32>
    %308 = vector.broadcast %287 : vector<1x128xf32> to vector<16x128xf32>
    %309 = arith.addf %307, %308 : vector<16x128xf32>
    %c2 = arith.constant 2 : index
    %c0_136 = arith.constant 0 : index
    %c0_137 = arith.constant 0 : index
    %310 = vector.load %arg2[%c2, %c0_136, %c0_137] : memref<4x128x384xf32, #tpu.memory_space<vmem>>, vector<1x128x384xf32>
    %311 = vector.shape_cast %310 : vector<1x128x384xf32> to vector<128x384xf32>
    %cst_138 = arith.constant dense<0.000000e+00> : vector<16x384xf32>
    %312 = tpu.matmul %309, %311, %cst_138 {dimension_numbers = #tpu.dot_dimension_numbers<[1], [0], [0], [1], [0, 0, 1, 1], [], []>} : vector<16x128xf32>, vector<128x384xf32>, vector<16x384xf32> -> vector<16x384xf32>
    %c2_139 = arith.constant 2 : index
    %c0_140 = arith.constant 0 : index
    %c0_141 = arith.constant 0 : index
    %313 = vector.load %arg3[%c2_139, %c0_140, %c0_141] : memref<4x1x384xf32, #tpu.memory_space<vmem>>, vector<1x1x384xf32>
    %314 = vector.shape_cast %313 : vector<1x1x384xf32> to vector<1x384xf32>
    %315 = vector.broadcast %314 : vector<1x384xf32> to vector<16x384xf32>
    %316 = arith.addf %312, %315 : vector<16x384xf32>
    %317 = vector.extract_strided_slice %316 {offsets = [0, 0], sizes = [16, 128], strides = [1, 1]} : vector<16x384xf32> to vector<16x128xf32>
    %cst_142 = arith.constant 0.176776692 : f32
    %318 = vector.broadcast %cst_142 : f32 to vector<16x128xf32>
    %319 = arith.mulf %317, %318 : vector<16x128xf32>
    %320 = vector.shape_cast %319 : vector<16x128xf32> to vector<2x8x128xf32>
    %321 = vector.extract_strided_slice %316 {offsets = [0, 128], sizes = [16, 128], strides = [1, 1]} : vector<16x384xf32> to vector<16x128xf32>
    %322 = vector.shape_cast %321 : vector<16x128xf32> to vector<2x8x128xf32>
    %323 = vector.extract_strided_slice %316 {offsets = [0, 256], sizes = [16, 128], strides = [1, 1]} : vector<16x384xf32> to vector<16x128xf32>
    %324 = vector.shape_cast %323 : vector<16x128xf32> to vector<2x8x128xf32>
    %325 = vector.extract_strided_slice %320 {offsets = [0, 0, 0], sizes = [2, 8, 32], strides = [1, 1, 1]} : vector<2x8x128xf32> to vector<2x8x32xf32>
    %326 = vector.extract_strided_slice %322 {offsets = [0, 0, 0], sizes = [2, 8, 32], strides = [1, 1, 1]} : vector<2x8x128xf32> to vector<2x8x32xf32>
    %327 = vector.extract_strided_slice %324 {offsets = [0, 0, 0], sizes = [2, 8, 32], strides = [1, 1, 1]} : vector<2x8x128xf32> to vector<2x8x32xf32>
    "tpu.trace_start"() <{level = 10 : i32, message = "bqd,bkd->bqk"}> : () -> ()
    %cst_143 = arith.constant dense<0.000000e+00> : vector<2x8x8xf32>
    %328 = tpu.matmul %325, %326, %cst_143 {dimension_numbers = #tpu.dot_dimension_numbers<[2], [2], [1], [1], [0, 0, 0, 1, 1, 1], [0], [0]>} : vector<2x8x32xf32>, vector<2x8x32xf32>, vector<2x8x8xf32> -> vector<2x8x8xf32>
    "tpu.trace_stop"() : () -> ()
    %cst_144 = arith.constant dense<0xFF800000> : vector<2x8xf32>
    %329 = vector.multi_reduction <maximumf>, %328, %cst_144 [2] : vector<2x8x8xf32> to vector<2x8xf32>
    %330 = vector.shape_cast %329 : vector<2x8xf32> to vector<2x8x1xf32>
    %331 = vector.broadcast %330 : vector<2x8x1xf32> to vector<2x8x8xf32>
    %332 = arith.subf %328, %331 : vector<2x8x8xf32>
    %333 = math.exp %332 : vector<2x8x8xf32>
    %cst_145 = arith.constant dense<0.000000e+00> : vector<2x8xf32>
    %334 = vector.multi_reduction <add>, %333, %cst_145 [2] : vector<2x8x8xf32> to vector<2x8xf32>
    %335 = vector.shape_cast %334 : vector<2x8xf32> to vector<2x8x1xf32>
    %336 = tpu.reciprocal %335 {approx = true} : vector<2x8x1xf32> -> vector<2x8x1xf32>
    %337 = vector.broadcast %336 : vector<2x8x1xf32> to vector<2x8x8xf32>
    %338 = arith.mulf %333, %337 : vector<2x8x8xf32>
    "tpu.trace_start"() <{level = 10 : i32, message = "bqk,bkd->bqd"}> : () -> ()
    %cst_146 = arith.constant dense<0.000000e+00> : vector<2x8x32xf32>
    %339 = tpu.matmul %338, %327, %cst_146 {dimension_numbers = #tpu.dot_dimension_numbers<[2], [1], [1], [2], [0, 0, 0, 1, 1, 2], [0], [0]>} : vector<2x8x8xf32>, vector<2x8x32xf32>, vector<2x8x32xf32> -> vector<2x8x32xf32>
    "tpu.trace_stop"() : () -> ()
    %340 = vector.extract_strided_slice %320 {offsets = [0, 0, 32], sizes = [2, 8, 32], strides = [1, 1, 1]} : vector<2x8x128xf32> to vector<2x8x32xf32>
    %341 = vector.extract_strided_slice %322 {offsets = [0, 0, 32], sizes = [2, 8, 32], strides = [1, 1, 1]} : vector<2x8x128xf32> to vector<2x8x32xf32>
    %342 = vector.extract_strided_slice %324 {offsets = [0, 0, 32], sizes = [2, 8, 32], strides = [1, 1, 1]} : vector<2x8x128xf32> to vector<2x8x32xf32>
    "tpu.trace_start"() <{level = 10 : i32, message = "bqd,bkd->bqk"}> : () -> ()
    %cst_147 = arith.constant dense<0.000000e+00> : vector<2x8x8xf32>
    %343 = tpu.matmul %340, %341, %cst_147 {dimension_numbers = #tpu.dot_dimension_numbers<[2], [2], [1], [1], [0, 0, 0, 1, 1, 1], [0], [0]>} : vector<2x8x32xf32>, vector<2x8x32xf32>, vector<2x8x8xf32> -> vector<2x8x8xf32>
    "tpu.trace_stop"() : () -> ()
    %cst_148 = arith.constant dense<0xFF800000> : vector<2x8xf32>
    %344 = vector.multi_reduction <maximumf>, %343, %cst_148 [2] : vector<2x8x8xf32> to vector<2x8xf32>
    %345 = vector.shape_cast %344 : vector<2x8xf32> to vector<2x8x1xf32>
    %346 = vector.broadcast %345 : vector<2x8x1xf32> to vector<2x8x8xf32>
    %347 = arith.subf %343, %346 : vector<2x8x8xf32>
    %348 = math.exp %347 : vector<2x8x8xf32>
    %cst_149 = arith.constant dense<0.000000e+00> : vector<2x8xf32>
    %349 = vector.multi_reduction <add>, %348, %cst_149 [2] : vector<2x8x8xf32> to vector<2x8xf32>
    %350 = vector.shape_cast %349 : vector<2x8xf32> to vector<2x8x1xf32>
    %351 = tpu.reciprocal %350 {approx = true} : vector<2x8x1xf32> -> vector<2x8x1xf32>
    %352 = vector.broadcast %351 : vector<2x8x1xf32> to vector<2x8x8xf32>
    %353 = arith.mulf %348, %352 : vector<2x8x8xf32>
    "tpu.trace_start"() <{level = 10 : i32, message = "bqk,bkd->bqd"}> : () -> ()
    %cst_150 = arith.constant dense<0.000000e+00> : vector<2x8x32xf32>
    %354 = tpu.matmul %353, %342, %cst_150 {dimension_numbers = #tpu.dot_dimension_numbers<[2], [1], [1], [2], [0, 0, 0, 1, 1, 2], [0], [0]>} : vector<2x8x8xf32>, vector<2x8x32xf32>, vector<2x8x32xf32> -> vector<2x8x32xf32>
    "tpu.trace_stop"() : () -> ()
    %355 = vector.extract_strided_slice %320 {offsets = [0, 0, 64], sizes = [2, 8, 32], strides = [1, 1, 1]} : vector<2x8x128xf32> to vector<2x8x32xf32>
    %356 = vector.extract_strided_slice %322 {offsets = [0, 0, 64], sizes = [2, 8, 32], strides = [1, 1, 1]} : vector<2x8x128xf32> to vector<2x8x32xf32>
    %357 = vector.extract_strided_slice %324 {offsets = [0, 0, 64], sizes = [2, 8, 32], strides = [1, 1, 1]} : vector<2x8x128xf32> to vector<2x8x32xf32>
    "tpu.trace_start"() <{level = 10 : i32, message = "bqd,bkd->bqk"}> : () -> ()
    %cst_151 = arith.constant dense<0.000000e+00> : vector<2x8x8xf32>
    %358 = tpu.matmul %355, %356, %cst_151 {dimension_numbers = #tpu.dot_dimension_numbers<[2], [2], [1], [1], [0, 0, 0, 1, 1, 1], [0], [0]>} : vector<2x8x32xf32>, vector<2x8x32xf32>, vector<2x8x8xf32> -> vector<2x8x8xf32>
    "tpu.trace_stop"() : () -> ()
    %cst_152 = arith.constant dense<0xFF800000> : vector<2x8xf32>
    %359 = vector.multi_reduction <maximumf>, %358, %cst_152 [2] : vector<2x8x8xf32> to vector<2x8xf32>
    %360 = vector.shape_cast %359 : vector<2x8xf32> to vector<2x8x1xf32>
    %361 = vector.broadcast %360 : vector<2x8x1xf32> to vector<2x8x8xf32>
    %362 = arith.subf %358, %361 : vector<2x8x8xf32>
    %363 = math.exp %362 : vector<2x8x8xf32>
    %cst_153 = arith.constant dense<0.000000e+00> : vector<2x8xf32>
    %364 = vector.multi_reduction <add>, %363, %cst_153 [2] : vector<2x8x8xf32> to vector<2x8xf32>
    %365 = vector.shape_cast %364 : vector<2x8xf32> to vector<2x8x1xf32>
    %366 = tpu.reciprocal %365 {approx = true} : vector<2x8x1xf32> -> vector<2x8x1xf32>
    %367 = vector.broadcast %366 : vector<2x8x1xf32> to vector<2x8x8xf32>
    %368 = arith.mulf %363, %367 : vector<2x8x8xf32>
    "tpu.trace_start"() <{level = 10 : i32, message = "bqk,bkd->bqd"}> : () -> ()
    %cst_154 = arith.constant dense<0.000000e+00> : vector<2x8x32xf32>
    %369 = tpu.matmul %368, %357, %cst_154 {dimension_numbers = #tpu.dot_dimension_numbers<[2], [1], [1], [2], [0, 0, 0, 1, 1, 2], [0], [0]>} : vector<2x8x8xf32>, vector<2x8x32xf32>, vector<2x8x32xf32> -> vector<2x8x32xf32>
    "tpu.trace_stop"() : () -> ()
    %370 = vector.extract_strided_slice %320 {offsets = [0, 0, 96], sizes = [2, 8, 32], strides = [1, 1, 1]} : vector<2x8x128xf32> to vector<2x8x32xf32>
    %371 = vector.extract_strided_slice %322 {offsets = [0, 0, 96], sizes = [2, 8, 32], strides = [1, 1, 1]} : vector<2x8x128xf32> to vector<2x8x32xf32>
    %372 = vector.extract_strided_slice %324 {offsets = [0, 0, 96], sizes = [2, 8, 32], strides = [1, 1, 1]} : vector<2x8x128xf32> to vector<2x8x32xf32>
    "tpu.trace_start"() <{level = 10 : i32, message = "bqd,bkd->bqk"}> : () -> ()
    %cst_155 = arith.constant dense<0.000000e+00> : vector<2x8x8xf32>
    %373 = tpu.matmul %370, %371, %cst_155 {dimension_numbers = #tpu.dot_dimension_numbers<[2], [2], [1], [1], [0, 0, 0, 1, 1, 1], [0], [0]>} : vector<2x8x32xf32>, vector<2x8x32xf32>, vector<2x8x8xf32> -> vector<2x8x8xf32>
    "tpu.trace_stop"() : () -> ()
    %cst_156 = arith.constant dense<0xFF800000> : vector<2x8xf32>
    %374 = vector.multi_reduction <maximumf>, %373, %cst_156 [2] : vector<2x8x8xf32> to vector<2x8xf32>
    %375 = vector.shape_cast %374 : vector<2x8xf32> to vector<2x8x1xf32>
    %376 = vector.broadcast %375 : vector<2x8x1xf32> to vector<2x8x8xf32>
    %377 = arith.subf %373, %376 : vector<2x8x8xf32>
    %378 = math.exp %377 : vector<2x8x8xf32>
    %cst_157 = arith.constant dense<0.000000e+00> : vector<2x8xf32>
    %379 = vector.multi_reduction <add>, %378, %cst_157 [2] : vector<2x8x8xf32> to vector<2x8xf32>
    %380 = vector.shape_cast %379 : vector<2x8xf32> to vector<2x8x1xf32>
    %381 = tpu.reciprocal %380 {approx = true} : vector<2x8x1xf32> -> vector<2x8x1xf32>
    %382 = vector.broadcast %381 : vector<2x8x1xf32> to vector<2x8x8xf32>
    %383 = arith.mulf %378, %382 : vector<2x8x8xf32>
    "tpu.trace_start"() <{level = 10 : i32, message = "bqk,bkd->bqd"}> : () -> ()
    %cst_158 = arith.constant dense<0.000000e+00> : vector<2x8x32xf32>
    %384 = tpu.matmul %383, %372, %cst_158 {dimension_numbers = #tpu.dot_dimension_numbers<[2], [1], [1], [2], [0, 0, 0, 1, 1, 2], [0], [0]>} : vector<2x8x8xf32>, vector<2x8x32xf32>, vector<2x8x32xf32> -> vector<2x8x32xf32>
    "tpu.trace_stop"() : () -> ()
    %385 = tpu.concatenate %339, %354, %369, %384 in 2 : vector<2x8x32xf32>, vector<2x8x32xf32>, vector<2x8x32xf32>, vector<2x8x32xf32> -> vector<2x8x128xf32>
    %386 = vector.shape_cast %385 : vector<2x8x128xf32> to vector<16x128xf32>
    %c2_159 = arith.constant 2 : index
    %c0_160 = arith.constant 0 : index
    %c0_161 = arith.constant 0 : index
    %387 = vector.load %arg4[%c2_159, %c0_160, %c0_161] : memref<4x128x128xf32, #tpu.memory_space<vmem>>, vector<1x128x128xf32>
    %388 = vector.shape_cast %387 : vector<1x128x128xf32> to vector<128x128xf32>
    %cst_162 = arith.constant dense<0.000000e+00> : vector<16x128xf32>
    %389 = tpu.matmul %386, %388, %cst_162 {dimension_numbers = #tpu.dot_dimension_numbers<[1], [0], [0], [1], [0, 0, 1, 1], [], []>} : vector<16x128xf32>, vector<128x128xf32>, vector<16x128xf32> -> vector<16x128xf32>
    %c2_163 = arith.constant 2 : index
    %c0_164 = arith.constant 0 : index
    %c0_165 = arith.constant 0 : index
    %390 = vector.load %arg5[%c2_163, %c0_164, %c0_165] : memref<4x1x128xf32, #tpu.memory_space<vmem>>, vector<1x1x128xf32>
    %391 = vector.shape_cast %390 : vector<1x1x128xf32> to vector<1x128xf32>
    %392 = vector.broadcast %391 : vector<1x128xf32> to vector<16x128xf32>
    %393 = arith.addf %389, %392 : vector<16x128xf32>
    %394 = arith.addf %309, %393 : vector<16x128xf32>
    %c2_166 = arith.constant 2 : index
    %c0_167 = arith.constant 0 : index
    %c0_168 = arith.constant 0 : index
    %395 = vector.load %arg6[%c2_166, %c0_167, %c0_168] : memref<4x1x128xf32, #tpu.memory_space<vmem>>, vector<1x1x128xf32>
    %396 = vector.shape_cast %395 : vector<1x1x128xf32> to vector<1x128xf32>
    %c2_169 = arith.constant 2 : index
    %c0_170 = arith.constant 0 : index
    %c0_171 = arith.constant 0 : index
    %397 = vector.load %arg7[%c2_169, %c0_170, %c0_171] : memref<4x1x128xf32, #tpu.memory_space<vmem>>, vector<1x1x128xf32>
    %398 = vector.shape_cast %397 : vector<1x1x128xf32> to vector<1x128xf32>
    %cst_172 = arith.constant dense<0.000000e+00> : vector<16xf32>
    %399 = vector.multi_reduction <add>, %394, %cst_172 [1] : vector<16x128xf32> to vector<16xf32>
    %400 = vector.shape_cast %399 : vector<16xf32> to vector<16x1xf32>
    %cst_173 = arith.constant 1.280000e+02 : f32
    %401 = vector.broadcast %cst_173 : f32 to vector<16x1xf32>
    %402 = arith.divf %400, %401 : vector<16x1xf32>
    %403 = vector.broadcast %402 : vector<16x1xf32> to vector<16x128xf32>
    %404 = arith.subf %394, %403 : vector<16x128xf32>
    %405 = arith.mulf %404, %404 : vector<16x128xf32>
    %cst_174 = arith.constant dense<0.000000e+00> : vector<16xf32>
    %406 = vector.multi_reduction <add>, %405, %cst_174 [1] : vector<16x128xf32> to vector<16xf32>
    %407 = vector.shape_cast %406 : vector<16xf32> to vector<16x1xf32>
    %cst_175 = arith.constant 1.280000e+02 : f32
    %408 = vector.broadcast %cst_175 : f32 to vector<16x1xf32>
    %409 = arith.divf %407, %408 : vector<16x1xf32>
    %410 = vector.broadcast %402 : vector<16x1xf32> to vector<16x128xf32>
    %411 = arith.subf %394, %410 : vector<16x128xf32>
    %cst_176 = arith.constant 9.99999974E-6 : f32
    %412 = vector.broadcast %cst_176 : f32 to vector<16x1xf32>
    %413 = arith.addf %409, %412 : vector<16x1xf32>
    %414 = math.rsqrt %413 : vector<16x1xf32>
    %415 = vector.broadcast %414 : vector<16x1xf32> to vector<16x128xf32>
    %416 = arith.mulf %411, %415 : vector<16x128xf32>
    %417 = vector.broadcast %396 : vector<1x128xf32> to vector<16x128xf32>
    %418 = arith.mulf %416, %417 : vector<16x128xf32>
    %419 = vector.broadcast %398 : vector<1x128xf32> to vector<16x128xf32>
    %420 = arith.addf %418, %419 : vector<16x128xf32>
    %c2_177 = arith.constant 2 : index
    %c0_178 = arith.constant 0 : index
    %c0_179 = arith.constant 0 : index
    %421 = vector.load %arg8[%c2_177, %c0_178, %c0_179] : memref<4x128x512xf32, #tpu.memory_space<vmem>>, vector<1x128x512xf32>
    %422 = vector.shape_cast %421 : vector<1x128x512xf32> to vector<128x512xf32>
    %cst_180 = arith.constant dense<0.000000e+00> : vector<16x512xf32>
    %423 = tpu.matmul %420, %422, %cst_180 {dimension_numbers = #tpu.dot_dimension_numbers<[1], [0], [0], [1], [0, 0, 1, 1], [], []>} : vector<16x128xf32>, vector<128x512xf32>, vector<16x512xf32> -> vector<16x512xf32>
    %c2_181 = arith.constant 2 : index
    %c0_182 = arith.constant 0 : index
    %c0_183 = arith.constant 0 : index
    %424 = vector.load %arg9[%c2_181, %c0_182, %c0_183] : memref<4x1x512xf32, #tpu.memory_space<vmem>>, vector<1x1x512xf32>
    %425 = vector.shape_cast %424 : vector<1x1x512xf32> to vector<1x512xf32>
    %426 = vector.broadcast %425 : vector<1x512xf32> to vector<16x512xf32>
    %427 = arith.addf %423, %426 : vector<16x512xf32>
    %cst_184 = arith.constant 0.000000e+00 : f32
    %428 = vector.broadcast %cst_184 : f32 to vector<16x512xf32>
    %429 = arith.maximumf %427, %428 : vector<16x512xf32>
    %c2_185 = arith.constant 2 : index
    %c0_186 = arith.constant 0 : index
    %c0_187 = arith.constant 0 : index
    %430 = vector.load %arg10[%c2_185, %c0_186, %c0_187] : memref<4x512x128xf32, #tpu.memory_space<vmem>>, vector<1x512x128xf32>
    %431 = vector.shape_cast %430 : vector<1x512x128xf32> to vector<512x128xf32>
    %cst_188 = arith.constant dense<0.000000e+00> : vector<16x128xf32>
    %432 = tpu.matmul %429, %431, %cst_188 {dimension_numbers = #tpu.dot_dimension_numbers<[1], [0], [0], [1], [0, 0, 1, 1], [], []>} : vector<16x512xf32>, vector<512x128xf32>, vector<16x128xf32> -> vector<16x128xf32>
    %c2_189 = arith.constant 2 : index
    %c0_190 = arith.constant 0 : index
    %c0_191 = arith.constant 0 : index
    %433 = vector.load %arg11[%c2_189, %c0_190, %c0_191] : memref<4x1x128xf32, #tpu.memory_space<vmem>>, vector<1x1x128xf32>
    %434 = vector.shape_cast %433 : vector<1x1x128xf32> to vector<1x128xf32>
    %435 = vector.broadcast %434 : vector<1x128xf32> to vector<16x128xf32>
    %436 = arith.addf %432, %435 : vector<16x128xf32>
    %437 = arith.addf %420, %436 : vector<16x128xf32>
    %c2_192 = arith.constant 2 : index
    %c0_193 = arith.constant 0 : index
    %c0_194 = arith.constant 0 : index
    %438 = vector.load %arg12[%c2_192, %c0_193, %c0_194] : memref<4x1x128xf32, #tpu.memory_space<vmem>>, vector<1x1x128xf32>
    %439 = vector.shape_cast %438 : vector<1x1x128xf32> to vector<1x128xf32>
    %c2_195 = arith.constant 2 : index
    %c0_196 = arith.constant 0 : index
    %c0_197 = arith.constant 0 : index
    %440 = vector.load %arg13[%c2_195, %c0_196, %c0_197] : memref<4x1x128xf32, #tpu.memory_space<vmem>>, vector<1x1x128xf32>
    %441 = vector.shape_cast %440 : vector<1x1x128xf32> to vector<1x128xf32>
    %cst_198 = arith.constant dense<0.000000e+00> : vector<16xf32>
    %442 = vector.multi_reduction <add>, %437, %cst_198 [1] : vector<16x128xf32> to vector<16xf32>
    %443 = vector.shape_cast %442 : vector<16xf32> to vector<16x1xf32>
    %cst_199 = arith.constant 1.280000e+02 : f32
    %444 = vector.broadcast %cst_199 : f32 to vector<16x1xf32>
    %445 = arith.divf %443, %444 : vector<16x1xf32>
    %446 = vector.broadcast %445 : vector<16x1xf32> to vector<16x128xf32>
    %447 = arith.subf %437, %446 : vector<16x128xf32>
    %448 = arith.mulf %447, %447 : vector<16x128xf32>
    %cst_200 = arith.constant dense<0.000000e+00> : vector<16xf32>
    %449 = vector.multi_reduction <add>, %448, %cst_200 [1] : vector<16x128xf32> to vector<16xf32>
    %450 = vector.shape_cast %449 : vector<16xf32> to vector<16x1xf32>
    %cst_201 = arith.constant 1.280000e+02 : f32
    %451 = vector.broadcast %cst_201 : f32 to vector<16x1xf32>
    %452 = arith.divf %450, %451 : vector<16x1xf32>
    %453 = vector.broadcast %445 : vector<16x1xf32> to vector<16x128xf32>
    %454 = arith.subf %437, %453 : vector<16x128xf32>
    %cst_202 = arith.constant 9.99999974E-6 : f32
    %455 = vector.broadcast %cst_202 : f32 to vector<16x1xf32>
    %456 = arith.addf %452, %455 : vector<16x1xf32>
    %457 = math.rsqrt %456 : vector<16x1xf32>
    %458 = vector.broadcast %457 : vector<16x1xf32> to vector<16x128xf32>
    %459 = arith.mulf %454, %458 : vector<16x128xf32>
    %460 = vector.broadcast %439 : vector<1x128xf32> to vector<16x128xf32>
    %461 = arith.mulf %459, %460 : vector<16x128xf32>
    %462 = vector.broadcast %441 : vector<1x128xf32> to vector<16x128xf32>
    %463 = arith.addf %461, %462 : vector<16x128xf32>
    %c3 = arith.constant 3 : index
    %c0_203 = arith.constant 0 : index
    %c0_204 = arith.constant 0 : index
    %464 = vector.load %arg2[%c3, %c0_203, %c0_204] : memref<4x128x384xf32, #tpu.memory_space<vmem>>, vector<1x128x384xf32>
    %465 = vector.shape_cast %464 : vector<1x128x384xf32> to vector<128x384xf32>
    %cst_205 = arith.constant dense<0.000000e+00> : vector<16x384xf32>
    %466 = tpu.matmul %463, %465, %cst_205 {dimension_numbers = #tpu.dot_dimension_numbers<[1], [0], [0], [1], [0, 0, 1, 1], [], []>} : vector<16x128xf32>, vector<128x384xf32>, vector<16x384xf32> -> vector<16x384xf32>
    %c3_206 = arith.constant 3 : index
    %c0_207 = arith.constant 0 : index
    %c0_208 = arith.constant 0 : index
    %467 = vector.load %arg3[%c3_206, %c0_207, %c0_208] : memref<4x1x384xf32, #tpu.memory_space<vmem>>, vector<1x1x384xf32>
    %468 = vector.shape_cast %467 : vector<1x1x384xf32> to vector<1x384xf32>
    %469 = vector.broadcast %468 : vector<1x384xf32> to vector<16x384xf32>
    %470 = arith.addf %466, %469 : vector<16x384xf32>
    %471 = vector.extract_strided_slice %470 {offsets = [0, 0], sizes = [16, 128], strides = [1, 1]} : vector<16x384xf32> to vector<16x128xf32>
    %cst_209 = arith.constant 0.176776692 : f32
    %472 = vector.broadcast %cst_209 : f32 to vector<16x128xf32>
    %473 = arith.mulf %471, %472 : vector<16x128xf32>
    %474 = vector.shape_cast %473 : vector<16x128xf32> to vector<2x8x128xf32>
    %475 = vector.extract_strided_slice %470 {offsets = [0, 128], sizes = [16, 128], strides = [1, 1]} : vector<16x384xf32> to vector<16x128xf32>
    %476 = vector.shape_cast %475 : vector<16x128xf32> to vector<2x8x128xf32>
    %477 = vector.extract_strided_slice %470 {offsets = [0, 256], sizes = [16, 128], strides = [1, 1]} : vector<16x384xf32> to vector<16x128xf32>
    %478 = vector.shape_cast %477 : vector<16x128xf32> to vector<2x8x128xf32>
    %479 = vector.extract_strided_slice %474 {offsets = [0, 0, 0], sizes = [2, 8, 32], strides = [1, 1, 1]} : vector<2x8x128xf32> to vector<2x8x32xf32>
    %480 = vector.extract_strided_slice %476 {offsets = [0, 0, 0], sizes = [2, 8, 32], strides = [1, 1, 1]} : vector<2x8x128xf32> to vector<2x8x32xf32>
    %481 = vector.extract_strided_slice %478 {offsets = [0, 0, 0], sizes = [2, 8, 32], strides = [1, 1, 1]} : vector<2x8x128xf32> to vector<2x8x32xf32>
    "tpu.trace_start"() <{level = 10 : i32, message = "bqd,bkd->bqk"}> : () -> ()
    %cst_210 = arith.constant dense<0.000000e+00> : vector<2x8x8xf32>
    %482 = tpu.matmul %479, %480, %cst_210 {dimension_numbers = #tpu.dot_dimension_numbers<[2], [2], [1], [1], [0, 0, 0, 1, 1, 1], [0], [0]>} : vector<2x8x32xf32>, vector<2x8x32xf32>, vector<2x8x8xf32> -> vector<2x8x8xf32>
    "tpu.trace_stop"() : () -> ()
    %cst_211 = arith.constant dense<0xFF800000> : vector<2x8xf32>
    %483 = vector.multi_reduction <maximumf>, %482, %cst_211 [2] : vector<2x8x8xf32> to vector<2x8xf32>
    %484 = vector.shape_cast %483 : vector<2x8xf32> to vector<2x8x1xf32>
    %485 = vector.broadcast %484 : vector<2x8x1xf32> to vector<2x8x8xf32>
    %486 = arith.subf %482, %485 : vector<2x8x8xf32>
    %487 = math.exp %486 : vector<2x8x8xf32>
    %cst_212 = arith.constant dense<0.000000e+00> : vector<2x8xf32>
    %488 = vector.multi_reduction <add>, %487, %cst_212 [2] : vector<2x8x8xf32> to vector<2x8xf32>
    %489 = vector.shape_cast %488 : vector<2x8xf32> to vector<2x8x1xf32>
    %490 = tpu.reciprocal %489 {approx = true} : vector<2x8x1xf32> -> vector<2x8x1xf32>
    %491 = vector.broadcast %490 : vector<2x8x1xf32> to vector<2x8x8xf32>
    %492 = arith.mulf %487, %491 : vector<2x8x8xf32>
    "tpu.trace_start"() <{level = 10 : i32, message = "bqk,bkd->bqd"}> : () -> ()
    %cst_213 = arith.constant dense<0.000000e+00> : vector<2x8x32xf32>
    %493 = tpu.matmul %492, %481, %cst_213 {dimension_numbers = #tpu.dot_dimension_numbers<[2], [1], [1], [2], [0, 0, 0, 1, 1, 2], [0], [0]>} : vector<2x8x8xf32>, vector<2x8x32xf32>, vector<2x8x32xf32> -> vector<2x8x32xf32>
    "tpu.trace_stop"() : () -> ()
    %494 = vector.extract_strided_slice %474 {offsets = [0, 0, 32], sizes = [2, 8, 32], strides = [1, 1, 1]} : vector<2x8x128xf32> to vector<2x8x32xf32>
    %495 = vector.extract_strided_slice %476 {offsets = [0, 0, 32], sizes = [2, 8, 32], strides = [1, 1, 1]} : vector<2x8x128xf32> to vector<2x8x32xf32>
    %496 = vector.extract_strided_slice %478 {offsets = [0, 0, 32], sizes = [2, 8, 32], strides = [1, 1, 1]} : vector<2x8x128xf32> to vector<2x8x32xf32>
    "tpu.trace_start"() <{level = 10 : i32, message = "bqd,bkd->bqk"}> : () -> ()
    %cst_214 = arith.constant dense<0.000000e+00> : vector<2x8x8xf32>
    %497 = tpu.matmul %494, %495, %cst_214 {dimension_numbers = #tpu.dot_dimension_numbers<[2], [2], [1], [1], [0, 0, 0, 1, 1, 1], [0], [0]>} : vector<2x8x32xf32>, vector<2x8x32xf32>, vector<2x8x8xf32> -> vector<2x8x8xf32>
    "tpu.trace_stop"() : () -> ()
    %cst_215 = arith.constant dense<0xFF800000> : vector<2x8xf32>
    %498 = vector.multi_reduction <maximumf>, %497, %cst_215 [2] : vector<2x8x8xf32> to vector<2x8xf32>
    %499 = vector.shape_cast %498 : vector<2x8xf32> to vector<2x8x1xf32>
    %500 = vector.broadcast %499 : vector<2x8x1xf32> to vector<2x8x8xf32>
    %501 = arith.subf %497, %500 : vector<2x8x8xf32>
    %502 = math.exp %501 : vector<2x8x8xf32>
    %cst_216 = arith.constant dense<0.000000e+00> : vector<2x8xf32>
    %503 = vector.multi_reduction <add>, %502, %cst_216 [2] : vector<2x8x8xf32> to vector<2x8xf32>
    %504 = vector.shape_cast %503 : vector<2x8xf32> to vector<2x8x1xf32>
    %505 = tpu.reciprocal %504 {approx = true} : vector<2x8x1xf32> -> vector<2x8x1xf32>
    %506 = vector.broadcast %505 : vector<2x8x1xf32> to vector<2x8x8xf32>
    %507 = arith.mulf %502, %506 : vector<2x8x8xf32>
    "tpu.trace_start"() <{level = 10 : i32, message = "bqk,bkd->bqd"}> : () -> ()
    %cst_217 = arith.constant dense<0.000000e+00> : vector<2x8x32xf32>
    %508 = tpu.matmul %507, %496, %cst_217 {dimension_numbers = #tpu.dot_dimension_numbers<[2], [1], [1], [2], [0, 0, 0, 1, 1, 2], [0], [0]>} : vector<2x8x8xf32>, vector<2x8x32xf32>, vector<2x8x32xf32> -> vector<2x8x32xf32>
    "tpu.trace_stop"() : () -> ()
    %509 = vector.extract_strided_slice %474 {offsets = [0, 0, 64], sizes = [2, 8, 32], strides = [1, 1, 1]} : vector<2x8x128xf32> to vector<2x8x32xf32>
    %510 = vector.extract_strided_slice %476 {offsets = [0, 0, 64], sizes = [2, 8, 32], strides = [1, 1, 1]} : vector<2x8x128xf32> to vector<2x8x32xf32>
    %511 = vector.extract_strided_slice %478 {offsets = [0, 0, 64], sizes = [2, 8, 32], strides = [1, 1, 1]} : vector<2x8x128xf32> to vector<2x8x32xf32>
    "tpu.trace_start"() <{level = 10 : i32, message = "bqd,bkd->bqk"}> : () -> ()
    %cst_218 = arith.constant dense<0.000000e+00> : vector<2x8x8xf32>
    %512 = tpu.matmul %509, %510, %cst_218 {dimension_numbers = #tpu.dot_dimension_numbers<[2], [2], [1], [1], [0, 0, 0, 1, 1, 1], [0], [0]>} : vector<2x8x32xf32>, vector<2x8x32xf32>, vector<2x8x8xf32> -> vector<2x8x8xf32>
    "tpu.trace_stop"() : () -> ()
    %cst_219 = arith.constant dense<0xFF800000> : vector<2x8xf32>
    %513 = vector.multi_reduction <maximumf>, %512, %cst_219 [2] : vector<2x8x8xf32> to vector<2x8xf32>
    %514 = vector.shape_cast %513 : vector<2x8xf32> to vector<2x8x1xf32>
    %515 = vector.broadcast %514 : vector<2x8x1xf32> to vector<2x8x8xf32>
    %516 = arith.subf %512, %515 : vector<2x8x8xf32>
    %517 = math.exp %516 : vector<2x8x8xf32>
    %cst_220 = arith.constant dense<0.000000e+00> : vector<2x8xf32>
    %518 = vector.multi_reduction <add>, %517, %cst_220 [2] : vector<2x8x8xf32> to vector<2x8xf32>
    %519 = vector.shape_cast %518 : vector<2x8xf32> to vector<2x8x1xf32>
    %520 = tpu.reciprocal %519 {approx = true} : vector<2x8x1xf32> -> vector<2x8x1xf32>
    %521 = vector.broadcast %520 : vector<2x8x1xf32> to vector<2x8x8xf32>
    %522 = arith.mulf %517, %521 : vector<2x8x8xf32>
    "tpu.trace_start"() <{level = 10 : i32, message = "bqk,bkd->bqd"}> : () -> ()
    %cst_221 = arith.constant dense<0.000000e+00> : vector<2x8x32xf32>
    %523 = tpu.matmul %522, %511, %cst_221 {dimension_numbers = #tpu.dot_dimension_numbers<[2], [1], [1], [2], [0, 0, 0, 1, 1, 2], [0], [0]>} : vector<2x8x8xf32>, vector<2x8x32xf32>, vector<2x8x32xf32> -> vector<2x8x32xf32>
    "tpu.trace_stop"() : () -> ()
    %524 = vector.extract_strided_slice %474 {offsets = [0, 0, 96], sizes = [2, 8, 32], strides = [1, 1, 1]} : vector<2x8x128xf32> to vector<2x8x32xf32>
    %525 = vector.extract_strided_slice %476 {offsets = [0, 0, 96], sizes = [2, 8, 32], strides = [1, 1, 1]} : vector<2x8x128xf32> to vector<2x8x32xf32>
    %526 = vector.extract_strided_slice %478 {offsets = [0, 0, 96], sizes = [2, 8, 32], strides = [1, 1, 1]} : vector<2x8x128xf32> to vector<2x8x32xf32>
    "tpu.trace_start"() <{level = 10 : i32, message = "bqd,bkd->bqk"}> : () -> ()
    %cst_222 = arith.constant dense<0.000000e+00> : vector<2x8x8xf32>
    %527 = tpu.matmul %524, %525, %cst_222 {dimension_numbers = #tpu.dot_dimension_numbers<[2], [2], [1], [1], [0, 0, 0, 1, 1, 1], [0], [0]>} : vector<2x8x32xf32>, vector<2x8x32xf32>, vector<2x8x8xf32> -> vector<2x8x8xf32>
    "tpu.trace_stop"() : () -> ()
    %cst_223 = arith.constant dense<0xFF800000> : vector<2x8xf32>
    %528 = vector.multi_reduction <maximumf>, %527, %cst_223 [2] : vector<2x8x8xf32> to vector<2x8xf32>
    %529 = vector.shape_cast %528 : vector<2x8xf32> to vector<2x8x1xf32>
    %530 = vector.broadcast %529 : vector<2x8x1xf32> to vector<2x8x8xf32>
    %531 = arith.subf %527, %530 : vector<2x8x8xf32>
    %532 = math.exp %531 : vector<2x8x8xf32>
    %cst_224 = arith.constant dense<0.000000e+00> : vector<2x8xf32>
    %533 = vector.multi_reduction <add>, %532, %cst_224 [2] : vector<2x8x8xf32> to vector<2x8xf32>
    %534 = vector.shape_cast %533 : vector<2x8xf32> to vector<2x8x1xf32>
    %535 = tpu.reciprocal %534 {approx = true} : vector<2x8x1xf32> -> vector<2x8x1xf32>
    %536 = vector.broadcast %535 : vector<2x8x1xf32> to vector<2x8x8xf32>
    %537 = arith.mulf %532, %536 : vector<2x8x8xf32>
    "tpu.trace_start"() <{level = 10 : i32, message = "bqk,bkd->bqd"}> : () -> ()
    %cst_225 = arith.constant dense<0.000000e+00> : vector<2x8x32xf32>
    %538 = tpu.matmul %537, %526, %cst_225 {dimension_numbers = #tpu.dot_dimension_numbers<[2], [1], [1], [2], [0, 0, 0, 1, 1, 2], [0], [0]>} : vector<2x8x8xf32>, vector<2x8x32xf32>, vector<2x8x32xf32> -> vector<2x8x32xf32>
    "tpu.trace_stop"() : () -> ()
    %539 = tpu.concatenate %493, %508, %523, %538 in 2 : vector<2x8x32xf32>, vector<2x8x32xf32>, vector<2x8x32xf32>, vector<2x8x32xf32> -> vector<2x8x128xf32>
    %540 = vector.shape_cast %539 : vector<2x8x128xf32> to vector<16x128xf32>
    %c3_226 = arith.constant 3 : index
    %c0_227 = arith.constant 0 : index
    %c0_228 = arith.constant 0 : index
    %541 = vector.load %arg4[%c3_226, %c0_227, %c0_228] : memref<4x128x128xf32, #tpu.memory_space<vmem>>, vector<1x128x128xf32>
    %542 = vector.shape_cast %541 : vector<1x128x128xf32> to vector<128x128xf32>
    %cst_229 = arith.constant dense<0.000000e+00> : vector<16x128xf32>
    %543 = tpu.matmul %540, %542, %cst_229 {dimension_numbers = #tpu.dot_dimension_numbers<[1], [0], [0], [1], [0, 0, 1, 1], [], []>} : vector<16x128xf32>, vector<128x128xf32>, vector<16x128xf32> -> vector<16x128xf32>
    %c3_230 = arith.constant 3 : index
    %c0_231 = arith.constant 0 : index
    %c0_232 = arith.constant 0 : index
    %544 = vector.load %arg5[%c3_230, %c0_231, %c0_232] : memref<4x1x128xf32, #tpu.memory_space<vmem>>, vector<1x1x128xf32>
    %545 = vector.shape_cast %544 : vector<1x1x128xf32> to vector<1x128xf32>
    %546 = vector.broadcast %545 : vector<1x128xf32> to vector<16x128xf32>
    %547 = arith.addf %543, %546 : vector<16x128xf32>
    %548 = arith.addf %463, %547 : vector<16x128xf32>
    %c3_233 = arith.constant 3 : index
    %c0_234 = arith.constant 0 : index
    %c0_235 = arith.constant 0 : index
    %549 = vector.load %arg6[%c3_233, %c0_234, %c0_235] : memref<4x1x128xf32, #tpu.memory_space<vmem>>, vector<1x1x128xf32>
    %550 = vector.shape_cast %549 : vector<1x1x128xf32> to vector<1x128xf32>
    %c3_236 = arith.constant 3 : index
    %c0_237 = arith.constant 0 : index
    %c0_238 = arith.constant 0 : index
    %551 = vector.load %arg7[%c3_236, %c0_237, %c0_238] : memref<4x1x128xf32, #tpu.memory_space<vmem>>, vector<1x1x128xf32>
    %552 = vector.shape_cast %551 : vector<1x1x128xf32> to vector<1x128xf32>
    %cst_239 = arith.constant dense<0.000000e+00> : vector<16xf32>
    %553 = vector.multi_reduction <add>, %548, %cst_239 [1] : vector<16x128xf32> to vector<16xf32>
    %554 = vector.shape_cast %553 : vector<16xf32> to vector<16x1xf32>
    %cst_240 = arith.constant 1.280000e+02 : f32
    %555 = vector.broadcast %cst_240 : f32 to vector<16x1xf32>
    %556 = arith.divf %554, %555 : vector<16x1xf32>
    %557 = vector.broadcast %556 : vector<16x1xf32> to vector<16x128xf32>
    %558 = arith.subf %548, %557 : vector<16x128xf32>
    %559 = arith.mulf %558, %558 : vector<16x128xf32>
    %cst_241 = arith.constant dense<0.000000e+00> : vector<16xf32>
    %560 = vector.multi_reduction <add>, %559, %cst_241 [1] : vector<16x128xf32> to vector<16xf32>
    %561 = vector.shape_cast %560 : vector<16xf32> to vector<16x1xf32>
    %cst_242 = arith.constant 1.280000e+02 : f32
    %562 = vector.broadcast %cst_242 : f32 to vector<16x1xf32>
    %563 = arith.divf %561, %562 : vector<16x1xf32>
    %564 = vector.broadcast %556 : vector<16x1xf32> to vector<16x128xf32>
    %565 = arith.subf %548, %564 : vector<16x128xf32>
    %cst_243 = arith.constant 9.99999974E-6 : f32
    %566 = vector.broadcast %cst_243 : f32 to vector<16x1xf32>
    %567 = arith.addf %563, %566 : vector<16x1xf32>
    %568 = math.rsqrt %567 : vector<16x1xf32>
    %569 = vector.broadcast %568 : vector<16x1xf32> to vector<16x128xf32>
    %570 = arith.mulf %565, %569 : vector<16x128xf32>
    %571 = vector.broadcast %550 : vector<1x128xf32> to vector<16x128xf32>
    %572 = arith.mulf %570, %571 : vector<16x128xf32>
    %573 = vector.broadcast %552 : vector<1x128xf32> to vector<16x128xf32>
    %574 = arith.addf %572, %573 : vector<16x128xf32>
    %c3_244 = arith.constant 3 : index
    %c0_245 = arith.constant 0 : index
    %c0_246 = arith.constant 0 : index
    %575 = vector.load %arg8[%c3_244, %c0_245, %c0_246] : memref<4x128x512xf32, #tpu.memory_space<vmem>>, vector<1x128x512xf32>
    %576 = vector.shape_cast %575 : vector<1x128x512xf32> to vector<128x512xf32>
    %cst_247 = arith.constant dense<0.000000e+00> : vector<16x512xf32>
    %577 = tpu.matmul %574, %576, %cst_247 {dimension_numbers = #tpu.dot_dimension_numbers<[1], [0], [0], [1], [0, 0, 1, 1], [], []>} : vector<16x128xf32>, vector<128x512xf32>, vector<16x512xf32> -> vector<16x512xf32>
    %c3_248 = arith.constant 3 : index
    %c0_249 = arith.constant 0 : index
    %c0_250 = arith.constant 0 : index
    %578 = vector.load %arg9[%c3_248, %c0_249, %c0_250] : memref<4x1x512xf32, #tpu.memory_space<vmem>>, vector<1x1x512xf32>
    %579 = vector.shape_cast %578 : vector<1x1x512xf32> to vector<1x512xf32>
    %580 = vector.broadcast %579 : vector<1x512xf32> to vector<16x512xf32>
    %581 = arith.addf %577, %580 : vector<16x512xf32>
    %cst_251 = arith.constant 0.000000e+00 : f32
    %582 = vector.broadcast %cst_251 : f32 to vector<16x512xf32>
    %583 = arith.maximumf %581, %582 : vector<16x512xf32>
    %c3_252 = arith.constant 3 : index
    %c0_253 = arith.constant 0 : index
    %c0_254 = arith.constant 0 : index
    %584 = vector.load %arg10[%c3_252, %c0_253, %c0_254] : memref<4x512x128xf32, #tpu.memory_space<vmem>>, vector<1x512x128xf32>
    %585 = vector.shape_cast %584 : vector<1x512x128xf32> to vector<512x128xf32>
    %cst_255 = arith.constant dense<0.000000e+00> : vector<16x128xf32>
    %586 = tpu.matmul %583, %585, %cst_255 {dimension_numbers = #tpu.dot_dimension_numbers<[1], [0], [0], [1], [0, 0, 1, 1], [], []>} : vector<16x512xf32>, vector<512x128xf32>, vector<16x128xf32> -> vector<16x128xf32>
    %c3_256 = arith.constant 3 : index
    %c0_257 = arith.constant 0 : index
    %c0_258 = arith.constant 0 : index
    %587 = vector.load %arg11[%c3_256, %c0_257, %c0_258] : memref<4x1x128xf32, #tpu.memory_space<vmem>>, vector<1x1x128xf32>
    %588 = vector.shape_cast %587 : vector<1x1x128xf32> to vector<1x128xf32>
    %589 = vector.broadcast %588 : vector<1x128xf32> to vector<16x128xf32>
    %590 = arith.addf %586, %589 : vector<16x128xf32>
    %591 = arith.addf %574, %590 : vector<16x128xf32>
    %c3_259 = arith.constant 3 : index
    %c0_260 = arith.constant 0 : index
    %c0_261 = arith.constant 0 : index
    %592 = vector.load %arg12[%c3_259, %c0_260, %c0_261] : memref<4x1x128xf32, #tpu.memory_space<vmem>>, vector<1x1x128xf32>
    %593 = vector.shape_cast %592 : vector<1x1x128xf32> to vector<1x128xf32>
    %c3_262 = arith.constant 3 : index
    %c0_263 = arith.constant 0 : index
    %c0_264 = arith.constant 0 : index
    %594 = vector.load %arg13[%c3_262, %c0_263, %c0_264] : memref<4x1x128xf32, #tpu.memory_space<vmem>>, vector<1x1x128xf32>
    %595 = vector.shape_cast %594 : vector<1x1x128xf32> to vector<1x128xf32>
    %cst_265 = arith.constant dense<0.000000e+00> : vector<16xf32>
    %596 = vector.multi_reduction <add>, %591, %cst_265 [1] : vector<16x128xf32> to vector<16xf32>
    %597 = vector.shape_cast %596 : vector<16xf32> to vector<16x1xf32>
    %cst_266 = arith.constant 1.280000e+02 : f32
    %598 = vector.broadcast %cst_266 : f32 to vector<16x1xf32>
    %599 = arith.divf %597, %598 : vector<16x1xf32>
    %600 = vector.broadcast %599 : vector<16x1xf32> to vector<16x128xf32>
    %601 = arith.subf %591, %600 : vector<16x128xf32>
    %602 = arith.mulf %601, %601 : vector<16x128xf32>
    %cst_267 = arith.constant dense<0.000000e+00> : vector<16xf32>
    %603 = vector.multi_reduction <add>, %602, %cst_267 [1] : vector<16x128xf32> to vector<16xf32>
    %604 = vector.shape_cast %603 : vector<16xf32> to vector<16x1xf32>
    %cst_268 = arith.constant 1.280000e+02 : f32
    %605 = vector.broadcast %cst_268 : f32 to vector<16x1xf32>
    %606 = arith.divf %604, %605 : vector<16x1xf32>
    %607 = vector.broadcast %599 : vector<16x1xf32> to vector<16x128xf32>
    %608 = arith.subf %591, %607 : vector<16x128xf32>
    %cst_269 = arith.constant 9.99999974E-6 : f32
    %609 = vector.broadcast %cst_269 : f32 to vector<16x1xf32>
    %610 = arith.addf %606, %609 : vector<16x1xf32>
    %611 = math.rsqrt %610 : vector<16x1xf32>
    %612 = vector.broadcast %611 : vector<16x1xf32> to vector<16x128xf32>
    %613 = arith.mulf %608, %612 : vector<16x128xf32>
    %614 = vector.broadcast %593 : vector<1x128xf32> to vector<16x128xf32>
    %615 = arith.mulf %613, %614 : vector<16x128xf32>
    %616 = vector.broadcast %595 : vector<1x128xf32> to vector<16x128xf32>
    %617 = arith.addf %615, %616 : vector<16x128xf32>
    %618 = vector.shape_cast %617 : vector<16x128xf32> to vector<2x8x128xf32>
    %c0_270 = arith.constant 0 : index
    %c0_271 = arith.constant 0 : index
    %c0_272 = arith.constant 0 : index
    %619 = vector.load %arg14[%c0_270, %c0_271, %c0_272] : memref<2x8x128xf32, #tpu.memory_space<vmem>>, vector<2x8x128xf32>
    tpu.vector_store %arg14[%c0_270, %c0_271, %c0_272], %618 {strides = array<i32>} : memref<2x8x128xf32, #tpu.memory_space<vmem>>, vector<2x8x128xf32>,
    return
  }
  func.func @transform_0(%arg0: i32) -> (i32, i32, i32) {
    %c0_i32 = arith.constant 0 : i32
    %c0_i32_0 = arith.constant 0 : i32
    %c0_i32_1 = arith.constant 0 : i32
    return %arg0, %c0_i32, %c0_i32_0 : i32, i32, i32
  }
  func.func @transform_1(%arg0: i32) -> (i32, i32, i32) {
    %c0_i32 = arith.constant 0 : i32
    %c0_i32_0 = arith.constant 0 : i32
    %c0_i32_1 = arith.constant 0 : i32
    %c0_i32_2 = arith.constant 0 : i32
    return %c0_i32, %c0_i32_0, %c0_i32_1 : i32, i32, i32
  }
  func.func @transform_2(%arg0: i32) -> (i32, i32, i32) {
    %c0_i32 = arith.constant 0 : i32
    %c0_i32_0 = arith.constant 0 : i32
    %c0_i32_1 = arith.constant 0 : i32
    %c0_i32_2 = arith.constant 0 : i32
    return %c0_i32, %c0_i32_0, %c0_i32_1 : i32, i32, i32
  }
  func.func @transform_3(%arg0: i32) -> (i32, i32, i32) {
    %c0_i32 = arith.constant 0 : i32
    %c0_i32_0 = arith.constant 0 : i32
    %c0_i32_1 = arith.constant 0 : i32
    %c0_i32_2 = arith.constant 0 : i32
    return %c0_i32, %c0_i32_0, %c0_i32_1 : i32, i32, i32
  }
  func.func @transform_4(%arg0: i32) -> (i32, i32, i32) {
    %c0_i32 = arith.constant 0 : i32
    %c0_i32_0 = arith.constant 0 : i32
    %c0_i32_1 = arith.constant 0 : i32
    %c0_i32_2 = arith.constant 0 : i32
    return %c0_i32, %c0_i32_0, %c0_i32_1 : i32, i32, i32
  }
  func.func @transform_5(%arg0: i32) -> (i32, i32, i32) {
    %c0_i32 = arith.constant 0 : i32
    %c0_i32_0 = arith.constant 0 : i32
    %c0_i32_1 = arith.constant 0 : i32
    %c0_i32_2 = arith.constant 0 : i32
    return %c0_i32, %c0_i32_0, %c0_i32_1 : i32, i32, i32
  }
  func.func @transform_6(%arg0: i32) -> (i32, i32, i32) {
    %c0_i32 = arith.constant 0 : i32
    %c0_i32_0 = arith.constant 0 : i32
    %c0_i32_1 = arith.constant 0 : i32
    %c0_i32_2 = arith.constant 0 : i32
    return %c0_i32, %c0_i32_0, %c0_i32_1 : i32, i32, i32
  }
  func.func @transform_7(%arg0: i32) -> (i32, i32, i32) {
    %c0_i32 = arith.constant 0 : i32
    %c0_i32_0 = arith.constant 0 : i32
    %c0_i32_1 = arith.constant 0 : i32
    %c0_i32_2 = arith.constant 0 : i32
    return %c0_i32, %c0_i32_0, %c0_i32_1 : i32, i32, i32
  }
  func.func @transform_8(%arg0: i32) -> (i32, i32, i32) {
    %c0_i32 = arith.constant 0 : i32
    %c0_i32_0 = arith.constant 0 : i32
    %c0_i32_1 = arith.constant 0 : i32
    %c0_i32_2 = arith.constant 0 : i32
    return %c0_i32, %c0_i32_0, %c0_i32_1 : i32, i32, i32
  }
  func.func @transform_9(%arg0: i32) -> (i32, i32, i32) {
    %c0_i32 = arith.constant 0 : i32
    %c0_i32_0 = arith.constant 0 : i32
    %c0_i32_1 = arith.constant 0 : i32
    %c0_i32_2 = arith.constant 0 : i32
    return %c0_i32, %c0_i32_0, %c0_i32_1 : i32, i32, i32
  }
  func.func @transform_10(%arg0: i32) -> (i32, i32, i32) {
    %c0_i32 = arith.constant 0 : i32
    %c0_i32_0 = arith.constant 0 : i32
    %c0_i32_1 = arith.constant 0 : i32
    %c0_i32_2 = arith.constant 0 : i32
    return %c0_i32, %c0_i32_0, %c0_i32_1 : i32, i32, i32
  }
  func.func @transform_11(%arg0: i32) -> (i32, i32, i32) {
    %c0_i32 = arith.constant 0 : i32
    %c0_i32_0 = arith.constant 0 : i32
    %c0_i32_1 = arith.constant 0 : i32
    %c0_i32_2 = arith.constant 0 : i32
    return %c0_i32, %c0_i32_0, %c0_i32_1 : i32, i32, i32
  }
  func.func @transform_12(%arg0: i32) -> (i32, i32, i32) {
    %c0_i32 = arith.constant 0 : i32
    %c0_i32_0 = arith.constant 0 : i32
    %c0_i32_1 = arith.constant 0 : i32
    %c0_i32_2 = arith.constant 0 : i32
    return %c0_i32, %c0_i32_0, %c0_i32_1 : i32, i32, i32
  }
  func.func @transform_13(%arg0: i32) -> (i32, i32, i32) {
    %c0_i32 = arith.constant 0 : i32
    %c0_i32_0 = arith.constant 0 : i32
    %c0_i32_1 = arith.constant 0 : i32
    return %arg0, %c0_i32, %c0_i32_0 : i32, i32, i32
  }
}

</mosaic_0001>

<bundles_post_ra>
// kernel: simple_transformer.1
= control target key start
LH: loop header
LB: loop body
LE: loop exit
PB: predicated region body
PF: predicated region fallthrough
CT: control target
= control target key end

     0   :  { %18 = vsyncpa [#allocation3], 0  ;;  %s12797_s0 = inlined_call_operand.hbm [shape: f32[2,8,128], index: 0, kind: input, shape index: {}]   ;;  %s12798_s1 = inlined_call_operand.hbm [shape: f32[4,128,384], index: 1, kind: input, shape index: {}]   ;;  %s12799_s2 = inlined_call_operand.hbm [shape: f32[4,1,384], index: 2, kind: input, shape index: {}]   ;;  %s12800_s3 = inlined_call_operand.hbm [shape: f32[4,128,128], index: 3, kind: input, shape index: {}]   ;;  %s12801_s4 = inlined_call_operand.vmem [shape: f32[4,1,128], index: 4, kind: input, shape index: {}]   ;;  %s12802_s5 = inlined_call_operand.vmem [shape: f32[4,1,128], index: 5, kind: input, shape index: {}]   ;;  %s12803_s6 = inlined_call_operand.vmem [shape: f32[4,1,128], index: 6, kind: input, shape index: {}]   ;;  %s12804_s7 = inlined_call_operand.hbm [shape: f32[4,128,512], index: 7, kind: input, shape index: {}]   ;;  %s12805_s8 = inlined_call_operand.vmem [shape: f32[4,1,512], index: 8, kind: input, shape index: {}]   ;;  %s12806_s9 = inlined_call_operand.hbm [shape: f32[4,512,128], index: 9, kind: input, shape index: {}]   ;;  %s12807_s10 = inlined_call_operand.vmem [shape: f32[4,1,128], index: 10, kind: input, shape index: {}]   ;;  %s12808_s11 = inlined_call_operand.vmem [shape: f32[4,1,128], index: 11, kind: input, shape index: {}]   ;;  %s12809_s12 = inlined_call_operand.vmem [shape: f32[4,1,128], index: 12, kind: input, shape index: {}]   ;;  %s12810_s13 = inlined_call_operand.hbm [shape: f32[2,8,128], index: 13, kind: output, shape index: {}]  }
   0x1   :  { %19 = vsyncpa [#allocation6], 0 }
   0x2   :  { %20 = vsyncpa [#allocation9], 0 }
   0x3   :  { %21 = vsyncpa [#allocation12], 0 }
   0x4   :  { %22 = vsyncpa [#allocation4], 0  ;;  %s11656_s25 = smov [#allocation5]   ;;  %s11492_s29 = scalar_lea.hbm %s12798_s1, 24576 }
   0x5   :  { %s40_s26 = sshll.u32 %s11656_s25, 4  ;;  %p11493_p0 = scmp.ne.s32.totalorder %s12798_s1, %s11492_s29  ;;  %s41_s26 = int_to_ptr.vmem [resolvable:$true] %s40_s26 }
   0x6   :  { %p11496_p1 = scmp.lt.u32.totalorder %s11492_s29, %s12798_s1 }
   0x8   :  { %p11498_p2 = pnand %p11496_p1, %p11493_p0 }
   0xa   :  { %11501 = shalt.err (!%p11498_p2)
}
   0xb   :  { %s11502_s17 = scalar_lea.vmem %s41_s26, 24576  ;;  %p11507_p4 = scmp.lt.s32.totalorder %s41_s26, %s41_s26 }
   0xc   :  { %p11503_p3 = scmp.ne.s32.totalorder %s41_s26, %s11502_s17  ;;  %p11508_p5 = scmp.lt.s32.totalorder %s11502_s17, %s11502_s17 }
   0xe   :  { %p11509_p6 = por %p11508_p5, %p11507_p4 }
  0x10   :  { %p11510_p7 = pnand %p11509_p6, %p11503_p3 }
  0x12   :  { %11513 = shalt.err (!%p11510_p7)
}
  0x13   :  { %s11657_s18 = smov 384   ;;  %s11658_s19 = smov 24  }
  0x14   :  { %46 = dma.hbm_to_vmem [thread:$0]  %s12798_s1, 24576, %s41_s26, [#allocation6], %s11657_s18, %s11657_s18, %s11658_s19  }
  0x15   :  { %s11659_s22 = smov [#allocation8]   ;;  %s11660_s24 = smov [#allocation2]  }
  0x16   :  { %s64_s23 = sshll.u32 %s11659_s22, 4  ;;  %s28_s25 = sshll.u32 %s11660_s24, 4  ;;  %s65_s23 = int_to_ptr.vmem [resolvable:$true] %s64_s23  ;;  %s29_s25 = int_to_ptr.vmem [resolvable:$true] %s28_s25 }
  0x17   :  { %s11514_s29 = scalar_lea.hbm %s12800_s3, 8192 }
  0x18   :  { %p11515_p8 = scmp.ne.s32.totalorder %s12800_s3, %s11514_s29  ;;  %p11518_p9 = scmp.lt.u32.totalorder %s11514_s29, %s12800_s3 }
  0x1a   :  { %p11520_p10 = pnand %p11518_p9, %p11515_p8 }
  0x1c   :  { %11523 = shalt.err (!%p11520_p10)
}
  0x1d   :  { %s11524_s1 = scalar_lea.vmem %s65_s23, 8192  ;;  %p11529_p12 = scmp.lt.s32.totalorder %s65_s23, %s65_s23 }
  0x1e   :  { %p11525_p11 = scmp.ne.s32.totalorder %s65_s23, %s11524_s1  ;;  %p11530_p13 = scmp.lt.s32.totalorder %s11524_s1, %s11524_s1 }
  0x20   :  { %p11531_p0 = por %p11530_p13, %p11529_p12 }
  0x22   :  { %p11532_p1 = pnand %p11531_p0, %p11525_p11 }
  0x24   :  { %11535 = shalt.err (!%p11532_p1)
}
  0x25   :  { %s11661_s26 = smov 128   ;;  %s11662_s17 = smov 8  }
  0x26   :  { %70 = dma.hbm_to_vmem [thread:$0]  %s12800_s3, 8192, %s65_s23, [#allocation9], %s11661_s26, %s11661_s26, %s11662_s17  }
  0x27   :  { %s11536_s22 = scalar_lea.hbm %s12797_s0, 256 }
  0x28   :  { %p11537_p2 = scmp.ne.s32.totalorder %s12797_s0, %s11536_s22  ;;  %p11540_p3 = scmp.lt.u32.totalorder %s11536_s22, %s12797_s0 }
  0x2a   :  { %p11542_p4 = pnand %p11540_p3, %p11537_p2 }
  0x2c   :  { %11545 = shalt.err (!%p11542_p4)
}
  0x2d   :  { %s11546_s30 = scalar_lea.vmem %s29_s25, 256  ;;  %p11551_p6 = scmp.lt.s32.totalorder %s29_s25, %s29_s25 }
  0x2e   :  { %p11547_p5 = scmp.ne.s32.totalorder %s29_s25, %s11546_s30  ;;  %p11552_p7 = scmp.lt.s32.totalorder %s11546_s30, %s11546_s30 }
  0x30   :  { %p11553_p8 = por %p11552_p7, %p11551_p6 }
  0x32   :  { %p11554_p9 = pnand %p11553_p8, %p11547_p5 }
  0x34   :  { %11557 = shalt.err (!%p11554_p9)
}
  0x35   :  { %34 = dma.hbm_to_vmem [thread:$0]  %s12797_s0, 256, %s29_s25, [#allocation3], %s11661_s26, %s11661_s26, %s11662_s17  }
  0x36   :  { %s11663_s14 = smov [#allocation7]   ;;  %s11558_s18 = scalar_lea.hbm %s12799_s2, 192 }
  0x37   :  { %s52_s15 = sshll.u32 %s11663_s14, 4  ;;  %p11559_p10 = scmp.ne.s32.totalorder %s12799_s2, %s11558_s18  ;;  %s53_s15 = int_to_ptr.vmem [resolvable:$true] %s52_s15 }
  0x38   :  { %p11562_p11 = scmp.lt.u32.totalorder %s11558_s18, %s12799_s2 }
  0x3a   :  { %p11564_p12 = pnand %p11562_p11, %p11559_p10 }
  0x3c   :  { %11567 = shalt.err (!%p11564_p12)
}
  0x3d   :  { %s11568_s24 = scalar_lea.vmem %s53_s15, 192  ;;  %p11573_p0 = scmp.lt.s32.totalorder %s53_s15, %s53_s15 }
  0x3e   :  { %p11569_p13 = scmp.ne.s32.totalorder %s53_s15, %s11568_s24  ;;  %p11574_p1 = scmp.lt.s32.totalorder %s11568_s24, %s11568_s24 }
  0x40   :  { %p11575_p2 = por %p11574_p1, %p11573_p0 }
  0x42   :  { %p11576_p3 = pnand %p11575_p2, %p11569_p13 }
  0x44   :  { %11579 = shalt.err (!%p11576_p3)
}
  0x45   :  { %s11664_s0 = smov 48   ;;  %s11665_s25 = smov 3  }
  0x46   :  { %58 = dma.hbm_to_vmem [thread:$0]  %s12799_s2, 192, %s53_s15, [#allocation6], %s11664_s0, %s11664_s0, %s11665_s25  }
  0x47   :  { %s11666_s29 = smov [#allocation10]   ;;  %s11580_s14 = scalar_lea.hbm %s12804_s7, 32768 }
  0x48   :  { %s82_s30 = sshll.u32 %s11666_s29, 4  ;;  %p11581_p4 = scmp.ne.s32.totalorder %s12804_s7, %s11580_s14  ;;  %s83_s30 = int_to_ptr.vmem [resolvable:$true] %s82_s30 }
  0x49   :  { %p11584_p5 = scmp.lt.u32.totalorder %s11580_s14, %s12804_s7 }
  0x4b   :  { %p11586_p6 = pnand %p11584_p5, %p11581_p4 }
  0x4d   :  { %11589 = shalt.err (!%p11586_p6)
}
  0x4e   :  { %s11590_s20 = scalar_lea.vmem %s83_s30, 32768  ;;  %p11595_p8 = scmp.lt.s32.totalorder %s83_s30, %s83_s30 }
  0x4f   :  { %p11591_p7 = scmp.ne.s32.totalorder %s83_s30, %s11590_s20  ;;  %p11596_p9 = scmp.lt.s32.totalorder %s11590_s20, %s11590_s20 }
  0x51   :  { %p11597_p10 = por %p11596_p9, %p11595_p8 }
  0x53   :  { %p11598_p11 = pnand %p11597_p10, %p11591_p7 }
  0x55   :  { %11601 = shalt.err (!%p11598_p11)
}
  0x56   :  { %s11667_s2 = smov 512   ;;  %s11668_s15 = smov 32  }
  0x57   :  { %88 = dma.hbm_to_vmem [thread:$0]  %s12804_s7, 32768, %s83_s30, [#allocation9], %s11667_s2, %s11667_s2, %s11668_s15  }
  0x58   :  { %s11669_s24 = smov [#allocation11]   ;;  %s11602_s28 = scalar_lea.hbm %s12806_s9, 32768 }
  0x59   :  { %s96_s0 = sshll.u32 %s11669_s24, 4  ;;  %p11603_p12 = scmp.ne.s32.totalorder %s12806_s9, %s11602_s28  ;;  %s97_s0 = int_to_ptr.vmem [resolvable:$true] %s96_s0 }
  0x5a   :  { %p11606_p13 = scmp.lt.u32.totalorder %s11602_s28, %s12806_s9 }
  0x5c   :  { %p11608_p0 = pnand %p11606_p13, %p11603_p12 }
  0x5e   :  { %11611 = shalt.err (!%p11608_p0)
}
  0x5f   :  { %s11612_s16 = scalar_lea.vmem %s97_s0, 32768  ;;  %p11617_p2 = scmp.lt.s32.totalorder %s97_s0, %s97_s0 }
  0x60   :  { %p11613_p1 = scmp.ne.s32.totalorder %s97_s0, %s11612_s16  ;;  %p11618_p3 = scmp.lt.s32.totalorder %s11612_s16, %s11612_s16 }
  0x62   :  { %p11619_p4 = por %p11618_p3, %p11617_p2 }
  0x64   :  { %p11620_p5 = pnand %p11619_p4, %p11613_p1 }
  0x66   :  { %11623 = shalt.err (!%p11620_p5)
}
  0x67   :  { %102 = dma.hbm_to_vmem [thread:$0]  %s12806_s9, 32768, %s97_s0, [#allocation12], %s11661_s26, %s11661_s26, %s11662_s17  }
  0x68   :  { %11646 = dma.done.wait [#allocation3], 256  }
  0x69   :  { %11647 = vsyncadd [#allocation3], 4294967040 }
  0x6a   :  { %11648 = dma.done.wait [#allocation6], 24768  }
  0x6b   :  { %11649 = vsyncadd [#allocation6], 4294942528 }
  0x6c   :  { %11650 = dma.done.wait [#allocation9], 40960  }
  0x6d   :  { %11651 = vsyncadd [#allocation9], 4294926336 }
  0x6e   :  { %11652 = dma.done.wait [#allocation12], 32768  }
  0x6f   :  { %11653 = vsyncadd [#allocation12], 4294934528  ;;  %v11670_v0 = vmov 0.0   ;;  %v130_v1 = vld [vmem:[#allocation5 + $0x8] sm:$0xff]  ;;  %v133_v2 = vld [vmem:[#allocation5 + $0x20] sm:$0xff]  ;;  %vm11671_vm0 = vmmov 0  }
  0x70   :  { %258 = vmatprep.mubr.f32.mxu0 %v11670_v0  ;;  %v129_v3 = vld [vmem:[#allocation5] sm:$0xff]  ;;  %v10357_v4 = vpack.c.bf16 %v133_v2, %v130_v1  ;;  %v132_v5 = vld [vmem:[#allocation5 + $0x18] sm:$0xff]  ;;  %v139_v7 = vld [vmem:[#allocation5 + $0x50] sm:$0xff]  ;;  %vm348_vm1 = vcmask 261120   ;;  %s11672_s9 = smov 96   ;;  %vm501_vm2 = vcmask 64512  }
  0x71   :  { %v136_v6 = vld [vmem:[#allocation5 + $0x38] sm:$0xff]  ;;  %v10359_v8 = vpack.c.bf16 %v132_v5, %v129_v3  ;;  %v135_v10 = vld [vmem:[#allocation5 + $0x30] sm:$0xff]  ;;  %v138_v11 = vld [vmem:[#allocation5 + $0x48] sm:$0xff]  ;;  %s11673_s1 = smov 64   ;;  %vm1688_vm3 = vcmask 523264   ;;  %vm1691_vm4 = vcmask 785408  }
  0x72   :  { %v10361_v9 = vpack.c.bf16 %v139_v7, %v136_v6  ;;  %v142_v12 = vld [vmem:[#allocation5 + $0x68] sm:$0xff]  ;;  %10358 = vmatprep.subr.bf16.mxu0 %v10357_v4  ;;  %v145_v13 = vld [vmem:[#allocation5 + $0x80] sm:$0xff]  ;;  %v10363_v14 = vpack.c.bf16 %v138_v11, %v135_v10  ;;  %v144_v17 = vld [vmem:[#allocation5 + $0x78] sm:$0xff]  ;;  %s11674_s3 = smov [#allocation13]  }
  0x73   :  { %10360 = vmatpush1.bf16.msra.mxu0 %v10359_v8  ;;  %v10365_v15 = vpack.c.bf16 %v145_v13, %v142_v12  ;;  %v141_v16 = vld [vmem:[#allocation5 + $0x60] sm:$0xff]  ;;  %v148_v18 = vld [vmem:[#allocation5 + $0x98] sm:$0xff]  ;;  %v151_v19 = vld [vmem:[#allocation5 + $0xb0] sm:$0xff]  ;;  %v179_v12 = vlaneseq  ;;  %s9025_s23 = sshll.u32 %s11674_s3, 4  ;;  %s9026_s23 = int_to_ptr.vmem [resolvable:$true] %s9025_s23 }
  0x74   :  { %10362 = vmatprep.subr.bf16.mxu0 %v10361_v9  ;;  %v10367_v20 = vpack.c.bf16 %v144_v17, %v141_v16  ;;  %v10369_v21 = vpack.c.bf16 %v151_v19, %v148_v18  ;;  %v147_v22 = vld [vmem:[#allocation5 + $0x90] sm:$0xff]  ;;  %v150_v23 = vld [vmem:[#allocation5 + $0xa8] sm:$0xff]  ;;  %v157_v25 = vld [vmem:[#allocation5 + $0xe0] sm:$0xff]  ;;  %s11624_s14 = scalar_lea.vmem %s9026_s23, 256  ;;  %p11629_p7 = scmp.lt.s32.totalorder %s9026_s23, %s9026_s23 }
  0x75   :  { %v154_v24 = vld [vmem:[#allocation5 + $0xc8] sm:$0xff]  ;;  %v11828_v26 = vld [vmem:[#allocation2] sm:$0xff]  ;;  %v10371_v29 = vpack.c.bf16 %v150_v23, %v147_v22  ;;  %v153_v30 = vld [vmem:[#allocation5 + $0xc0] sm:$0xff]  ;;  %v11843_v13 = vshrl.u32 %v179_v12, 7  ;;  %p11625_p6 = scmp.ne.s32.totalorder %s9026_s23, %s11624_s14  ;;  %p11630_p8 = scmp.lt.s32.totalorder %s11624_s14, %s11624_s14 }
  0x76   :  { %v131_v27 = vld [vmem:[#allocation5 + $0x10] sm:$0xff]  ;;  %v134_v28 = vld [vmem:[#allocation5 + $0x28] sm:$0xff]  ;;  %9789 = vmatprep.mubr.f32.mxu1 %v11828_v26  ;;  %v137_v32 = vld [vmem:[#allocation5 + $0x40] sm:$0xff]  ;;  %v10373_v34 = vpack.c.bf16 %v157_v25, %v154_v24 }
  0x77   :  { %10364 = vmatpush1.bf16.msra.mxu0 %v10363_v14  ;;  %v10389_v31 = vpack.c.bf16 %v134_v28, %v131_v27  ;;  %v140_v33 = vld [vmem:[#allocation5 + $0x58] sm:$0xff]  ;;  %v143_v37 = vld [vmem:[#allocation5 + $0x70] sm:$0xff]  ;;  %v146_v38 = vld [vmem:[#allocation5 + $0x88] sm:$0xff]  ;;  %v11846_v14 = vsub.s32 0, %v11843_v13  ;;  %v11849_v16 = vsub.s32 1, %v11843_v13  ;;  %v11860_v25 = vsub.s32 2, %v11843_v13  ;;  %p11631_p9 = por %p11630_p8, %p11629_p7 }
  0x78   :  { %10366 = vmatprep.subr.bf16.mxu0 %v10365_v15  ;;  %v156_v35 = vld [vmem:[#allocation5 + $0xd8] sm:$0xff]  ;;  %v10393_v36 = vpack.c.bf16 %v140_v33, %v137_v32  ;;  %v163_v40 = vld [vmem:[#allocation5 + $0x110] sm:$0xff]  ;;  %v10397_v43 = vpack.c.bf16 %v146_v38, %v143_v37  ;;  %v162_v45 = vld [vmem:[#allocation5 + $0x108] sm:$0xff] }
  0x79   :  { %v160_v39 = vld [vmem:[#allocation5 + $0xf8] sm:$0xff]  ;;  %10390 = vmatprep.subr.bf16.mxu1 %v10389_v31  ;;  %v10375_v41 = vpack.c.bf16 %v156_v35, %v153_v30  ;;  %v159_v42 = vld [vmem:[#allocation5 + $0xf0] sm:$0xff]  ;;  %v149_v46 = vld [vmem:[#allocation5 + $0xa0] sm:$0xff]  ;;  %p11632_p10 = pnand %p11631_p9, %p11625_p6 }
  0x7a   :  { %10392 = vmatpush3.bf16.msra.mxu1 %v10389_v31  ;;  %v10377_v44 = vpack.c.bf16 %v163_v40, %v160_v39  ;;  %v152_v47 = vld [vmem:[#allocation5 + $0xb8] sm:$0xff]  ;;  %v166_v48 = vld [vmem:[#allocation5 + $0x128] sm:$0xff]  ;;  %v169_v49 = vld [vmem:[#allocation5 + $0x140] sm:$0xff]  ;;  %v10379_v50 = vpack.c.bf16 %v162_v45, %v159_v42 }
  0x7b   :  { %10368 = vmatpush1.bf16.msra.mxu0 %v10367_v20  ;;  %10394 = vmatprep.subr.bf16.mxu1 %v10393_v36  ;;  %v165_v51 = vld [vmem:[#allocation5 + $0x120] sm:$0xff]  ;;  %v10401_v52 = vpack.c.bf16 %v152_v47, %v149_v46  ;;  %v10381_v53 = vpack.c.bf16 %v169_v49, %v166_v48  ;;  %v168_v54 = vld [vmem:[#allocation5 + $0x138] sm:$0xff]  ;;  %v155_v55 = vld [vmem:[#allocation5 + $0xd0] sm:$0xff] }
  0x7c   :  { %10370 = vmatprep.subr.bf16.mxu0 %v10369_v21  ;;  %v158_v56 = vld [vmem:[#allocation5 + $0xe8] sm:$0xff]  ;;  %v172_v57 = vld [vmem:[#allocation5 + $0x158] sm:$0xff]  ;;  %v175_v58 = vld [vmem:[#allocation5 + $0x170] sm:$0xff]  ;;  %v10383_v59 = vpack.c.bf16 %v168_v54, %v165_v51 }
  0x7d   :  { %v171_v60 = vld [vmem:[#allocation5 + $0x150] sm:$0xff]  ;;  %v10405_v61 = vpack.c.bf16 %v158_v56, %v155_v55  ;;  %v10385_v62 = vpack.c.bf16 %v175_v58, %v172_v57  ;;  %v174_v63 = vld [vmem:[#allocation5 + $0x168] sm:$0xff]  ;;  %v161_v1 = vld [vmem:[#allocation5 + $0x100] sm:$0xff] }
  0x7e   :  { %10396 = vmatpush3.bf16.msra.mxu1 %v10393_v36  ;;  %v164_v2 = vld [vmem:[#allocation5 + $0x118] sm:$0xff]  ;;  %v10387_v3 = vpack.c.bf16 %v174_v63, %v171_v60  ;;  %v167_v5 = vld [vmem:[#allocation5 + $0x130] sm:$0xff]  ;;  %v170_v6 = vld [vmem:[#allocation5 + $0x148] sm:$0xff] }
  0x7f   :  { %10372 = vmatpush1.bf16.msra.mxu0 %v10371_v29  ;;  %10398 = vmatprep.subr.bf16.mxu1 %v10397_v43  ;;  %v10409_v4 = vpack.c.bf16 %v164_v2, %v161_v1  ;;  %v10413_v7 = vpack.c.bf16 %v170_v6, %v167_v5  ;;  %v173_v8 = vld [vmem:[#allocation5 + $0x160] sm:$0xff]  ;;  %v176_v9 = vld [vmem:[#allocation5 + $0x178] sm:$0xff] }
  0x80   :  { %10374 = vmatprep.subr.bf16.mxu0 %v10373_v34  ;;  %v11834_v10 = vld [vmem:[#allocation2 + $0x8] sm:$0xff]  ;;  %v10417_v11 = vpack.c.bf16 %v176_v9, %v173_v8  ;;  %v177_v15 = vld [vmem:[#allocation7] sm:$0x7] }
  0x81   :  { %v182_v17 = vrot.slane %v177_v15, %v11846_v14  ;;  %v186_v18 = vrot.slane %v177_v15, %v11849_v16  ;;  %v190_v31 = vrot.slane %v177_v15, %v11860_v25 }
  0x82   :  { %10400 = vmatpush3.bf16.msra.mxu1 %v10397_v43 }
  0x83   :  { %10376 = vmatpush1.bf16.msra.mxu0 %v10375_v41  ;;  %10402 = vmatprep.subr.bf16.mxu1 %v10401_v52 }
  0x84   :  { %10378 = vmatprep.subr.bf16.mxu0 %v10377_v44 }
  0x86   :  { %10404 = vmatpush3.bf16.msra.mxu1 %v10401_v52 }
  0x87   :  { %10380 = vmatpush1.bf16.msra.mxu0 %v10379_v50  ;;  %10406 = vmatprep.subr.bf16.mxu1 %v10405_v61 }
  0x88   :  { %10382 = vmatprep.subr.bf16.mxu0 %v10381_v53 }
  0x8a   :  { %10408 = vmatpush3.bf16.msra.mxu1 %v10405_v61 }
  0x8b   :  { %10384 = vmatpush1.bf16.msra.mxu0 %v10383_v59  ;;  %10410 = vmatprep.subr.bf16.mxu1 %v10409_v4 }
  0x8c   :  { %10386 = vmatprep.subr.bf16.mxu0 %v10385_v62 }
  0x8e   :  { %10412 = vmatpush3.bf16.msra.mxu1 %v10409_v4 }
  0x8f   :  { %10388 = vmatpush1.bf16.msra.mxu0 %v10387_v3  ;;  %10414 = vmatprep.subr.bf16.mxu1 %v10413_v7 }
  0x90   :  { %9837 = vmatprep.subr.mxu0 %v11670_v0 }
  0x92   :  { %259 = vmatmul.mubr.f32.vlgmr.msra.gmra.mrb[0].mxu0 %v11828_v26  ;;  %10416 = vmatpush3.bf16.msra.mxu1 %v10413_v7 }
  0x93   :  { %264 = vmatprep.mubr.f32.mxu0 %v11670_v0  ;;  %10418 = vmatprep.subr.bf16.mxu1 %v10417_v11 }
  0x96   :  { %265 = vmatmul.mubr.f32.gmra.mrb[2].mxu0 %v11834_v10  ;;  %10420 = vmatpush3.bf16.msra.mxu1 %v10417_v11 }
  0x97   :  { %9792 = vmatprep.subr.mxu1 %v11670_v0  ;;  %9839 = vmatprep.mubr.msk.f32.mxu0 %vm11671_vm0, %v11670_v0 }
  0x99   :  { %9790 = vmatmul.mubr.f32.vlgmr.msra.gmra.mrb[0].mxu1 %v11834_v10 }
  0x9a   :  { %9794 = vmatprep.mubr.msk.f32.mxu1 %vm11671_vm0, %v11670_v0 }
 0x165   :  { %v260_v19 = vpop.f32.mrb[0].mxu0 }
 0x166   :  { %v261_v20 = vadd.f32 %v260_v19, %v182_v17  ;;  %v262_v21 = vpop.f32.mrb[1].mxu0 }
 0x167   :  { %v11853_v22 = vadd.f32 %v262_v21, %v186_v18 }
 0x168   :  { %v11855_v23 = vmul.f32 0.17677669, %v261_v20 }
 0x169   :  { %v266_v24 = vpop.f32.mrb[2].mxu0  ;;  %9793 = vmatpush3.xpose.msk.msra.mxu1 %vm348_vm1, %v11853_v22 }
 0x16a   :  { %v267_v27 = vadd.f32 %v266_v24, %v182_v17  ;;  %v268_v28 = vpop.f32.mrb[3].mxu0  ;;  %670 = vrot.lane.b32.xlu1 %v11855_v23, %s11672_s9  ;;  %9797 = vmatprep.subr.mxu1 %v11670_v0 }
 0x16b   :  { %v11865_v29 = vadd.f32 %v268_v28, %v186_v18 }
 0x16c   :  { %v11867_v30 = vmul.f32 0.17677669, %v267_v27  ;;  %9795 = vmatmul.mubr.msk.f32.vlgmr.msra.gmra.mrb[2].mxu1 %vm348_vm1, %v11855_v23  ;;  %v9791_v32 = vpop.f32.mrb[0].mxu1 }
 0x16d   :  { %9798 = vmatpush3.xpose.msk.msra.mxu1 %vm348_vm1, %v11865_v29  ;;  %9799 = vmatprep.mubr.msk.f32.mxu1 %vm11671_vm0, %v11670_v0  ;;  %v11879_v33 = vadd.f32 %v9791_v32, %v190_v31  ;;  %v337_v34 = vpop.f32.mrb[1].mxu1 }
 0x16e   :  { %9802 = vmatprep.subr.mxu1 %v11670_v0  ;;  %v11883_v35 = vadd.f32 %v337_v34, %v190_v31 }
 0x170   :  { %9800 = vmatmul.mubr.msk.f32.vlgmr.msra.gmra.mrb[4].mxu1 %vm348_vm1, %v11867_v30 }
 0x171   :  { %9804 = vmatprep.mubr.msk.f32.mxu1 %vm11671_vm0, %v11670_v0  ;;  %9803 = vmatpush3.msra.mxu1 %v11883_v35 }
 0x172   :  { %9807 = vmatprep.subr.mxu1 %v11670_v0 }
 0x1dc   :  { %v671_v52 = vpop.permute.xlu1 %670 }
 0x23f   :  { %v421_v36 = vpop.f32.mrb[2].mxu1 }
 0x240   :  { %v9796_v37 = vpop.f32.mrb[3].mxu1  ;;  %v502_v38 = vsel %vm501_vm2, %v421_v36, -inf }
 0x241   :  { %503 = vmax.xlane.f32.xlu0 %v502_v38 }
 0x243   :  { %v497_v39 = vpop.f32.mrb[4].mxu1 }
 0x244   :  { %v9801_v40 = vpop.f32.mrb[5].mxu1  ;;  %v505_v41 = vsel %vm501_vm2, %v497_v39, -inf }
 0x245   :  { %506 = vmax.xlane.f32.xlu0 %v505_v41 }
 0x25b   :  { %672 = vrot.lane.b32.xlu0 %v11853_v22, %s11672_s9 }
 0x2ce   :  { %v504_v42 = vpop.xlane.xlu0 %503 }
 0x2cf   :  { %v508_v43 = vsub.f32 %v421_v36, %v504_v42 }
 0x2d1   :  { %v510_v44 = vmul.f32 1.442695, %v508_v43 }
 0x2d2   :  { %v507_v45 = vpop.xlane.xlu0 %506 }
 0x2d3   :  { %11332 = vpow2.f32 %v510_v44  ;;  %v509_v46 = vsub.f32 %v497_v39, %v507_v45 }
 0x2d5   :  { %v512_v47 = vmul.f32 1.442695, %v509_v46 }
 0x2d6   :  { %v673_v59 = vpop.permute.xlu0 %672 }
 0x2d7   :  { %11334 = vpow2.f32 %v512_v47 }
 0x2dd   :  { %v11333_v48 = vpop.eup %11332 }
 0x2de   :  { %v514_v49 = vsel %vm501_vm2, %v11333_v48, 0.0 }
 0x2df   :  { %515 = vadd.xlane.f32.xlu1 %v514_v49 }
 0x2e1   :  { %v11335_v50 = vpop.eup %11334 }
 0x2e2   :  { %v517_v51 = vsel %vm501_vm2, %v11335_v50, 0.0 }
 0x2e3   :  { %518 = vadd.xlane.f32.xlu1 %v517_v51 }
 0x2f4   :  { %750 = vrot.lane.b32.xlu1 %v11865_v29, %s11672_s9 }
 0x2f8   :  { %748 = vrot.lane.b32.xlu1 %v11867_v30, %s11672_s9 }
 0x36c   :  { %v516_v53 = vpop.xlane.xlu1 %515 }
 0x36d   :  { %11336 = vrcp.f32 %v516_v53 }
 0x370   :  { %v519_v54 = vpop.xlane.xlu1 %518 }
 0x371   :  { %11338 = vrcp.f32 %v519_v54 }
 0x374   :  { %v751_v60 = vpop.permute.xlu1 %750 }
 0x377   :  { %v11337_v55 = vpop.eup %11336 }
 0x378   :  { %v522_v56 = vmul.f32 %v11337_v55, %v11333_v48  ;;  %v749_v61 = vpop.permute.xlu1 %748 }
 0x37a   :  { %9805 = vmatmul.mubr.msk.f32.vlgmr.msra.gmra.mrb[6].mxu1 %vm501_vm2, %v522_v56 }
 0x37b   :  { %v11339_v57 = vpop.eup %11338  ;;  %9808 = vmatpush3.msra.mxu1 %v11879_v33  ;;  %9809 = vmatprep.mubr.msk.f32.mxu1 %vm11671_vm0, %v11670_v0 }
 0x37c   :  { %v523_v58 = vmul.f32 %v11339_v57, %v11335_v50  ;;  %9812 = vmatprep.subr.mxu1 %v11670_v0 }
 0x37e   :  { %9810 = vmatmul.mubr.msk.f32.vlgmr.msra.gmra.mrb[8].mxu1 %vm501_vm2, %v523_v58 }
 0x37f   :  { %9814 = vmatprep.mubr.msk.f32.mxu1 %vm11671_vm0, %v11670_v0 }
 0x382   :  { %9813 = vmatpush3.xpose.msk.msra.mxu1 %vm348_vm1, %v673_v59 }
 0x383   :  { %9817 = vmatprep.subr.mxu1 %v11670_v0 }
 0x385   :  { %9815 = vmatmul.mubr.msk.f32.vlgmr.msra.gmra.mrb[10].mxu1 %vm348_vm1, %v671_v52 }
 0x386   :  { %9818 = vmatpush3.xpose.msk.msra.mxu1 %vm348_vm1, %v751_v60  ;;  %9819 = vmatprep.mubr.msk.f32.mxu1 %vm11671_vm0, %v11670_v0 }
 0x387   :  { %9822 = vmatprep.subr.mxu1 %v11670_v0 }
 0x389   :  { %9820 = vmatmul.mubr.msk.f32.vlgmr.msra.gmra.mrb[12].mxu1 %vm348_vm1, %v749_v61 }
 0x38a   :  { %9824 = vmatprep.mubr.msk.f32.mxu1 %vm11671_vm0, %v11670_v0 }
 0x44d   :  { %v11915_v62 = vpop.f32.mrb[6].mxu1 }
 0x44e   :  { %v9806_v63 = vpop.f32.mrb[7].mxu1 }
 0x451   :  { %v11917_v1 = vpop.f32.mrb[8].mxu1 }
 0x452   :  { %v9811_v2 = vpop.f32.mrb[9].mxu1 }
 0x458   :  { %v744_v3 = vpop.f32.mrb[10].mxu1 }
 0x459   :  { %v9816_v4 = vpop.f32.mrb[11].mxu1  ;;  %v826_v5 = vsel %vm501_vm2, %v744_v3, -inf }
 0x45a   :  { %827 = vmax.xlane.f32.xlu0 %v826_v5 }
 0x45c   :  { %v822_v6 = vpop.f32.mrb[12].mxu1 }
 0x45d   :  { %v9821_v7 = vpop.f32.mrb[13].mxu1  ;;  %v829_v8 = vsel %vm501_vm2, %v822_v6, -inf }
 0x45e   :  { %830 = vmax.xlane.f32.xlu1 %v829_v8 }
 0x46f   :  { %926 = vrot.lane.b32.xlu1 %v11879_v33, %s11672_s9 }
 0x473   :  { %1004 = vrot.lane.b32.xlu1 %v11853_v22, %s11673_s1 }
 0x477   :  { %1082 = vrot.lane.b32.xlu1 %v11865_v29, %s11673_s1 }
 0x47b   :  { %1080 = vrot.lane.b32.xlu1 %v11867_v30, %s11673_s1 }
 0x4e7   :  { %v828_v9 = vpop.xlane.xlu0 %827 }
 0x4e8   :  { %v832_v11 = vsub.f32 %v744_v3, %v828_v9 }
 0x4ea   :  { %v834_v12 = vmul.f32 1.442695, %v832_v11 }
 0x4eb   :  { %v831_v15 = vpop.xlane.xlu1 %830 }
 0x4ec   :  { %11340 = vpow2.f32 %v834_v12  ;;  %v833_v27 = vsub.f32 %v822_v6, %v831_v15 }
 0x4ee   :  { %v836_v28 = vmul.f32 1.442695, %v833_v27 }
 0x4ef   :  { %v927_v17 = vpop.permute.xlu1 %926 }
 0x4f0   :  { %11342 = vpow2.f32 %v836_v28 }
 0x4f3   :  { %v1005_v18 = vpop.permute.xlu1 %1004 }
 0x4f6   :  { %v11341_v19 = vpop.eup %11340 }
 0x4f7   :  { %v1083_v20 = vpop.permute.xlu1 %1082  ;;  %v838_v21 = vsel %vm501_vm2, %v11341_v19, 0.0 }
 0x4f8   :  { %839 = vadd.xlane.f32.xlu0 %v838_v21  ;;  %9838 = vmatpush3.xpose.msk.msra.mxu0 %vm348_vm1, %v1083_v20 }
 0x4f9   :  { %9847 = vmatprep.subr.mxu0 %v11670_v0 }
 0x4fa   :  { %v11343_v31 = vpop.eup %11342 }
 0x4fb   :  { %v1081_v24 = vpop.permute.xlu1 %1080  ;;  %v841_v32 = vsel %vm501_vm2, %v11343_v31, 0.0 }
 0x4fc   :  { %9840 = vmatmul.mubr.msk.f32.vlgmr.msra.gmra.mrb[4].mxu0 %vm348_vm1, %v1081_v24 }
 0x4fd   :  { %9849 = vmatprep.mubr.msk.f32.mxu0 %vm11671_vm0, %v11670_v0 }
 0x50e   :  { %849 = vrot.lane.b32.xlu0 %v11883_v35, %s11672_s9 }
 0x52d   :  { %842 = vadd.xlane.f32.xlu0 %v841_v32 }
 0x543   :  { %1002 = vrot.lane.b32.xlu0 %v11855_v23, %s11673_s1 }
 0x585   :  { %v840_v34 = vpop.xlane.xlu0 %839 }
 0x586   :  { %11344 = vrcp.f32 %v840_v34 }
 0x589   :  { %v850_v36 = vpop.permute.xlu0 %849 }
 0x58a   :  { %9823 = vmatpush3.msra.mxu1 %v850_v36 }
 0x58b   :  { %9827 = vmatprep.subr.mxu1 %v11670_v0 }
 0x590   :  { %v11345_v37 = vpop.eup %11344 }
 0x591   :  { %v846_v38 = vmul.f32 %v11345_v37, %v11341_v19 }
 0x593   :  { %9825 = vmatmul.mubr.msk.f32.vlgmr.msra.gmra.mrb[14].mxu1 %vm501_vm2, %v846_v38 }
 0x594   :  { %9828 = vmatpush3.msra.mxu1 %v927_v17  ;;  %9829 = vmatprep.mubr.msk.f32.mxu1 %vm11671_vm0, %v11670_v0 }
 0x595   :  { %9832 = vmatprep.subr.mxu1 %v11670_v0 }
 0x5ba   :  { %v843_v39 = vpop.xlane.xlu0 %842 }
 0x5bb   :  { %11346 = vrcp.f32 %v843_v39 }
 0x5be   :  { %v1003_v42 = vpop.permute.xlu0 %1002 }
 0x5c5   :  { %v11347_v40 = vpop.eup %11346 }
 0x5c6   :  { %v847_v41 = vmul.f32 %v11347_v40, %v11343_v31 }
 0x5c8   :  { %9830 = vmatmul.mubr.msk.f32.vlgmr.msra.gmra.mrb[16].mxu1 %vm501_vm2, %v847_v41 }
 0x5c9   :  { %9833 = vmatpush3.xpose.msk.msra.mxu1 %vm348_vm1, %v1005_v18  ;;  %9834 = vmatprep.mubr.msk.f32.mxu1 %vm11671_vm0, %v11670_v0 }
 0x5ca   :  { %9842 = vmatprep.subr.mxu1 %v11670_v0 }
 0x5cc   :  { %9835 = vmatmul.mubr.msk.f32.vlgmr.msra.gmra.mrb[18].mxu1 %vm348_vm1, %v1003_v42 }
 0x5cd   :  { %9844 = vmatprep.mubr.msk.f32.mxu1 %vm11671_vm0, %v11670_v0 }
 0x5cf   :  { %v1154_v43 = vpop.f32.mrb[4].mxu0 }
 0x5d0   :  { %v9841_v44 = vpop.f32.mrb[5].mxu0  ;;  %v1161_v45 = vsel %vm501_vm2, %v1154_v43, -inf }
 0x5d1   :  { %1162 = vmax.xlane.f32.xlu1 %v1161_v45 }
 0x5e2   :  { %1256 = vrot.lane.b32.xlu1 %v11879_v33, %s11673_s1 }
 0x5e6   :  { %1334 = vrot.lane.b32.xlu1 %v11853_v22, %s11668_s15 }
 0x5ea   :  { %1412 = vrot.lane.b32.xlu1 %v11865_v29, %s11668_s15 }
 0x5ee   :  { %1410 = vrot.lane.b32.xlu1 %v11867_v30, %s11668_s15 }
 0x65e   :  { %v1163_v46 = vpop.xlane.xlu1 %1162 }
 0x65f   :  { %v1165_v50 = vsub.f32 %v1154_v43, %v1163_v46 }
 0x661   :  { %v1168_v51 = vmul.f32 1.442695, %v1165_v50 }
 0x662   :  { %v1257_v47 = vpop.permute.xlu1 %1256 }
 0x663   :  { %9848 = vmatpush3.msra.mxu0 %v1257_v47  ;;  %11348 = vpow2.f32 %v1168_v51 }
 0x664   :  { %9857 = vmatprep.subr.mxu0 %v11670_v0 }
 0x666   :  { %v921_v48 = vpop.f32.mrb[14].mxu1  ;;  %v1335_v63 = vpop.permute.xlu1 %1334 }
 0x667   :  { %v9826_v49 = vpop.f32.mrb[15].mxu1 }
 0x66a   :  { %v1413_v4 = vpop.permute.xlu1 %1412 }
 0x66d   :  { %v11349_v56 = vpop.eup %11348 }
 0x66e   :  { %v1173_v30 = vsel %vm501_vm2, %v11349_v56, 0.0  ;;  %v1411_v7 = vpop.permute.xlu1 %1410 }
 0x69b   :  { %v998_v52 = vpop.f32.mrb[16].mxu1 }
 0x69c   :  { %v11272_v53 = vpack.i.bf16 %v998_v52, %v921_v48  ;;  %v9831_v54 = vpop.f32.mrb[17].mxu1 }
 0x69d   :  { %v1695_v54 = vld [vmem:[#allocation8 + $0x8] sm:$0xff] }
 0x69f   :  { %v1076_v22 = vpop.f32.mrb[18].mxu1 }
 0x6a0   :  { %v9836_v55 = vpop.f32.mrb[19].mxu1  ;;  %v1158_v29 = vsel %vm501_vm2, %v1076_v22, -inf }
 0x6a1   :  { %1159 = vmax.xlane.f32.xlu0 %v1158_v29  ;;  %v1697_v29 = vld [vmem:[#allocation8 + $0x18] sm:$0xff] }
 0x6a5   :  { %1174 = vadd.xlane.f32.xlu0 %v1173_v30  ;;  %v1698_v30 = vld [vmem:[#allocation8 + $0x20] sm:$0xff] }
 0x6bb   :  { %1180 = vrot.lane.b32.xlu0 %v11883_v35, %s11673_s1 }
 0x72e   :  { %v1160_v57 = vpop.xlane.xlu0 %1159 }
 0x72f   :  { %v1164_v58 = vsub.f32 %v1076_v22, %v1160_v57  ;;  %v1696_v22 = vld [vmem:[#allocation8 + $0x10] sm:$0xff]  ;;  %v1699_v57 = vld [vmem:[#allocation8 + $0x28] sm:$0xff] }
 0x731   :  { %v1166_v59 = vmul.f32 1.442695, %v1164_v58  ;;  %v1700_v58 = vld [vmem:[#allocation8 + $0x30] sm:$0xff] }
 0x732   :  { %v1175_v60 = vpop.xlane.xlu0 %1174 }
 0x733   :  { %11350 = vpow2.f32 %v1166_v59  ;;  %v1701_v59 = vld [vmem:[#allocation8 + $0x38] sm:$0xff] }
 0x734   :  { %11352 = vrcp.f32 %v1175_v60  ;;  %v10433_v60 = vpack.c.bf16 %v1701_v59, %v1700_v58  ;;  %v1847_v58 = vld [vmem:[#allocation10 + $0x60] sm:$0xff]  ;;  %v1845_v59 = vld [vmem:[#allocation10 + $0x50] sm:$0xff] }
 0x736   :  { %v1181_v61 = vpop.permute.xlu0 %1180 }
 0x737   :  { %9843 = vmatpush3.msra.mxu1 %v1181_v61  ;;  %v1702_v61 = vld [vmem:[#allocation8 + $0x40] sm:$0xff] }
 0x738   :  { %9852 = vmatprep.subr.mxu1 %v11670_v0 }
 0x73d   :  { %v11351_v2 = vpop.eup %11350 }
 0x73e   :  { %v11353_v3 = vpop.eup %11352  ;;  %v1170_v5 = vsel %vm501_vm2, %v11351_v2, 0.0 }
 0x73f   :  { %1171 = vadd.xlane.f32.xlu0 %v1170_v5  ;;  %v1179_v6 = vmul.f32 %v11353_v3, %v11349_v56  ;;  %v10425_v56 = vpack.c.bf16 %v1697_v29, %v1696_v22  ;;  %v1704_v3 = vld [vmem:[#allocation8 + $0x50] sm:$0xff] }
 0x740   :  { %v1841_v22 = vld [vmem:[#allocation10 + $0x30] sm:$0xff] }
 0x741   :  { %9850 = vmatmul.mubr.msk.f32.vlgmr.msra.gmra.mrb[6].mxu0 %vm501_vm2, %v1179_v6  ;;  %v1706_v6 = vld [vmem:[#allocation8 + $0x60] sm:$0xff] }
 0x742   :  { %9858 = vmatpush3.xpose.msk.msra.mxu0 %vm348_vm1, %v1413_v4  ;;  %9859 = vmatprep.mubr.msk.f32.mxu0 %vm11671_vm0, %v11670_v0  ;;  %v1705_v4 = vld [vmem:[#allocation8 + $0x58] sm:$0xff] }
 0x743   :  { %9867 = vmatprep.subr.mxu0 %v11670_v0  ;;  %v10441_v5 = vpack.c.bf16 %v1705_v4, %v1704_v3 }
 0x745   :  { %9860 = vmatmul.mubr.msk.f32.vlgmr.msra.gmra.mrb[8].mxu0 %vm348_vm1, %v1411_v7  ;;  %v1707_v7 = vld [vmem:[#allocation8 + $0x68] sm:$0xff] }
 0x746   :  { %9869 = vmatprep.mubr.msk.f32.mxu0 %vm11671_vm0, %v11670_v0 }
 0x755   :  { %1332 = vrot.lane.b32.xlu0 %v11855_v23, %s11668_s15 }
 0x7cc   :  { %v1172_v8 = vpop.xlane.xlu0 %1171 }
 0x7cd   :  { %11354 = vrcp.f32 %v1172_v8  ;;  %v10445_v8 = vpack.c.bf16 %v1707_v7, %v1706_v6  ;;  %v1858_v6 = vld [vmem:[#allocation10 + $0xb8] sm:$0xff]  ;;  %v1851_v7 = vld [vmem:[#allocation10 + $0x80] sm:$0xff] }
 0x7d0   :  { %v1333_v12 = vpop.permute.xlu0 %1332 }
 0x7d7   :  { %v11355_v9 = vpop.eup %11354 }
 0x7d8   :  { %v1178_v11 = vmul.f32 %v11355_v9, %v11351_v2  ;;  %v1708_v9 = vld [vmem:[#allocation8 + $0x70] sm:$0xff] }
 0x7da   :  { %9845 = vmatmul.mubr.msk.f32.vlgmr.msra.gmra.mrb[20].mxu1 %vm501_vm2, %v1178_v11  ;;  %v1709_v11 = vld [vmem:[#allocation8 + $0x78] sm:$0xff] }
 0x7db   :  { %9853 = vmatpush3.xpose.msk.msra.mxu1 %vm348_vm1, %v1335_v63  ;;  %9854 = vmatprep.mubr.msk.f32.mxu1 %vm11671_vm0, %v11670_v0  ;;  %v1703_v63 = vld [vmem:[#allocation8 + $0x48] sm:$0xff] }
 0x7dc   :  { %9862 = vmatprep.subr.mxu1 %v11670_v0  ;;  %v10437_v2 = vpack.c.bf16 %v1703_v63, %v1702_v61  ;;  %v1849_v61 = vld [vmem:[#allocation10 + $0x70] sm:$0xff]  ;;  %v1852_v63 = vld [vmem:[#allocation10 + $0x88] sm:$0xff] }
 0x7dd   :  { %v10491_v3 = vpack.c.bf16 %v1849_v61, %v1845_v59  ;;  %v1884_v59 = vld [vmem:[#allocation10 + $0x188] sm:$0xff] }
 0x7de   :  { %9855 = vmatmul.mubr.msk.f32.vlgmr.msra.gmra.mrb[22].mxu1 %vm348_vm1, %v1333_v12  ;;  %v10449_v12 = vpack.c.bf16 %v1709_v11, %v1708_v9  ;;  %v1855_v9 = vld [vmem:[#allocation10 + $0xa0] sm:$0xff]  ;;  %v1853_v11 = vld [vmem:[#allocation10 + $0x90] sm:$0xff]  ;;  %v1888_v61 = vld [vmem:[#allocation10 + $0x1a8] sm:$0xff] }
 0x7df   :  { %9864 = vmatprep.mubr.msk.f32.mxu1 %vm11671_vm0, %v11670_v0 }
 0x814   :  { %v1328_v23 = vpop.f32.mrb[6].mxu0 }
 0x815   :  { %v9851_v15 = vpop.f32.mrb[7].mxu0 }
 0x818   :  { %v1484_v17 = vpop.f32.mrb[8].mxu0 }
 0x819   :  { %v9861_v18 = vpop.f32.mrb[9].mxu0  ;;  %v1491_v19 = vsel %vm501_vm2, %v1484_v17, -inf }
 0x81a   :  { %1492 = vmax.xlane.f32.xlu1 %v1491_v19 }
 0x82b   :  { %1586 = vrot.lane.b32.xlu1 %v11879_v33, %s11668_s15 }
 0x82f   :  { %11273 = vrot.lane.b32.xlu1 %v11272_v53, %s11668_s15  ;;  %v1694_v53 = vld [vmem:[#allocation8] sm:$0xff] }
 0x830   :  { %v10421_v55 = vpack.c.bf16 %v1695_v54, %v1694_v53  ;;  %v1837_v54 = vld [vmem:[#allocation10 + $0x10] sm:$0xff] }
 0x831   :  { %v10487_v29 = vpack.c.bf16 %v1841_v22, %v1837_v54  ;;  %v1876_v54 = vld [vmem:[#allocation10 + $0x148] sm:$0xff] }
 0x832   :  { %v1880_v22 = vld [vmem:[#allocation10 + $0x168] sm:$0xff] }
 0x8a7   :  { %v1493_v20 = vpop.xlane.xlu1 %1492 }
 0x8a8   :  { %v1495_v21 = vsub.f32 %v1484_v17, %v1493_v20 }
 0x8aa   :  { %v1498_v24 = vmul.f32 1.442695, %v1495_v21 }
 0x8ab   :  { %v1587_v27 = vpop.permute.xlu1 %1586 }
 0x8ac   :  { %11356 = vpow2.f32 %v1498_v24  ;;  %9868 = vmatpush3.msra.mxu0 %v1587_v27 }
 0x8ad   :  { %v1252_v28 = vpop.f32.mrb[20].mxu1 }
 0x8ae   :  { %v11277_v31 = vpack.i.bf16 %v1328_v23, %v1252_v28  ;;  %v9846_v32 = vpop.f32.mrb[21].mxu1 }
 0x8af   :  { %v11274_v18 = vpop.permute.xlu1 %11273 }
 0x8b0   :  { %11278 = vrot.lane.b32.xlu1 %v11277_v31, %s11673_s1  ;;  %v11276_v20 = vunpack.i.h.bf16 %v11274_v18  ;;  %v11275_v21 = vunpack.i.l.bf16 %v11274_v18 }
 0x8b1   :  { %v1406_v34 = vpop.f32.mrb[22].mxu1 }
 0x8b2   :  { %v9856_v36 = vpop.f32.mrb[23].mxu1  ;;  %v1488_v37 = vsel %vm501_vm2, %v1406_v34, -inf }
 0x8b3   :  { %1489 = vmax.xlane.f32.xlu0 %v1488_v37  ;;  %v1687_v36 = vsel %vm348_vm1, %v11917_v1, %v11276_v20 }
 0x8b6   :  { %v11357_v38 = vpop.eup %11356 }
 0x8b7   :  { %v1503_v33 = vsel %vm501_vm2, %v11357_v38, 0.0 }
 0x8b8   :  { %1504 = vadd.xlane.f32.xlu0 %v1503_v33 }
 0x922   :  { %v11279_v19 = vpop.permute.xlu1 %11278 }
 0x923   :  { %v11281_v24 = vunpack.i.h.bf16 %v11279_v19  ;;  %v11280_v27 = vunpack.i.l.bf16 %v11279_v19 }
 0x940   :  { %v1490_v39 = vpop.xlane.xlu0 %1489 }
 0x941   :  { %v1494_v40 = vsub.f32 %v1406_v34, %v1490_v39  ;;  %v1686_v34 = vsel %vm348_vm1, %v11915_v62, %v11275_v21 }
 0x942   :  { %v1689_v37 = vsel %vm1688_vm3, %v1686_v34, %v11280_v27  ;;  %v1862_v34 = vld [vmem:[#allocation10 + $0xd8] sm:$0xff] }
 0x943   :  { %v1496_v41 = vmul.f32 1.442695, %v1494_v40  ;;  %v9064_v40 = vld [vmem:[%s12801_s4] ss:$0 sm:$0xff] }
 0x945   :  { %11358 = vpow2.f32 %v1496_v41  ;;  %v1505_v42 = vpop.xlane.xlu0 %1504 }
 0x946   :  { %11360 = vrcp.f32 %v1505_v42 }
 0x94f   :  { %v11359_v43 = vpop.eup %11358 }
 0x950   :  { %v11361_v44 = vpop.eup %11360  ;;  %v1500_v45 = vsel %vm501_vm2, %v11359_v43, 0.0 }
 0x951   :  { %1501 = vadd.xlane.f32.xlu0 %v1500_v45  ;;  %v1509_v46 = vmul.f32 %v11361_v44, %v11357_v38  ;;  %v1690_v38 = vsel %vm1688_vm3, %v1687_v36, %v11281_v24  ;;  %v1836_v45 = vld [vmem:[#allocation10 + $0x8] sm:$0xff] }
 0x953   :  { %9870 = vmatmul.mubr.msk.f32.vlgmr.msra.gmra.mrb[10].mxu0 %vm501_vm2, %v1509_v46  ;;  %v1840_v46 = vld [vmem:[#allocation10 + $0x28] sm:$0xff] }
 0x954   :  { %1985 = vmatprep.mubr.f32.mxu0 %v11670_v0 }
 0x967   :  { %1510 = vrot.lane.b32.xlu0 %v11883_v35, %s11668_s15  ;;  %v10429_v35 = vpack.c.bf16 %v1699_v57, %v1698_v30  ;;  %v1850_v30 = vld [vmem:[#allocation10 + $0x78] sm:$0xff] }
 0x9de   :  { %v1502_v47 = vpop.xlane.xlu0 %1501 }
 0x9df   :  { %11362 = vrcp.f32 %v1502_v47  ;;  %v1838_v47 = vld [vmem:[#allocation10 + $0x18] sm:$0xff] }
 0x9e2   :  { %v1511_v48 = vpop.permute.xlu0 %1510 }
 0x9e3   :  { %9863 = vmatpush3.msra.mxu1 %v1511_v48  ;;  %v10453_v48 = vpack.c.bf16 %v1840_v46, %v1836_v45  ;;  %v1874_v46 = vld [vmem:[#allocation10 + $0x138] sm:$0xff] }
 0x9e4   :  { %10422 = vmatprep.subr.bf16.mxu1 %v10421_v55 }
 0x9e5   :  { %10454 = vmatprep.subr.bf16.mxu0 %v10453_v48  ;;  %v1871_v48 = vld [vmem:[#allocation10 + $0x120] sm:$0xff] }
 0x9e9   :  { %v11363_v49 = vpop.eup %11362 }
 0x9ea   :  { %v1508_v50 = vmul.f32 %v11363_v49, %v11359_v43  ;;  %v1842_v49 = vld [vmem:[#allocation10 + $0x38] sm:$0xff] }
 0x9ec   :  { %9865 = vmatmul.mubr.msk.f32.vlgmr.msra.gmra.mrb[24].mxu1 %vm501_vm2, %v1508_v50  ;;  %v1835_v50 = vld [vmem:[#allocation10] sm:$0xff] }
 0x9ed   :  { %10424 = vmatpush3.bf16.msra.mxu1 %v10421_v55  ;;  %v1844_v55 = vld [vmem:[#allocation10 + $0x48] sm:$0xff] }
 0x9ee   :  { %10426 = vmatprep.subr.bf16.mxu1 %v10425_v56 }
 0x9f1   :  { %10428 = vmatpush3.bf16.msra.mxu1 %v10425_v56  ;;  %v1848_v56 = vld [vmem:[#allocation10 + $0x68] sm:$0xff] }
 0x9f2   :  { %10430 = vmatprep.subr.bf16.mxu1 %v10429_v35 }
 0x9f5   :  { %10432 = vmatpush3.bf16.msra.mxu1 %v10429_v35  ;;  %v1843_v35 = vld [vmem:[#allocation10 + $0x40] sm:$0xff] }
 0x9f6   :  { %10434 = vmatprep.subr.bf16.mxu1 %v10433_v60 }
 0x9f9   :  { %10436 = vmatpush3.bf16.msra.mxu1 %v10433_v60  ;;  %v10459_v60 = vpack.c.bf16 %v1847_v58, %v1843_v35  ;;  %v1877_v35 = vld [vmem:[#allocation10 + $0x150] sm:$0xff] }
 0x9fa   :  { %10438 = vmatprep.subr.bf16.mxu1 %v10437_v2  ;;  %v1881_v58 = vld [vmem:[#allocation10 + $0x170] sm:$0xff] }
 0x9fd   :  { %10440 = vmatpush3.bf16.msra.mxu1 %v10437_v2  ;;  %v1856_v2 = vld [vmem:[#allocation10 + $0xa8] sm:$0xff] }
 0x9fe   :  { %10442 = vmatprep.subr.bf16.mxu1 %v10441_v5  ;;  %v10461_v4 = vpack.c.bf16 %v1856_v2, %v1852_v63  ;;  %v1886_v63 = vld [vmem:[#allocation10 + $0x198] sm:$0xff] }
 0x9ff   :  { %v1890_v2 = vld [vmem:[#allocation10 + $0x1b8] sm:$0xff] }
 0xa01   :  { %10444 = vmatpush3.bf16.msra.mxu1 %v10441_v5  ;;  %v1854_v5 = vld [vmem:[#allocation10 + $0x98] sm:$0xff] }
 0xa02   :  { %10446 = vmatprep.subr.bf16.mxu1 %v10445_v8 }
 0xa05   :  { %10448 = vmatpush3.bf16.msra.mxu1 %v10445_v8  ;;  %v10493_v8 = vpack.c.bf16 %v1858_v6, %v1854_v5  ;;  %v1883_v5 = vld [vmem:[#allocation10 + $0x180] sm:$0xff] }
 0xa06   :  { %10450 = vmatprep.subr.bf16.mxu1 %v10449_v12  ;;  %v1887_v6 = vld [vmem:[#allocation10 + $0x1a0] sm:$0xff] }
 0xa09   :  { %10452 = vmatpush3.bf16.msra.mxu1 %v10449_v12  ;;  %v1857_v12 = vld [vmem:[#allocation10 + $0xb0] sm:$0xff] }
 0xa26   :  { %v1658_v51 = vpop.f32.mrb[10].mxu0 }
 0xa27   :  { %v9871_v52 = vpop.f32.mrb[11].mxu0 }
 0xa28   :  { %v10485_v52 = vpack.c.bf16 %v1842_v49, %v1838_v47  ;;  %v1867_v47 = vld [vmem:[#allocation10 + $0x100] sm:$0xff] }
 0xa2a   :  { %10486 = vmatprep.subr.bf16.mxu1 %v10485_v52  ;;  %v1873_v52 = vld [vmem:[#allocation10 + $0x130] sm:$0xff] }
 0xabf   :  { %v1582_v23 = vpop.f32.mrb[24].mxu1 }
 0xac0   :  { %v11282_v15 = vpack.i.bf16 %v1658_v51, %v1582_v23  ;;  %v9866_v17 = vpop.f32.mrb[25].mxu1  ;;  %v1839_v51 = vld [vmem:[#allocation10 + $0x20] sm:$0xff]  ;;  %v10463_v23 = vpack.c.bf16 %v1855_v9, %v1851_v7  ;;  %v1885_v7 = vld [vmem:[#allocation10 + $0x190] sm:$0xff] }
 0xac1   :  { %v10455_v53 = vpack.c.bf16 %v1839_v51, %v1835_v50  ;;  %v10471_v50 = vpack.c.bf16 %v1871_v48, %v1867_v47  ;;  %v1869_v51 = vld [vmem:[#allocation10 + $0x110] sm:$0xff]  ;;  %v9066_v47 = vld [vmem:[%s12803_s6] ss:$0 sm:$0xff] }
 0xac2   :  { %11283 = vrot.lane.b32.xlu0 %v11282_v15, %s11672_s9  ;;  %v10495_v15 = vpack.c.bf16 %v1857_v12, %v1853_v11  ;;  %v1889_v9 = vld [vmem:[#allocation10 + $0x1b0] sm:$0xff]  ;;  %v1892_v11 = vld [vmem:[#allocation10 + $0x1c8] sm:$0xff] }
 0xac3   :  { %10456 = vmatpush1.bf16.msra.mxu0 %v10455_v53  ;;  %v10503_v53 = vpack.c.bf16 %v1873_v52, %v1869_v51  ;;  %v1896_v12 = vld [vmem:[#allocation10 + $0x1e8] sm:$0xff]  ;;  %v2115_v51 = vld [vmem:[#allocation11 + $0x100] sm:$0xff] }
 0xac4   :  { %v2116_v52 = vld [vmem:[#allocation11 + $0x108] sm:$0xff] }
 0xb34   :  { %v11284_v28 = vpop.permute.xlu0 %11283 }
 0xb35   :  { %v11286_v31 = vunpack.i.h.bf16 %v11284_v28  ;;  %v11285_v32 = vunpack.i.l.bf16 %v11284_v28 }
 0xb37   :  { %v1692_v33 = vsel %vm1691_vm4, %v1689_v37, %v11285_v32  ;;  %v1693_v39 = vsel %vm1691_vm4, %v1690_v38, %v11286_v31  ;;  %v1860_v31 = vld [vmem:[#allocation10 + $0xc8] sm:$0xff]  ;;  %v1866_v37 = vld [vmem:[#allocation10 + $0xf8] sm:$0xff]  ;;  %v1859_v38 = vld [vmem:[#allocation10 + $0xc0] sm:$0xff] }
 0xb38   :  { %9904 = vmatprep.mubr.f32.mxu1 %v1692_v33  ;;  %v1864_v32 = vld [vmem:[#allocation10 + $0xe8] sm:$0xff]  ;;  %v1863_v33 = vld [vmem:[#allocation10 + $0xe0] sm:$0xff] }
 0xb39   :  { %9905 = vmatmul.mubr.f32.vlgmr.msra.gmra.mrb[26].mxu1 %v1693_v39  ;;  %v10465_v36 = vpack.c.bf16 %v1864_v32, %v1860_v31  ;;  %v10497_v39 = vpack.c.bf16 %v1866_v37, %v1862_v34  ;;  %v1897_v31 = vld [vmem:[#allocation10 + $0x1f0] sm:$0xff]  ;;  %v2100_v37 = vld [vmem:[#allocation11 + $0x88] sm:$0xff] }
 0xb3a   :  { %2062 = vmatprep.mubr.f32.mxu1 %v11670_v0  ;;  %10488 = vmatpush1.bf16.msra.mxu1 %v10487_v29  ;;  %v10473_v29 = vpack.c.bf16 %v1880_v22, %v1876_v54  ;;  %v2102_v22 = vld [vmem:[#allocation11 + $0x98] sm:$0xff] }
 0xc0c   :  { %v9906_v62 = vpop.f32.mrb[26].mxu1 }
 0xc0d   :  { %v1789_v41 = vadd.f32 %v9906_v62, %v9064_v40  ;;  %v1783_v42 = vpop.f32.mrb[27].mxu1  ;;  %v1861_v62 = vld [vmem:[#allocation10 + $0xd0] sm:$0xff] }
 0xc0e   :  { %v1784_v1 = vadd.f32 %v9064_v40, %v1783_v42  ;;  %v10467_v40 = vpack.c.bf16 %v1863_v33, %v1859_v38  ;;  %v2131_v38 = vld [vmem:[#allocation11 + $0x180] sm:$0xff] }
 0xc0f   :  { %v1793_v43 = vadd.f32 %v1789_v41, %v11834_v10  ;;  %v1846_v10 = vld [vmem:[#allocation10 + $0x58] sm:$0xff]  ;;  %v1865_v41 = vld [vmem:[#allocation10 + $0xf0] sm:$0xff] }
 0xc10   :  { %v1792_v44 = vadd.f32 %v1784_v1, %v11828_v26  ;;  %v10457_v26 = vpack.c.bf16 %v1848_v56, %v1844_v55  ;;  %v10489_v57 = vpack.c.bf16 %v1850_v30, %v1846_v10  ;;  %v10499_v42 = vpack.c.bf16 %v1865_v41, %v1861_v62  ;;  %v1868_v1 = vld [vmem:[#allocation10 + $0x108] sm:$0xff]  ;;  %v1878_v55 = vld [vmem:[#allocation10 + $0x158] sm:$0xff]  ;;  %v1875_v10 = vld [vmem:[#allocation10 + $0x140] sm:$0xff] }
 0xc11   :  { %1798 = vadd.xlane.f32.xlu0 %v1793_v43  ;;  %v1882_v56 = vld [vmem:[#allocation10 + $0x178] sm:$0xff]  ;;  %v1879_v30 = vld [vmem:[#allocation10 + $0x160] sm:$0xff] }
 0xc12   :  { %1796 = vadd.xlane.f32.xlu1 %v1792_v44  ;;  %10458 = vmatprep.subr.bf16.mxu0 %v10457_v26  ;;  %v10505_v26 = vpack.c.bf16 %v1882_v56, %v1878_v55  ;;  %v2133_v55 = vld [vmem:[#allocation11 + $0x190] sm:$0xff] }
 0xc13   :  { %10490 = vmatprep.subr.bf16.mxu1 %v10489_v57  ;;  %10460 = vmatpush1.bf16.msra.mxu0 %v10459_v60  ;;  %v10475_v57 = vpack.c.bf16 %v1879_v30, %v1875_v10  ;;  %v10507_v60 = vpack.c.bf16 %v1881_v58, %v1877_v35  ;;  %v2085_v35 = vld [vmem:[#allocation11 + $0x10] sm:$0xff]  ;;  %v2086_v58 = vld [vmem:[#allocation11 + $0x18] sm:$0xff] }
 0xc14   :  { %10492 = vmatpush1.bf16.msra.mxu1 %v10491_v3  ;;  %10462 = vmatprep.subr.bf16.mxu0 %v10461_v4  ;;  %v10477_v3 = vpack.c.bf16 %v1888_v61, %v1884_v59  ;;  %v10509_v4 = vpack.c.bf16 %v1890_v2, %v1886_v63  ;;  %v2118_v61 = vld [vmem:[#allocation11 + $0x118] sm:$0xff]  ;;  %v2103_v63 = vld [vmem:[#allocation11 + $0xa0] sm:$0xff] }
 0xc15   :  { %10494 = vmatprep.subr.bf16.mxu1 %v10493_v8  ;;  %v10479_v8 = vpack.c.bf16 %v1887_v6, %v1883_v5  ;;  %v2136_v5 = vld [vmem:[#allocation11 + $0x1a8] sm:$0xff]  ;;  %v10523_v6 = vpack.c.bf16 %v2086_v58, %v2085_v35  ;;  %v2143_v35 = vld [vmem:[#allocation11 + $0x1e0] sm:$0xff] }
 0xc16   :  { %v2144_v58 = vld [vmem:[#allocation11 + $0x1e8] sm:$0xff] }
 0xc17   :  { %10464 = vmatpush1.bf16.msra.mxu0 %v10463_v23  ;;  %v10511_v23 = vpack.c.bf16 %v1889_v9, %v1885_v7  ;;  %v2088_v9 = vld [vmem:[#allocation11 + $0x28] sm:$0xff] }
 0xc18   :  { %10496 = vmatpush1.bf16.msra.mxu1 %v10495_v15  ;;  %10466 = vmatprep.subr.bf16.mxu0 %v10465_v36  ;;  %v10481_v15 = vpack.c.bf16 %v1896_v12, %v1892_v11  ;;  %v2099_v36 = vld [vmem:[#allocation11 + $0x80] sm:$0xff] }
 0xc19   :  { %10498 = vmatprep.subr.bf16.mxu1 %v10497_v39  ;;  %v10517_v33 = vpack.c.bf16 %v2100_v37, %v2099_v36  ;;  %v2132_v39 = vld [vmem:[#allocation11 + $0x188] sm:$0xff]  ;;  %v2121_v37 = vld [vmem:[#allocation11 + $0x130] sm:$0xff] }
 0xc1b   :  { %10468 = vmatpush1.bf16.msra.mxu0 %v10467_v40  ;;  %v10549_v40 = vpack.c.bf16 %v2132_v39, %v2131_v38  ;;  %v2122_v38 = vld [vmem:[#allocation11 + $0x138] sm:$0xff]  ;;  %v2108_v39 = vld [vmem:[#allocation11 + $0xc8] sm:$0xff] }
 0xc1c   :  { %10500 = vmatpush1.bf16.msra.mxu1 %v10499_v42 }
 0xc9e   :  { %v1799_v17 = vpop.xlane.xlu0 %1798 }
 0xc9f   :  { %v1797_v18 = vpop.xlane.xlu1 %1796  ;;  %v1802_v19 = vmul.f32 0.0078125, %v1799_v17  ;;  %v1894_v17 = vld [vmem:[#allocation10 + $0x1d8] sm:$0xff] }
 0xca0   :  { %v1801_v20 = vmul.f32 0.0078125, %v1797_v18  ;;  %v1898_v18 = vld [vmem:[#allocation10 + $0x1f8] sm:$0xff] }
 0xca1   :  { %v12019_v27 = vsub.f32 %v1793_v43, %v1802_v19  ;;  %v1872_v43 = vld [vmem:[#allocation10 + $0x128] sm:$0xff]  ;;  %v1891_v19 = vld [vmem:[#allocation10 + $0x1c0] sm:$0xff] }
 0xca2   :  { %v12015_v21 = vsub.f32 %v1792_v44, %v1801_v20  ;;  %v1870_v44 = vld [vmem:[#allocation10 + $0x118] sm:$0xff]  ;;  %v10469_v45 = vpack.c.bf16 %v1872_v43, %v1868_v1  ;;  %v10513_v20 = vpack.c.bf16 %v1898_v18, %v1894_v17  ;;  %v2105_v17 = vld [vmem:[#allocation11 + $0xb0] sm:$0xff] }
 0xca3   :  { %v1806_v28 = vmul.f32 %v12019_v27, %v12019_v27  ;;  %v10501_v49 = vpack.c.bf16 %v1874_v46, %v1870_v44  ;;  %v9065_v46 = vld [vmem:[%s12802_s5] ss:$0 sm:$0xff]  ;;  %v2106_v18 = vld [vmem:[#allocation11 + $0xb8] sm:$0xff] }
 0xca4   :  { %v1805_v24 = vmul.f32 %v12015_v21, %v12015_v21  ;;  %10470 = vmatprep.subr.bf16.mxu0 %v10469_v45 }
 0xca5   :  { %10502 = vmatprep.subr.bf16.mxu1 %v10501_v49  ;;  %10472 = vmatpush1.bf16.msra.mxu0 %v10471_v50  ;;  %v2083_v49 = vld [vmem:[#allocation11] sm:$0xff]  ;;  %v2084_v50 = vld [vmem:[#allocation11 + $0x8] sm:$0xff] }
 0xca6   :  { %1807 = vadd.xlane.f32.xlu0 %v1805_v24  ;;  %10504 = vmatpush1.bf16.msra.mxu1 %v10503_v53  ;;  %v1895_v24 = vld [vmem:[#allocation10 + $0x1e0] sm:$0xff]  ;;  %v2101_v53 = vld [vmem:[#allocation11 + $0x90] sm:$0xff] }
 0xca7   :  { %10474 = vmatprep.subr.bf16.mxu0 %v10473_v29  ;;  %10506 = vmatprep.subr.bf16.mxu1 %v10505_v26  ;;  %v10483_v32 = vpack.c.bf16 %v1895_v24, %v1891_v19  ;;  %v2134_v29 = vld [vmem:[#allocation11 + $0x198] sm:$0xff]  ;;  %v10519_v26 = vpack.c.bf16 %v2084_v50, %v2083_v49  ;;  %v10521_v59 = vpack.c.bf16 %v2102_v22, %v2101_v53  ;;  %v2137_v19 = vld [vmem:[#allocation11 + $0x1b0] sm:$0xff] }
 0xca8   :  { %v2110_v49 = vld [vmem:[#allocation11 + $0xd8] sm:$0xff]  ;;  %v2141_v50 = vld [vmem:[#allocation11 + $0x1d0] sm:$0xff] }
 0xca9   :  { %10476 = vmatpush1.bf16.msra.mxu0 %v10475_v57  ;;  %v10551_v57 = vpack.c.bf16 %v2116_v52, %v2115_v51  ;;  %v2142_v51 = vld [vmem:[#allocation11 + $0x1d8] sm:$0xff] }
 0xcaa   :  { %1809 = vadd.xlane.f32.xlu0 %v1806_v28  ;;  %10508 = vmatpush1.bf16.msra.mxu1 %v10507_v60  ;;  %v1893_v28 = vld [vmem:[#allocation10 + $0x1d0] sm:$0xff]  ;;  %v2094_v22 = vld [vmem:[#allocation11 + $0x58] sm:$0xff] }
 0xcab   :  { %10478 = vmatprep.subr.bf16.mxu0 %v10477_v3  ;;  %10510 = vmatprep.subr.bf16.mxu1 %v10509_v4  ;;  %v10515_v34 = vpack.c.bf16 %v1897_v31, %v1893_v28  ;;  %v2117_v60 = vld [vmem:[#allocation11 + $0x110] sm:$0xff]  ;;  %v2104_v3 = vld [vmem:[#allocation11 + $0xa8] sm:$0xff]  ;;  %v2135_v4 = vld [vmem:[#allocation11 + $0x1a0] sm:$0xff] }
 0xcac   :  { %v10555_v7 = vpack.c.bf16 %v2118_v61, %v2117_v60  ;;  %v10525_v11 = vpack.c.bf16 %v2104_v3, %v2103_v63  ;;  %v10557_v12 = vpack.c.bf16 %v2136_v5, %v2135_v4  ;;  %v2089_v31 = vld [vmem:[#allocation11 + $0x30] sm:$0xff]  ;;  %v10573_v61 = vpack.c.bf16 %v2144_v58, %v2143_v35  ;;  %v2095_v63 = vld [vmem:[#allocation11 + $0x60] sm:$0xff]  ;;  %v2128_v5 = vld [vmem:[#allocation11 + $0x168] sm:$0xff] }
 0xcad   :  { %10480 = vmatpush1.bf16.msra.mxu0 %v10479_v8  ;;  %v2087_v8 = vld [vmem:[#allocation11 + $0x20] sm:$0xff] }
 0xcae   :  { %10512 = vmatpush1.bf16.msra.mxu1 %v10511_v23  ;;  %10482 = vmatprep.subr.bf16.mxu0 %v10481_v15  ;;  %v2119_v23 = vld [vmem:[#allocation11 + $0x120] sm:$0xff]  ;;  %v2120_v15 = vld [vmem:[#allocation11 + $0x128] sm:$0xff]  ;;  %v10527_v24 = vpack.c.bf16 %v2088_v9, %v2087_v8  ;;  %v2114_v8 = vld [vmem:[#allocation11 + $0xf8] sm:$0xff] }
 0xcaf   :  { %10514 = vmatprep.subr.bf16.mxu1 %v10513_v20  ;;  %v2138_v20 = vld [vmem:[#allocation11 + $0x1b8] sm:$0xff]  ;;  %v10559_v28 = vpack.c.bf16 %v2120_v15, %v2119_v23  ;;  %v2127_v3 = vld [vmem:[#allocation11 + $0x160] sm:$0xff]  ;;  %v2145_v9 = vld [vmem:[#allocation11 + $0x1f0] sm:$0xff] }
 0xcb0   :  { %v10561_v36 = vpack.c.bf16 %v2138_v20, %v2137_v19  ;;  %v2097_v23 = vld [vmem:[#allocation11 + $0x70] sm:$0xff]  ;;  %v2098_v15 = vld [vmem:[#allocation11 + $0x78] sm:$0xff] }
 0xcb1   :  { %10484 = vmatpush1.bf16.msra.mxu0 %v10483_v32  ;;  %v2090_v32 = vld [vmem:[#allocation11 + $0x38] sm:$0xff]  ;;  %v2129_v19 = vld [vmem:[#allocation11 + $0x170] sm:$0xff] }
 0xcb2   :  { %10516 = vmatpush1.bf16.msra.mxu1 %v10515_v34  ;;  %10518 = vmatprep.subr.bf16.mxu0 %v10517_v33  ;;  %v10529_v34 = vpack.c.bf16 %v2106_v18, %v2105_v17  ;;  %v2107_v33 = vld [vmem:[#allocation11 + $0xc0] sm:$0xff]  ;;  %v10547_v18 = vpack.c.bf16 %v2098_v15, %v2097_v23  ;;  %v2130_v20 = vld [vmem:[#allocation11 + $0x178] sm:$0xff] }
 0xcb3   :  { %10550 = vmatprep.subr.bf16.mxu1 %v10549_v40  ;;  %v2139_v40 = vld [vmem:[#allocation11 + $0x1c0] sm:$0xff]  ;;  %v2347_v23 = vld [vmem:[#allocation5 + $0x180] sm:$0xff] }
 0xd33   :  { %v1808_v62 = vpop.xlane.xlu0 %1807 }
 0xd34   :  { %v1811_v41 = vmul.f32 0.0078125, %v1808_v62  ;;  %v2140_v62 = vld [vmem:[#allocation11 + $0x1c8] sm:$0xff] }
 0xd36   :  { %v1813_v42 = vadd.f32 1e-05, %v1811_v41  ;;  %v10531_v41 = vpack.c.bf16 %v2090_v32, %v2089_v31  ;;  %v12045_v31 = vsub.s32 3, %v11843_v13 }
 0xd37   :  { %v1810_v1 = vpop.xlane.xlu0 %1809 }
 0xd38   :  { %11364 = vrsqrt.f32 %v1813_v42  ;;  %v1812_v43 = vmul.f32 0.0078125, %v1810_v1  ;;  %v10563_v42 = vpack.c.bf16 %v2122_v38, %v2121_v37  ;;  %v2091_v1 = vld [vmem:[#allocation11 + $0x40] sm:$0xff] }
 0xd3a   :  { %v1814_v44 = vadd.f32 1e-05, %v1812_v43  ;;  %v2092_v43 = vld [vmem:[#allocation11 + $0x48] sm:$0xff] }
 0xd3b   :  { %v10535_v52 = vpack.c.bf16 %v2092_v43, %v2091_v1 }
 0xd3c   :  { %11366 = vrsqrt.f32 %v1814_v44  ;;  %v10533_v44 = vpack.c.bf16 %v2108_v39, %v2107_v33 }
 0xd42   :  { %v11365_v45 = vpop.eup %11364 }
 0xd43   :  { %v1817_v48 = vmul.f32 %v11365_v45, %v12015_v21  ;;  %v10553_v21 = vpack.c.bf16 %v2134_v29, %v2133_v55  ;;  %v10565_v45 = vpack.c.bf16 %v2140_v62, %v2139_v40  ;;  %v10569_v29 = vpack.c.bf16 %v2142_v51, %v2141_v50 }
 0xd45   :  { %v1825_v54 = vmul.f32 %v9065_v46, %v1817_v48  ;;  %v2109_v48 = vld [vmem:[#allocation11 + $0xd0] sm:$0xff] }
 0xd46   :  { %v11367_v56 = vpop.eup %11366  ;;  %v10537_v55 = vpack.c.bf16 %v2110_v49, %v2109_v48 }
 0xd47   :  { %v12030_v10 = vadd.f32 %v9066_v47, %v1825_v54  ;;  %v1818_v30 = vmul.f32 %v11367_v56, %v12019_v27  ;;  %v2093_v54 = vld [vmem:[#allocation11 + $0x50] sm:$0xff] }
 0xd48   :  { %v2125_v56 = vld [vmem:[#allocation11 + $0x150] sm:$0xff] }
 0xd49   :  { %1986 = vmatmul.mubr.f32.vlgmr.msra.gmra.mrb[12].mxu0 %v12030_v10  ;;  %2063 = vmatmul.mubr.f32.vlgmr.msra.gmra.mrb[28].mxu1 %v12030_v10  ;;  %v1826_v2 = vmul.f32 %v9065_v46, %v1818_v30  ;;  %v2123_v46 = vld [vmem:[#allocation11 + $0x140] sm:$0xff]  ;;  %v2126_v30 = vld [vmem:[#allocation11 + $0x158] sm:$0xff] }
 0xd4a   :  { %1991 = vmatprep.mubr.f32.mxu0 %v11670_v0  ;;  %2068 = vmatprep.mubr.f32.mxu1 %v11670_v0 }
 0xd4b   :  { %v12037_v27 = vadd.f32 %v9066_v47, %v1826_v2  ;;  %10520 = vmatpush3.bf16.msra.mxu0 %v10519_v26  ;;  %10552 = vmatpush3.bf16.msra.mxu1 %v10551_v57  ;;  %v2124_v47 = vld [vmem:[#allocation11 + $0x148] sm:$0xff]  ;;  %v2111_v26 = vld [vmem:[#allocation11 + $0xe0] sm:$0xff] }
 0xd4c   :  { %10522 = vmatprep.subr.bf16.mxu0 %v10521_v59  ;;  %10554 = vmatprep.subr.bf16.mxu1 %v10553_v21  ;;  %v10567_v53 = vpack.c.bf16 %v2124_v47, %v2123_v46  ;;  %v2112_v57 = vld [vmem:[#allocation11 + $0xe8] sm:$0xff]  ;;  %v10539_v59 = vpack.c.bf16 %v2094_v22, %v2093_v54  ;;  %v10571_v21 = vpack.c.bf16 %v2126_v30, %v2125_v56 }
 0xd4d   :  { %1992 = vmatmul.mubr.f32.gmra.mrb[14].mxu0 %v12037_v27  ;;  %2069 = vmatmul.mubr.f32.gmra.mrb[30].mxu1 %v12037_v27  ;;  %v10541_v60 = vpack.c.bf16 %v2112_v57, %v2111_v26  ;;  %v2096_v2 = vld [vmem:[#allocation11 + $0x68] sm:$0xff]  ;;  %v9067_v26 = vld [vmem:[%s12807_s10] ss:$0 sm:$0xff] }
 0xd4e   :  { %v10543_v4 = vpack.c.bf16 %v2096_v2, %v2095_v63 }
 0xd4f   :  { %10524 = vmatpush3.bf16.msra.mxu0 %v10523_v6  ;;  %10556 = vmatpush3.bf16.msra.mxu1 %v10555_v7  ;;  %v10575_v6 = vpack.c.bf16 %v2128_v5, %v2127_v3  ;;  %v2113_v7 = vld [vmem:[#allocation11 + $0xf0] sm:$0xff] }
 0xd50   :  { %10526 = vmatprep.subr.bf16.mxu0 %v10525_v11  ;;  %10558 = vmatprep.subr.bf16.mxu1 %v10557_v12  ;;  %v10545_v11 = vpack.c.bf16 %v2114_v8, %v2113_v7  ;;  %v2146_v12 = vld [vmem:[#allocation11 + $0x1f8] sm:$0xff] }
 0xd51   :  { %v10577_v17 = vpack.c.bf16 %v2146_v12, %v2145_v9  ;;  %v2351_v12 = vld [vmem:[#allocation5 + $0x1a0] sm:$0xff] }
 0xd53   :  { %10528 = vmatpush3.bf16.msra.mxu0 %v10527_v24  ;;  %10560 = vmatpush3.bf16.msra.mxu1 %v10559_v28  ;;  %v10579_v24 = vpack.c.bf16 %v2130_v20, %v2129_v19  ;;  %v1899_v28 = vld [vmem:[%s12805_s8] sm:$0xf] }
 0xd54   :  { %10530 = vmatprep.subr.bf16.mxu0 %v10529_v34  ;;  %10562 = vmatprep.subr.bf16.mxu1 %v10561_v36  ;;  %v1904_v32 = vrot.slane %v1899_v28, %v11846_v14  ;;  %v1912_v34 = vrot.slane %v1899_v28, %v11860_v25  ;;  %v1908_v36 = vrot.slane %v1899_v28, %v11849_v16  ;;  %v2357_v19 = vld [vmem:[#allocation5 + $0x1d0] sm:$0xff] }
 0xd55   :  { %v1916_v37 = vrot.slane %v1899_v28, %v12045_v31  ;;  %v2349_v28 = vld [vmem:[#allocation5 + $0x190] sm:$0xff] }
 0xd57   :  { %10532 = vmatpush3.bf16.msra.mxu0 %v10531_v41  ;;  %10564 = vmatpush3.bf16.msra.mxu1 %v10563_v42 }
 0xd58   :  { %10534 = vmatprep.subr.bf16.mxu0 %v10533_v44  ;;  %10566 = vmatprep.subr.bf16.mxu1 %v10565_v45 }
 0xd5b   :  { %10536 = vmatpush3.bf16.msra.mxu0 %v10535_v52  ;;  %10568 = vmatpush3.bf16.msra.mxu1 %v10567_v53 }
 0xd5c   :  { %10538 = vmatprep.subr.bf16.mxu0 %v10537_v55  ;;  %10570 = vmatprep.subr.bf16.mxu1 %v10569_v29 }
 0xd5f   :  { %10540 = vmatpush3.bf16.msra.mxu0 %v10539_v59  ;;  %10572 = vmatpush3.bf16.msra.mxu1 %v10571_v21 }
 0xd60   :  { %10542 = vmatprep.subr.bf16.mxu0 %v10541_v60  ;;  %10574 = vmatprep.subr.bf16.mxu1 %v10573_v61 }
 0xd63   :  { %10544 = vmatpush3.bf16.msra.mxu0 %v10543_v4  ;;  %10576 = vmatpush3.bf16.msra.mxu1 %v10575_v6 }
 0xd64   :  { %10546 = vmatprep.subr.bf16.mxu0 %v10545_v11  ;;  %10578 = vmatprep.subr.bf16.mxu1 %v10577_v17  ;;  %v2348_v11 = vld [vmem:[#allocation5 + $0x188] sm:$0xff]  ;;  %v2350_v17 = vld [vmem:[#allocation5 + $0x198] sm:$0xff] }
 0xd65   :  { %v10581_v15 = vpack.c.bf16 %v2351_v12, %v2348_v11  ;;  %v10583_v20 = vpack.c.bf16 %v2350_v17, %v2347_v23  ;;  %v2384_v11 = vld [vmem:[#allocation5 + $0x2a8] sm:$0xff]  ;;  %v2387_v12 = vld [vmem:[#allocation5 + $0x2c0] sm:$0xff]  ;;  %v2382_v17 = vld [vmem:[#allocation5 + $0x298] sm:$0xff] }
 0xd66   :  { %v2379_v23 = vld [vmem:[#allocation5 + $0x280] sm:$0xff] }
 0xd67   :  { %10548 = vmatpush3.bf16.msra.mxu0 %v10547_v18  ;;  %10580 = vmatpush3.bf16.msra.mxu1 %v10579_v24  ;;  %v2354_v18 = vld [vmem:[#allocation5 + $0x1b8] sm:$0xff] }
 0xd68   :  { %v10585_v24 = vpack.c.bf16 %v2357_v19, %v2354_v18  ;;  %10582 = vmatprep.subr.bf16.mxu0 %v10581_v15  ;;  %v10605_v15 = vpack.c.bf16 %v2387_v12, %v2384_v11  ;;  %v2383_v18 = vld [vmem:[#allocation5 + $0x2a0] sm:$0xff]  ;;  %v2386_v19 = vld [vmem:[#allocation5 + $0x2b8] sm:$0xff] }
 0xe1c   :  { %v1987_v38 = vpop.f32.mrb[12].mxu0  ;;  %v2064_v33 = vpop.f32.mrb[28].mxu1 }
 0xe1d   :  { %v1988_v39 = vadd.f32 %v1987_v38, %v1904_v32  ;;  %v2065_v40 = vadd.f32 %v2064_v33, %v1912_v34  ;;  %v1989_v62 = vpop.f32.mrb[13].mxu0  ;;  %v2066_v41 = vpop.f32.mrb[29].mxu1  ;;  %v2363_v38 = vld [vmem:[#allocation5 + $0x200] sm:$0xff] }
 0xe1e   :  { %v1990_v42 = vadd.f32 %v1989_v62, %v1908_v36  ;;  %v2067_v1 = vadd.f32 %v2066_v41, %v1916_v37  ;;  %v2355_v33 = vld [vmem:[#allocation5 + $0x1c0] sm:$0xff] }
 0xe1f   :  { %v2075_v46 = vmax.f32 %v1988_v39, 0.0  ;;  %v2077_v47 = vmax.f32 %v2065_v40, 0.0  ;;  %v2358_v39 = vld [vmem:[#allocation5 + $0x1d8] sm:$0xff]  ;;  %v2359_v41 = vld [vmem:[#allocation5 + $0x1e0] sm:$0xff] }
 0xe20   :  { %v2076_v43 = vmax.f32 %v1990_v42, 0.0  ;;  %v2078_v44 = vmax.f32 %v2067_v1, 0.0  ;;  %v1993_v13 = vpop.f32.mrb[14].mxu0  ;;  %v2070_v45 = vpop.f32.mrb[30].mxu1  ;;  %v10617_v62 = vpack.c.bf16 %v2358_v39, %v2355_v33  ;;  %v2362_v42 = vld [vmem:[#allocation5 + $0x1f8] sm:$0xff]  ;;  %v2391_v39 = vld [vmem:[#allocation5 + $0x2e0] sm:$0xff] }
 0xe21   :  { %v1994_v48 = vadd.f32 %v1993_v13, %v1904_v32  ;;  %v2071_v49 = vadd.f32 %v2070_v45, %v1912_v34  ;;  %v1995_v50 = vpop.f32.mrb[15].mxu0  ;;  %v2072_v51 = vpop.f32.mrb[31].mxu1  ;;  %v2352_v32 = vld [vmem:[#allocation5 + $0x1a8] sm:$0xff]  ;;  %v2353_v34 = vld [vmem:[#allocation5 + $0x1b0] sm:$0xff]  ;;  %v10591_v1 = vpack.c.bf16 %v2362_v42, %v2359_v41 }
 0xe22   :  { %v1996_v52 = vadd.f32 %v1995_v50, %v1908_v36  ;;  %v2073_v53 = vadd.f32 %v2072_v51, %v1916_v37  ;;  %2218 = vmatprep.mubr.f32.mxu0 %v2076_v43  ;;  %2293 = vmatprep.mubr.f32.mxu1 %v2078_v44  ;;  %v10613_v36 = vpack.c.bf16 %v2352_v32, %v2349_v28  ;;  %v2360_v37 = vld [vmem:[#allocation5 + $0x1e8] sm:$0xff]  ;;  %v2366_v50 = vld [vmem:[#allocation5 + $0x218] sm:$0xff]  ;;  %v2369_v51 = vld [vmem:[#allocation5 + $0x230] sm:$0xff] }
 0xe23   :  { %2219 = vmatmul.mubr.f32.vlgmr.msra.gmra.mrb[16].mxu0 %v2075_v46  ;;  %2294 = vmatmul.mubr.f32.vlgmr.msra.gmra.mrb[32].mxu1 %v2077_v47  ;;  %v2079_v55 = vmax.f32 %v1994_v48, 0.0  ;;  %v2081_v29 = vmax.f32 %v2071_v49, 0.0  ;;  %v10589_v40 = vpack.c.bf16 %v2363_v38, %v2360_v37  ;;  %v2390_v28 = vld [vmem:[#allocation5 + $0x2d8] sm:$0xff]  ;;  %v2393_v32 = vld [vmem:[#allocation5 + $0x2f0] sm:$0xff]  ;;  %v2392_v38 = vld [vmem:[#allocation5 + $0x2e8] sm:$0xff] }
 0xe24   :  { %v2080_v54 = vmax.f32 %v1996_v52, 0.0  ;;  %v2082_v22 = vmax.f32 %v2073_v53, 0.0  ;;  %10584 = vmatpush1.bf16.msra.mxu0 %v10583_v20  ;;  %10614 = vmatprep.subr.bf16.mxu1 %v10613_v36  ;;  %v2361_v52 = vld [vmem:[#allocation5 + $0x1f0] sm:$0xff]  ;;  %v10593_v53 = vpack.c.bf16 %v2369_v51, %v2366_v50  ;;  %v10633_v20 = vpack.c.bf16 %v2382_v17, %v2379_v23 }
 0xe25   :  { %10586 = vmatprep.subr.bf16.mxu0 %v10585_v24  ;;  %10616 = vmatpush3.bf16.msra.mxu1 %v10613_v36  ;;  %v10607_v24 = vpack.c.bf16 %v2386_v19, %v2383_v18  ;;  %v10609_v36 = vpack.c.bf16 %v2393_v32, %v2390_v28  ;;  %v2389_v37 = vld [vmem:[#allocation5 + $0x2d0] sm:$0xff] }
 0xe26   :  { %2223 = vmatprep.mubr.f32.mxu0 %v2080_v54  ;;  %2298 = vmatprep.mubr.f32.mxu1 %v2082_v22  ;;  %v2364_v54 = vld [vmem:[#allocation5 + $0x208] sm:$0xff]  ;;  %v2365_v22 = vld [vmem:[#allocation5 + $0x210] sm:$0xff]  ;;  %v10611_v33 = vpack.c.bf16 %v2392_v38, %v2389_v37 }
 0xe27   :  { %2224 = vmatmul.mubr.f32.gmra.mrb[18].mxu0 %v2079_v55  ;;  %2299 = vmatmul.mubr.f32.gmra.mrb[34].mxu1 %v2081_v29  ;;  %v2368_v55 = vld [vmem:[#allocation5 + $0x228] sm:$0xff]  ;;  %v10621_v29 = vpack.c.bf16 %v2364_v54, %v2361_v52  ;;  %v9069_v50 = vld [vmem:[%s12809_s12] ss:$0 sm:$0xff] }
 0xe28   :  { %2477 = vmatprep.mubr.f32.mxu0 %v11670_v0  ;;  %10618 = vmatprep.subr.bf16.mxu1 %v10617_v62 }
 0xe29   :  { %10620 = vmatpush3.bf16.msra.mxu1 %v10617_v62 }
 0xe2a   :  { %10622 = vmatprep.subr.bf16.mxu1 %v10621_v29 }
 0xe2d   :  { %10624 = vmatpush3.bf16.msra.mxu1 %v10621_v29 }
 0xef6   :  { %v9281_v56 = vpop.f32.mrb[16].mxu0  ;;  %v9319_v30 = vpop.f32.mrb[32].mxu1 }
 0xef7   :  { %v9282_v57 = vpop.f32.mrb[17].mxu0  ;;  %v9320_v35 = vpop.f32.mrb[33].mxu1 }
 0xef8   :  { %v9283_v58 = vadd.f32 %v9282_v57, %v9281_v56  ;;  %v9321_v59 = vadd.f32 %v9320_v35, %v9319_v30  ;;  %v10595_v56 = vpack.c.bf16 %v2368_v55, %v2365_v22  ;;  %v2372_v30 = vld [vmem:[#allocation5 + $0x248] sm:$0xff]  ;;  %v2367_v57 = vld [vmem:[#allocation5 + $0x220] sm:$0xff] }
 0xefa   :  { %v2221_v21 = vadd.f32 %v9283_v58, %v9067_v26  ;;  %v9284_v60 = vpop.f32.mrb[18].mxu0  ;;  %v9322_v61 = vpop.f32.mrb[34].mxu1  ;;  %v2370_v58 = vld [vmem:[#allocation5 + $0x238] sm:$0xff] }
 0xefb   :  { %v9285_v63 = vpop.f32.mrb[19].mxu0  ;;  %v9323_v2 = vpop.f32.mrb[35].mxu1 }
 0xefc   :  { %v2296_v3 = vadd.f32 %v9321_v59, %v2221_v21  ;;  %v9286_v4 = vadd.f32 %v9285_v63, %v9284_v60  ;;  %v9324_v5 = vadd.f32 %v9323_v2, %v9322_v61  ;;  %v2371_v59 = vld [vmem:[#allocation5 + $0x240] sm:$0xff]  ;;  %v2374_v21 = vld [vmem:[#allocation5 + $0x258] sm:$0xff]  ;;  %v10625_v60 = vpack.c.bf16 %v2370_v58, %v2367_v57  ;;  %v2381_v2 = vld [vmem:[#allocation5 + $0x290] sm:$0xff] }
 0xefd   :  { %v10599_v61 = vpack.c.bf16 %v2374_v21, %v2371_v59  ;;  %v2378_v63 = vld [vmem:[#allocation5 + $0x278] sm:$0xff] }
 0xefe   :  { %v2226_v6 = vadd.f32 %v9286_v4, %v9067_v26  ;;  %v2304_v7 = vadd.f32 %v2296_v3, %v12030_v10  ;;  %v2356_v10 = vld [vmem:[#allocation5 + $0x1c8] sm:$0xff]  ;;  %v2375_v26 = vld [vmem:[#allocation5 + $0x260] sm:$0xff]  ;;  %10626 = vmatprep.subr.bf16.mxu1 %v10625_v60  ;;  %v2373_v3 = vld [vmem:[#allocation5 + $0x250] sm:$0xff]  ;;  %v10601_v4 = vpack.c.bf16 %v2381_v2, %v2378_v63 }
 0xeff   :  { %v10597_v35 = vpack.c.bf16 %v2375_v26, %v2372_v30  ;;  %10628 = vmatpush3.bf16.msra.mxu1 %v10625_v60 }
 0xf00   :  { %v2301_v8 = vadd.f32 %v9324_v5, %v2226_v6  ;;  %2308 = vadd.xlane.f32.xlu1 %v2304_v7  ;;  %v2376_v5 = vld [vmem:[#allocation5 + $0x268] sm:$0xff]  ;;  %v2377_v6 = vld [vmem:[#allocation5 + $0x270] sm:$0xff] }
 0xf02   :  { %v2305_v9 = vadd.f32 %v2301_v8, %v12037_v27  ;;  %v10587_v27 = vpack.c.bf16 %v2356_v10, %v2353_v34  ;;  %v10629_v8 = vpack.c.bf16 %v2376_v5, %v2373_v3  ;;  %v2385_v34 = vld [vmem:[#allocation5 + $0x2b0] sm:$0xff]  ;;  %v2388_v10 = vld [vmem:[#allocation5 + $0x2c8] sm:$0xff] }
 0xf04   :  { %2310 = vadd.xlane.f32.xlu0 %v2305_v9  ;;  %10588 = vmatpush1.bf16.msra.mxu0 %v10587_v27  ;;  %v10637_v27 = vpack.c.bf16 %v2388_v10, %v2385_v34 }
 0xf05   :  { %10590 = vmatprep.subr.bf16.mxu0 %v10589_v40  ;;  %10630 = vmatprep.subr.bf16.mxu1 %v10629_v8  ;;  %v2394_v40 = vld [vmem:[#allocation5 + $0x2f8] sm:$0xff] }
 0xf06   :  { %10632 = vmatpush3.bf16.msra.mxu1 %v10629_v8  ;;  %v10641_v62 = vpack.c.bf16 %v2394_v40, %v2391_v39 }
 0xf07   :  { %10634 = vmatprep.subr.bf16.mxu1 %v10633_v20 }
 0xf08   :  { %10592 = vmatpush1.bf16.msra.mxu0 %v10591_v1 }
 0xf09   :  { %10594 = vmatprep.subr.bf16.mxu0 %v10593_v53 }
 0xf0a   :  { %10636 = vmatpush3.bf16.msra.mxu1 %v10633_v20 }
 0xf0b   :  { %10638 = vmatprep.subr.bf16.mxu1 %v10637_v27 }
 0xf0c   :  { %10596 = vmatpush1.bf16.msra.mxu0 %v10595_v56 }
 0xf0d   :  { %10598 = vmatprep.subr.bf16.mxu0 %v10597_v35 }
 0xf0e   :  { %10640 = vmatpush3.bf16.msra.mxu1 %v10637_v27 }
 0xf0f   :  { %10642 = vmatprep.subr.bf16.mxu1 %v10641_v62 }
 0xf10   :  { %10600 = vmatpush1.bf16.msra.mxu0 %v10599_v61 }
 0xf11   :  { %10602 = vmatprep.subr.bf16.mxu0 %v10601_v4 }
 0xf12   :  { %10644 = vmatpush3.bf16.msra.mxu1 %v10641_v62 }
 0xf13   :  { %9977 = vmatprep.subr.mxu1 %v11670_v0 }
 0xf8d   :  { %v2309_v43 = vpop.xlane.xlu1 %2308 }
 0xf8e   :  { %v2312_v44 = vmul.f32 0.0078125, %v2309_v43 }
 0xf90   :  { %v12057_v13 = vsub.f32 %v2304_v7, %v2312_v44  ;;  %v2380_v7 = vld [vmem:[#allocation5 + $0x288] sm:$0xff] }
 0xf91   :  { %v2311_v45 = vpop.xlane.xlu0 %2310 }
 0xf92   :  { %v2313_v46 = vmul.f32 0.0078125, %v2311_v45  ;;  %v2316_v47 = vmul.f32 %v12057_v13, %v12057_v13 }
 0xf94   :  { %2318 = vadd.xlane.f32.xlu1 %v2316_v47  ;;  %v12061_v48 = vsub.f32 %v2305_v9, %v2313_v46  ;;  %v10603_v9 = vpack.c.bf16 %v2380_v7, %v2377_v6  ;;  %v9068_v47 = vld [vmem:[%s12808_s11] ss:$0 sm:$0xff] }
 0xf96   :  { %v2317_v49 = vmul.f32 %v12061_v48, %v12061_v48  ;;  %10604 = vmatpush1.bf16.msra.mxu0 %v10603_v9 }
 0xf97   :  { %10606 = vmatprep.subr.bf16.mxu0 %v10605_v15 }
 0xf98   :  { %2320 = vadd.xlane.f32.xlu0 %v2317_v49 }
 0xf9a   :  { %10608 = vmatpush1.bf16.msra.mxu0 %v10607_v24 }
 0xf9b   :  { %10610 = vmatprep.subr.bf16.mxu0 %v10609_v36 }
 0xf9e   :  { %10612 = vmatpush1.bf16.msra.mxu0 %v10611_v33 }
 0xf9f   :  { %9942 = vmatprep.subr.mxu0 %v11670_v0 }
0x1021   :  { %v2319_v41 = vpop.xlane.xlu1 %2318 }
0x1022   :  { %v2322_v42 = vmul.f32 0.0078125, %v2319_v41 }
0x1024   :  { %v2324_v1 = vadd.f32 1e-05, %v2322_v42 }
0x1025   :  { %v2321_v43 = vpop.xlane.xlu0 %2320 }
0x1026   :  { %11368 = vrsqrt.f32 %v2324_v1  ;;  %v2323_v44 = vmul.f32 0.0078125, %v2321_v43 }
0x1028   :  { %v2325_v45 = vadd.f32 1e-05, %v2323_v44 }
0x102a   :  { %11370 = vrsqrt.f32 %v2325_v45 }
0x1030   :  { %v11369_v46 = vpop.eup %11368 }
0x1031   :  { %v2328_v49 = vmul.f32 %v11369_v46, %v12057_v13  ;;  %v2396_v13 = vld [vmem:[#allocation7 + $0x3] sm:$0x7] }
0x1032   :  { %v2405_v29 = vrot.slane %v2396_v13, %v11849_v16  ;;  %v2409_v57 = vrot.slane %v2396_v13, %v11860_v25 }
0x1033   :  { %v2336_v51 = vmul.f32 %v9068_v47, %v2328_v49 }
0x1034   :  { %v11371_v52 = vpop.eup %11370 }
0x1035   :  { %v12074_v53 = vadd.f32 %v9069_v50, %v2336_v51  ;;  %v2329_v54 = vmul.f32 %v11371_v52, %v12061_v48  ;;  %v2401_v48 = vrot.slane %v2396_v13, %v11846_v14 }
0x1037   :  { %2478 = vmatmul.mubr.f32.vlgmr.msra.gmra.mrb[20].mxu0 %v12074_v53  ;;  %9939 = vmatprep.mubr.f32.mxu1 %v12074_v53  ;;  %v2337_v22 = vmul.f32 %v9068_v47, %v2329_v54 }
0x1038   :  { %2483 = vmatprep.mubr.f32.mxu0 %v11670_v0 }
0x1039   :  { %v12080_v55 = vadd.f32 %v9069_v50, %v2337_v22 }
0x103b   :  { %2484 = vmatmul.mubr.f32.gmra.mrb[22].mxu0 %v12080_v55  ;;  %9940 = vmatmul.mubr.f32.vlgmr.msra.gmra.mrb[36].mxu1 %v12080_v55 }
0x103c   :  { %9944 = vmatprep.mubr.msk.f32.mxu0 %vm11671_vm0, %v11670_v0  ;;  %9979 = vmatprep.mubr.msk.f32.mxu1 %vm11671_vm0, %v11670_v0 }
0x110a   :  { %v2479_v56 = vpop.f32.mrb[20].mxu0 }
0x110b   :  { %v2480_v30 = vadd.f32 %v2479_v56, %v2401_v48  ;;  %v2481_v26 = vpop.f32.mrb[21].mxu0 }
0x110c   :  { %v12091_v35 = vadd.f32 %v2481_v26, %v2405_v29 }
0x110d   :  { %v12095_v21 = vmul.f32 0.17677669, %v2480_v30 }
0x110e   :  { %v2485_v58 = vpop.f32.mrb[22].mxu0  ;;  %v9941_v59 = vpop.f32.mrb[36].mxu1  ;;  %9943 = vmatpush3.xpose.msk.msra.mxu0 %vm348_vm1, %v12091_v35 }
0x110f   :  { %v2486_v60 = vadd.f32 %v2485_v58, %v2401_v48  ;;  %v12097_v61 = vadd.f32 %v9941_v59, %v2409_v57  ;;  %v2487_v63 = vpop.f32.mrb[23].mxu0  ;;  %v2556_v2 = vpop.f32.mrb[37].mxu1  ;;  %9947 = vmatprep.subr.mxu0 %v11670_v0 }
0x1110   :  { %v12100_v3 = vadd.f32 %v2487_v63, %v2405_v29  ;;  %v12111_v5 = vadd.f32 %v2556_v2, %v2409_v57 }
0x1111   :  { %9945 = vmatmul.mubr.msk.f32.vlgmr.msra.gmra.mrb[24].mxu0 %vm348_vm1, %v12095_v21  ;;  %v12108_v4 = vmul.f32 0.17677669, %v2486_v60 }
0x1112   :  { %9948 = vmatpush3.xpose.msk.msra.mxu0 %vm348_vm1, %v12100_v3  ;;  %9949 = vmatprep.mubr.msk.f32.mxu0 %vm11671_vm0, %v11670_v0 }
0x1113   :  { %9952 = vmatprep.subr.mxu0 %v11670_v0 }
0x1115   :  { %9950 = vmatmul.mubr.msk.f32.vlgmr.msra.gmra.mrb[26].mxu0 %vm348_vm1, %v12108_v4 }
0x1116   :  { %9953 = vmatpush3.msra.mxu0 %v12111_v5  ;;  %9954 = vmatprep.mubr.msk.f32.mxu0 %vm11671_vm0, %v11670_v0 }
0x1117   :  { %9957 = vmatprep.subr.mxu0 %v11670_v0 }
0x11e4   :  { %v2639_v6 = vpop.f32.mrb[24].mxu0 }
0x11e5   :  { %v9946_v7 = vpop.f32.mrb[25].mxu0  ;;  %v2719_v8 = vsel %vm501_vm2, %v2639_v6, -inf }
0x11e6   :  { %2720 = vmax.xlane.f32.xlu1 %v2719_v8 }
0x11e8   :  { %v2715_v9 = vpop.f32.mrb[26].mxu0 }
0x11e9   :  { %v9951_v11 = vpop.f32.mrb[27].mxu0  ;;  %v2722_v12 = vsel %vm501_vm2, %v2715_v9, -inf }
0x11ea   :  { %2723 = vmax.xlane.f32.xlu0 %v2722_v12 }
0x1273   :  { %v2721_v23 = vpop.xlane.xlu1 %2720 }
0x1274   :  { %v2725_v15 = vsub.f32 %v2639_v6, %v2721_v23 }
0x1276   :  { %v2727_v17 = vmul.f32 1.442695, %v2725_v15 }
0x1277   :  { %v2724_v18 = vpop.xlane.xlu0 %2723 }
0x1278   :  { %11372 = vpow2.f32 %v2727_v17  ;;  %v2726_v19 = vsub.f32 %v2715_v9, %v2724_v18 }
0x127a   :  { %v2729_v20 = vmul.f32 1.442695, %v2726_v19 }
0x127c   :  { %11374 = vpow2.f32 %v2729_v20 }
0x1282   :  { %v11373_v24 = vpop.eup %11372 }
0x1283   :  { %v2731_v28 = vsel %vm501_vm2, %v11373_v24, 0.0 }
0x1284   :  { %2732 = vadd.xlane.f32.xlu1 %v2731_v28 }
0x1286   :  { %v11375_v32 = vpop.eup %11374 }
0x1287   :  { %v2734_v34 = vsel %vm501_vm2, %v11375_v32, 0.0 }
0x1288   :  { %2735 = vadd.xlane.f32.xlu0 %v2734_v34 }
0x1295   :  { %2889 = vrot.lane.b32.xlu1 %v12091_v35, %s11672_s9 }
0x1299   :  { %2967 = vrot.lane.b32.xlu1 %v12100_v3, %s11672_s9 }
0x129d   :  { %2965 = vrot.lane.b32.xlu1 %v12108_v4, %s11672_s9 }
0x129e   :  { %2887 = vrot.lane.b32.xlu0 %v12095_v21, %s11672_s9 }
0x1311   :  { %v2733_v36 = vpop.xlane.xlu1 %2732 }
0x1312   :  { %11376 = vrcp.f32 %v2733_v36 }
0x1315   :  { %v2736_v10 = vpop.xlane.xlu0 %2735  ;;  %v2890_v33 = vpop.permute.xlu1 %2889 }
0x1316   :  { %11378 = vrcp.f32 %v2736_v10 }
0x1319   :  { %v2968_v40 = vpop.permute.xlu1 %2967  ;;  %v2888_v62 = vpop.permute.xlu0 %2887 }
0x131c   :  { %v11377_v37 = vpop.eup %11376 }
0x131d   :  { %v2739_v38 = vmul.f32 %v11377_v37, %v11373_v24  ;;  %v2966_v41 = vpop.permute.xlu1 %2965 }
0x131f   :  { %9955 = vmatmul.mubr.msk.f32.vlgmr.msra.gmra.mrb[28].mxu0 %vm501_vm2, %v2739_v38 }
0x1320   :  { %v11379_v27 = vpop.eup %11378  ;;  %9958 = vmatpush3.msra.mxu0 %v12097_v61  ;;  %9959 = vmatprep.mubr.msk.f32.mxu0 %vm11671_vm0, %v11670_v0 }
0x1321   :  { %v2740_v39 = vmul.f32 %v11379_v27, %v11375_v32  ;;  %9962 = vmatprep.subr.mxu0 %v11670_v0 }
0x1323   :  { %9960 = vmatmul.mubr.msk.f32.vlgmr.msra.gmra.mrb[30].mxu0 %vm501_vm2, %v2740_v39 }
0x1324   :  { %9964 = vmatprep.mubr.msk.f32.mxu0 %vm11671_vm0, %v11670_v0 }
0x1327   :  { %9963 = vmatpush3.xpose.msk.msra.mxu0 %vm348_vm1, %v2890_v33 }
0x1328   :  { %9967 = vmatprep.subr.mxu0 %v11670_v0 }
0x132a   :  { %9965 = vmatmul.mubr.msk.f32.vlgmr.msra.gmra.mrb[32].mxu0 %vm348_vm1, %v2888_v62 }
0x132b   :  { %9968 = vmatpush3.xpose.msk.msra.mxu0 %vm348_vm1, %v2968_v40  ;;  %9969 = vmatprep.mubr.msk.f32.mxu0 %vm11671_vm0, %v11670_v0 }
0x132c   :  { %9972 = vmatprep.subr.mxu0 %v11670_v0 }
0x132e   :  { %9970 = vmatmul.mubr.msk.f32.vlgmr.msra.gmra.mrb[34].mxu0 %vm348_vm1, %v2966_v41 }
0x132f   :  { %9974 = vmatprep.mubr.msk.f32.mxu0 %vm11671_vm0, %v11670_v0 }
0x13f2   :  { %v12149_v42 = vpop.f32.mrb[28].mxu0 }
0x13f3   :  { %v9956_v1 = vpop.f32.mrb[29].mxu0 }
0x13f6   :  { %v12151_v43 = vpop.f32.mrb[30].mxu0 }
0x13f7   :  { %v9961_v44 = vpop.f32.mrb[31].mxu0 }
0x13fd   :  { %v2961_v45 = vpop.f32.mrb[32].mxu0 }
0x13fe   :  { %v9966_v46 = vpop.f32.mrb[33].mxu0  ;;  %v3043_v47 = vsel %vm501_vm2, %v2961_v45, -inf }
0x13ff   :  { %3044 = vmax.xlane.f32.xlu1 %v3043_v47 }
0x1401   :  { %v3039_v49 = vpop.f32.mrb[34].mxu0 }
0x1402   :  { %v9971_v50 = vpop.f32.mrb[35].mxu0  ;;  %v3046_v51 = vsel %vm501_vm2, %v3039_v49, -inf }
0x1403   :  { %3047 = vmax.xlane.f32.xlu0 %v3046_v51 }
0x1410   :  { %3066 = vrot.lane.b32.xlu1 %v12111_v5, %s11672_s9 }
0x1414   :  { %3221 = vrot.lane.b32.xlu1 %v12091_v35, %s11673_s1 }
0x1418   :  { %3299 = vrot.lane.b32.xlu1 %v12100_v3, %s11673_s1 }
0x1419   :  { %3143 = vrot.lane.b32.xlu0 %v12097_v61, %s11672_s9 }
0x141c   :  { %3219 = vrot.lane.b32.xlu1 %v12095_v21, %s11673_s1 }
0x148c   :  { %v3045_v52 = vpop.xlane.xlu1 %3044 }
0x148d   :  { %v3049_v54 = vsub.f32 %v2961_v45, %v3045_v52 }
0x148f   :  { %v3051_v22 = vmul.f32 1.442695, %v3049_v54 }
0x1490   :  { %v3067_v13 = vpop.permute.xlu1 %3066  ;;  %v3048_v48 = vpop.xlane.xlu0 %3047 }
0x1491   :  { %11380 = vpow2.f32 %v3051_v22  ;;  %v3050_v29 = vsub.f32 %v3039_v49, %v3048_v48  ;;  %9973 = vmatpush3.msra.mxu0 %v3067_v13 }
0x1492   :  { %9982 = vmatprep.subr.mxu0 %v11670_v0 }
0x1493   :  { %v3053_v56 = vmul.f32 1.442695, %v3050_v29 }
0x1494   :  { %v3144_v30 = vpop.permute.xlu0 %3143  ;;  %v3222_v2 = vpop.permute.xlu1 %3221 }
0x1495   :  { %11382 = vpow2.f32 %v3053_v56  ;;  %9978 = vmatpush3.msra.mxu1 %v3144_v30 }
0x1496   :  { %9987 = vmatprep.subr.mxu1 %v11670_v0 }
0x1498   :  { %v3300_v7 = vpop.permute.xlu1 %3299 }
0x149b   :  { %v11381_v26 = vpop.eup %11380 }
0x149c   :  { %v3055_v57 = vsel %vm501_vm2, %v11381_v26, 0.0  ;;  %v3220_v12 = vpop.permute.xlu1 %3219 }
0x149d   :  { %3056 = vadd.xlane.f32.xlu0 %v3055_v57 }
0x149f   :  { %v11383_v58 = vpop.eup %11382 }
0x14a0   :  { %v3058_v59 = vsel %vm501_vm2, %v11383_v58, 0.0 }
0x14a1   :  { %3059 = vadd.xlane.f32.xlu0 %v3058_v59 }
0x14b7   :  { %3297 = vrot.lane.b32.xlu0 %v12108_v4, %s11673_s1 }
0x152a   :  { %v3057_v60 = vpop.xlane.xlu0 %3056 }
0x152b   :  { %11384 = vrcp.f32 %v3057_v60 }
0x152e   :  { %v3060_v63 = vpop.xlane.xlu0 %3059 }
0x152f   :  { %11386 = vrcp.f32 %v3060_v63 }
0x1532   :  { %v3298_v23 = vpop.permute.xlu0 %3297 }
0x1535   :  { %v11385_v6 = vpop.eup %11384 }
0x1536   :  { %v3063_v8 = vmul.f32 %v11385_v6, %v11381_v26 }
0x1538   :  { %9975 = vmatmul.mubr.msk.f32.vlgmr.msra.gmra.mrb[36].mxu0 %vm501_vm2, %v3063_v8 }
0x1539   :  { %v11387_v9 = vpop.eup %11386  ;;  %9983 = vmatpush3.xpose.msk.msra.mxu0 %vm348_vm1, %v3222_v2  ;;  %9984 = vmatprep.mubr.msk.f32.mxu0 %vm11671_vm0, %v11670_v0 }
0x153a   :  { %v3064_v11 = vmul.f32 %v11387_v9, %v11383_v58  ;;  %9992 = vmatprep.subr.mxu0 %v11670_v0 }
0x153c   :  { %9980 = vmatmul.mubr.msk.f32.vlgmr.msra.gmra.mrb[38].mxu1 %vm501_vm2, %v3064_v11  ;;  %9985 = vmatmul.mubr.msk.f32.vlgmr.msra.gmra.mrb[38].mxu0 %vm348_vm1, %v3220_v12 }
0x153d   :  { %9988 = vmatpush3.xpose.msk.msra.mxu1 %vm348_vm1, %v3300_v7  ;;  %9989 = vmatprep.mubr.msk.f32.mxu1 %vm11671_vm0, %v11670_v0 }
0x153e   :  { %9997 = vmatprep.subr.mxu1 %v11670_v0  ;;  %9994 = vmatprep.mubr.msk.f32.mxu0 %vm11671_vm0, %v11670_v0 }
0x1540   :  { %9990 = vmatmul.mubr.msk.f32.vlgmr.msra.gmra.mrb[40].mxu1 %vm348_vm1, %v3298_v23 }
0x1541   :  { %9999 = vmatprep.mubr.msk.f32.mxu1 %vm11671_vm0, %v11670_v0 }
0x160b   :  { %v12187_v15 = vpop.f32.mrb[36].mxu0 }
0x160c   :  { %v9976_v17 = vpop.f32.mrb[37].mxu0 }
0x160f   :  { %v12189_v18 = vpop.f32.mrb[38].mxu1  ;;  %v3293_v19 = vpop.f32.mrb[38].mxu0 }
0x1610   :  { %v11287_v20 = vpack.i.bf16 %v12189_v18, %v12187_v15  ;;  %v9981_v24 = vpop.f32.mrb[39].mxu1  ;;  %v9986_v28 = vpop.f32.mrb[39].mxu0  ;;  %v3375_v32 = vsel %vm501_vm2, %v3293_v19, -inf }
0x1611   :  { %3376 = vmax.xlane.f32.xlu1 %v3375_v32 }
0x1613   :  { %v3371_v34 = vpop.f32.mrb[40].mxu1 }
0x1614   :  { %v9991_v36 = vpop.f32.mrb[41].mxu1  ;;  %v3378_v10 = vsel %vm501_vm2, %v3371_v34, -inf }
0x1615   :  { %3379 = vmax.xlane.f32.xlu0 %v3378_v10  ;;  %v3911_v36 = vld [vmem:[#allocation8 + $0x88] sm:$0xff]  ;;  %v3912_v10 = vld [vmem:[#allocation8 + $0x90] sm:$0xff] }
0x1622   :  { %3397 = vrot.lane.b32.xlu1 %v12111_v5, %s11673_s1 }
0x1626   :  { %3551 = vrot.lane.b32.xlu1 %v12091_v35, %s11668_s15 }
0x162a   :  { %3629 = vrot.lane.b32.xlu1 %v12100_v3, %s11668_s15 }
0x162b   :  { %3473 = vrot.lane.b32.xlu0 %v12097_v61, %s11673_s1 }
0x162e   :  { %3549 = vrot.lane.b32.xlu1 %v12095_v21, %s11668_s15 }
0x169e   :  { %v3377_v37 = vpop.xlane.xlu1 %3376 }
0x169f   :  { %v3381_v38 = vsub.f32 %v3293_v19, %v3377_v37  ;;  %v3913_v37 = vld [vmem:[#allocation8 + $0x98] sm:$0xff] }
0x16a1   :  { %v3383_v27 = vmul.f32 1.442695, %v3381_v38  ;;  %v10649_v38 = vpack.c.bf16 %v3913_v37, %v3912_v10  ;;  %v4060_v37 = vld [vmem:[#allocation10 + $0x230] sm:$0xff] }
0x16a2   :  { %v3380_v33 = vpop.xlane.xlu0 %3379  ;;  %v3398_v39 = vpop.permute.xlu1 %3397 }
0x16a3   :  { %11388 = vpow2.f32 %v3383_v27  ;;  %v3382_v40 = vsub.f32 %v3371_v34, %v3380_v33  ;;  %9993 = vmatpush3.msra.mxu0 %v3398_v39  ;;  %v3910_v34 = vld [vmem:[#allocation8 + $0x80] sm:$0xff]  ;;  %v3915_v33 = vld [vmem:[#allocation8 + $0xa8] sm:$0xff] }
0x16a4   :  { %10002 = vmatprep.subr.mxu0 %v11670_v0  ;;  %v3914_v27 = vld [vmem:[#allocation8 + $0xa0] sm:$0xff] }
0x16a5   :  { %v3385_v35 = vmul.f32 1.442695, %v3382_v40  ;;  %v10653_v39 = vpack.c.bf16 %v3915_v33, %v3914_v27  ;;  %v3916_v40 = vld [vmem:[#allocation8 + $0xb0] sm:$0xff]  ;;  %v4067_v33 = vld [vmem:[#allocation10 + $0x268] sm:$0xff] }
0x16a6   :  { %v3474_v62 = vpop.permute.xlu0 %3473  ;;  %v3552_v46 = vpop.permute.xlu1 %3551 }
0x16a7   :  { %11390 = vpow2.f32 %v3385_v35  ;;  %9998 = vmatpush3.msra.mxu1 %v3474_v62  ;;  %v3917_v35 = vld [vmem:[#allocation8 + $0xb8] sm:$0xff] }
0x16a8   :  { %10007 = vmatprep.subr.mxu1 %v11670_v0  ;;  %v10657_v62 = vpack.c.bf16 %v3917_v35, %v3916_v40  ;;  %v4062_v35 = vld [vmem:[#allocation10 + $0x240] sm:$0xff] }
0x16aa   :  { %v3630_v49 = vpop.permute.xlu1 %3629 }
0x16ad   :  { %v11389_v3 = vpop.eup %11388 }
0x16ae   :  { %v3387_v41 = vsel %vm501_vm2, %v11389_v3, 0.0 }
0x16af   :  { %3388 = vadd.xlane.f32.xlu0 %v3387_v41  ;;  %v3919_v41 = vld [vmem:[#allocation8 + $0xc8] sm:$0xff] }
0x16b1   :  { %v11391_v21 = vpop.eup %11390 }
0x16b2   :  { %v3390_v1 = vsel %vm501_vm2, %v11391_v21, 0.0 }
0x16b3   :  { %3391 = vadd.xlane.f32.xlu0 %v3390_v1  ;;  %v3920_v1 = vld [vmem:[#allocation8 + $0xd0] sm:$0xff] }
0x16c9   :  { %3627 = vrot.lane.b32.xlu0 %v12108_v4, %s11668_s15  ;;  %v3550_v4 = vpop.permute.xlu1 %3549 }
0x173c   :  { %v3389_v44 = vpop.xlane.xlu0 %3388 }
0x173d   :  { %11392 = vrcp.f32 %v3389_v44  ;;  %v3921_v44 = vld [vmem:[#allocation8 + $0xd8] sm:$0xff] }
0x1740   :  { %v3392_v45 = vpop.xlane.xlu0 %3391 }
0x1741   :  { %11394 = vrcp.f32 %v3392_v45  ;;  %v10665_v45 = vpack.c.bf16 %v3921_v44, %v3920_v1  ;;  %v4071_v1 = vld [vmem:[#allocation10 + $0x288] sm:$0xff] }
0x1742   :  { %v4075_v44 = vld [vmem:[#allocation10 + $0x2a8] sm:$0xff] }
0x1744   :  { %v3628_v54 = vpop.permute.xlu0 %3627 }
0x1747   :  { %v11393_v47 = vpop.eup %11392 }
0x1748   :  { %v3395_v50 = vmul.f32 %v11393_v47, %v11389_v3  ;;  %v3918_v3 = vld [vmem:[#allocation8 + $0xc0] sm:$0xff]  ;;  %v3923_v47 = vld [vmem:[#allocation8 + $0xe8] sm:$0xff] }
0x174a   :  { %9995 = vmatmul.mubr.msk.f32.vlgmr.msra.gmra.mrb[40].mxu0 %vm501_vm2, %v3395_v50  ;;  %v3924_v50 = vld [vmem:[#allocation8 + $0xf0] sm:$0xff] }
0x174b   :  { %v11395_v51 = vpop.eup %11394  ;;  %10003 = vmatpush3.xpose.msk.msra.mxu0 %vm348_vm1, %v3552_v46  ;;  %10004 = vmatprep.mubr.msk.f32.mxu0 %vm11671_vm0, %v11670_v0  ;;  %v3922_v46 = vld [vmem:[#allocation8 + $0xe0] sm:$0xff] }
0x174c   :  { %v3396_v52 = vmul.f32 %v11395_v51, %v11391_v21  ;;  %10012 = vmatprep.subr.mxu0 %v11670_v0  ;;  %v10661_v21 = vpack.c.bf16 %v3919_v41, %v3918_v3  ;;  %v3925_v51 = vld [vmem:[#allocation8 + $0xf8] sm:$0xff]  ;;  %v4064_v3 = vld [vmem:[#allocation10 + $0x250] sm:$0xff] }
0x174e   :  { %10000 = vmatmul.mubr.msk.f32.vlgmr.msra.gmra.mrb[42].mxu1 %vm501_vm2, %v3396_v52  ;;  %10005 = vmatmul.mubr.msk.f32.vlgmr.msra.gmra.mrb[42].mxu0 %vm348_vm1, %v3550_v4  ;;  %v10673_v52 = vpack.c.bf16 %v3925_v51, %v3924_v50  ;;  %v4070_v50 = vld [vmem:[#allocation10 + $0x280] sm:$0xff] }
0x174f   :  { %10008 = vmatpush3.xpose.msk.msra.mxu1 %vm348_vm1, %v3630_v49  ;;  %10009 = vmatprep.mubr.msk.f32.mxu1 %vm11671_vm0, %v11670_v0  ;;  %v10669_v49 = vpack.c.bf16 %v3923_v47, %v3922_v46  ;;  %v10685_v46 = vpack.c.bf16 %v4075_v44, %v4071_v1  ;;  %v4073_v47 = vld [vmem:[#allocation10 + $0x298] sm:$0xff] }
0x1750   :  { %10017 = vmatprep.subr.mxu1 %v11670_v0  ;;  %10014 = vmatprep.mubr.msk.f32.mxu0 %vm11671_vm0, %v11670_v0  ;;  %v4105_v1 = vld [vmem:[#allocation10 + $0x398] sm:$0xff] }
0x1751   :  { %v4109_v44 = vld [vmem:[#allocation10 + $0x3b8] sm:$0xff] }
0x1752   :  { %10010 = vmatmul.mubr.msk.f32.vlgmr.msra.gmra.mrb[44].mxu1 %vm348_vm1, %v3628_v54 }
0x1753   :  { %10019 = vmatprep.mubr.msk.f32.mxu1 %vm11671_vm0, %v11670_v0 }
0x181d   :  { %v3469_v22 = vpop.f32.mrb[40].mxu0 }
0x181e   :  { %v9996_v13 = vpop.f32.mrb[41].mxu0 }
0x1821   :  { %v3545_v48 = vpop.f32.mrb[42].mxu1  ;;  %v3623_v29 = vpop.f32.mrb[42].mxu0 }
0x1822   :  { %v11292_v56 = vpack.i.bf16 %v3545_v48, %v3469_v22  ;;  %v10001_v30 = vpop.f32.mrb[43].mxu1  ;;  %v10006_v26 = vpop.f32.mrb[43].mxu0  ;;  %v3705_v57 = vsel %vm501_vm2, %v3623_v29, -inf }
0x1823   :  { %3706 = vmax.xlane.f32.xlu1 %v3705_v57 }
0x1825   :  { %v3701_v58 = vpop.f32.mrb[44].mxu1 }
0x1826   :  { %v10011_v59 = vpop.f32.mrb[45].mxu1  ;;  %v3708_v60 = vsel %vm501_vm2, %v3701_v58, -inf }
0x1827   :  { %3709 = vmax.xlane.f32.xlu0 %v3708_v60 }
0x1834   :  { %3727 = vrot.lane.b32.xlu1 %v12111_v5, %s11668_s15 }
0x1838   :  { %11288 = vrot.lane.b32.xlu1 %v11287_v20, %s11668_s15 }
0x183c   :  { %11293 = vrot.lane.b32.xlu1 %v11292_v56, %s11673_s1 }
0x18b0   :  { %v3707_v63 = vpop.xlane.xlu1 %3706 }
0x18b1   :  { %v3711_v2 = vsub.f32 %v3623_v29, %v3707_v63 }
0x18b3   :  { %v3713_v6 = vmul.f32 1.442695, %v3711_v2 }
0x18b4   :  { %v3710_v7 = vpop.xlane.xlu0 %3709  ;;  %v3728_v8 = vpop.permute.xlu1 %3727 }
0x18b5   :  { %11396 = vpow2.f32 %v3713_v6  ;;  %v3712_v9 = vsub.f32 %v3701_v58, %v3710_v7  ;;  %10013 = vmatpush3.msra.mxu0 %v3728_v8 }
0x18b7   :  { %v3715_v11 = vmul.f32 1.442695, %v3712_v9 }
0x18b8   :  { %v11289_v29 = vpop.permute.xlu1 %11288 }
0x18b9   :  { %11398 = vpow2.f32 %v3715_v11  ;;  %v11291_v30 = vunpack.i.h.bf16 %v11289_v29  ;;  %v11290_v26 = vunpack.i.l.bf16 %v11289_v29 }
0x18bb   :  { %v3903_v2 = vsel %vm348_vm1, %v12149_v42, %v11290_v26  ;;  %v3904_v6 = vsel %vm348_vm1, %v12151_v43, %v11291_v30 }
0x18bc   :  { %v11294_v56 = vpop.permute.xlu1 %11293 }
0x18bd   :  { %v11296_v57 = vunpack.i.h.bf16 %v11294_v56  ;;  %v11295_v58 = vunpack.i.l.bf16 %v11294_v56 }
0x18bf   :  { %v11397_v12 = vpop.eup %11396  ;;  %v3905_v7 = vsel %vm1688_vm3, %v3903_v2, %v11295_v58  ;;  %v3906_v8 = vsel %vm1688_vm3, %v3904_v6, %v11296_v57  ;;  %v4081_v2 = vld [vmem:[#allocation10 + $0x2d8] sm:$0xff] }
0x18c0   :  { %v3717_v5 = vsel %vm501_vm2, %v11397_v12, 0.0 }
0x18c1   :  { %3718 = vadd.xlane.f32.xlu0 %v3717_v5 }
0x18c3   :  { %v11399_v23 = vpop.eup %11398 }
0x18c4   :  { %v3720_v15 = vsel %vm501_vm2, %v11399_v23, 0.0 }
0x18c5   :  { %3721 = vadd.xlane.f32.xlu0 %v3720_v15 }
0x18db   :  { %3803 = vrot.lane.b32.xlu0 %v12097_v61, %s11668_s15  ;;  %v10645_v61 = vpack.c.bf16 %v3911_v36, %v3910_v34  ;;  %v4058_v34 = vld [vmem:[#allocation10 + $0x220] sm:$0xff] }
0x18dd   :  { %10646 = vmatprep.subr.bf16.mxu0 %v10645_v61 }
0x194e   :  { %v3719_v17 = vpop.xlane.xlu0 %3718 }
0x194f   :  { %11400 = vrcp.f32 %v3719_v17 }
0x1952   :  { %v3722_v18 = vpop.xlane.xlu0 %3721 }
0x1953   :  { %11402 = vrcp.f32 %v3722_v18  ;;  %v4055_v18 = vld [vmem:[#allocation10 + $0x208] sm:$0xff] }
0x1956   :  { %v3804_v19 = vpop.permute.xlu0 %3803 }
0x1957   :  { %10018 = vmatpush3.msra.mxu1 %v3804_v19  ;;  %v4059_v19 = vld [vmem:[#allocation10 + $0x228] sm:$0xff] }
0x1959   :  { %v11401_v20 = vpop.eup %11400 }
0x195a   :  { %v3725_v24 = vmul.f32 %v11401_v20, %v11397_v12  ;;  %v9095_v12 = vld [vmem:[%s12801_s4 + $0x1] ss:$0 sm:$0xff]  ;;  %v4057_v20 = vld [vmem:[#allocation10 + $0x218] sm:$0xff] }
0x195c   :  { %10015 = vmatmul.mubr.msk.f32.vlgmr.msra.gmra.mrb[44].mxu0 %vm501_vm2, %v3725_v24  ;;  %v10677_v24 = vpack.c.bf16 %v4059_v19, %v4055_v18  ;;  %v4093_v19 = vld [vmem:[#allocation10 + $0x338] sm:$0xff] }
0x195d   :  { %v11403_v28 = vpop.eup %11402  ;;  %10648 = vmatpush3.bf16.msra.mxu0 %v10645_v61  ;;  %v4056_v61 = vld [vmem:[#allocation10 + $0x210] sm:$0xff] }
0x195e   :  { %v3726_v32 = vmul.f32 %v11403_v28, %v11399_v23  ;;  %10650 = vmatprep.subr.bf16.mxu0 %v10649_v38  ;;  %v4061_v28 = vld [vmem:[#allocation10 + $0x238] sm:$0xff]  ;;  %10678 = vmatprep.subr.bf16.mxu1 %v10677_v24  ;;  %v10711_v27 = vpack.c.bf16 %v4060_v37, %v4056_v61  ;;  %v4090_v24 = vld [vmem:[#allocation10 + $0x320] sm:$0xff]  ;;  %v4095_v61 = vld [vmem:[#allocation10 + $0x348] sm:$0xff] }
0x195f   :  { %v10709_v36 = vpack.c.bf16 %v4061_v28, %v4057_v20  ;;  %v4086_v20 = vld [vmem:[#allocation10 + $0x300] sm:$0xff]  ;;  %v4099_v37 = vld [vmem:[#allocation10 + $0x368] sm:$0xff] }
0x1960   :  { %10020 = vmatmul.mubr.msk.f32.vlgmr.msra.gmra.mrb[46].mxu1 %vm501_vm2, %v3726_v32  ;;  %v4054_v32 = vld [vmem:[#allocation10 + $0x200] sm:$0xff] }
0x1961   :  { %4205 = vmatprep.mubr.f32.mxu1 %v11670_v0  ;;  %10652 = vmatpush3.bf16.msra.mxu0 %v10649_v38  ;;  %v10679_v10 = vpack.c.bf16 %v4058_v34, %v4054_v32  ;;  %v4063_v38 = vld [vmem:[#allocation10 + $0x248] sm:$0xff]  ;;  %v10695_v32 = vpack.c.bf16 %v4090_v24, %v4086_v20  ;;  %v4088_v34 = vld [vmem:[#allocation10 + $0x310] sm:$0xff]  ;;  %v9099_v20 = vld [vmem:[%s12803_s6 + $0x1] ss:$0 sm:$0xff] }
0x1962   :  { %10654 = vmatprep.subr.bf16.mxu0 %v10653_v39 }
0x1963   :  { %10680 = vmatpush1.bf16.msra.mxu1 %v10679_v10 }
0x1965   :  { %10656 = vmatpush3.bf16.msra.mxu0 %v10653_v39  ;;  %v4069_v39 = vld [vmem:[#allocation10 + $0x278] sm:$0xff] }
0x1966   :  { %10658 = vmatprep.subr.bf16.mxu0 %v10657_v62 }
0x1969   :  { %10660 = vmatpush3.bf16.msra.mxu0 %v10657_v62  ;;  %v4066_v62 = vld [vmem:[#allocation10 + $0x260] sm:$0xff] }
0x196a   :  { %10662 = vmatprep.subr.bf16.mxu0 %v10661_v21  ;;  %v10683_v41 = vpack.c.bf16 %v4066_v62, %v4062_v35  ;;  %v4096_v35 = vld [vmem:[#allocation10 + $0x350] sm:$0xff] }
0x196b   :  { %v4100_v62 = vld [vmem:[#allocation10 + $0x370] sm:$0xff] }
0x196d   :  { %10664 = vmatpush3.bf16.msra.mxu0 %v10661_v21  ;;  %v4068_v21 = vld [vmem:[#allocation10 + $0x270] sm:$0xff] }
0x196e   :  { %10666 = vmatprep.subr.bf16.mxu0 %v10665_v45 }
0x1971   :  { %10668 = vmatpush3.bf16.msra.mxu0 %v10665_v45  ;;  %v10715_v45 = vpack.c.bf16 %v4068_v21, %v4064_v3  ;;  %v4103_v3 = vld [vmem:[#allocation10 + $0x388] sm:$0xff] }
0x1972   :  { %10670 = vmatprep.subr.bf16.mxu0 %v10669_v49  ;;  %v4107_v21 = vld [vmem:[#allocation10 + $0x3a8] sm:$0xff] }
0x1975   :  { %10672 = vmatpush3.bf16.msra.mxu0 %v10669_v49  ;;  %v4077_v49 = vld [vmem:[#allocation10 + $0x2b8] sm:$0xff] }
0x1976   :  { %10674 = vmatprep.subr.bf16.mxu0 %v10673_v52  ;;  %v10717_v51 = vpack.c.bf16 %v4077_v49, %v4073_v47  ;;  %v4102_v47 = vld [vmem:[#allocation10 + $0x380] sm:$0xff] }
0x1977   :  { %v4106_v49 = vld [vmem:[#allocation10 + $0x3a0] sm:$0xff] }
0x1979   :  { %10676 = vmatpush3.bf16.msra.mxu0 %v10673_v52  ;;  %v4074_v52 = vld [vmem:[#allocation10 + $0x2a0] sm:$0xff] }
0x197a   :  { %10710 = vmatprep.subr.bf16.mxu0 %v10709_v36  ;;  %v4092_v36 = vld [vmem:[#allocation10 + $0x330] sm:$0xff] }
0x197b   :  { %v10727_v10 = vpack.c.bf16 %v4092_v36, %v4088_v34  ;;  %v4336_v34 = vld [vmem:[#allocation11 + $0x300] sm:$0xff]  ;;  %v4337_v36 = vld [vmem:[#allocation11 + $0x308] sm:$0xff] }
0x1a2f   :  { %v3799_v4 = vpop.f32.mrb[44].mxu0 }
0x1a30   :  { %v10016_v54 = vpop.f32.mrb[45].mxu0 }
0x1a31   :  { %v4076_v54 = vld [vmem:[#allocation10 + $0x2b0] sm:$0xff] }
0x1a33   :  { %v3875_v22 = vpop.f32.mrb[46].mxu1 }
0x1a34   :  { %v11297_v13 = vpack.i.bf16 %v3875_v22, %v3799_v4  ;;  %v10021_v48 = vpop.f32.mrb[47].mxu1  ;;  %v4072_v4 = vld [vmem:[#allocation10 + $0x290] sm:$0xff]  ;;  %v10687_v22 = vpack.c.bf16 %v4074_v52, %v4070_v50 }
0x1a35   :  { %v4104_v50 = vld [vmem:[#allocation10 + $0x390] sm:$0xff] }
0x1a36   :  { %11298 = vrot.lane.b32.xlu1 %v11297_v13, %s11672_s9  ;;  %v10719_v13 = vpack.c.bf16 %v4076_v54, %v4072_v4  ;;  %v4108_v52 = vld [vmem:[#allocation10 + $0x3b0] sm:$0xff]  ;;  %v4111_v4 = vld [vmem:[#allocation10 + $0x3c8] sm:$0xff] }
0x1a37   :  { %v4115_v54 = vld [vmem:[#allocation10 + $0x3e8] sm:$0xff] }
0x1aa8   :  { %v11299_v59 = vpop.permute.xlu1 %11298 }
0x1aa9   :  { %v11301_v60 = vunpack.i.h.bf16 %v11299_v59  ;;  %v11300_v63 = vunpack.i.l.bf16 %v11299_v59 }
0x1aab   :  { %v3907_v9 = vsel %vm1691_vm4, %v3905_v7, %v11300_v63  ;;  %v3908_v11 = vsel %vm1691_vm4, %v3906_v8, %v11301_v60  ;;  %v4079_v60 = vld [vmem:[#allocation10 + $0x2c8] sm:$0xff]  ;;  %v4085_v7 = vld [vmem:[#allocation10 + $0x2f8] sm:$0xff]  ;;  %v4078_v8 = vld [vmem:[#allocation10 + $0x2c0] sm:$0xff] }
0x1aac   :  { %10054 = vmatprep.mubr.f32.mxu0 %v3907_v9  ;;  %v4083_v63 = vld [vmem:[#allocation10 + $0x2e8] sm:$0xff]  ;;  %v4082_v9 = vld [vmem:[#allocation10 + $0x2e0] sm:$0xff] }
0x1aad   :  { %10055 = vmatmul.mubr.f32.vlgmr.msra.gmra.mrb[46].mxu0 %v3908_v11  ;;  %v10689_v6 = vpack.c.bf16 %v4083_v63, %v4079_v60  ;;  %v10721_v11 = vpack.c.bf16 %v4085_v7, %v4081_v2  ;;  %v4116_v60 = vld [vmem:[#allocation10 + $0x3f0] sm:$0xff]  ;;  %v4321_v7 = vld [vmem:[#allocation11 + $0x288] sm:$0xff] }
0x1aae   :  { %4282 = vmatprep.mubr.f32.mxu0 %v11670_v0  ;;  %10712 = vmatpush1.bf16.msra.mxu0 %v10711_v27  ;;  %v10697_v27 = vpack.c.bf16 %v4099_v37, %v4095_v61  ;;  %v4323_v37 = vld [vmem:[#allocation11 + $0x298] sm:$0xff] }
0x1b80   :  { %v10056_v42 = vpop.f32.mrb[46].mxu0 }
0x1b81   :  { %v4006_v5 = vadd.f32 %v10056_v42, %v9095_v12  ;;  %v4000_v23 = vpop.f32.mrb[47].mxu0  ;;  %v4080_v42 = vld [vmem:[#allocation10 + $0x2d0] sm:$0xff] }
0x1b82   :  { %v4001_v43 = vadd.f32 %v9095_v12, %v4000_v23  ;;  %v10691_v12 = vpack.c.bf16 %v4082_v9, %v4078_v8  ;;  %v4352_v8 = vld [vmem:[#allocation11 + $0x380] sm:$0xff] }
0x1b83   :  { %v4010_v15 = vadd.f32 %v4006_v5, %v12080_v55  ;;  %v4065_v55 = vld [vmem:[#allocation10 + $0x258] sm:$0xff]  ;;  %v4084_v5 = vld [vmem:[#allocation10 + $0x2f0] sm:$0xff] }
0x1b84   :  { %v4009_v17 = vadd.f32 %v4001_v43, %v12074_v53  ;;  %v10681_v53 = vpack.c.bf16 %v4067_v33, %v4063_v38  ;;  %v10713_v40 = vpack.c.bf16 %v4069_v39, %v4065_v55  ;;  %v10723_v23 = vpack.c.bf16 %v4084_v5, %v4080_v42  ;;  %v4087_v43 = vld [vmem:[#allocation10 + $0x308] sm:$0xff]  ;;  %v4097_v38 = vld [vmem:[#allocation10 + $0x358] sm:$0xff]  ;;  %v4094_v55 = vld [vmem:[#allocation10 + $0x340] sm:$0xff] }
0x1b85   :  { %4017 = vadd.xlane.f32.xlu1 %v4010_v15  ;;  %v4101_v33 = vld [vmem:[#allocation10 + $0x378] sm:$0xff]  ;;  %v4098_v39 = vld [vmem:[#allocation10 + $0x360] sm:$0xff] }
0x1b86   :  { %4015 = vadd.xlane.f32.xlu0 %v4009_v17  ;;  %10682 = vmatprep.subr.bf16.mxu1 %v10681_v53  ;;  %v10729_v53 = vpack.c.bf16 %v4101_v33, %v4097_v38  ;;  %v4354_v38 = vld [vmem:[#allocation11 + $0x390] sm:$0xff] }
0x1b87   :  { %10714 = vmatprep.subr.bf16.mxu0 %v10713_v40  ;;  %10684 = vmatpush1.bf16.msra.mxu1 %v10683_v41  ;;  %v10699_v40 = vpack.c.bf16 %v4098_v39, %v4094_v55  ;;  %v10731_v41 = vpack.c.bf16 %v4100_v62, %v4096_v35  ;;  %v4306_v35 = vld [vmem:[#allocation11 + $0x210] sm:$0xff]  ;;  %v4307_v62 = vld [vmem:[#allocation11 + $0x218] sm:$0xff] }
0x1b88   :  { %10716 = vmatpush1.bf16.msra.mxu0 %v10715_v45  ;;  %10686 = vmatprep.subr.bf16.mxu1 %v10685_v46  ;;  %v10701_v45 = vpack.c.bf16 %v4107_v21, %v4103_v3  ;;  %v10733_v46 = vpack.c.bf16 %v4109_v44, %v4105_v1  ;;  %v4339_v21 = vld [vmem:[#allocation11 + $0x318] sm:$0xff]  ;;  %v4324_v1 = vld [vmem:[#allocation11 + $0x2a0] sm:$0xff] }
0x1b89   :  { %10718 = vmatprep.subr.bf16.mxu0 %v10717_v51  ;;  %v10703_v51 = vpack.c.bf16 %v4106_v49, %v4102_v47  ;;  %v4357_v47 = vld [vmem:[#allocation11 + $0x3a8] sm:$0xff]  ;;  %v10747_v49 = vpack.c.bf16 %v4307_v62, %v4306_v35  ;;  %v4364_v35 = vld [vmem:[#allocation11 + $0x3e0] sm:$0xff] }
0x1b8a   :  { %v4365_v62 = vld [vmem:[#allocation11 + $0x3e8] sm:$0xff] }
0x1b8b   :  { %10688 = vmatpush1.bf16.msra.mxu1 %v10687_v22  ;;  %v10735_v22 = vpack.c.bf16 %v4108_v52, %v4104_v50  ;;  %v4309_v52 = vld [vmem:[#allocation11 + $0x228] sm:$0xff] }
0x1b8c   :  { %10720 = vmatpush1.bf16.msra.mxu0 %v10719_v13  ;;  %10690 = vmatprep.subr.bf16.mxu1 %v10689_v6  ;;  %v10705_v13 = vpack.c.bf16 %v4115_v54, %v4111_v4  ;;  %v4320_v6 = vld [vmem:[#allocation11 + $0x280] sm:$0xff] }
0x1b8d   :  { %10722 = vmatprep.subr.bf16.mxu0 %v10721_v11  ;;  %v10741_v9 = vpack.c.bf16 %v4321_v7, %v4320_v6  ;;  %v4353_v11 = vld [vmem:[#allocation11 + $0x388] sm:$0xff]  ;;  %v4342_v7 = vld [vmem:[#allocation11 + $0x330] sm:$0xff] }
0x1b8f   :  { %10692 = vmatpush1.bf16.msra.mxu1 %v10691_v12  ;;  %v10773_v12 = vpack.c.bf16 %v4353_v11, %v4352_v8  ;;  %v4343_v8 = vld [vmem:[#allocation11 + $0x338] sm:$0xff]  ;;  %v4329_v11 = vld [vmem:[#allocation11 + $0x2c8] sm:$0xff] }
0x1b90   :  { %10724 = vmatpush1.bf16.msra.mxu0 %v10723_v23 }
0x1c12   :  { %v4018_v48 = vpop.xlane.xlu1 %4017 }
0x1c13   :  { %v4016_v29 = vpop.xlane.xlu0 %4015  ;;  %v4020_v56 = vmul.f32 0.0078125, %v4018_v48  ;;  %v4113_v48 = vld [vmem:[#allocation10 + $0x3d8] sm:$0xff] }
0x1c14   :  { %v4019_v30 = vmul.f32 0.0078125, %v4016_v29  ;;  %v4117_v29 = vld [vmem:[#allocation10 + $0x3f8] sm:$0xff] }
0x1c15   :  { %v12260_v57 = vsub.f32 %v4010_v15, %v4020_v56  ;;  %v4091_v15 = vld [vmem:[#allocation10 + $0x328] sm:$0xff]  ;;  %v4110_v56 = vld [vmem:[#allocation10 + $0x3c0] sm:$0xff] }
0x1c16   :  { %v12258_v26 = vsub.f32 %v4009_v17, %v4019_v30  ;;  %v4089_v17 = vld [vmem:[#allocation10 + $0x318] sm:$0xff]  ;;  %v10693_v18 = vpack.c.bf16 %v4091_v15, %v4087_v43  ;;  %v10737_v30 = vpack.c.bf16 %v4117_v29, %v4113_v48  ;;  %v4326_v48 = vld [vmem:[#allocation11 + $0x2b0] sm:$0xff] }
0x1c17   :  { %v4024_v59 = vmul.f32 %v12260_v57, %v12260_v57  ;;  %v10725_v28 = vpack.c.bf16 %v4093_v19, %v4089_v17  ;;  %v9098_v19 = vld [vmem:[%s12802_s5 + $0x1] ss:$0 sm:$0xff]  ;;  %v4327_v29 = vld [vmem:[#allocation11 + $0x2b8] sm:$0xff] }
0x1c18   :  { %v4023_v58 = vmul.f32 %v12258_v26, %v12258_v26  ;;  %10694 = vmatprep.subr.bf16.mxu1 %v10693_v18 }
0x1c19   :  { %10726 = vmatprep.subr.bf16.mxu0 %v10725_v28  ;;  %10696 = vmatpush1.bf16.msra.mxu1 %v10695_v32  ;;  %v4304_v28 = vld [vmem:[#allocation11 + $0x200] sm:$0xff]  ;;  %v4305_v32 = vld [vmem:[#allocation11 + $0x208] sm:$0xff] }
0x1c1a   :  { %4025 = vadd.xlane.f32.xlu0 %v4023_v58  ;;  %10728 = vmatpush1.bf16.msra.mxu0 %v10727_v10  ;;  %v4114_v58 = vld [vmem:[#allocation10 + $0x3e0] sm:$0xff]  ;;  %v4322_v10 = vld [vmem:[#allocation11 + $0x290] sm:$0xff] }
0x1c1b   :  { %10698 = vmatprep.subr.bf16.mxu1 %v10697_v27  ;;  %10730 = vmatprep.subr.bf16.mxu0 %v10729_v53  ;;  %v10707_v63 = vpack.c.bf16 %v4114_v58, %v4110_v56  ;;  %v4355_v27 = vld [vmem:[#allocation11 + $0x398] sm:$0xff]  ;;  %v10743_v53 = vpack.c.bf16 %v4305_v32, %v4304_v28  ;;  %v10745_v3 = vpack.c.bf16 %v4323_v37, %v4322_v10  ;;  %v4358_v56 = vld [vmem:[#allocation11 + $0x3b0] sm:$0xff] }
0x1c1c   :  { %v4331_v28 = vld [vmem:[#allocation11 + $0x2d8] sm:$0xff]  ;;  %v4362_v32 = vld [vmem:[#allocation11 + $0x3d0] sm:$0xff] }
0x1c1d   :  { %10700 = vmatpush1.bf16.msra.mxu1 %v10699_v40  ;;  %v10775_v40 = vpack.c.bf16 %v4337_v36, %v4336_v34  ;;  %v4363_v34 = vld [vmem:[#allocation11 + $0x3d8] sm:$0xff] }
0x1c1e   :  { %4027 = vadd.xlane.f32.xlu0 %v4024_v59  ;;  %10732 = vmatpush1.bf16.msra.mxu0 %v10731_v41  ;;  %v4112_v59 = vld [vmem:[#allocation10 + $0x3d0] sm:$0xff]  ;;  %v4315_v37 = vld [vmem:[#allocation11 + $0x258] sm:$0xff] }
0x1c1f   :  { %10702 = vmatprep.subr.bf16.mxu1 %v10701_v45  ;;  %10734 = vmatprep.subr.bf16.mxu0 %v10733_v46  ;;  %v10739_v2 = vpack.c.bf16 %v4116_v60, %v4112_v59  ;;  %v4338_v41 = vld [vmem:[#allocation11 + $0x310] sm:$0xff]  ;;  %v4325_v45 = vld [vmem:[#allocation11 + $0x2a8] sm:$0xff]  ;;  %v4356_v46 = vld [vmem:[#allocation11 + $0x3a0] sm:$0xff] }
0x1c20   :  { %v10779_v50 = vpack.c.bf16 %v4339_v21, %v4338_v41  ;;  %v10749_v4 = vpack.c.bf16 %v4325_v45, %v4324_v1  ;;  %v10781_v54 = vpack.c.bf16 %v4357_v47, %v4356_v46  ;;  %v4310_v60 = vld [vmem:[#allocation11 + $0x230] sm:$0xff]  ;;  %v10797_v21 = vpack.c.bf16 %v4365_v62, %v4364_v35  ;;  %v4316_v1 = vld [vmem:[#allocation11 + $0x260] sm:$0xff]  ;;  %v4349_v47 = vld [vmem:[#allocation11 + $0x368] sm:$0xff] }
0x1c21   :  { %10704 = vmatpush1.bf16.msra.mxu1 %v10703_v51  ;;  %v4308_v51 = vld [vmem:[#allocation11 + $0x220] sm:$0xff] }
0x1c22   :  { %10736 = vmatpush1.bf16.msra.mxu0 %v10735_v22  ;;  %10706 = vmatprep.subr.bf16.mxu1 %v10705_v13  ;;  %v4340_v22 = vld [vmem:[#allocation11 + $0x320] sm:$0xff]  ;;  %v4341_v13 = vld [vmem:[#allocation11 + $0x328] sm:$0xff]  ;;  %v10751_v58 = vpack.c.bf16 %v4309_v52, %v4308_v51  ;;  %v4335_v51 = vld [vmem:[#allocation11 + $0x2f8] sm:$0xff] }
0x1c23   :  { %10738 = vmatprep.subr.bf16.mxu0 %v10737_v30  ;;  %v4359_v30 = vld [vmem:[#allocation11 + $0x3b8] sm:$0xff]  ;;  %v10783_v59 = vpack.c.bf16 %v4341_v13, %v4340_v22  ;;  %v4348_v45 = vld [vmem:[#allocation11 + $0x360] sm:$0xff]  ;;  %v4366_v52 = vld [vmem:[#allocation11 + $0x3f0] sm:$0xff] }
0x1c24   :  { %v10785_v6 = vpack.c.bf16 %v4359_v30, %v4358_v56  ;;  %v4318_v22 = vld [vmem:[#allocation11 + $0x270] sm:$0xff]  ;;  %v4319_v13 = vld [vmem:[#allocation11 + $0x278] sm:$0xff] }
0x1c25   :  { %10708 = vmatpush1.bf16.msra.mxu1 %v10707_v63  ;;  %v4311_v63 = vld [vmem:[#allocation11 + $0x238] sm:$0xff]  ;;  %v4350_v56 = vld [vmem:[#allocation11 + $0x370] sm:$0xff] }
0x1c26   :  { %10740 = vmatpush1.bf16.msra.mxu0 %v10739_v2  ;;  %10742 = vmatprep.subr.bf16.mxu1 %v10741_v9  ;;  %v10753_v2 = vpack.c.bf16 %v4327_v29, %v4326_v48  ;;  %v4328_v9 = vld [vmem:[#allocation11 + $0x2c0] sm:$0xff]  ;;  %v10771_v29 = vpack.c.bf16 %v4319_v13, %v4318_v22  ;;  %v4351_v30 = vld [vmem:[#allocation11 + $0x378] sm:$0xff] }
0x1c27   :  { %10774 = vmatprep.subr.bf16.mxu0 %v10773_v12  ;;  %v4360_v12 = vld [vmem:[#allocation11 + $0x3c0] sm:$0xff]  ;;  %v4571_v22 = vld [vmem:[#allocation5 + $0x300] sm:$0xff] }
0x1ca7   :  { %v4026_v42 = vpop.xlane.xlu0 %4025 }
0x1ca8   :  { %v4029_v5 = vmul.f32 0.0078125, %v4026_v42  ;;  %v4361_v42 = vld [vmem:[#allocation11 + $0x3c8] sm:$0xff] }
0x1caa   :  { %v4031_v23 = vadd.f32 1e-05, %v4029_v5  ;;  %v10755_v5 = vpack.c.bf16 %v4311_v63, %v4310_v60 }
0x1cab   :  { %v4028_v43 = vpop.xlane.xlu0 %4027 }
0x1cac   :  { %11404 = vrsqrt.f32 %v4031_v23  ;;  %v4030_v15 = vmul.f32 0.0078125, %v4028_v43  ;;  %v10787_v23 = vpack.c.bf16 %v4343_v8, %v4342_v7  ;;  %v4312_v43 = vld [vmem:[#allocation11 + $0x240] sm:$0xff] }
0x1cae   :  { %v4032_v17 = vadd.f32 1e-05, %v4030_v15  ;;  %v4313_v15 = vld [vmem:[#allocation11 + $0x248] sm:$0xff] }
0x1caf   :  { %v10759_v36 = vpack.c.bf16 %v4313_v15, %v4312_v43 }
0x1cb0   :  { %11406 = vrsqrt.f32 %v4032_v17  ;;  %v10757_v17 = vpack.c.bf16 %v4329_v11, %v4328_v9 }
0x1cb6   :  { %v11405_v18 = vpop.eup %11404 }
0x1cb7   :  { %v4035_v24 = vmul.f32 %v11405_v18, %v12258_v26  ;;  %v10777_v26 = vpack.c.bf16 %v4355_v27, %v4354_v38  ;;  %v10789_v18 = vpack.c.bf16 %v4361_v42, %v4360_v12  ;;  %v10793_v27 = vpack.c.bf16 %v4363_v34, %v4362_v32 }
0x1cb9   :  { %v4043_v61 = vmul.f32 %v9098_v19, %v4035_v24  ;;  %v4330_v24 = vld [vmem:[#allocation11 + $0x2d0] sm:$0xff] }
0x1cba   :  { %v11407_v33 = vpop.eup %11406  ;;  %v10761_v38 = vpack.c.bf16 %v4331_v28, %v4330_v24 }
0x1cbb   :  { %v12273_v55 = vadd.f32 %v9099_v20, %v4043_v61  ;;  %v4036_v39 = vmul.f32 %v11407_v33, %v12260_v57  ;;  %v4314_v61 = vld [vmem:[#allocation11 + $0x250] sm:$0xff] }
0x1cbc   :  { %v4346_v33 = vld [vmem:[#allocation11 + $0x350] sm:$0xff] }
0x1cbd   :  { %4206 = vmatmul.mubr.f32.vlgmr.msra.gmra.mrb[48].mxu1 %v12273_v55  ;;  %4283 = vmatmul.mubr.f32.vlgmr.msra.gmra.mrb[48].mxu0 %v12273_v55  ;;  %v4044_v44 = vmul.f32 %v9098_v19, %v4036_v39  ;;  %v4344_v19 = vld [vmem:[#allocation11 + $0x340] sm:$0xff]  ;;  %v4347_v39 = vld [vmem:[#allocation11 + $0x358] sm:$0xff] }
0x1cbe   :  { %4211 = vmatprep.mubr.f32.mxu1 %v11670_v0  ;;  %4288 = vmatprep.mubr.f32.mxu0 %v11670_v0 }
0x1cbf   :  { %v12280_v57 = vadd.f32 %v9099_v20, %v4044_v44  ;;  %10744 = vmatpush3.bf16.msra.mxu1 %v10743_v53  ;;  %10776 = vmatpush3.bf16.msra.mxu0 %v10775_v40  ;;  %v4345_v20 = vld [vmem:[#allocation11 + $0x348] sm:$0xff]  ;;  %v4332_v53 = vld [vmem:[#allocation11 + $0x2e0] sm:$0xff] }
0x1cc0   :  { %10746 = vmatprep.subr.bf16.mxu1 %v10745_v3  ;;  %10778 = vmatprep.subr.bf16.mxu0 %v10777_v26  ;;  %v10791_v10 = vpack.c.bf16 %v4345_v20, %v4344_v19  ;;  %v4333_v40 = vld [vmem:[#allocation11 + $0x2e8] sm:$0xff]  ;;  %v10763_v3 = vpack.c.bf16 %v4315_v37, %v4314_v61  ;;  %v10795_v26 = vpack.c.bf16 %v4347_v39, %v4346_v33 }
0x1cc1   :  { %4212 = vmatmul.mubr.f32.gmra.mrb[50].mxu1 %v12280_v57  ;;  %4289 = vmatmul.mubr.f32.gmra.mrb[50].mxu0 %v12280_v57  ;;  %v10765_v41 = vpack.c.bf16 %v4333_v40, %v4332_v53  ;;  %v4317_v44 = vld [vmem:[#allocation11 + $0x268] sm:$0xff]  ;;  %v9102_v53 = vld [vmem:[%s12807_s10 + $0x1] ss:$0 sm:$0xff] }
0x1cc2   :  { %v10767_v46 = vpack.c.bf16 %v4317_v44, %v4316_v1 }
0x1cc3   :  { %10748 = vmatpush3.bf16.msra.mxu1 %v10747_v49  ;;  %10780 = vmatpush3.bf16.msra.mxu0 %v10779_v50  ;;  %v10799_v49 = vpack.c.bf16 %v4349_v47, %v4348_v45  ;;  %v4334_v50 = vld [vmem:[#allocation11 + $0x2f0] sm:$0xff] }
0x1cc4   :  { %10750 = vmatprep.subr.bf16.mxu1 %v10749_v4  ;;  %10782 = vmatprep.subr.bf16.mxu0 %v10781_v54  ;;  %v10769_v4 = vpack.c.bf16 %v4335_v51, %v4334_v50  ;;  %v4367_v54 = vld [vmem:[#allocation11 + $0x3f8] sm:$0xff] }
0x1cc5   :  { %v10801_v48 = vpack.c.bf16 %v4367_v54, %v4366_v52  ;;  %v4575_v54 = vld [vmem:[#allocation5 + $0x320] sm:$0xff] }
0x1cc7   :  { %10752 = vmatpush3.bf16.msra.mxu1 %v10751_v58  ;;  %10784 = vmatpush3.bf16.msra.mxu0 %v10783_v59  ;;  %v10803_v58 = vpack.c.bf16 %v4351_v30, %v4350_v56  ;;  %v9100_v59 = vld [vmem:[%s12805_s8 + $0x4] sm:$0xf] }
0x1cc8   :  { %10754 = vmatprep.subr.bf16.mxu1 %v10753_v2  ;;  %10786 = vmatprep.subr.bf16.mxu0 %v10785_v6  ;;  %v4124_v60 = vrot.slane %v9100_v59, %v11846_v14  ;;  %v4132_v63 = vrot.slane %v9100_v59, %v11860_v25  ;;  %v4128_v2 = vrot.slane %v9100_v59, %v11849_v16  ;;  %v4581_v56 = vld [vmem:[#allocation5 + $0x350] sm:$0xff] }
0x1cc9   :  { %v4136_v6 = vrot.slane %v9100_v59, %v12045_v31  ;;  %v4573_v59 = vld [vmem:[#allocation5 + $0x310] sm:$0xff] }
0x1ccb   :  { %10756 = vmatpush3.bf16.msra.mxu1 %v10755_v5  ;;  %10788 = vmatpush3.bf16.msra.mxu0 %v10787_v23 }
0x1ccc   :  { %10758 = vmatprep.subr.bf16.mxu1 %v10757_v17  ;;  %10790 = vmatprep.subr.bf16.mxu0 %v10789_v18 }
0x1ccf   :  { %10760 = vmatpush3.bf16.msra.mxu1 %v10759_v36  ;;  %10792 = vmatpush3.bf16.msra.mxu0 %v10791_v10 }
0x1cd0   :  { %10762 = vmatprep.subr.bf16.mxu1 %v10761_v38  ;;  %10794 = vmatprep.subr.bf16.mxu0 %v10793_v27 }
0x1cd3   :  { %10764 = vmatpush3.bf16.msra.mxu1 %v10763_v3  ;;  %10796 = vmatpush3.bf16.msra.mxu0 %v10795_v26 }
0x1cd4   :  { %10766 = vmatprep.subr.bf16.mxu1 %v10765_v41  ;;  %10798 = vmatprep.subr.bf16.mxu0 %v10797_v21 }
0x1cd7   :  { %10768 = vmatpush3.bf16.msra.mxu1 %v10767_v46  ;;  %10800 = vmatpush3.bf16.msra.mxu0 %v10799_v49 }
0x1cd8   :  { %10770 = vmatprep.subr.bf16.mxu1 %v10769_v4  ;;  %10802 = vmatprep.subr.bf16.mxu0 %v10801_v48  ;;  %v4572_v4 = vld [vmem:[#allocation5 + $0x308] sm:$0xff]  ;;  %v4574_v48 = vld [vmem:[#allocation5 + $0x318] sm:$0xff] }
0x1cd9   :  { %v10805_v13 = vpack.c.bf16 %v4575_v54, %v4572_v4  ;;  %v10807_v30 = vpack.c.bf16 %v4574_v48, %v4571_v22  ;;  %v4608_v4 = vld [vmem:[#allocation5 + $0x428] sm:$0xff]  ;;  %v4611_v54 = vld [vmem:[#allocation5 + $0x440] sm:$0xff]  ;;  %v4606_v48 = vld [vmem:[#allocation5 + $0x418] sm:$0xff] }
0x1cda   :  { %v4603_v22 = vld [vmem:[#allocation5 + $0x400] sm:$0xff] }
0x1cdb   :  { %10772 = vmatpush3.bf16.msra.mxu1 %v10771_v29  ;;  %10804 = vmatpush3.bf16.msra.mxu0 %v10803_v58  ;;  %v4578_v29 = vld [vmem:[#allocation5 + $0x338] sm:$0xff] }
0x1cdc   :  { %v10809_v58 = vpack.c.bf16 %v4581_v56, %v4578_v29  ;;  %10806 = vmatprep.subr.bf16.mxu1 %v10805_v13  ;;  %v10829_v13 = vpack.c.bf16 %v4611_v54, %v4608_v4  ;;  %v4607_v29 = vld [vmem:[#allocation5 + $0x420] sm:$0xff]  ;;  %v4610_v56 = vld [vmem:[#allocation5 + $0x438] sm:$0xff] }
0x1d90   :  { %v4207_v7 = vpop.f32.mrb[48].mxu1  ;;  %v4284_v8 = vpop.f32.mrb[48].mxu0 }
0x1d91   :  { %v4208_v9 = vadd.f32 %v4207_v7, %v4124_v60  ;;  %v4285_v11 = vadd.f32 %v4284_v8, %v4132_v63  ;;  %v4209_v12 = vpop.f32.mrb[49].mxu1  ;;  %v4286_v42 = vpop.f32.mrb[49].mxu0  ;;  %v4587_v7 = vld [vmem:[#allocation5 + $0x380] sm:$0xff] }
0x1d92   :  { %v4210_v5 = vadd.f32 %v4209_v12, %v4128_v2  ;;  %v4287_v23 = vadd.f32 %v4286_v42, %v4136_v6  ;;  %v4579_v8 = vld [vmem:[#allocation5 + $0x340] sm:$0xff] }
0x1d93   :  { %v4295_v19 = vmax.f32 %v4208_v9, 0.0  ;;  %v4297_v20 = vmax.f32 %v4285_v11, 0.0  ;;  %v4582_v9 = vld [vmem:[#allocation5 + $0x358] sm:$0xff]  ;;  %v4583_v42 = vld [vmem:[#allocation5 + $0x360] sm:$0xff] }
0x1d94   :  { %v4296_v43 = vmax.f32 %v4210_v5, 0.0  ;;  %v4298_v15 = vmax.f32 %v4287_v23, 0.0  ;;  %v4213_v17 = vpop.f32.mrb[50].mxu1  ;;  %v4290_v18 = vpop.f32.mrb[50].mxu0  ;;  %v10841_v12 = vpack.c.bf16 %v4582_v9, %v4579_v8  ;;  %v4586_v5 = vld [vmem:[#allocation5 + $0x378] sm:$0xff]  ;;  %v4615_v9 = vld [vmem:[#allocation5 + $0x460] sm:$0xff] }
0x1d95   :  { %v4214_v24 = vadd.f32 %v4213_v17, %v4124_v60  ;;  %v4291_v28 = vadd.f32 %v4290_v18, %v4132_v63  ;;  %v4215_v32 = vpop.f32.mrb[51].mxu1  ;;  %v4292_v34 = vpop.f32.mrb[51].mxu0  ;;  %v4576_v60 = vld [vmem:[#allocation5 + $0x328] sm:$0xff]  ;;  %v4577_v63 = vld [vmem:[#allocation5 + $0x330] sm:$0xff]  ;;  %v10815_v23 = vpack.c.bf16 %v4586_v5, %v4583_v42 }
0x1d96   :  { %v4216_v36 = vadd.f32 %v4215_v32, %v4128_v2  ;;  %v4293_v10 = vadd.f32 %v4292_v34, %v4136_v6  ;;  %4440 = vmatprep.mubr.f32.mxu1 %v4296_v43  ;;  %4515 = vmatprep.mubr.f32.mxu0 %v4298_v15  ;;  %v10837_v2 = vpack.c.bf16 %v4576_v60, %v4573_v59  ;;  %v4584_v6 = vld [vmem:[#allocation5 + $0x368] sm:$0xff]  ;;  %v4590_v32 = vld [vmem:[#allocation5 + $0x398] sm:$0xff]  ;;  %v4593_v34 = vld [vmem:[#allocation5 + $0x3b0] sm:$0xff] }
0x1d97   :  { %4441 = vmatmul.mubr.f32.vlgmr.msra.gmra.mrb[52].mxu1 %v4295_v19  ;;  %4516 = vmatmul.mubr.f32.vlgmr.msra.gmra.mrb[52].mxu0 %v4297_v20  ;;  %v4299_v38 = vmax.f32 %v4214_v24, 0.0  ;;  %v4301_v27 = vmax.f32 %v4291_v28, 0.0  ;;  %v10813_v11 = vpack.c.bf16 %v4587_v7, %v4584_v6  ;;  %v4614_v59 = vld [vmem:[#allocation5 + $0x458] sm:$0xff]  ;;  %v4617_v60 = vld [vmem:[#allocation5 + $0x470] sm:$0xff]  ;;  %v4616_v7 = vld [vmem:[#allocation5 + $0x468] sm:$0xff] }
0x1d98   :  { %v4300_v61 = vmax.f32 %v4216_v36, 0.0  ;;  %v4302_v37 = vmax.f32 %v4293_v10, 0.0  ;;  %10808 = vmatpush1.bf16.msra.mxu1 %v10807_v30  ;;  %10838 = vmatprep.subr.bf16.mxu0 %v10837_v2  ;;  %v4585_v36 = vld [vmem:[#allocation5 + $0x370] sm:$0xff]  ;;  %v10817_v10 = vpack.c.bf16 %v4593_v34, %v4590_v32  ;;  %v10857_v30 = vpack.c.bf16 %v4606_v48, %v4603_v22 }
0x1d99   :  { %10810 = vmatprep.subr.bf16.mxu1 %v10809_v58  ;;  %10840 = vmatpush3.bf16.msra.mxu0 %v10837_v2  ;;  %v10831_v58 = vpack.c.bf16 %v4610_v56, %v4607_v29  ;;  %v10833_v2 = vpack.c.bf16 %v4617_v60, %v4614_v59  ;;  %v4613_v6 = vld [vmem:[#allocation5 + $0x450] sm:$0xff] }
0x1d9a   :  { %4445 = vmatprep.mubr.f32.mxu1 %v4300_v61  ;;  %4520 = vmatprep.mubr.f32.mxu0 %v4302_v37  ;;  %v4588_v61 = vld [vmem:[#allocation5 + $0x388] sm:$0xff]  ;;  %v4589_v37 = vld [vmem:[#allocation5 + $0x390] sm:$0xff]  ;;  %v10835_v8 = vpack.c.bf16 %v4616_v7, %v4613_v6 }
0x1d9b   :  { %4446 = vmatmul.mubr.f32.gmra.mrb[54].mxu1 %v4299_v38  ;;  %4521 = vmatmul.mubr.f32.gmra.mrb[54].mxu0 %v4301_v27  ;;  %v4592_v38 = vld [vmem:[#allocation5 + $0x3a8] sm:$0xff]  ;;  %v10845_v27 = vpack.c.bf16 %v4588_v61, %v4585_v36  ;;  %v9106_v32 = vld [vmem:[%s12809_s12 + $0x1] ss:$0 sm:$0xff] }
0x1d9c   :  { %4701 = vmatprep.mubr.f32.mxu1 %v11670_v0  ;;  %10842 = vmatprep.subr.bf16.mxu0 %v10841_v12 }
0x1d9d   :  { %10844 = vmatpush3.bf16.msra.mxu0 %v10841_v12 }
0x1d9e   :  { %10846 = vmatprep.subr.bf16.mxu0 %v10845_v27 }
0x1da1   :  { %10848 = vmatpush3.bf16.msra.mxu0 %v10845_v27 }
0x1e6a   :  { %v9425_v33 = vpop.f32.mrb[52].mxu1  ;;  %v9463_v39 = vpop.f32.mrb[52].mxu0 }
0x1e6b   :  { %v9426_v40 = vpop.f32.mrb[53].mxu1  ;;  %v9464_v35 = vpop.f32.mrb[53].mxu0 }
0x1e6c   :  { %v9427_v62 = vadd.f32 %v9426_v40, %v9425_v33  ;;  %v9465_v3 = vadd.f32 %v9464_v35, %v9463_v39  ;;  %v10819_v33 = vpack.c.bf16 %v4592_v38, %v4589_v37  ;;  %v4596_v39 = vld [vmem:[#allocation5 + $0x3c8] sm:$0xff]  ;;  %v4591_v40 = vld [vmem:[#allocation5 + $0x3a0] sm:$0xff] }
0x1e6e   :  { %v4443_v26 = vadd.f32 %v9427_v62, %v9102_v53  ;;  %v9428_v41 = vpop.f32.mrb[54].mxu1  ;;  %v9466_v21 = vpop.f32.mrb[54].mxu0  ;;  %v4594_v62 = vld [vmem:[#allocation5 + $0x3b8] sm:$0xff] }
0x1e6f   :  { %v9429_v1 = vpop.f32.mrb[55].mxu1  ;;  %v9467_v44 = vpop.f32.mrb[55].mxu0 }
0x1e70   :  { %v4518_v45 = vadd.f32 %v9465_v3, %v4443_v26  ;;  %v9430_v46 = vadd.f32 %v9429_v1, %v9428_v41  ;;  %v9468_v47 = vadd.f32 %v9467_v44, %v9466_v21  ;;  %v4595_v3 = vld [vmem:[#allocation5 + $0x3c0] sm:$0xff]  ;;  %v4598_v26 = vld [vmem:[#allocation5 + $0x3d8] sm:$0xff]  ;;  %v10849_v41 = vpack.c.bf16 %v4594_v62, %v4591_v40  ;;  %v4605_v44 = vld [vmem:[#allocation5 + $0x410] sm:$0xff] }
0x1e71   :  { %v10823_v21 = vpack.c.bf16 %v4598_v26, %v4595_v3  ;;  %v4602_v1 = vld [vmem:[#allocation5 + $0x3f8] sm:$0xff] }
0x1e72   :  { %v4448_v49 = vadd.f32 %v9430_v46, %v9102_v53  ;;  %v4526_v50 = vadd.f32 %v4518_v45, %v12273_v55  ;;  %v4580_v55 = vld [vmem:[#allocation5 + $0x348] sm:$0xff]  ;;  %v4599_v53 = vld [vmem:[#allocation5 + $0x3e0] sm:$0xff]  ;;  %10850 = vmatprep.subr.bf16.mxu0 %v10849_v41  ;;  %v4597_v45 = vld [vmem:[#allocation5 + $0x3d0] sm:$0xff]  ;;  %v10825_v46 = vpack.c.bf16 %v4605_v44, %v4602_v1 }
0x1e73   :  { %v10821_v35 = vpack.c.bf16 %v4599_v53, %v4596_v39  ;;  %10852 = vmatpush3.bf16.msra.mxu0 %v10849_v41 }
0x1e74   :  { %v4523_v51 = vadd.f32 %v9468_v47, %v4448_v49  ;;  %4532 = vadd.xlane.f32.xlu0 %v4526_v50  ;;  %v4600_v47 = vld [vmem:[#allocation5 + $0x3e8] sm:$0xff]  ;;  %v4601_v49 = vld [vmem:[#allocation5 + $0x3f0] sm:$0xff] }
0x1e76   :  { %v4527_v52 = vadd.f32 %v4523_v51, %v12280_v57  ;;  %v10811_v57 = vpack.c.bf16 %v4580_v55, %v4577_v63  ;;  %v10853_v51 = vpack.c.bf16 %v4600_v47, %v4597_v45  ;;  %v4609_v63 = vld [vmem:[#allocation5 + $0x430] sm:$0xff]  ;;  %v4612_v55 = vld [vmem:[#allocation5 + $0x448] sm:$0xff] }
0x1e78   :  { %4534 = vadd.xlane.f32.xlu1 %v4527_v52  ;;  %10812 = vmatpush1.bf16.msra.mxu1 %v10811_v57  ;;  %v10861_v57 = vpack.c.bf16 %v4612_v55, %v4609_v63 }
0x1e79   :  { %10814 = vmatprep.subr.bf16.mxu1 %v10813_v11  ;;  %10854 = vmatprep.subr.bf16.mxu0 %v10853_v51  ;;  %v4618_v11 = vld [vmem:[#allocation5 + $0x478] sm:$0xff] }
0x1e7a   :  { %10856 = vmatpush3.bf16.msra.mxu0 %v10853_v51  ;;  %v10865_v12 = vpack.c.bf16 %v4618_v11, %v4615_v9 }
0x1e7b   :  { %10858 = vmatprep.subr.bf16.mxu0 %v10857_v30 }
0x1e7c   :  { %10816 = vmatpush1.bf16.msra.mxu1 %v10815_v23 }
0x1e7d   :  { %10818 = vmatprep.subr.bf16.mxu1 %v10817_v10 }
0x1e7e   :  { %10860 = vmatpush3.bf16.msra.mxu0 %v10857_v30 }
0x1e7f   :  { %10862 = vmatprep.subr.bf16.mxu0 %v10861_v57 }
0x1e80   :  { %10820 = vmatpush1.bf16.msra.mxu1 %v10819_v33 }
0x1e81   :  { %10822 = vmatprep.subr.bf16.mxu1 %v10821_v35 }
0x1e82   :  { %10864 = vmatpush3.bf16.msra.mxu0 %v10861_v57 }
0x1e83   :  { %10866 = vmatprep.subr.bf16.mxu0 %v10865_v12 }
0x1e84   :  { %10824 = vmatpush1.bf16.msra.mxu1 %v10823_v21 }
0x1e85   :  { %10826 = vmatprep.subr.bf16.mxu1 %v10825_v46 }
0x1e86   :  { %10868 = vmatpush3.bf16.msra.mxu0 %v10865_v12 }
0x1e87   :  { %10127 = vmatprep.subr.mxu0 %v11670_v0 }
0x1f01   :  { %v4533_v43 = vpop.xlane.xlu0 %4532 }
0x1f02   :  { %v4536_v15 = vmul.f32 0.0078125, %v4533_v43 }
0x1f04   :  { %v12297_v17 = vsub.f32 %v4526_v50, %v4536_v15  ;;  %v4604_v50 = vld [vmem:[#allocation5 + $0x408] sm:$0xff] }
0x1f05   :  { %v4535_v18 = vpop.xlane.xlu1 %4534 }
0x1f06   :  { %v4537_v19 = vmul.f32 0.0078125, %v4535_v18  ;;  %v4540_v20 = vmul.f32 %v12297_v17, %v12297_v17 }
0x1f08   :  { %v12301_v24 = vsub.f32 %v4527_v52, %v4537_v19  ;;  %4542 = vadd.xlane.f32.xlu0 %v4540_v20  ;;  %v10827_v52 = vpack.c.bf16 %v4604_v50, %v4601_v49  ;;  %v9105_v20 = vld [vmem:[%s12808_s11 + $0x1] ss:$0 sm:$0xff] }
0x1f0a   :  { %v4541_v28 = vmul.f32 %v12301_v24, %v12301_v24  ;;  %10828 = vmatpush1.bf16.msra.mxu1 %v10827_v52 }
0x1f0b   :  { %10830 = vmatprep.subr.bf16.mxu1 %v10829_v13 }
0x1f0c   :  { %4544 = vadd.xlane.f32.xlu1 %v4541_v28 }
0x1f0e   :  { %10832 = vmatpush1.bf16.msra.mxu1 %v10831_v58 }
0x1f0f   :  { %10834 = vmatprep.subr.bf16.mxu1 %v10833_v2 }
0x1f12   :  { %10836 = vmatpush1.bf16.msra.mxu1 %v10835_v8 }
0x1f13   :  { %10092 = vmatprep.subr.mxu1 %v11670_v0 }
0x1f95   :  { %v4543_v42 = vpop.xlane.xlu0 %4542 }
0x1f96   :  { %v4546_v5 = vmul.f32 0.0078125, %v4543_v42 }
0x1f98   :  { %v4548_v23 = vadd.f32 1e-05, %v4546_v5 }
0x1f99   :  { %v4545_v43 = vpop.xlane.xlu1 %4544 }
0x1f9a   :  { %11408 = vrsqrt.f32 %v4548_v23  ;;  %v4547_v15 = vmul.f32 0.0078125, %v4545_v43 }
0x1f9c   :  { %v4549_v18 = vadd.f32 1e-05, %v4547_v15 }
0x1f9e   :  { %11410 = vrsqrt.f32 %v4549_v18 }
0x1fa4   :  { %v11409_v19 = vpop.eup %11408 }
0x1fa5   :  { %v4552_v28 = vmul.f32 %v11409_v19, %v12297_v17  ;;  %v4620_v17 = vld [vmem:[#allocation7 + $0x6] sm:$0x7] }
0x1fa6   :  { %v4629_v27 = vrot.slane %v4620_v17, %v11849_v16  ;;  %v4633_v40 = vrot.slane %v4620_v17, %v11860_v25 }
0x1fa7   :  { %v4560_v34 = vmul.f32 %v9105_v20, %v4552_v28 }
0x1fa8   :  { %v11411_v36 = vpop.eup %11410 }
0x1fa9   :  { %v12314_v10 = vadd.f32 %v9106_v32, %v4560_v34  ;;  %v4553_v61 = vmul.f32 %v11411_v36, %v12301_v24  ;;  %v4625_v24 = vrot.slane %v4620_v17, %v11846_v14 }
0x1fab   :  { %4702 = vmatmul.mubr.f32.vlgmr.msra.gmra.mrb[56].mxu1 %v12314_v10  ;;  %10089 = vmatprep.mubr.f32.mxu0 %v12314_v10  ;;  %v4561_v37 = vmul.f32 %v9105_v20, %v4553_v61 }
0x1fac   :  { %4707 = vmatprep.mubr.f32.mxu1 %v11670_v0 }
0x1fad   :  { %v12320_v38 = vadd.f32 %v9106_v32, %v4561_v37 }
0x1faf   :  { %4708 = vmatmul.mubr.f32.gmra.mrb[58].mxu1 %v12320_v38  ;;  %10090 = vmatmul.mubr.f32.vlgmr.msra.gmra.mrb[56].mxu0 %v12320_v38 }
0x1fb0   :  { %10094 = vmatprep.mubr.msk.f32.mxu1 %vm11671_vm0, %v11670_v0  ;;  %10129 = vmatprep.mubr.msk.f32.mxu0 %vm11671_vm0, %v11670_v0 }
0x207e   :  { %v4703_v33 = vpop.f32.mrb[56].mxu1 }
0x207f   :  { %v4704_v39 = vadd.f32 %v4703_v33, %v4625_v24  ;;  %v4705_v53 = vpop.f32.mrb[57].mxu1 }
0x2080   :  { %v12331_v35 = vadd.f32 %v4705_v53, %v4629_v27 }
0x2081   :  { %v12335_v26 = vmul.f32 0.17677669, %v4704_v39 }
0x2082   :  { %v4709_v62 = vpop.f32.mrb[58].mxu1  ;;  %v10091_v3 = vpop.f32.mrb[56].mxu0  ;;  %10093 = vmatpush3.xpose.msk.msra.mxu1 %vm348_vm1, %v12331_v35 }
0x2083   :  { %v4710_v41 = vadd.f32 %v4709_v62, %v4625_v24  ;;  %v12337_v21 = vadd.f32 %v10091_v3, %v4633_v40  ;;  %v4711_v1 = vpop.f32.mrb[59].mxu1  ;;  %v4780_v44 = vpop.f32.mrb[57].mxu0  ;;  %10097 = vmatprep.subr.mxu1 %v11670_v0 }
0x2084   :  { %v12340_v45 = vadd.f32 %v4711_v1, %v4629_v27  ;;  %v12351_v47 = vadd.f32 %v4780_v44, %v4633_v40 }
0x2085   :  { %10095 = vmatmul.mubr.msk.f32.vlgmr.msra.gmra.mrb[60].mxu1 %vm348_vm1, %v12335_v26  ;;  %v12348_v46 = vmul.f32 0.17677669, %v4710_v41 }
0x2086   :  { %10098 = vmatpush3.xpose.msk.msra.mxu1 %vm348_vm1, %v12340_v45  ;;  %10099 = vmatprep.mubr.msk.f32.mxu1 %vm11671_vm0, %v11670_v0 }
0x2087   :  { %10102 = vmatprep.subr.mxu1 %v11670_v0 }
0x2089   :  { %10100 = vmatmul.mubr.msk.f32.vlgmr.msra.gmra.mrb[62].mxu1 %vm348_vm1, %v12348_v46 }
0x208a   :  { %10103 = vmatpush3.msra.mxu1 %v12351_v47  ;;  %10104 = vmatprep.mubr.msk.f32.mxu1 %vm11671_vm0, %v11670_v0 }
0x208b   :  { %10107 = vmatprep.subr.mxu1 %v11670_v0 }
0x2158   :  { %v4863_v49 = vpop.f32.mrb[60].mxu1 }
0x2159   :  { %v10096_v50 = vpop.f32.mrb[61].mxu1  ;;  %v4943_v51 = vsel %vm501_vm2, %v4863_v49, -inf }
0x215a   :  { %4944 = vmax.xlane.f32.xlu0 %v4943_v51 }
0x215c   :  { %v4939_v52 = vpop.f32.mrb[62].mxu1 }
0x215d   :  { %v10101_v4 = vpop.f32.mrb[63].mxu1  ;;  %v4946_v54 = vsel %vm501_vm2, %v4939_v52, -inf }
0x215e   :  { %4947 = vmax.xlane.f32.xlu1 %v4946_v54 }
0x216f   :  { %5111 = vrot.lane.b32.xlu1 %v12335_v26, %s11672_s9 }
0x2173   :  { %5191 = vrot.lane.b32.xlu1 %v12340_v45, %s11672_s9 }
0x21e7   :  { %v4945_v22 = vpop.xlane.xlu0 %4944 }
0x21e8   :  { %v4949_v13 = vsub.f32 %v4863_v49, %v4945_v22 }
0x21ea   :  { %v4951_v48 = vmul.f32 1.442695, %v4949_v13 }
0x21eb   :  { %v4948_v29 = vpop.xlane.xlu1 %4947 }
0x21ec   :  { %11412 = vpow2.f32 %v4951_v48  ;;  %v4950_v56 = vsub.f32 %v4939_v52, %v4948_v29 }
0x21ee   :  { %v4953_v30 = vmul.f32 1.442695, %v4950_v56 }
0x21ef   :  { %v5112_v2 = vpop.permute.xlu1 %5111 }
0x21f0   :  { %11414 = vpow2.f32 %v4953_v30 }
0x21f3   :  { %v5192_v55 = vpop.permute.xlu1 %5191 }
0x21f6   :  { %v11413_v58 = vpop.eup %11412 }
0x21f7   :  { %v4955_v59 = vsel %vm501_vm2, %v11413_v58, 0.0 }
0x21f8   :  { %4956 = vadd.xlane.f32.xlu0 %v4955_v59 }
0x21fa   :  { %v11415_v60 = vpop.eup %11414 }
0x21fb   :  { %v4958_v63 = vsel %vm501_vm2, %v11415_v60, 0.0 }
0x21fc   :  { %4959 = vadd.xlane.f32.xlu1 %v4958_v63 }
0x220d   :  { %5189 = vrot.lane.b32.xlu1 %v12348_v46, %s11672_s9 }
0x220e   :  { %5113 = vrot.lane.b32.xlu0 %v12331_v35, %s11672_s9 }
0x2285   :  { %v4957_v6 = vpop.xlane.xlu0 %4956 }
0x2286   :  { %11416 = vrcp.f32 %v4957_v6 }
0x2289   :  { %v4960_v7 = vpop.xlane.xlu1 %4959  ;;  %v5114_v12 = vpop.permute.xlu0 %5113 }
0x228a   :  { %11418 = vrcp.f32 %v4960_v7 }
0x228d   :  { %v5190_v42 = vpop.permute.xlu1 %5189 }
0x2290   :  { %v11417_v57 = vpop.eup %11416 }
0x2291   :  { %v4963_v8 = vmul.f32 %v11417_v57, %v11413_v58 }
0x2293   :  { %10105 = vmatmul.mubr.msk.f32.vlgmr.msra.gmra.mrb[64].mxu1 %vm501_vm2, %v4963_v8 }
0x2294   :  { %v11419_v9 = vpop.eup %11418  ;;  %10108 = vmatpush3.msra.mxu1 %v12337_v21  ;;  %10109 = vmatprep.mubr.msk.f32.mxu1 %vm11671_vm0, %v11670_v0 }
0x2295   :  { %v4964_v11 = vmul.f32 %v11419_v9, %v11415_v60  ;;  %10112 = vmatprep.subr.mxu1 %v11670_v0 }
0x2297   :  { %10110 = vmatmul.mubr.msk.f32.vlgmr.msra.gmra.mrb[66].mxu1 %vm501_vm2, %v4964_v11 }
0x2298   :  { %10114 = vmatprep.mubr.msk.f32.mxu1 %vm11671_vm0, %v11670_v0 }
0x229b   :  { %10113 = vmatpush3.xpose.msk.msra.mxu1 %vm348_vm1, %v5114_v12 }
0x229c   :  { %10117 = vmatprep.subr.mxu1 %v11670_v0 }
0x229e   :  { %10115 = vmatmul.mubr.msk.f32.vlgmr.msra.gmra.mrb[68].mxu1 %vm348_vm1, %v5112_v2 }
0x229f   :  { %10118 = vmatpush3.xpose.msk.msra.mxu1 %vm348_vm1, %v5192_v55  ;;  %10119 = vmatprep.mubr.msk.f32.mxu1 %vm11671_vm0, %v11670_v0 }
0x22a0   :  { %10122 = vmatprep.subr.mxu1 %v11670_v0 }
0x22a2   :  { %10120 = vmatmul.mubr.msk.f32.vlgmr.msra.gmra.mrb[70].mxu1 %vm348_vm1, %v5190_v42 }
0x22a3   :  { %10124 = vmatprep.mubr.msk.f32.mxu1 %vm11671_vm0, %v11670_v0 }
0x2366   :  { %v12389_v5 = vpop.f32.mrb[64].mxu1 }
0x2367   :  { %v10106_v23 = vpop.f32.mrb[65].mxu1 }
0x236a   :  { %v12391_v43 = vpop.f32.mrb[66].mxu1 }
0x236b   :  { %v10111_v15 = vpop.f32.mrb[67].mxu1 }
0x2371   :  { %v5185_v18 = vpop.f32.mrb[68].mxu1 }
0x2372   :  { %v10116_v19 = vpop.f32.mrb[69].mxu1  ;;  %v5267_v20 = vsel %vm501_vm2, %v5185_v18, -inf }
0x2373   :  { %5268 = vmax.xlane.f32.xlu0 %v5267_v20 }
0x2375   :  { %v5263_v28 = vpop.f32.mrb[70].mxu1 }
0x2376   :  { %v10121_v32 = vpop.f32.mrb[71].mxu1  ;;  %v5270_v34 = vsel %vm501_vm2, %v5263_v28, -inf }
0x2377   :  { %5271 = vmax.xlane.f32.xlu1 %v5270_v34 }
0x2388   :  { %5367 = vrot.lane.b32.xlu1 %v12337_v21, %s11672_s9 }
0x2389   :  { %5290 = vrot.lane.b32.xlu0 %v12351_v47, %s11672_s9 }
0x238c   :  { %5445 = vrot.lane.b32.xlu1 %v12331_v35, %s11673_s1 }
0x2390   :  { %5523 = vrot.lane.b32.xlu1 %v12340_v45, %s11673_s1 }
0x2394   :  { %5521 = vrot.lane.b32.xlu1 %v12348_v46, %s11673_s1 }
0x2400   :  { %v5269_v36 = vpop.xlane.xlu0 %5268 }
0x2401   :  { %v5273_v61 = vsub.f32 %v5185_v18, %v5269_v36 }
0x2403   :  { %v5275_v37 = vmul.f32 1.442695, %v5273_v61 }
0x2404   :  { %v5291_v17 = vpop.permute.xlu0 %5290  ;;  %v5272_v24 = vpop.xlane.xlu1 %5271 }
0x2405   :  { %11420 = vpow2.f32 %v5275_v37  ;;  %v5274_v27 = vsub.f32 %v5263_v28, %v5272_v24  ;;  %10123 = vmatpush3.msra.mxu1 %v5291_v17 }
0x2406   :  { %10132 = vmatprep.subr.mxu1 %v11670_v0 }
0x2407   :  { %v5277_v33 = vmul.f32 1.442695, %v5274_v27 }
0x2408   :  { %v5368_v39 = vpop.permute.xlu1 %5367 }
0x2409   :  { %11422 = vpow2.f32 %v5277_v33  ;;  %10128 = vmatpush3.msra.mxu0 %v5368_v39 }
0x240a   :  { %10137 = vmatprep.subr.mxu0 %v11670_v0 }
0x240c   :  { %v5446_v44 = vpop.permute.xlu1 %5445 }
0x240f   :  { %v11421_v53 = vpop.eup %11420 }
0x2410   :  { %v5279_v40 = vsel %vm501_vm2, %v11421_v53, 0.0  ;;  %v5524_v52 = vpop.permute.xlu1 %5523 }
0x2411   :  { %5280 = vadd.xlane.f32.xlu0 %v5279_v40 }
0x2413   :  { %v11423_v62 = vpop.eup %11422 }
0x2414   :  { %v5282_v3 = vsel %vm501_vm2, %v11423_v62, 0.0  ;;  %v5522_v22 = vpop.permute.xlu1 %5521 }
0x2415   :  { %5283 = vadd.xlane.f32.xlu0 %v5282_v3 }
0x242b   :  { %5443 = vrot.lane.b32.xlu0 %v12335_v26, %s11673_s1 }
0x249e   :  { %v5281_v41 = vpop.xlane.xlu0 %5280 }
0x249f   :  { %11424 = vrcp.f32 %v5281_v41 }
0x24a2   :  { %v5284_v1 = vpop.xlane.xlu0 %5283 }
0x24a3   :  { %11426 = vrcp.f32 %v5284_v1 }
0x24a6   :  { %v5444_v54 = vpop.permute.xlu0 %5443 }
0x24a9   :  { %v11425_v49 = vpop.eup %11424 }
0x24aa   :  { %v5287_v50 = vmul.f32 %v11425_v49, %v11421_v53 }
0x24ac   :  { %10125 = vmatmul.mubr.msk.f32.vlgmr.msra.gmra.mrb[72].mxu1 %vm501_vm2, %v5287_v50 }
0x24ad   :  { %v11427_v51 = vpop.eup %11426  ;;  %10133 = vmatpush3.xpose.msk.msra.mxu1 %vm348_vm1, %v5446_v44  ;;  %10134 = vmatprep.mubr.msk.f32.mxu1 %vm11671_vm0, %v11670_v0 }
0x24ae   :  { %v5288_v4 = vmul.f32 %v11427_v51, %v11423_v62  ;;  %10142 = vmatprep.subr.mxu1 %v11670_v0 }
0x24b0   :  { %10130 = vmatmul.mubr.msk.f32.vlgmr.msra.gmra.mrb[58].mxu0 %vm501_vm2, %v5288_v4  ;;  %10135 = vmatmul.mubr.msk.f32.vlgmr.msra.gmra.mrb[74].mxu1 %vm348_vm1, %v5444_v54 }
0x24b1   :  { %10138 = vmatpush3.xpose.msk.msra.mxu0 %vm348_vm1, %v5524_v52  ;;  %10139 = vmatprep.mubr.msk.f32.mxu0 %vm11671_vm0, %v11670_v0 }
0x24b2   :  { %10147 = vmatprep.subr.mxu0 %v11670_v0  ;;  %10144 = vmatprep.mubr.msk.f32.mxu1 %vm11671_vm0, %v11670_v0 }
0x24b4   :  { %10140 = vmatmul.mubr.msk.f32.vlgmr.msra.gmra.mrb[60].mxu0 %vm348_vm1, %v5522_v22 }
0x24b5   :  { %10149 = vmatprep.mubr.msk.f32.mxu0 %vm11671_vm0, %v11670_v0 }
0x257f   :  { %v12427_v13 = vpop.f32.mrb[72].mxu1 }
0x2580   :  { %v10126_v48 = vpop.f32.mrb[73].mxu1 }
0x2583   :  { %v12429_v29 = vpop.f32.mrb[58].mxu0  ;;  %v5517_v56 = vpop.f32.mrb[74].mxu1 }
0x2584   :  { %v11302_v30 = vpack.i.bf16 %v12429_v29, %v12427_v13  ;;  %v10131_v58 = vpop.f32.mrb[59].mxu0  ;;  %v10136_v59 = vpop.f32.mrb[75].mxu1  ;;  %v5599_v60 = vsel %vm501_vm2, %v5517_v56, -inf }
0x2585   :  { %5600 = vmax.xlane.f32.xlu0 %v5599_v60 }
0x2587   :  { %v5595_v63 = vpop.f32.mrb[60].mxu0 }
0x2588   :  { %v10141_v2 = vpop.f32.mrb[61].mxu0  ;;  %v5602_v55 = vsel %vm501_vm2, %v5595_v63, -inf }
0x2589   :  { %5603 = vmax.xlane.f32.xlu1 %v5602_v55  ;;  %v6135_v2 = vld [vmem:[#allocation8 + $0x108] sm:$0xff]  ;;  %v6136_v55 = vld [vmem:[#allocation8 + $0x110] sm:$0xff] }
0x259a   :  { %5697 = vrot.lane.b32.xlu1 %v12337_v21, %s11673_s1 }
0x259b   :  { %5621 = vrot.lane.b32.xlu0 %v12351_v47, %s11673_s1 }
0x259e   :  { %5775 = vrot.lane.b32.xlu1 %v12331_v35, %s11668_s15 }
0x25a2   :  { %5853 = vrot.lane.b32.xlu1 %v12340_v45, %s11668_s15 }
0x25a6   :  { %5851 = vrot.lane.b32.xlu1 %v12348_v46, %s11668_s15 }
0x2612   :  { %v5601_v6 = vpop.xlane.xlu0 %5600 }
0x2613   :  { %v5605_v7 = vsub.f32 %v5517_v56, %v5601_v6  ;;  %v6137_v6 = vld [vmem:[#allocation8 + $0x118] sm:$0xff] }
0x2615   :  { %v5607_v57 = vmul.f32 1.442695, %v5605_v7  ;;  %v10873_v7 = vpack.c.bf16 %v6137_v6, %v6136_v55  ;;  %v6284_v6 = vld [vmem:[#allocation10 + $0x430] sm:$0xff] }
0x2616   :  { %v5604_v8 = vpop.xlane.xlu1 %5603  ;;  %v5622_v9 = vpop.permute.xlu0 %5621 }
0x2617   :  { %11428 = vpow2.f32 %v5607_v57  ;;  %v5606_v11 = vsub.f32 %v5595_v63, %v5604_v8  ;;  %10143 = vmatpush3.msra.mxu1 %v5622_v9  ;;  %v6134_v63 = vld [vmem:[#allocation8 + $0x100] sm:$0xff]  ;;  %v6139_v8 = vld [vmem:[#allocation8 + $0x128] sm:$0xff] }
0x2618   :  { %10152 = vmatprep.subr.mxu1 %v11670_v0  ;;  %v6138_v57 = vld [vmem:[#allocation8 + $0x120] sm:$0xff] }
0x2619   :  { %v5609_v12 = vmul.f32 1.442695, %v5606_v11  ;;  %v10877_v9 = vpack.c.bf16 %v6139_v8, %v6138_v57  ;;  %v6140_v11 = vld [vmem:[#allocation8 + $0x130] sm:$0xff]  ;;  %v6291_v8 = vld [vmem:[#allocation10 + $0x468] sm:$0xff] }
0x261a   :  { %v5698_v42 = vpop.permute.xlu1 %5697 }
0x261b   :  { %11430 = vpow2.f32 %v5609_v12  ;;  %10148 = vmatpush3.msra.mxu0 %v5698_v42  ;;  %v6141_v12 = vld [vmem:[#allocation8 + $0x138] sm:$0xff] }
0x261c   :  { %10157 = vmatprep.subr.mxu0 %v11670_v0  ;;  %v10881_v42 = vpack.c.bf16 %v6141_v12, %v6140_v11  ;;  %v6286_v12 = vld [vmem:[#allocation10 + $0x440] sm:$0xff] }
0x261e   :  { %v5776_v19 = vpop.permute.xlu1 %5775 }
0x2621   :  { %v11429_v35 = vpop.eup %11428 }
0x2622   :  { %v5611_v45 = vsel %vm501_vm2, %v11429_v35, 0.0  ;;  %v5854_v34 = vpop.permute.xlu1 %5853 }
0x2623   :  { %5612 = vadd.xlane.f32.xlu0 %v5611_v45  ;;  %v6143_v45 = vld [vmem:[#allocation8 + $0x148] sm:$0xff] }
0x2625   :  { %v11431_v46 = vpop.eup %11430 }
0x2626   :  { %v5614_v23 = vsel %vm501_vm2, %v11431_v46, 0.0  ;;  %v5852_v61 = vpop.permute.xlu1 %5851 }
0x2627   :  { %5615 = vadd.xlane.f32.xlu0 %v5614_v23  ;;  %v6144_v23 = vld [vmem:[#allocation8 + $0x150] sm:$0xff] }
0x263d   :  { %5773 = vrot.lane.b32.xlu0 %v12335_v26, %s11668_s15 }
0x26b0   :  { %v5613_v15 = vpop.xlane.xlu0 %5612 }
0x26b1   :  { %11432 = vrcp.f32 %v5613_v15  ;;  %v6145_v15 = vld [vmem:[#allocation8 + $0x158] sm:$0xff] }
0x26b4   :  { %v5616_v18 = vpop.xlane.xlu0 %5615 }
0x26b5   :  { %11434 = vrcp.f32 %v5616_v18  ;;  %v10889_v18 = vpack.c.bf16 %v6145_v15, %v6144_v23  ;;  %v6295_v23 = vld [vmem:[#allocation10 + $0x488] sm:$0xff] }
0x26b6   :  { %v6299_v15 = vld [vmem:[#allocation10 + $0x4a8] sm:$0xff] }
0x26b8   :  { %v5774_v26 = vpop.permute.xlu0 %5773 }
0x26bb   :  { %v11433_v20 = vpop.eup %11432 }
0x26bc   :  { %v5619_v28 = vmul.f32 %v11433_v20, %v11429_v35  ;;  %v6142_v35 = vld [vmem:[#allocation8 + $0x140] sm:$0xff]  ;;  %v6147_v20 = vld [vmem:[#allocation8 + $0x168] sm:$0xff] }
0x26be   :  { %10145 = vmatmul.mubr.msk.f32.vlgmr.msra.gmra.mrb[76].mxu1 %vm501_vm2, %v5619_v28 }
0x26bf   :  { %v11435_v32 = vpop.eup %11434  ;;  %10153 = vmatpush3.xpose.msk.msra.mxu1 %vm348_vm1, %v5776_v19  ;;  %10154 = vmatprep.mubr.msk.f32.mxu1 %vm11671_vm0, %v11670_v0  ;;  %v6146_v19 = vld [vmem:[#allocation8 + $0x160] sm:$0xff] }
0x26c0   :  { %v5620_v36 = vmul.f32 %v11435_v32, %v11431_v46  ;;  %10162 = vmatprep.subr.mxu1 %v11670_v0  ;;  %v10885_v46 = vpack.c.bf16 %v6143_v45, %v6142_v35  ;;  %v10893_v28 = vpack.c.bf16 %v6147_v20, %v6146_v19  ;;  %v6148_v32 = vld [vmem:[#allocation8 + $0x170] sm:$0xff]  ;;  %v10909_v19 = vpack.c.bf16 %v6299_v15, %v6295_v23  ;;  %v6297_v20 = vld [vmem:[#allocation10 + $0x498] sm:$0xff] }
0x26c1   :  { %v6288_v35 = vld [vmem:[#allocation10 + $0x450] sm:$0xff]  ;;  %v6329_v23 = vld [vmem:[#allocation10 + $0x598] sm:$0xff] }
0x26c2   :  { %10150 = vmatmul.mubr.msk.f32.vlgmr.msra.gmra.mrb[62].mxu0 %vm501_vm2, %v5620_v36  ;;  %10155 = vmatmul.mubr.msk.f32.vlgmr.msra.gmra.mrb[78].mxu1 %vm348_vm1, %v5774_v26  ;;  %v6333_v15 = vld [vmem:[#allocation10 + $0x5b8] sm:$0xff] }
0x26c3   :  { %10158 = vmatpush3.xpose.msk.msra.mxu0 %vm348_vm1, %v5854_v34  ;;  %10159 = vmatprep.mubr.msk.f32.mxu0 %vm11671_vm0, %v11670_v0  ;;  %v6149_v34 = vld [vmem:[#allocation8 + $0x178] sm:$0xff] }
0x26c4   :  { %10167 = vmatprep.subr.mxu0 %v11670_v0  ;;  %10164 = vmatprep.mubr.msk.f32.mxu1 %vm11671_vm0, %v11670_v0  ;;  %v10897_v36 = vpack.c.bf16 %v6149_v34, %v6148_v32  ;;  %v6294_v32 = vld [vmem:[#allocation10 + $0x480] sm:$0xff] }
0x26c6   :  { %10160 = vmatmul.mubr.msk.f32.vlgmr.msra.gmra.mrb[64].mxu0 %vm348_vm1, %v5852_v61 }
0x26c7   :  { %10169 = vmatprep.mubr.msk.f32.mxu0 %vm11671_vm0, %v11670_v0 }
0x2791   :  { %v5693_v37 = vpop.f32.mrb[76].mxu1 }
0x2792   :  { %v10146_v17 = vpop.f32.mrb[77].mxu1 }
0x2795   :  { %v5769_v24 = vpop.f32.mrb[62].mxu0  ;;  %v5847_v27 = vpop.f32.mrb[78].mxu1 }
0x2796   :  { %v11307_v33 = vpack.i.bf16 %v5769_v24, %v5693_v37  ;;  %v10151_v39 = vpop.f32.mrb[63].mxu0  ;;  %v10156_v53 = vpop.f32.mrb[79].mxu1  ;;  %v5929_v40 = vsel %vm501_vm2, %v5847_v27, -inf }
0x2797   :  { %5930 = vmax.xlane.f32.xlu0 %v5929_v40 }
0x2799   :  { %v5925_v62 = vpop.f32.mrb[64].mxu0 }
0x279a   :  { %v10161_v3 = vpop.f32.mrb[65].mxu0  ;;  %v5932_v41 = vsel %vm501_vm2, %v5925_v62, -inf }
0x279b   :  { %5933 = vmax.xlane.f32.xlu1 %v5932_v41 }
0x27ac   :  { %6027 = vrot.lane.b32.xlu1 %v12337_v21, %s11668_s15 }
0x27b0   :  { %11303 = vrot.lane.b32.xlu1 %v11302_v30, %s11668_s15 }
0x27b4   :  { %11308 = vrot.lane.b32.xlu1 %v11307_v33, %s11673_s1 }
0x2824   :  { %v5931_v1 = vpop.xlane.xlu0 %5930 }
0x2825   :  { %v5935_v44 = vsub.f32 %v5847_v27, %v5931_v1 }
0x2827   :  { %v5937_v49 = vmul.f32 1.442695, %v5935_v44 }
0x2828   :  { %v5934_v50 = vpop.xlane.xlu1 %5933 }
0x2829   :  { %11436 = vpow2.f32 %v5937_v49  ;;  %v5936_v51 = vsub.f32 %v5925_v62, %v5934_v50 }
0x282b   :  { %v5939_v52 = vmul.f32 1.442695, %v5936_v51 }
0x282c   :  { %v6028_v4 = vpop.permute.xlu1 %6027 }
0x282d   :  { %11438 = vpow2.f32 %v5939_v52  ;;  %10168 = vmatpush3.msra.mxu0 %v6028_v4 }
0x2830   :  { %v11304_v27 = vpop.permute.xlu1 %11303 }
0x2831   :  { %v11306_v39 = vunpack.i.h.bf16 %v11304_v27  ;;  %v11305_v53 = vunpack.i.l.bf16 %v11304_v27 }
0x2833   :  { %v11437_v54 = vpop.eup %11436  ;;  %v6128_v41 = vsel %vm348_vm1, %v12391_v43, %v11306_v39  ;;  %v6127_v49 = vsel %vm348_vm1, %v12389_v5, %v11305_v53  ;;  %v9132_v43 = vld [vmem:[%s12801_s4 + $0x2] ss:$0 sm:$0xff] }
0x2834   :  { %v5941_v21 = vsel %vm501_vm2, %v11437_v54, 0.0  ;;  %v11309_v33 = vpop.permute.xlu1 %11308 }
0x2835   :  { %5942 = vadd.xlane.f32.xlu0 %v5941_v21  ;;  %v11311_v40 = vunpack.i.h.bf16 %v11309_v33  ;;  %v11310_v62 = vunpack.i.l.bf16 %v11309_v33 }
0x2837   :  { %v11439_v22 = vpop.eup %11438  ;;  %v6129_v50 = vsel %vm1688_vm3, %v6127_v49, %v11310_v62  ;;  %v6130_v51 = vsel %vm1688_vm3, %v6128_v41, %v11311_v40  ;;  %v6303_v41 = vld [vmem:[#allocation10 + $0x4c8] sm:$0xff] }
0x2838   :  { %v5944_v13 = vsel %vm501_vm2, %v11439_v22, 0.0 }
0x2839   :  { %5945 = vadd.xlane.f32.xlu0 %v5944_v13 }
0x284f   :  { %5951 = vrot.lane.b32.xlu0 %v12351_v47, %s11668_s15  ;;  %v10869_v47 = vpack.c.bf16 %v6135_v2, %v6134_v63  ;;  %v6282_v63 = vld [vmem:[#allocation10 + $0x420] sm:$0xff] }
0x28c2   :  { %v5943_v48 = vpop.xlane.xlu0 %5942 }
0x28c3   :  { %11440 = vrcp.f32 %v5943_v48 }
0x28c6   :  { %v5946_v29 = vpop.xlane.xlu0 %5945 }
0x28c7   :  { %11442 = vrcp.f32 %v5946_v29  ;;  %v6279_v29 = vld [vmem:[#allocation10 + $0x408] sm:$0xff] }
0x28ca   :  { %v5952_v56 = vpop.permute.xlu0 %5951 }
0x28cb   :  { %10163 = vmatpush3.msra.mxu1 %v5952_v56  ;;  %v6283_v56 = vld [vmem:[#allocation10 + $0x428] sm:$0xff] }
0x28cc   :  { %10870 = vmatprep.subr.bf16.mxu1 %v10869_v47 }
0x28cd   :  { %v11441_v30 = vpop.eup %11440 }
0x28ce   :  { %v5949_v58 = vmul.f32 %v11441_v30, %v11437_v54  ;;  %v6281_v30 = vld [vmem:[#allocation10 + $0x418] sm:$0xff] }
0x28d0   :  { %10165 = vmatmul.mubr.msk.f32.vlgmr.msra.gmra.mrb[80].mxu1 %vm501_vm2, %v5949_v58  ;;  %v10901_v58 = vpack.c.bf16 %v6283_v56, %v6279_v29  ;;  %v6317_v56 = vld [vmem:[#allocation10 + $0x538] sm:$0xff] }
0x28d1   :  { %v11443_v59 = vpop.eup %11442  ;;  %10872 = vmatpush3.bf16.msra.mxu1 %v10869_v47  ;;  %v6280_v47 = vld [vmem:[#allocation10 + $0x410] sm:$0xff] }
0x28d2   :  { %v5950_v60 = vmul.f32 %v11443_v59, %v11439_v22  ;;  %10874 = vmatprep.subr.bf16.mxu1 %v10873_v7  ;;  %v6285_v59 = vld [vmem:[#allocation10 + $0x438] sm:$0xff]  ;;  %10902 = vmatprep.subr.bf16.mxu0 %v10901_v58  ;;  %v10935_v57 = vpack.c.bf16 %v6284_v6, %v6280_v47  ;;  %v6314_v58 = vld [vmem:[#allocation10 + $0x520] sm:$0xff]  ;;  %v6319_v47 = vld [vmem:[#allocation10 + $0x548] sm:$0xff] }
0x28d3   :  { %v10933_v2 = vpack.c.bf16 %v6285_v59, %v6281_v30  ;;  %v6310_v30 = vld [vmem:[#allocation10 + $0x500] sm:$0xff]  ;;  %v6323_v6 = vld [vmem:[#allocation10 + $0x568] sm:$0xff] }
0x28d4   :  { %10170 = vmatmul.mubr.msk.f32.vlgmr.msra.gmra.mrb[66].mxu0 %vm501_vm2, %v5950_v60  ;;  %v6278_v60 = vld [vmem:[#allocation10 + $0x400] sm:$0xff] }
0x28d5   :  { %6429 = vmatprep.mubr.f32.mxu0 %v11670_v0  ;;  %10876 = vmatpush3.bf16.msra.mxu1 %v10873_v7  ;;  %v10903_v55 = vpack.c.bf16 %v6282_v63, %v6278_v60  ;;  %v6287_v7 = vld [vmem:[#allocation10 + $0x448] sm:$0xff]  ;;  %v10919_v60 = vpack.c.bf16 %v6314_v58, %v6310_v30  ;;  %v6312_v63 = vld [vmem:[#allocation10 + $0x510] sm:$0xff]  ;;  %v9136_v30 = vld [vmem:[%s12803_s6 + $0x2] ss:$0 sm:$0xff] }
0x28d6   :  { %10878 = vmatprep.subr.bf16.mxu1 %v10877_v9 }
0x28d7   :  { %10904 = vmatpush1.bf16.msra.mxu0 %v10903_v55 }
0x28d9   :  { %10880 = vmatpush3.bf16.msra.mxu1 %v10877_v9  ;;  %v6293_v9 = vld [vmem:[#allocation10 + $0x478] sm:$0xff] }
0x28da   :  { %10882 = vmatprep.subr.bf16.mxu1 %v10881_v42 }
0x28dd   :  { %10884 = vmatpush3.bf16.msra.mxu1 %v10881_v42  ;;  %v6290_v42 = vld [vmem:[#allocation10 + $0x460] sm:$0xff] }
0x28de   :  { %10886 = vmatprep.subr.bf16.mxu1 %v10885_v46  ;;  %v10907_v45 = vpack.c.bf16 %v6290_v42, %v6286_v12  ;;  %v6320_v12 = vld [vmem:[#allocation10 + $0x550] sm:$0xff] }
0x28df   :  { %v6324_v42 = vld [vmem:[#allocation10 + $0x570] sm:$0xff] }
0x28e1   :  { %10888 = vmatpush3.bf16.msra.mxu1 %v10885_v46  ;;  %v6292_v46 = vld [vmem:[#allocation10 + $0x470] sm:$0xff] }
0x28e2   :  { %10890 = vmatprep.subr.bf16.mxu1 %v10889_v18 }
0x28e5   :  { %10892 = vmatpush3.bf16.msra.mxu1 %v10889_v18  ;;  %v10939_v18 = vpack.c.bf16 %v6292_v46, %v6288_v35  ;;  %v6327_v35 = vld [vmem:[#allocation10 + $0x588] sm:$0xff] }
0x28e6   :  { %10894 = vmatprep.subr.bf16.mxu1 %v10893_v28  ;;  %v6331_v46 = vld [vmem:[#allocation10 + $0x5a8] sm:$0xff] }
0x28e9   :  { %10896 = vmatpush3.bf16.msra.mxu1 %v10893_v28  ;;  %v6301_v28 = vld [vmem:[#allocation10 + $0x4b8] sm:$0xff] }
0x28ea   :  { %10898 = vmatprep.subr.bf16.mxu1 %v10897_v36  ;;  %v10941_v34 = vpack.c.bf16 %v6301_v28, %v6297_v20  ;;  %v6326_v20 = vld [vmem:[#allocation10 + $0x580] sm:$0xff] }
0x28eb   :  { %v6330_v28 = vld [vmem:[#allocation10 + $0x5a0] sm:$0xff] }
0x28ed   :  { %10900 = vmatpush3.bf16.msra.mxu1 %v10897_v36  ;;  %v6298_v36 = vld [vmem:[#allocation10 + $0x4a0] sm:$0xff] }
0x28ee   :  { %10934 = vmatprep.subr.bf16.mxu1 %v10933_v2  ;;  %v6316_v2 = vld [vmem:[#allocation10 + $0x530] sm:$0xff] }
0x28ef   :  { %v10951_v55 = vpack.c.bf16 %v6316_v2, %v6312_v63  ;;  %v6560_v63 = vld [vmem:[#allocation11 + $0x500] sm:$0xff]  ;;  %v6561_v2 = vld [vmem:[#allocation11 + $0x508] sm:$0xff] }
0x29a3   :  { %v6023_v26 = vpop.f32.mrb[80].mxu1 }
0x29a4   :  { %v10166_v61 = vpop.f32.mrb[81].mxu1 }
0x29a5   :  { %v6300_v61 = vld [vmem:[#allocation10 + $0x4b0] sm:$0xff] }
0x29a7   :  { %v6099_v37 = vpop.f32.mrb[66].mxu0 }
0x29a8   :  { %v11312_v17 = vpack.i.bf16 %v6099_v37, %v6023_v26  ;;  %v10171_v24 = vpop.f32.mrb[67].mxu0  ;;  %v6296_v26 = vld [vmem:[#allocation10 + $0x490] sm:$0xff]  ;;  %v10911_v37 = vpack.c.bf16 %v6298_v36, %v6294_v32 }
0x29a9   :  { %v6328_v32 = vld [vmem:[#allocation10 + $0x590] sm:$0xff] }
0x29aa   :  { %11313 = vrot.lane.b32.xlu0 %v11312_v17, %s11672_s9  ;;  %v10943_v17 = vpack.c.bf16 %v6300_v61, %v6296_v26  ;;  %v6332_v36 = vld [vmem:[#allocation10 + $0x5b0] sm:$0xff]  ;;  %v6335_v26 = vld [vmem:[#allocation10 + $0x5c8] sm:$0xff] }
0x29ab   :  { %v6339_v61 = vld [vmem:[#allocation10 + $0x5e8] sm:$0xff] }
0x2a1c   :  { %v11314_v3 = vpop.permute.xlu0 %11313 }
0x2a1d   :  { %v11316_v1 = vunpack.i.h.bf16 %v11314_v3  ;;  %v11315_v44 = vunpack.i.l.bf16 %v11314_v3 }
0x2a1f   :  { %v6131_v52 = vsel %vm1691_vm4, %v6129_v50, %v11315_v44  ;;  %v6132_v4 = vsel %vm1691_vm4, %v6130_v51, %v11316_v1  ;;  %v6307_v1 = vld [vmem:[#allocation10 + $0x4e8] sm:$0xff]  ;;  %v6305_v44 = vld [vmem:[#allocation10 + $0x4d8] sm:$0xff]  ;;  %v6302_v51 = vld [vmem:[#allocation10 + $0x4c0] sm:$0xff] }
0x2a20   :  { %10204 = vmatprep.mubr.f32.mxu1 %v6131_v52  ;;  %v10913_v49 = vpack.c.bf16 %v6307_v1, %v6303_v41  ;;  %v6309_v50 = vld [vmem:[#allocation10 + $0x4f8] sm:$0xff]  ;;  %v6306_v52 = vld [vmem:[#allocation10 + $0x4e0] sm:$0xff]  ;;  %v6340_v41 = vld [vmem:[#allocation10 + $0x5f0] sm:$0xff] }
0x2a21   :  { %10205 = vmatmul.mubr.f32.vlgmr.msra.gmra.mrb[82].mxu1 %v6132_v4  ;;  %v10945_v4 = vpack.c.bf16 %v6309_v50, %v6305_v44  ;;  %v6545_v50 = vld [vmem:[#allocation11 + $0x488] sm:$0xff] }
0x2a22   :  { %6506 = vmatprep.mubr.f32.mxu1 %v11670_v0  ;;  %10936 = vmatpush1.bf16.msra.mxu1 %v10935_v57  ;;  %v10921_v57 = vpack.c.bf16 %v6323_v6, %v6319_v47  ;;  %v6547_v6 = vld [vmem:[#allocation11 + $0x498] sm:$0xff] }
0x2af4   :  { %v10206_v54 = vpop.f32.mrb[82].mxu1 }
0x2af5   :  { %v6230_v21 = vadd.f32 %v10206_v54, %v9132_v43  ;;  %v6224_v22 = vpop.f32.mrb[83].mxu1  ;;  %v6304_v54 = vld [vmem:[#allocation10 + $0x4d0] sm:$0xff] }
0x2af6   :  { %v6225_v5 = vadd.f32 %v9132_v43, %v6224_v22  ;;  %v10915_v43 = vpack.c.bf16 %v6306_v52, %v6302_v51  ;;  %v6576_v51 = vld [vmem:[#allocation11 + $0x580] sm:$0xff] }
0x2af7   :  { %v6234_v13 = vadd.f32 %v6230_v21, %v12320_v38  ;;  %v6289_v38 = vld [vmem:[#allocation10 + $0x458] sm:$0xff]  ;;  %v6308_v21 = vld [vmem:[#allocation10 + $0x4f0] sm:$0xff] }
0x2af8   :  { %v6233_v48 = vadd.f32 %v6225_v5, %v12314_v10  ;;  %v10905_v10 = vpack.c.bf16 %v6291_v8, %v6287_v7  ;;  %v10937_v11 = vpack.c.bf16 %v6293_v9, %v6289_v38  ;;  %v10947_v22 = vpack.c.bf16 %v6308_v21, %v6304_v54  ;;  %v6311_v5 = vld [vmem:[#allocation10 + $0x508] sm:$0xff]  ;;  %v6321_v7 = vld [vmem:[#allocation10 + $0x558] sm:$0xff]  ;;  %v6318_v38 = vld [vmem:[#allocation10 + $0x540] sm:$0xff] }
0x2af9   :  { %6241 = vadd.xlane.f32.xlu0 %v6234_v13  ;;  %v6325_v8 = vld [vmem:[#allocation10 + $0x578] sm:$0xff]  ;;  %v6322_v9 = vld [vmem:[#allocation10 + $0x560] sm:$0xff] }
0x2afa   :  { %6239 = vadd.xlane.f32.xlu1 %v6233_v48  ;;  %10906 = vmatprep.subr.bf16.mxu0 %v10905_v10  ;;  %v10953_v10 = vpack.c.bf16 %v6325_v8, %v6321_v7  ;;  %v6578_v7 = vld [vmem:[#allocation11 + $0x590] sm:$0xff] }
0x2afb   :  { %10938 = vmatprep.subr.bf16.mxu1 %v10937_v11  ;;  %10908 = vmatpush1.bf16.msra.mxu0 %v10907_v45  ;;  %v10923_v11 = vpack.c.bf16 %v6322_v9, %v6318_v38  ;;  %v10955_v45 = vpack.c.bf16 %v6324_v42, %v6320_v12  ;;  %v6530_v12 = vld [vmem:[#allocation11 + $0x410] sm:$0xff]  ;;  %v6531_v42 = vld [vmem:[#allocation11 + $0x418] sm:$0xff] }
0x2afc   :  { %10940 = vmatpush1.bf16.msra.mxu1 %v10939_v18  ;;  %10910 = vmatprep.subr.bf16.mxu0 %v10909_v19  ;;  %v10925_v18 = vpack.c.bf16 %v6331_v46, %v6327_v35  ;;  %v10957_v19 = vpack.c.bf16 %v6333_v15, %v6329_v23  ;;  %v6563_v46 = vld [vmem:[#allocation11 + $0x518] sm:$0xff]  ;;  %v6548_v23 = vld [vmem:[#allocation11 + $0x4a0] sm:$0xff] }
0x2afd   :  { %10942 = vmatprep.subr.bf16.mxu1 %v10941_v34  ;;  %v10927_v34 = vpack.c.bf16 %v6330_v28, %v6326_v20  ;;  %v6581_v20 = vld [vmem:[#allocation11 + $0x5a8] sm:$0xff]  ;;  %v10971_v28 = vpack.c.bf16 %v6531_v42, %v6530_v12  ;;  %v6588_v12 = vld [vmem:[#allocation11 + $0x5e0] sm:$0xff] }
0x2afe   :  { %v6589_v42 = vld [vmem:[#allocation11 + $0x5e8] sm:$0xff] }
0x2aff   :  { %10912 = vmatpush1.bf16.msra.mxu0 %v10911_v37  ;;  %v10959_v37 = vpack.c.bf16 %v6332_v36, %v6328_v32  ;;  %v6533_v36 = vld [vmem:[#allocation11 + $0x428] sm:$0xff] }
0x2b00   :  { %10944 = vmatpush1.bf16.msra.mxu1 %v10943_v17  ;;  %10914 = vmatprep.subr.bf16.mxu0 %v10913_v49  ;;  %v10929_v17 = vpack.c.bf16 %v6339_v61, %v6335_v26  ;;  %v6544_v49 = vld [vmem:[#allocation11 + $0x480] sm:$0xff] }
0x2b01   :  { %10946 = vmatprep.subr.bf16.mxu1 %v10945_v4  ;;  %v10965_v52 = vpack.c.bf16 %v6545_v50, %v6544_v49  ;;  %v6577_v4 = vld [vmem:[#allocation11 + $0x588] sm:$0xff]  ;;  %v6566_v50 = vld [vmem:[#allocation11 + $0x530] sm:$0xff] }
0x2b03   :  { %10916 = vmatpush1.bf16.msra.mxu0 %v10915_v43  ;;  %v10997_v43 = vpack.c.bf16 %v6577_v4, %v6576_v51  ;;  %v6567_v51 = vld [vmem:[#allocation11 + $0x538] sm:$0xff]  ;;  %v6553_v4 = vld [vmem:[#allocation11 + $0x4c8] sm:$0xff] }
0x2b04   :  { %10948 = vmatpush1.bf16.msra.mxu1 %v10947_v22 }
0x2b86   :  { %v6242_v24 = vpop.xlane.xlu0 %6241 }
0x2b87   :  { %v6240_v27 = vpop.xlane.xlu1 %6239  ;;  %v6244_v33 = vmul.f32 0.0078125, %v6242_v24  ;;  %v6337_v24 = vld [vmem:[#allocation10 + $0x5d8] sm:$0xff] }
0x2b88   :  { %v6243_v39 = vmul.f32 0.0078125, %v6240_v27  ;;  %v6341_v27 = vld [vmem:[#allocation10 + $0x5f8] sm:$0xff] }
0x2b89   :  { %v12500_v40 = vsub.f32 %v6234_v13, %v6244_v33  ;;  %v6315_v13 = vld [vmem:[#allocation10 + $0x528] sm:$0xff]  ;;  %v6334_v33 = vld [vmem:[#allocation10 + $0x5c0] sm:$0xff] }
0x2b8a   :  { %v12498_v53 = vsub.f32 %v6233_v48, %v6243_v39  ;;  %v6313_v48 = vld [vmem:[#allocation10 + $0x518] sm:$0xff]  ;;  %v10917_v29 = vpack.c.bf16 %v6315_v13, %v6311_v5  ;;  %v10961_v39 = vpack.c.bf16 %v6341_v27, %v6337_v24  ;;  %v6550_v24 = vld [vmem:[#allocation11 + $0x4b0] sm:$0xff] }
0x2b8b   :  { %v6248_v3 = vmul.f32 %v12500_v40, %v12500_v40  ;;  %v10949_v59 = vpack.c.bf16 %v6317_v56, %v6313_v48  ;;  %v9135_v56 = vld [vmem:[%s12802_s5 + $0x2] ss:$0 sm:$0xff]  ;;  %v6551_v27 = vld [vmem:[#allocation11 + $0x4b8] sm:$0xff] }
0x2b8c   :  { %v6247_v62 = vmul.f32 %v12498_v53, %v12498_v53  ;;  %10918 = vmatprep.subr.bf16.mxu0 %v10917_v29 }
0x2b8d   :  { %10950 = vmatprep.subr.bf16.mxu1 %v10949_v59  ;;  %10920 = vmatpush1.bf16.msra.mxu0 %v10919_v60  ;;  %v6528_v59 = vld [vmem:[#allocation11 + $0x400] sm:$0xff]  ;;  %v6529_v60 = vld [vmem:[#allocation11 + $0x408] sm:$0xff] }
0x2b8e   :  { %6249 = vadd.xlane.f32.xlu0 %v6247_v62  ;;  %10952 = vmatpush1.bf16.msra.mxu1 %v10951_v55  ;;  %v6338_v62 = vld [vmem:[#allocation10 + $0x5e0] sm:$0xff]  ;;  %v6546_v55 = vld [vmem:[#allocation11 + $0x490] sm:$0xff] }
0x2b8f   :  { %10922 = vmatprep.subr.bf16.mxu0 %v10921_v57  ;;  %10954 = vmatprep.subr.bf16.mxu1 %v10953_v10  ;;  %v10931_v1 = vpack.c.bf16 %v6338_v62, %v6334_v33  ;;  %v6579_v57 = vld [vmem:[#allocation11 + $0x598] sm:$0xff]  ;;  %v10967_v10 = vpack.c.bf16 %v6529_v60, %v6528_v59  ;;  %v10969_v35 = vpack.c.bf16 %v6547_v6, %v6546_v55  ;;  %v6582_v33 = vld [vmem:[#allocation11 + $0x5b0] sm:$0xff] }
0x2b90   :  { %v6555_v59 = vld [vmem:[#allocation11 + $0x4d8] sm:$0xff]  ;;  %v6586_v60 = vld [vmem:[#allocation11 + $0x5d0] sm:$0xff] }
0x2b91   :  { %10924 = vmatpush1.bf16.msra.mxu0 %v10923_v11  ;;  %v10999_v11 = vpack.c.bf16 %v6561_v2, %v6560_v63  ;;  %v6587_v63 = vld [vmem:[#allocation11 + $0x5d8] sm:$0xff] }
0x2b92   :  { %6251 = vadd.xlane.f32.xlu0 %v6248_v3  ;;  %10956 = vmatpush1.bf16.msra.mxu1 %v10955_v45  ;;  %v6336_v3 = vld [vmem:[#allocation10 + $0x5d0] sm:$0xff]  ;;  %v6539_v6 = vld [vmem:[#allocation11 + $0x458] sm:$0xff] }
0x2b93   :  { %10926 = vmatprep.subr.bf16.mxu0 %v10925_v18  ;;  %10958 = vmatprep.subr.bf16.mxu1 %v10957_v19  ;;  %v10963_v44 = vpack.c.bf16 %v6340_v41, %v6336_v3  ;;  %v6562_v45 = vld [vmem:[#allocation11 + $0x510] sm:$0xff]  ;;  %v6549_v18 = vld [vmem:[#allocation11 + $0x4a8] sm:$0xff]  ;;  %v6580_v19 = vld [vmem:[#allocation11 + $0x5a0] sm:$0xff] }
0x2b94   :  { %v11003_v32 = vpack.c.bf16 %v6563_v46, %v6562_v45  ;;  %v10973_v26 = vpack.c.bf16 %v6549_v18, %v6548_v23  ;;  %v11005_v61 = vpack.c.bf16 %v6581_v20, %v6580_v19  ;;  %v6534_v41 = vld [vmem:[#allocation11 + $0x430] sm:$0xff]  ;;  %v11021_v46 = vpack.c.bf16 %v6589_v42, %v6588_v12  ;;  %v6540_v23 = vld [vmem:[#allocation11 + $0x460] sm:$0xff]  ;;  %v6573_v20 = vld [vmem:[#allocation11 + $0x568] sm:$0xff] }
0x2b95   :  { %10928 = vmatpush1.bf16.msra.mxu0 %v10927_v34  ;;  %v6532_v34 = vld [vmem:[#allocation11 + $0x420] sm:$0xff] }
0x2b96   :  { %10960 = vmatpush1.bf16.msra.mxu1 %v10959_v37  ;;  %10930 = vmatprep.subr.bf16.mxu0 %v10929_v17  ;;  %v6564_v37 = vld [vmem:[#allocation11 + $0x520] sm:$0xff]  ;;  %v6565_v17 = vld [vmem:[#allocation11 + $0x528] sm:$0xff]  ;;  %v10975_v62 = vpack.c.bf16 %v6533_v36, %v6532_v34  ;;  %v6559_v34 = vld [vmem:[#allocation11 + $0x4f8] sm:$0xff] }
0x2b97   :  { %10962 = vmatprep.subr.bf16.mxu1 %v10961_v39  ;;  %v6583_v39 = vld [vmem:[#allocation11 + $0x5b8] sm:$0xff]  ;;  %v11007_v3 = vpack.c.bf16 %v6565_v17, %v6564_v37  ;;  %v6572_v18 = vld [vmem:[#allocation11 + $0x560] sm:$0xff]  ;;  %v6590_v36 = vld [vmem:[#allocation11 + $0x5f0] sm:$0xff] }
0x2b98   :  { %v11009_v49 = vpack.c.bf16 %v6583_v39, %v6582_v33  ;;  %v6542_v37 = vld [vmem:[#allocation11 + $0x470] sm:$0xff]  ;;  %v6543_v17 = vld [vmem:[#allocation11 + $0x478] sm:$0xff] }
0x2b99   :  { %10932 = vmatpush1.bf16.msra.mxu0 %v10931_v1  ;;  %v6535_v1 = vld [vmem:[#allocation11 + $0x438] sm:$0xff]  ;;  %v6574_v33 = vld [vmem:[#allocation11 + $0x570] sm:$0xff] }
0x2b9a   :  { %10964 = vmatpush1.bf16.msra.mxu1 %v10963_v44  ;;  %10966 = vmatprep.subr.bf16.mxu0 %v10965_v52  ;;  %v10977_v44 = vpack.c.bf16 %v6551_v27, %v6550_v24  ;;  %v6552_v52 = vld [vmem:[#allocation11 + $0x4c0] sm:$0xff]  ;;  %v10995_v27 = vpack.c.bf16 %v6543_v17, %v6542_v37  ;;  %v6575_v39 = vld [vmem:[#allocation11 + $0x578] sm:$0xff] }
0x2b9b   :  { %10998 = vmatprep.subr.bf16.mxu1 %v10997_v43  ;;  %v6584_v43 = vld [vmem:[#allocation11 + $0x5c0] sm:$0xff]  ;;  %v6795_v37 = vld [vmem:[#allocation5 + $0x480] sm:$0xff] }
0x2c1b   :  { %v6250_v54 = vpop.xlane.xlu0 %6249 }
0x2c1c   :  { %v6253_v21 = vmul.f32 0.0078125, %v6250_v54  ;;  %v6585_v54 = vld [vmem:[#allocation11 + $0x5c8] sm:$0xff] }
0x2c1e   :  { %v6255_v22 = vadd.f32 1e-05, %v6253_v21  ;;  %v10979_v21 = vpack.c.bf16 %v6535_v1, %v6534_v41 }
0x2c1f   :  { %v6252_v5 = vpop.xlane.xlu0 %6251 }
0x2c20   :  { %11444 = vrsqrt.f32 %v6255_v22  ;;  %v6254_v13 = vmul.f32 0.0078125, %v6252_v5  ;;  %v11011_v22 = vpack.c.bf16 %v6567_v51, %v6566_v50  ;;  %v6536_v5 = vld [vmem:[#allocation11 + $0x440] sm:$0xff] }
0x2c22   :  { %v6256_v48 = vadd.f32 1e-05, %v6254_v13  ;;  %v6537_v13 = vld [vmem:[#allocation11 + $0x448] sm:$0xff] }
0x2c23   :  { %v10983_v2 = vpack.c.bf16 %v6537_v13, %v6536_v5 }
0x2c24   :  { %11446 = vrsqrt.f32 %v6256_v48  ;;  %v10981_v48 = vpack.c.bf16 %v6553_v4, %v6552_v52 }
0x2c2a   :  { %v11445_v29 = vpop.eup %11444 }
0x2c2b   :  { %v6259_v58 = vmul.f32 %v11445_v29, %v12498_v53  ;;  %v11001_v53 = vpack.c.bf16 %v6579_v57, %v6578_v7  ;;  %v11013_v29 = vpack.c.bf16 %v6585_v54, %v6584_v43  ;;  %v11017_v57 = vpack.c.bf16 %v6587_v63, %v6586_v60 }
0x2c2d   :  { %v6267_v47 = vmul.f32 %v9135_v56, %v6259_v58  ;;  %v6554_v58 = vld [vmem:[#allocation11 + $0x4d0] sm:$0xff] }
0x2c2e   :  { %v11447_v8 = vpop.eup %11446  ;;  %v10985_v7 = vpack.c.bf16 %v6555_v59, %v6554_v58 }
0x2c2f   :  { %v12513_v38 = vadd.f32 %v9136_v30, %v6267_v47  ;;  %v6260_v9 = vmul.f32 %v11447_v8, %v12500_v40  ;;  %v6538_v47 = vld [vmem:[#allocation11 + $0x450] sm:$0xff] }
0x2c30   :  { %v6570_v8 = vld [vmem:[#allocation11 + $0x550] sm:$0xff] }
0x2c31   :  { %6430 = vmatmul.mubr.f32.vlgmr.msra.gmra.mrb[68].mxu0 %v12513_v38  ;;  %6507 = vmatmul.mubr.f32.vlgmr.msra.gmra.mrb[84].mxu1 %v12513_v38  ;;  %v6268_v15 = vmul.f32 %v9135_v56, %v6260_v9  ;;  %v6568_v56 = vld [vmem:[#allocation11 + $0x540] sm:$0xff]  ;;  %v6571_v9 = vld [vmem:[#allocation11 + $0x558] sm:$0xff] }
0x2c32   :  { %6435 = vmatprep.mubr.f32.mxu0 %v11670_v0  ;;  %6512 = vmatprep.mubr.f32.mxu1 %v11670_v0 }
0x2c33   :  { %v12520_v40 = vadd.f32 %v9136_v30, %v6268_v15  ;;  %10968 = vmatpush3.bf16.msra.mxu0 %v10967_v10  ;;  %11000 = vmatpush3.bf16.msra.mxu1 %v10999_v11  ;;  %v6569_v30 = vld [vmem:[#allocation11 + $0x548] sm:$0xff]  ;;  %v6556_v10 = vld [vmem:[#allocation11 + $0x4e0] sm:$0xff] }
0x2c34   :  { %10970 = vmatprep.subr.bf16.mxu0 %v10969_v35  ;;  %11002 = vmatprep.subr.bf16.mxu1 %v11001_v53  ;;  %v11015_v55 = vpack.c.bf16 %v6569_v30, %v6568_v56  ;;  %v6557_v11 = vld [vmem:[#allocation11 + $0x4e8] sm:$0xff]  ;;  %v10987_v35 = vpack.c.bf16 %v6539_v6, %v6538_v47  ;;  %v11019_v53 = vpack.c.bf16 %v6571_v9, %v6570_v8 }
0x2c35   :  { %6436 = vmatmul.mubr.f32.gmra.mrb[70].mxu0 %v12520_v40  ;;  %6513 = vmatmul.mubr.f32.gmra.mrb[86].mxu1 %v12520_v40  ;;  %v10989_v45 = vpack.c.bf16 %v6557_v11, %v6556_v10  ;;  %v6541_v15 = vld [vmem:[#allocation11 + $0x468] sm:$0xff]  ;;  %v9139_v10 = vld [vmem:[%s12807_s10 + $0x2] ss:$0 sm:$0xff] }
0x2c36   :  { %v10991_v19 = vpack.c.bf16 %v6541_v15, %v6540_v23 }
0x2c37   :  { %10972 = vmatpush3.bf16.msra.mxu0 %v10971_v28  ;;  %11004 = vmatpush3.bf16.msra.mxu1 %v11003_v32  ;;  %v11023_v28 = vpack.c.bf16 %v6573_v20, %v6572_v18  ;;  %v6558_v32 = vld [vmem:[#allocation11 + $0x4f0] sm:$0xff] }
0x2c38   :  { %10974 = vmatprep.subr.bf16.mxu0 %v10973_v26  ;;  %11006 = vmatprep.subr.bf16.mxu1 %v11005_v61  ;;  %v10993_v26 = vpack.c.bf16 %v6559_v34, %v6558_v32  ;;  %v6591_v61 = vld [vmem:[#allocation11 + $0x5f8] sm:$0xff] }
0x2c39   :  { %v11025_v24 = vpack.c.bf16 %v6591_v61, %v6590_v36  ;;  %v6799_v61 = vld [vmem:[#allocation5 + $0x4a0] sm:$0xff] }
0x2c3b   :  { %10976 = vmatpush3.bf16.msra.mxu0 %v10975_v62  ;;  %11008 = vmatpush3.bf16.msra.mxu1 %v11007_v3  ;;  %v11027_v62 = vpack.c.bf16 %v6575_v39, %v6574_v33  ;;  %v9137_v3 = vld [vmem:[%s12805_s8 + $0x8] sm:$0xf]  ;;  %v6805_v33 = vld [vmem:[#allocation5 + $0x4d0] sm:$0xff] }
0x2c3c   :  { %10978 = vmatprep.subr.bf16.mxu0 %v10977_v44  ;;  %11010 = vmatprep.subr.bf16.mxu1 %v11009_v49  ;;  %v6348_v41 = vrot.slane %v9137_v3, %v11846_v14  ;;  %v6356_v1 = vrot.slane %v9137_v3, %v11860_v25  ;;  %v6352_v44 = vrot.slane %v9137_v3, %v11849_v16 }
0x2c3d   :  { %v6360_v49 = vrot.slane %v9137_v3, %v12045_v31  ;;  %v6797_v3 = vld [vmem:[#allocation5 + $0x490] sm:$0xff] }
0x2c3f   :  { %10980 = vmatpush3.bf16.msra.mxu0 %v10979_v21  ;;  %11012 = vmatpush3.bf16.msra.mxu1 %v11011_v22 }
0x2c40   :  { %10982 = vmatprep.subr.bf16.mxu0 %v10981_v48  ;;  %11014 = vmatprep.subr.bf16.mxu1 %v11013_v29 }
0x2c43   :  { %10984 = vmatpush3.bf16.msra.mxu0 %v10983_v2  ;;  %11016 = vmatpush3.bf16.msra.mxu1 %v11015_v55 }
0x2c44   :  { %10986 = vmatprep.subr.bf16.mxu0 %v10985_v7  ;;  %11018 = vmatprep.subr.bf16.mxu1 %v11017_v57 }
0x2c47   :  { %10988 = vmatpush3.bf16.msra.mxu0 %v10987_v35  ;;  %11020 = vmatpush3.bf16.msra.mxu1 %v11019_v53 }
0x2c48   :  { %10990 = vmatprep.subr.bf16.mxu0 %v10989_v45  ;;  %11022 = vmatprep.subr.bf16.mxu1 %v11021_v46 }
0x2c4b   :  { %10992 = vmatpush3.bf16.msra.mxu0 %v10991_v19  ;;  %11024 = vmatpush3.bf16.msra.mxu1 %v11023_v28 }
0x2c4c   :  { %10994 = vmatprep.subr.bf16.mxu0 %v10993_v26  ;;  %11026 = vmatprep.subr.bf16.mxu1 %v11025_v24  ;;  %v6796_v26 = vld [vmem:[#allocation5 + $0x488] sm:$0xff]  ;;  %v6798_v24 = vld [vmem:[#allocation5 + $0x498] sm:$0xff] }
0x2c4d   :  { %v11029_v17 = vpack.c.bf16 %v6799_v61, %v6796_v26  ;;  %v11031_v39 = vpack.c.bf16 %v6798_v24, %v6795_v37  ;;  %v6832_v26 = vld [vmem:[#allocation5 + $0x5a8] sm:$0xff]  ;;  %v6835_v61 = vld [vmem:[#allocation5 + $0x5c0] sm:$0xff]  ;;  %v6830_v24 = vld [vmem:[#allocation5 + $0x598] sm:$0xff] }
0x2c4e   :  { %v6827_v37 = vld [vmem:[#allocation5 + $0x580] sm:$0xff] }
0x2c4f   :  { %10996 = vmatpush3.bf16.msra.mxu0 %v10995_v27  ;;  %11028 = vmatpush3.bf16.msra.mxu1 %v11027_v62  ;;  %v6802_v27 = vld [vmem:[#allocation5 + $0x4b8] sm:$0xff] }
0x2c50   :  { %v11033_v62 = vpack.c.bf16 %v6805_v33, %v6802_v27  ;;  %11030 = vmatprep.subr.bf16.mxu0 %v11029_v17  ;;  %v11053_v17 = vpack.c.bf16 %v6835_v61, %v6832_v26  ;;  %v6831_v27 = vld [vmem:[#allocation5 + $0x5a0] sm:$0xff]  ;;  %v6834_v33 = vld [vmem:[#allocation5 + $0x5b8] sm:$0xff] }
0x2d04   :  { %v6431_v50 = vpop.f32.mrb[68].mxu0  ;;  %v6508_v51 = vpop.f32.mrb[84].mxu1 }
0x2d05   :  { %v6432_v52 = vadd.f32 %v6431_v50, %v6348_v41  ;;  %v6509_v4 = vadd.f32 %v6508_v51, %v6356_v1  ;;  %v6433_v43 = vpop.f32.mrb[69].mxu0  ;;  %v6510_v54 = vpop.f32.mrb[85].mxu1  ;;  %v6811_v50 = vld [vmem:[#allocation5 + $0x500] sm:$0xff] }
0x2d06   :  { %v6434_v21 = vadd.f32 %v6433_v43, %v6352_v44  ;;  %v6511_v22 = vadd.f32 %v6510_v54, %v6360_v49  ;;  %v6803_v51 = vld [vmem:[#allocation5 + $0x4c0] sm:$0xff] }
0x2d07   :  { %v6519_v56 = vmax.f32 %v6432_v52, 0.0  ;;  %v6521_v30 = vmax.f32 %v6509_v4, 0.0  ;;  %v6806_v52 = vld [vmem:[#allocation5 + $0x4d8] sm:$0xff]  ;;  %v6807_v54 = vld [vmem:[#allocation5 + $0x4e0] sm:$0xff] }
0x2d08   :  { %v6520_v5 = vmax.f32 %v6434_v21, 0.0  ;;  %v6522_v13 = vmax.f32 %v6511_v22, 0.0  ;;  %v6437_v48 = vpop.f32.mrb[70].mxu0  ;;  %v6514_v29 = vpop.f32.mrb[86].mxu1  ;;  %v11065_v43 = vpack.c.bf16 %v6806_v52, %v6803_v51  ;;  %v6810_v21 = vld [vmem:[#allocation5 + $0x4f8] sm:$0xff]  ;;  %v6839_v52 = vld [vmem:[#allocation5 + $0x5e0] sm:$0xff] }
0x2d09   :  { %v6438_v58 = vadd.f32 %v6437_v48, %v6348_v41  ;;  %v6515_v59 = vadd.f32 %v6514_v29, %v6356_v1  ;;  %v6439_v60 = vpop.f32.mrb[71].mxu0  ;;  %v6516_v63 = vpop.f32.mrb[87].mxu1  ;;  %v6800_v41 = vld [vmem:[#allocation5 + $0x4a8] sm:$0xff]  ;;  %v6801_v1 = vld [vmem:[#allocation5 + $0x4b0] sm:$0xff]  ;;  %v11039_v22 = vpack.c.bf16 %v6810_v21, %v6807_v54 }
0x2d0a   :  { %v6440_v2 = vadd.f32 %v6439_v60, %v6352_v44  ;;  %v6517_v55 = vadd.f32 %v6516_v63, %v6360_v49  ;;  %6664 = vmatprep.mubr.f32.mxu0 %v6520_v5  ;;  %6739 = vmatprep.mubr.f32.mxu1 %v6522_v13  ;;  %v11061_v44 = vpack.c.bf16 %v6800_v41, %v6797_v3  ;;  %v6808_v49 = vld [vmem:[#allocation5 + $0x4e8] sm:$0xff]  ;;  %v6814_v60 = vld [vmem:[#allocation5 + $0x518] sm:$0xff]  ;;  %v6817_v63 = vld [vmem:[#allocation5 + $0x530] sm:$0xff] }
0x2d0b   :  { %6665 = vmatmul.mubr.f32.vlgmr.msra.gmra.mrb[72].mxu0 %v6519_v56  ;;  %6740 = vmatmul.mubr.f32.vlgmr.msra.gmra.mrb[88].mxu1 %v6521_v30  ;;  %v6523_v7 = vmax.f32 %v6438_v58, 0.0  ;;  %v6525_v57 = vmax.f32 %v6515_v59, 0.0  ;;  %v11037_v4 = vpack.c.bf16 %v6811_v50, %v6808_v49  ;;  %v6838_v3 = vld [vmem:[#allocation5 + $0x5d8] sm:$0xff]  ;;  %v6841_v41 = vld [vmem:[#allocation5 + $0x5f0] sm:$0xff]  ;;  %v6840_v50 = vld [vmem:[#allocation5 + $0x5e8] sm:$0xff] }
0x2d0c   :  { %v6524_v47 = vmax.f32 %v6440_v2, 0.0  ;;  %v6526_v6 = vmax.f32 %v6517_v55, 0.0  ;;  %11032 = vmatpush1.bf16.msra.mxu0 %v11031_v39  ;;  %11062 = vmatprep.subr.bf16.mxu1 %v11061_v44  ;;  %v6809_v2 = vld [vmem:[#allocation5 + $0x4f0] sm:$0xff]  ;;  %v11041_v55 = vpack.c.bf16 %v6817_v63, %v6814_v60  ;;  %v11081_v39 = vpack.c.bf16 %v6830_v24, %v6827_v37 }
0x2d0d   :  { %11034 = vmatprep.subr.bf16.mxu0 %v11033_v62  ;;  %11064 = vmatpush3.bf16.msra.mxu1 %v11061_v44  ;;  %v11055_v62 = vpack.c.bf16 %v6834_v33, %v6831_v27  ;;  %v11057_v44 = vpack.c.bf16 %v6841_v41, %v6838_v3  ;;  %v6837_v49 = vld [vmem:[#allocation5 + $0x5d0] sm:$0xff] }
0x2d0e   :  { %6669 = vmatprep.mubr.f32.mxu0 %v6524_v47  ;;  %6744 = vmatprep.mubr.f32.mxu1 %v6526_v6  ;;  %v6812_v47 = vld [vmem:[#allocation5 + $0x508] sm:$0xff]  ;;  %v6813_v6 = vld [vmem:[#allocation5 + $0x510] sm:$0xff]  ;;  %v11059_v51 = vpack.c.bf16 %v6840_v50, %v6837_v49 }
0x2d0f   :  { %6670 = vmatmul.mubr.f32.gmra.mrb[74].mxu0 %v6523_v7  ;;  %6745 = vmatmul.mubr.f32.gmra.mrb[90].mxu1 %v6525_v57  ;;  %v6816_v7 = vld [vmem:[#allocation5 + $0x528] sm:$0xff]  ;;  %v11069_v57 = vpack.c.bf16 %v6812_v47, %v6809_v2  ;;  %v9143_v60 = vld [vmem:[%s12809_s12 + $0x2] ss:$0 sm:$0xff] }
0x2d10   :  { %6925 = vmatprep.mubr.f32.mxu0 %v11670_v0  ;;  %11066 = vmatprep.subr.bf16.mxu1 %v11065_v43 }
0x2d11   :  { %11068 = vmatpush3.bf16.msra.mxu1 %v11065_v43 }
0x2d12   :  { %11070 = vmatprep.subr.bf16.mxu1 %v11069_v57 }
0x2d15   :  { %11072 = vmatpush3.bf16.msra.mxu1 %v11069_v57 }
0x2dde   :  { %v9569_v8 = vpop.f32.mrb[72].mxu0  ;;  %v9607_v9 = vpop.f32.mrb[88].mxu1 }
0x2ddf   :  { %v9570_v11 = vpop.f32.mrb[73].mxu0  ;;  %v9608_v12 = vpop.f32.mrb[89].mxu1 }
0x2de0   :  { %v9571_v42 = vadd.f32 %v9570_v11, %v9569_v8  ;;  %v9609_v35 = vadd.f32 %v9608_v12, %v9607_v9  ;;  %v11043_v8 = vpack.c.bf16 %v6816_v7, %v6813_v6  ;;  %v6820_v9 = vld [vmem:[#allocation5 + $0x548] sm:$0xff]  ;;  %v6815_v11 = vld [vmem:[#allocation5 + $0x520] sm:$0xff] }
0x2de2   :  { %v6667_v53 = vadd.f32 %v9571_v42, %v9139_v10  ;;  %v9572_v45 = vpop.f32.mrb[74].mxu0  ;;  %v9610_v46 = vpop.f32.mrb[90].mxu1  ;;  %v6818_v42 = vld [vmem:[#allocation5 + $0x538] sm:$0xff] }
0x2de3   :  { %v9573_v23 = vpop.f32.mrb[75].mxu0  ;;  %v9611_v15 = vpop.f32.mrb[91].mxu1 }
0x2de4   :  { %v6742_v18 = vadd.f32 %v9609_v35, %v6667_v53  ;;  %v9574_v19 = vadd.f32 %v9573_v23, %v9572_v45  ;;  %v9612_v20 = vadd.f32 %v9611_v15, %v9610_v46  ;;  %v6819_v35 = vld [vmem:[#allocation5 + $0x540] sm:$0xff]  ;;  %v6822_v53 = vld [vmem:[#allocation5 + $0x558] sm:$0xff]  ;;  %v11073_v45 = vpack.c.bf16 %v6818_v42, %v6815_v11  ;;  %v6829_v15 = vld [vmem:[#allocation5 + $0x590] sm:$0xff] }
0x2de5   :  { %v11047_v46 = vpack.c.bf16 %v6822_v53, %v6819_v35  ;;  %v6826_v23 = vld [vmem:[#allocation5 + $0x578] sm:$0xff] }
0x2de6   :  { %v6672_v28 = vadd.f32 %v9574_v19, %v9139_v10  ;;  %v6750_v32 = vadd.f32 %v6742_v18, %v12513_v38  ;;  %v6804_v38 = vld [vmem:[#allocation5 + $0x4c8] sm:$0xff]  ;;  %v6823_v10 = vld [vmem:[#allocation5 + $0x560] sm:$0xff]  ;;  %11074 = vmatprep.subr.bf16.mxu1 %v11073_v45  ;;  %v6821_v18 = vld [vmem:[#allocation5 + $0x550] sm:$0xff]  ;;  %v11049_v19 = vpack.c.bf16 %v6829_v15, %v6826_v23 }
0x2de7   :  { %v11045_v12 = vpack.c.bf16 %v6823_v10, %v6820_v9  ;;  %11076 = vmatpush3.bf16.msra.mxu1 %v11073_v45 }
0x2de8   :  { %v6747_v34 = vadd.f32 %v9612_v20, %v6672_v28  ;;  %6756 = vadd.xlane.f32.xlu1 %v6750_v32  ;;  %v6824_v20 = vld [vmem:[#allocation5 + $0x568] sm:$0xff]  ;;  %v6825_v28 = vld [vmem:[#allocation5 + $0x570] sm:$0xff] }
0x2dea   :  { %v6751_v36 = vadd.f32 %v6747_v34, %v12520_v40  ;;  %v11035_v40 = vpack.c.bf16 %v6804_v38, %v6801_v1  ;;  %v11077_v34 = vpack.c.bf16 %v6824_v20, %v6821_v18  ;;  %v6833_v1 = vld [vmem:[#allocation5 + $0x5b0] sm:$0xff]  ;;  %v6836_v38 = vld [vmem:[#allocation5 + $0x5c8] sm:$0xff] }
0x2dec   :  { %6758 = vadd.xlane.f32.xlu0 %v6751_v36  ;;  %11036 = vmatpush1.bf16.msra.mxu0 %v11035_v40  ;;  %v11085_v40 = vpack.c.bf16 %v6836_v38, %v6833_v1 }
0x2ded   :  { %11038 = vmatprep.subr.bf16.mxu0 %v11037_v4  ;;  %11078 = vmatprep.subr.bf16.mxu1 %v11077_v34  ;;  %v6842_v4 = vld [vmem:[#allocation5 + $0x5f8] sm:$0xff] }
0x2dee   :  { %11080 = vmatpush3.bf16.msra.mxu1 %v11077_v34  ;;  %v11089_v43 = vpack.c.bf16 %v6842_v4, %v6839_v52 }
0x2def   :  { %11082 = vmatprep.subr.bf16.mxu1 %v11081_v39 }
0x2df0   :  { %11040 = vmatpush1.bf16.msra.mxu0 %v11039_v22 }
0x2df1   :  { %11042 = vmatprep.subr.bf16.mxu0 %v11041_v55 }
0x2df2   :  { %11084 = vmatpush3.bf16.msra.mxu1 %v11081_v39 }
0x2df3   :  { %11086 = vmatprep.subr.bf16.mxu1 %v11085_v40 }
0x2df4   :  { %11044 = vmatpush1.bf16.msra.mxu0 %v11043_v8 }
0x2df5   :  { %11046 = vmatprep.subr.bf16.mxu0 %v11045_v12 }
0x2df6   :  { %11088 = vmatpush3.bf16.msra.mxu1 %v11085_v40 }
0x2df7   :  { %11090 = vmatprep.subr.bf16.mxu1 %v11089_v43 }
0x2df8   :  { %11048 = vmatpush1.bf16.msra.mxu0 %v11047_v46 }
0x2df9   :  { %11050 = vmatprep.subr.bf16.mxu0 %v11049_v19 }
0x2dfa   :  { %11092 = vmatpush3.bf16.msra.mxu1 %v11089_v43 }
0x2dfb   :  { %10277 = vmatprep.subr.mxu1 %v11670_v0 }
0x2e75   :  { %v6757_v5 = vpop.xlane.xlu1 %6756 }
0x2e76   :  { %v6760_v13 = vmul.f32 0.0078125, %v6757_v5 }
0x2e78   :  { %v12537_v48 = vsub.f32 %v6750_v32, %v6760_v13  ;;  %v6828_v32 = vld [vmem:[#allocation5 + $0x588] sm:$0xff] }
0x2e79   :  { %v6759_v29 = vpop.xlane.xlu0 %6758 }
0x2e7a   :  { %v6761_v56 = vmul.f32 0.0078125, %v6759_v29  ;;  %v6764_v30 = vmul.f32 %v12537_v48, %v12537_v48 }
0x2e7c   :  { %v12541_v58 = vsub.f32 %v6751_v36, %v6761_v56  ;;  %6766 = vadd.xlane.f32.xlu1 %v6764_v30  ;;  %v11051_v36 = vpack.c.bf16 %v6828_v32, %v6825_v28  ;;  %v9142_v30 = vld [vmem:[%s12808_s11 + $0x2] ss:$0 sm:$0xff] }
0x2e7e   :  { %v6765_v59 = vmul.f32 %v12541_v58, %v12541_v58  ;;  %11052 = vmatpush1.bf16.msra.mxu0 %v11051_v36 }
0x2e7f   :  { %11054 = vmatprep.subr.bf16.mxu0 %v11053_v17 }
0x2e80   :  { %6768 = vadd.xlane.f32.xlu0 %v6765_v59 }
0x2e82   :  { %11056 = vmatpush1.bf16.msra.mxu0 %v11055_v62 }
0x2e83   :  { %11058 = vmatprep.subr.bf16.mxu0 %v11057_v44 }
0x2e86   :  { %11060 = vmatpush1.bf16.msra.mxu0 %v11059_v51 }
0x2e87   :  { %10242 = vmatprep.subr.mxu0 %v11670_v0 }
0x2f09   :  { %v6767_v54 = vpop.xlane.xlu1 %6766 }
0x2f0a   :  { %v6770_v21 = vmul.f32 0.0078125, %v6767_v54 }
0x2f0c   :  { %v6772_v22 = vadd.f32 1e-05, %v6770_v21 }
0x2f0d   :  { %v6769_v5 = vpop.xlane.xlu0 %6768 }
0x2f0e   :  { %11448 = vrsqrt.f32 %v6772_v22  ;;  %v6771_v13 = vmul.f32 0.0078125, %v6769_v5 }
0x2f10   :  { %v6773_v29 = vadd.f32 1e-05, %v6771_v13 }
0x2f12   :  { %11450 = vrsqrt.f32 %v6773_v29 }
0x2f18   :  { %v11449_v56 = vpop.eup %11448 }
0x2f19   :  { %v6776_v59 = vmul.f32 %v11449_v56, %v12537_v48  ;;  %v6844_v48 = vld [vmem:[#allocation7 + $0x9] sm:$0x7] }
0x2f1a   :  { %v6853_v57 = vrot.slane %v6844_v48, %v11849_v16  ;;  %v6857_v11 = vrot.slane %v6844_v48, %v11860_v25 }
0x2f1b   :  { %v6784_v63 = vmul.f32 %v9142_v30, %v6776_v59 }
0x2f1c   :  { %v11451_v2 = vpop.eup %11450 }
0x2f1d   :  { %v12554_v55 = vadd.f32 %v9143_v60, %v6784_v63  ;;  %v6777_v47 = vmul.f32 %v11451_v2, %v12541_v58  ;;  %v6849_v58 = vrot.slane %v6844_v48, %v11846_v14 }
0x2f1f   :  { %6926 = vmatmul.mubr.f32.vlgmr.msra.gmra.mrb[76].mxu0 %v12554_v55  ;;  %10239 = vmatprep.mubr.f32.mxu1 %v12554_v55  ;;  %v6785_v6 = vmul.f32 %v9142_v30, %v6777_v47 }
0x2f20   :  { %6931 = vmatprep.mubr.f32.mxu0 %v11670_v0 }
0x2f21   :  { %v12560_v7 = vadd.f32 %v9143_v60, %v6785_v6 }
0x2f23   :  { %6932 = vmatmul.mubr.f32.gmra.mrb[78].mxu0 %v12560_v7  ;;  %10240 = vmatmul.mubr.f32.vlgmr.msra.gmra.mrb[92].mxu1 %v12560_v7 }
0x2f24   :  { %10244 = vmatprep.mubr.msk.f32.mxu0 %vm11671_vm0, %v11670_v0  ;;  %10279 = vmatprep.mubr.msk.f32.mxu1 %vm11671_vm0, %v11670_v0 }
0x2ff2   :  { %v6927_v8 = vpop.f32.mrb[76].mxu0 }
0x2ff3   :  { %v6928_v9 = vadd.f32 %v6927_v8, %v6849_v58  ;;  %v6929_v10 = vpop.f32.mrb[77].mxu0 }
0x2ff4   :  { %v12571_v12 = vadd.f32 %v6929_v10, %v6853_v57 }
0x2ff5   :  { %v12575_v53 = vmul.f32 0.17677669, %v6928_v9 }
0x2ff6   :  { %v6933_v42 = vpop.f32.mrb[78].mxu0  ;;  %v10241_v35 = vpop.f32.mrb[92].mxu1  ;;  %10243 = vmatpush3.xpose.msk.msra.mxu0 %vm348_vm1, %v12571_v12 }
0x2ff7   :  { %v6934_v45 = vadd.f32 %v6933_v42, %v6849_v58  ;;  %v12577_v46 = vadd.f32 %v10241_v35, %v6857_v11  ;;  %v6935_v23 = vpop.f32.mrb[79].mxu0  ;;  %v7004_v15 = vpop.f32.mrb[93].mxu1  ;;  %10247 = vmatprep.subr.mxu0 %v11670_v0 }
0x2ff8   :  { %v12580_v18 = vadd.f32 %v6935_v23, %v6853_v57  ;;  %v12591_v20 = vadd.f32 %v7004_v15, %v6857_v11 }
0x2ff9   :  { %10245 = vmatmul.mubr.msk.f32.vlgmr.msra.gmra.mrb[80].mxu0 %vm348_vm1, %v12575_v53  ;;  %v12588_v19 = vmul.f32 0.17677669, %v6934_v45 }
0x2ffa   :  { %10248 = vmatpush3.xpose.msk.msra.mxu0 %vm348_vm1, %v12580_v18  ;;  %10249 = vmatprep.mubr.msk.f32.mxu0 %vm11671_vm0, %v11670_v0 }
0x2ffb   :  { %10252 = vmatprep.subr.mxu0 %v11670_v0 }
0x2ffd   :  { %10250 = vmatmul.mubr.msk.f32.vlgmr.msra.gmra.mrb[82].mxu0 %vm348_vm1, %v12588_v19 }
0x2ffe   :  { %10253 = vmatpush3.msra.mxu0 %v12591_v20  ;;  %10254 = vmatprep.mubr.msk.f32.mxu0 %vm11671_vm0, %v11670_v0 }
0x2fff   :  { %10257 = vmatprep.subr.mxu0 %v11670_v0 }
0x30cc   :  { %v7087_v28 = vpop.f32.mrb[80].mxu0 }
0x30cd   :  { %v10246_v32 = vpop.f32.mrb[81].mxu0  ;;  %v7167_v34 = vsel %vm501_vm2, %v7087_v28, -inf }
0x30ce   :  { %7168 = vmax.xlane.f32.xlu1 %v7167_v34 }
0x30d0   :  { %v7163_v36 = vpop.f32.mrb[82].mxu0 }
0x30d1   :  { %v10251_v26 = vpop.f32.mrb[83].mxu0  ;;  %v7170_v61 = vsel %vm501_vm2, %v7163_v36, -inf }
0x30d2   :  { %7171 = vmax.xlane.f32.xlu0 %v7170_v61 }
0x315b   :  { %v7169_v37 = vpop.xlane.xlu1 %7168 }
0x315c   :  { %v7173_v17 = vsub.f32 %v7087_v28, %v7169_v37 }
0x315e   :  { %v7175_v24 = vmul.f32 1.442695, %v7173_v17 }
0x315f   :  { %v7172_v27 = vpop.xlane.xlu0 %7171 }
0x3160   :  { %11452 = vpow2.f32 %v7175_v24  ;;  %v7174_v33 = vsub.f32 %v7163_v36, %v7172_v27 }
0x3162   :  { %v7177_v39 = vmul.f32 1.442695, %v7174_v33 }
0x3164   :  { %11454 = vpow2.f32 %v7177_v39 }
0x316a   :  { %v11453_v62 = vpop.eup %11452 }
0x316b   :  { %v7179_v3 = vsel %vm501_vm2, %v11453_v62, 0.0 }
0x316c   :  { %7180 = vadd.xlane.f32.xlu1 %v7179_v3 }
0x316e   :  { %v11455_v41 = vpop.eup %11454 }
0x316f   :  { %v7182_v1 = vsel %vm501_vm2, %v11455_v41, 0.0 }
0x3170   :  { %7183 = vadd.xlane.f32.xlu0 %v7182_v1 }
0x317d   :  { %7337 = vrot.lane.b32.xlu1 %v12571_v12, %s11672_s9 }
0x3181   :  { %7415 = vrot.lane.b32.xlu1 %v12580_v18, %s11672_s9 }
0x3185   :  { %7413 = vrot.lane.b32.xlu1 %v12588_v19, %s11672_s9 }
0x3186   :  { %7335 = vrot.lane.b32.xlu0 %v12575_v53, %s11672_s9 }
0x31f9   :  { %v7181_v44 = vpop.xlane.xlu1 %7180 }
0x31fa   :  { %11456 = vrcp.f32 %v7181_v44 }
0x31fd   :  { %v7184_v38 = vpop.xlane.xlu0 %7183  ;;  %v7338_v51 = vpop.permute.xlu1 %7337 }
0x31fe   :  { %11458 = vrcp.f32 %v7184_v38 }
0x3201   :  { %v7416_v4 = vpop.permute.xlu1 %7415  ;;  %v7336_v43 = vpop.permute.xlu0 %7335 }
0x3204   :  { %v11457_v49 = vpop.eup %11456 }
0x3205   :  { %v7187_v50 = vmul.f32 %v11457_v49, %v11453_v62  ;;  %v7414_v54 = vpop.permute.xlu1 %7413 }
0x3207   :  { %10255 = vmatmul.mubr.msk.f32.vlgmr.msra.gmra.mrb[84].mxu0 %vm501_vm2, %v7187_v50 }
0x3208   :  { %v11459_v40 = vpop.eup %11458  ;;  %10258 = vmatpush3.msra.mxu0 %v12577_v46  ;;  %10259 = vmatprep.mubr.msk.f32.mxu0 %vm11671_vm0, %v11670_v0 }
0x3209   :  { %v7188_v52 = vmul.f32 %v11459_v40, %v11455_v41  ;;  %10262 = vmatprep.subr.mxu0 %v11670_v0 }
0x320b   :  { %10260 = vmatmul.mubr.msk.f32.vlgmr.msra.gmra.mrb[86].mxu0 %vm501_vm2, %v7188_v52 }
0x320c   :  { %10264 = vmatprep.mubr.msk.f32.mxu0 %vm11671_vm0, %v11670_v0 }
0x320f   :  { %10263 = vmatpush3.xpose.msk.msra.mxu0 %vm348_vm1, %v7338_v51 }
0x3210   :  { %10267 = vmatprep.subr.mxu0 %v11670_v0 }
0x3212   :  { %10265 = vmatmul.mubr.msk.f32.vlgmr.msra.gmra.mrb[88].mxu0 %vm348_vm1, %v7336_v43 }
0x3213   :  { %10268 = vmatpush3.xpose.msk.msra.mxu0 %vm348_vm1, %v7416_v4  ;;  %10269 = vmatprep.mubr.msk.f32.mxu0 %vm11671_vm0, %v11670_v0 }
0x3214   :  { %10272 = vmatprep.subr.mxu0 %v11670_v0 }
0x3216   :  { %10270 = vmatmul.mubr.msk.f32.vlgmr.msra.gmra.mrb[90].mxu0 %vm348_vm1, %v7414_v54 }
0x3217   :  { %10274 = vmatprep.mubr.msk.f32.mxu0 %vm11671_vm0, %v11670_v0 }
0x32da   :  { %v12629_v21 = vpop.f32.mrb[84].mxu0 }
0x32db   :  { %v10256_v22 = vpop.f32.mrb[85].mxu0 }
0x32de   :  { %v12631_v5 = vpop.f32.mrb[86].mxu0 }
0x32df   :  { %v10261_v13 = vpop.f32.mrb[87].mxu0 }
0x32e5   :  { %v7409_v29 = vpop.f32.mrb[88].mxu0 }
0x32e6   :  { %v10266_v56 = vpop.f32.mrb[89].mxu0  ;;  %v7491_v30 = vsel %vm501_vm2, %v7409_v29, -inf }
0x32e7   :  { %7492 = vmax.xlane.f32.xlu1 %v7491_v30 }
0x32e9   :  { %v7487_v59 = vpop.f32.mrb[90].mxu0 }
0x32ea   :  { %v10271_v60 = vpop.f32.mrb[91].mxu0  ;;  %v7494_v63 = vsel %vm501_vm2, %v7487_v59, -inf }
0x32eb   :  { %7495 = vmax.xlane.f32.xlu0 %v7494_v63 }
0x32f8   :  { %7514 = vrot.lane.b32.xlu1 %v12591_v20, %s11672_s9 }
0x32fc   :  { %7669 = vrot.lane.b32.xlu1 %v12571_v12, %s11673_s1 }
0x3300   :  { %7747 = vrot.lane.b32.xlu1 %v12580_v18, %s11673_s1 }
0x3301   :  { %7591 = vrot.lane.b32.xlu0 %v12577_v46, %s11672_s9 }
0x3304   :  { %7667 = vrot.lane.b32.xlu1 %v12575_v53, %s11673_s1 }
0x3374   :  { %v7493_v2 = vpop.xlane.xlu1 %7492 }
0x3375   :  { %v7497_v47 = vsub.f32 %v7409_v29, %v7493_v2 }
0x3377   :  { %v7499_v6 = vmul.f32 1.442695, %v7497_v47 }
0x3378   :  { %v7515_v48 = vpop.permute.xlu1 %7514  ;;  %v7496_v58 = vpop.xlane.xlu0 %7495 }
0x3379   :  { %11460 = vpow2.f32 %v7499_v6  ;;  %v7498_v57 = vsub.f32 %v7487_v59, %v7496_v58  ;;  %10273 = vmatpush3.msra.mxu0 %v7515_v48 }
0x337a   :  { %10282 = vmatprep.subr.mxu0 %v11670_v0 }
0x337b   :  { %v7501_v8 = vmul.f32 1.442695, %v7498_v57 }
0x337c   :  { %v7592_v9 = vpop.permute.xlu0 %7591  ;;  %v7670_v15 = vpop.permute.xlu1 %7669 }
0x337d   :  { %11462 = vpow2.f32 %v7501_v8  ;;  %10278 = vmatpush3.msra.mxu1 %v7592_v9 }
0x337e   :  { %10287 = vmatprep.subr.mxu1 %v11670_v0 }
0x3380   :  { %v7748_v32 = vpop.permute.xlu1 %7747 }
0x3383   :  { %v11461_v10 = vpop.eup %11460 }
0x3384   :  { %v7503_v11 = vsel %vm501_vm2, %v11461_v10, 0.0  ;;  %v7668_v61 = vpop.permute.xlu1 %7667 }
0x3385   :  { %7504 = vadd.xlane.f32.xlu0 %v7503_v11 }
0x3387   :  { %v11463_v42 = vpop.eup %11462 }
0x3388   :  { %v7506_v35 = vsel %vm501_vm2, %v11463_v42, 0.0 }
0x3389   :  { %7507 = vadd.xlane.f32.xlu0 %v7506_v35 }
0x339f   :  { %7745 = vrot.lane.b32.xlu0 %v12588_v19, %s11673_s1 }
0x3412   :  { %v7505_v45 = vpop.xlane.xlu0 %7504 }
0x3413   :  { %11464 = vrcp.f32 %v7505_v45 }
0x3416   :  { %v7508_v23 = vpop.xlane.xlu0 %7507 }
0x3417   :  { %11466 = vrcp.f32 %v7508_v23 }
0x341a   :  { %v7746_v37 = vpop.permute.xlu0 %7745 }
0x341d   :  { %v11465_v28 = vpop.eup %11464 }
0x341e   :  { %v7511_v34 = vmul.f32 %v11465_v28, %v11461_v10 }
0x3420   :  { %10275 = vmatmul.mubr.msk.f32.vlgmr.msra.gmra.mrb[92].mxu0 %vm501_vm2, %v7511_v34 }
0x3421   :  { %v11467_v36 = vpop.eup %11466  ;;  %10283 = vmatpush3.xpose.msk.msra.mxu0 %vm348_vm1, %v7670_v15  ;;  %10284 = vmatprep.mubr.msk.f32.mxu0 %vm11671_vm0, %v11670_v0 }
0x3422   :  { %v7512_v26 = vmul.f32 %v11467_v36, %v11463_v42  ;;  %10292 = vmatprep.subr.mxu0 %v11670_v0 }
0x3424   :  { %10280 = vmatmul.mubr.msk.f32.vlgmr.msra.gmra.mrb[94].mxu1 %vm501_vm2, %v7512_v26  ;;  %10285 = vmatmul.mubr.msk.f32.vlgmr.msra.gmra.mrb[94].mxu0 %vm348_vm1, %v7668_v61 }
0x3425   :  { %10288 = vmatpush3.xpose.msk.msra.mxu1 %vm348_vm1, %v7748_v32  ;;  %10289 = vmatprep.mubr.msk.f32.mxu1 %vm11671_vm0, %v11670_v0 }
0x3426   :  { %10297 = vmatprep.subr.mxu1 %v11670_v0  ;;  %10294 = vmatprep.mubr.msk.f32.mxu0 %vm11671_vm0, %v11670_v0 }
0x3428   :  { %10290 = vmatmul.mubr.msk.f32.vlgmr.msra.gmra.mrb[96].mxu1 %vm348_vm1, %v7746_v37 }
0x3429   :  { %10299 = vmatprep.mubr.msk.f32.mxu1 %vm11671_vm0, %v11670_v0 }
0x34f3   :  { %v12667_v17 = vpop.f32.mrb[92].mxu0 }
0x34f4   :  { %v10276_v24 = vpop.f32.mrb[93].mxu0 }
0x34f7   :  { %v12669_v27 = vpop.f32.mrb[94].mxu1  ;;  %v7741_v33 = vpop.f32.mrb[94].mxu0 }
0x34f8   :  { %v11317_v39 = vpack.i.bf16 %v12669_v27, %v12667_v17  ;;  %v10281_v62 = vpop.f32.mrb[95].mxu1  ;;  %v10286_v3 = vpop.f32.mrb[95].mxu0  ;;  %v7823_v41 = vsel %vm501_vm2, %v7741_v33, -inf }
0x34f9   :  { %7824 = vmax.xlane.f32.xlu1 %v7823_v41 }
0x34fb   :  { %v7819_v1 = vpop.f32.mrb[96].mxu1 }
0x34fc   :  { %v10291_v44 = vpop.f32.mrb[97].mxu1  ;;  %v7826_v38 = vsel %vm501_vm2, %v7819_v1, -inf }
0x34fd   :  { %7827 = vmax.xlane.f32.xlu0 %v7826_v38  ;;  %v8359_v44 = vld [vmem:[#allocation8 + $0x188] sm:$0xff]  ;;  %v8360_v38 = vld [vmem:[#allocation8 + $0x190] sm:$0xff] }
0x350a   :  { %7845 = vrot.lane.b32.xlu1 %v12591_v20, %s11673_s1 }
0x350e   :  { %7999 = vrot.lane.b32.xlu1 %v12571_v12, %s11668_s15 }
0x3512   :  { %8077 = vrot.lane.b32.xlu1 %v12580_v18, %s11668_s15 }
0x3513   :  { %7921 = vrot.lane.b32.xlu0 %v12577_v46, %s11673_s1 }
0x3516   :  { %7997 = vrot.lane.b32.xlu1 %v12575_v53, %s11668_s15 }
0x3586   :  { %v7825_v49 = vpop.xlane.xlu1 %7824 }
0x3587   :  { %v7829_v50 = vsub.f32 %v7741_v33, %v7825_v49  ;;  %v8361_v49 = vld [vmem:[#allocation8 + $0x198] sm:$0xff] }
0x3589   :  { %v7831_v40 = vmul.f32 1.442695, %v7829_v50  ;;  %v11097_v50 = vpack.c.bf16 %v8361_v49, %v8360_v38  ;;  %v8508_v49 = vld [vmem:[#allocation10 + $0x630] sm:$0xff] }
0x358a   :  { %v7828_v51 = vpop.xlane.xlu0 %7827  ;;  %v7846_v52 = vpop.permute.xlu1 %7845 }
0x358b   :  { %11468 = vpow2.f32 %v7831_v40  ;;  %v7830_v4 = vsub.f32 %v7819_v1, %v7828_v51  ;;  %10293 = vmatpush3.msra.mxu0 %v7846_v52  ;;  %v8358_v1 = vld [vmem:[#allocation8 + $0x180] sm:$0xff]  ;;  %v8363_v51 = vld [vmem:[#allocation8 + $0x1a8] sm:$0xff] }
0x358c   :  { %10302 = vmatprep.subr.mxu0 %v11670_v0  ;;  %v8362_v40 = vld [vmem:[#allocation8 + $0x1a0] sm:$0xff] }
0x358d   :  { %v7833_v12 = vmul.f32 1.442695, %v7830_v4  ;;  %v11101_v52 = vpack.c.bf16 %v8363_v51, %v8362_v40  ;;  %v8364_v4 = vld [vmem:[#allocation8 + $0x1b0] sm:$0xff]  ;;  %v8515_v51 = vld [vmem:[#allocation10 + $0x668] sm:$0xff] }
0x358e   :  { %v7922_v43 = vpop.permute.xlu0 %7921  ;;  %v8000_v56 = vpop.permute.xlu1 %7999 }
0x358f   :  { %11470 = vpow2.f32 %v7833_v12  ;;  %10298 = vmatpush3.msra.mxu1 %v7922_v43  ;;  %v8365_v12 = vld [vmem:[#allocation8 + $0x1b8] sm:$0xff] }
0x3590   :  { %10307 = vmatprep.subr.mxu1 %v11670_v0  ;;  %v11105_v43 = vpack.c.bf16 %v8365_v12, %v8364_v4  ;;  %v8510_v12 = vld [vmem:[#allocation10 + $0x640] sm:$0xff] }
0x3592   :  { %v8078_v59 = vpop.permute.xlu1 %8077 }
0x3595   :  { %v11469_v18 = vpop.eup %11468 }
0x3596   :  { %v7835_v54 = vsel %vm501_vm2, %v11469_v18, 0.0 }
0x3597   :  { %7836 = vadd.xlane.f32.xlu0 %v7835_v54  ;;  %v8367_v54 = vld [vmem:[#allocation8 + $0x1c8] sm:$0xff] }
0x3599   :  { %v11471_v53 = vpop.eup %11470 }
0x359a   :  { %v7838_v22 = vsel %vm501_vm2, %v11471_v53, 0.0 }
0x359b   :  { %7839 = vadd.xlane.f32.xlu0 %v7838_v22  ;;  %v8368_v22 = vld [vmem:[#allocation8 + $0x1d0] sm:$0xff] }
0x35b1   :  { %8075 = vrot.lane.b32.xlu0 %v12588_v19, %s11668_s15  ;;  %v7998_v19 = vpop.permute.xlu1 %7997 }
0x3624   :  { %v7837_v13 = vpop.xlane.xlu0 %7836 }
0x3625   :  { %11472 = vrcp.f32 %v7837_v13  ;;  %v8369_v13 = vld [vmem:[#allocation8 + $0x1d8] sm:$0xff] }
0x3628   :  { %v7840_v29 = vpop.xlane.xlu0 %7839 }
0x3629   :  { %11474 = vrcp.f32 %v7840_v29  ;;  %v11113_v29 = vpack.c.bf16 %v8369_v13, %v8368_v22  ;;  %v8519_v22 = vld [vmem:[#allocation10 + $0x688] sm:$0xff] }
0x362a   :  { %v8523_v13 = vld [vmem:[#allocation10 + $0x6a8] sm:$0xff] }
0x362c   :  { %v8076_v47 = vpop.permute.xlu0 %8075 }
0x362f   :  { %v11473_v30 = vpop.eup %11472 }
0x3630   :  { %v7843_v60 = vmul.f32 %v11473_v30, %v11469_v18  ;;  %v8366_v18 = vld [vmem:[#allocation8 + $0x1c0] sm:$0xff]  ;;  %v8371_v30 = vld [vmem:[#allocation8 + $0x1e8] sm:$0xff] }
0x3632   :  { %10295 = vmatmul.mubr.msk.f32.vlgmr.msra.gmra.mrb[96].mxu0 %vm501_vm2, %v7843_v60  ;;  %v8372_v60 = vld [vmem:[#allocation8 + $0x1f0] sm:$0xff] }
0x3633   :  { %v11475_v63 = vpop.eup %11474  ;;  %10303 = vmatpush3.xpose.msk.msra.mxu0 %vm348_vm1, %v8000_v56  ;;  %10304 = vmatprep.mubr.msk.f32.mxu0 %vm11671_vm0, %v11670_v0  ;;  %v8370_v56 = vld [vmem:[#allocation8 + $0x1e0] sm:$0xff] }
0x3634   :  { %v7844_v2 = vmul.f32 %v11475_v63, %v11471_v53  ;;  %10312 = vmatprep.subr.mxu0 %v11670_v0  ;;  %v11109_v53 = vpack.c.bf16 %v8367_v54, %v8366_v18  ;;  %v8373_v63 = vld [vmem:[#allocation8 + $0x1f8] sm:$0xff]  ;;  %v8512_v18 = vld [vmem:[#allocation10 + $0x650] sm:$0xff] }
0x3636   :  { %10300 = vmatmul.mubr.msk.f32.vlgmr.msra.gmra.mrb[98].mxu1 %vm501_vm2, %v7844_v2  ;;  %10305 = vmatmul.mubr.msk.f32.vlgmr.msra.gmra.mrb[98].mxu0 %vm348_vm1, %v7998_v19  ;;  %v11121_v2 = vpack.c.bf16 %v8373_v63, %v8372_v60  ;;  %v8518_v60 = vld [vmem:[#allocation10 + $0x680] sm:$0xff] }
0x3637   :  { %10308 = vmatpush3.xpose.msk.msra.mxu1 %vm348_vm1, %v8078_v59  ;;  %10309 = vmatprep.mubr.msk.f32.mxu1 %vm11671_vm0, %v11670_v0  ;;  %v11117_v59 = vpack.c.bf16 %v8371_v30, %v8370_v56  ;;  %v11133_v56 = vpack.c.bf16 %v8523_v13, %v8519_v22  ;;  %v8521_v30 = vld [vmem:[#allocation10 + $0x698] sm:$0xff] }
0x3638   :  { %10317 = vmatprep.subr.mxu1 %v11670_v0  ;;  %10314 = vmatprep.mubr.msk.f32.mxu0 %vm11671_vm0, %v11670_v0  ;;  %v8553_v22 = vld [vmem:[#allocation10 + $0x798] sm:$0xff] }
0x3639   :  { %v8557_v13 = vld [vmem:[#allocation10 + $0x7b8] sm:$0xff] }
0x363a   :  { %10310 = vmatmul.mubr.msk.f32.vlgmr.msra.gmra.mrb[100].mxu1 %vm348_vm1, %v8076_v47 }
0x363b   :  { %10319 = vmatprep.mubr.msk.f32.mxu1 %vm11671_vm0, %v11670_v0 }
0x3705   :  { %v7917_v6 = vpop.f32.mrb[96].mxu0 }
0x3706   :  { %v10296_v48 = vpop.f32.mrb[97].mxu0 }
0x3709   :  { %v7993_v58 = vpop.f32.mrb[98].mxu1  ;;  %v8071_v57 = vpop.f32.mrb[98].mxu0 }
0x370a   :  { %v11322_v8 = vpack.i.bf16 %v7993_v58, %v7917_v6  ;;  %v10301_v9 = vpop.f32.mrb[99].mxu1  ;;  %v10306_v10 = vpop.f32.mrb[99].mxu0  ;;  %v8153_v11 = vsel %vm501_vm2, %v8071_v57, -inf }
0x370b   :  { %8154 = vmax.xlane.f32.xlu1 %v8153_v11 }
0x370d   :  { %v8149_v42 = vpop.f32.mrb[100].mxu1 }
0x370e   :  { %v10311_v35 = vpop.f32.mrb[101].mxu1  ;;  %v8156_v45 = vsel %vm501_vm2, %v8149_v42, -inf }
0x370f   :  { %8157 = vmax.xlane.f32.xlu0 %v8156_v45 }
0x371c   :  { %8175 = vrot.lane.b32.xlu1 %v12591_v20, %s11668_s15 }
0x3720   :  { %11318 = vrot.lane.b32.xlu1 %v11317_v39, %s11668_s15 }
0x3724   :  { %11323 = vrot.lane.b32.xlu1 %v11322_v8, %s11673_s1 }
0x3798   :  { %v8155_v23 = vpop.xlane.xlu1 %8154 }
0x3799   :  { %v8159_v15 = vsub.f32 %v8071_v57, %v8155_v23 }
0x379b   :  { %v8161_v28 = vmul.f32 1.442695, %v8159_v15 }
0x379c   :  { %v8158_v32 = vpop.xlane.xlu0 %8157  ;;  %v8176_v34 = vpop.permute.xlu1 %8175 }
0x379d   :  { %11476 = vpow2.f32 %v8161_v28  ;;  %v8160_v36 = vsub.f32 %v8149_v42, %v8158_v32  ;;  %10313 = vmatpush3.msra.mxu0 %v8176_v34 }
0x379f   :  { %v8163_v26 = vmul.f32 1.442695, %v8160_v36 }
0x37a0   :  { %v11319_v57 = vpop.permute.xlu1 %11318 }
0x37a1   :  { %11478 = vpow2.f32 %v8163_v26  ;;  %v11321_v9 = vunpack.i.h.bf16 %v11319_v57  ;;  %v11320_v10 = vunpack.i.l.bf16 %v11319_v57 }
0x37a3   :  { %v8352_v45 = vsel %vm348_vm1, %v12631_v5, %v11321_v9  ;;  %v8351_v28 = vsel %vm348_vm1, %v12629_v21, %v11320_v10  ;;  %v9169_v5 = vld [vmem:[%s12801_s4 + $0x3] ss:$0 sm:$0xff] }
0x37a4   :  { %v11324_v8 = vpop.permute.xlu1 %11323 }
0x37a5   :  { %v11326_v11 = vunpack.i.h.bf16 %v11324_v8  ;;  %v11325_v42 = vunpack.i.l.bf16 %v11324_v8 }
0x37a7   :  { %v11477_v61 = vpop.eup %11476  ;;  %v8353_v32 = vsel %vm1688_vm3, %v8351_v28, %v11325_v42  ;;  %v8354_v34 = vsel %vm1688_vm3, %v8352_v45, %v11326_v11  ;;  %v8527_v45 = vld [vmem:[#allocation10 + $0x6c8] sm:$0xff] }
0x37a8   :  { %v8165_v20 = vsel %vm501_vm2, %v11477_v61, 0.0 }
0x37a9   :  { %8166 = vadd.xlane.f32.xlu0 %v8165_v20 }
0x37ab   :  { %v11479_v37 = vpop.eup %11478 }
0x37ac   :  { %v8168_v17 = vsel %vm501_vm2, %v11479_v37, 0.0 }
0x37ad   :  { %8169 = vadd.xlane.f32.xlu0 %v8168_v17 }
0x37c3   :  { %8251 = vrot.lane.b32.xlu0 %v12577_v46, %s11668_s15  ;;  %v11093_v46 = vpack.c.bf16 %v8359_v44, %v8358_v1  ;;  %v8506_v1 = vld [vmem:[#allocation10 + $0x620] sm:$0xff] }
0x37c5   :  { %11094 = vmatprep.subr.bf16.mxu0 %v11093_v46 }
0x3836   :  { %v8167_v24 = vpop.xlane.xlu0 %8166 }
0x3837   :  { %11480 = vrcp.f32 %v8167_v24 }
0x383a   :  { %v8170_v27 = vpop.xlane.xlu0 %8169 }
0x383b   :  { %11482 = vrcp.f32 %v8170_v27  ;;  %v8503_v27 = vld [vmem:[#allocation10 + $0x608] sm:$0xff] }
0x383e   :  { %v8252_v33 = vpop.permute.xlu0 %8251 }
0x383f   :  { %10318 = vmatpush3.msra.mxu1 %v8252_v33  ;;  %v8507_v33 = vld [vmem:[#allocation10 + $0x628] sm:$0xff] }
0x3841   :  { %v11481_v39 = vpop.eup %11480 }
0x3842   :  { %v8173_v62 = vmul.f32 %v11481_v39, %v11477_v61  ;;  %v8505_v39 = vld [vmem:[#allocation10 + $0x618] sm:$0xff] }
0x3844   :  { %10315 = vmatmul.mubr.msk.f32.vlgmr.msra.gmra.mrb[100].mxu0 %vm501_vm2, %v8173_v62  ;;  %v11125_v62 = vpack.c.bf16 %v8507_v33, %v8503_v27  ;;  %v8541_v33 = vld [vmem:[#allocation10 + $0x738] sm:$0xff] }
0x3845   :  { %v11483_v3 = vpop.eup %11482  ;;  %11096 = vmatpush3.bf16.msra.mxu0 %v11093_v46  ;;  %v8504_v46 = vld [vmem:[#allocation10 + $0x610] sm:$0xff] }
0x3846   :  { %v8174_v41 = vmul.f32 %v11483_v3, %v11479_v37  ;;  %11098 = vmatprep.subr.bf16.mxu0 %v11097_v50  ;;  %v8509_v3 = vld [vmem:[#allocation10 + $0x638] sm:$0xff]  ;;  %11126 = vmatprep.subr.bf16.mxu1 %v11125_v62  ;;  %v11159_v40 = vpack.c.bf16 %v8508_v49, %v8504_v46  ;;  %v8538_v62 = vld [vmem:[#allocation10 + $0x720] sm:$0xff]  ;;  %v8543_v46 = vld [vmem:[#allocation10 + $0x748] sm:$0xff] }
0x3847   :  { %v11157_v44 = vpack.c.bf16 %v8509_v3, %v8505_v39  ;;  %v8534_v39 = vld [vmem:[#allocation10 + $0x700] sm:$0xff]  ;;  %v8547_v49 = vld [vmem:[#allocation10 + $0x768] sm:$0xff] }
0x3848   :  { %10320 = vmatmul.mubr.msk.f32.vlgmr.msra.gmra.mrb[102].mxu1 %vm501_vm2, %v8174_v41  ;;  %v8502_v41 = vld [vmem:[#allocation10 + $0x600] sm:$0xff] }
0x3849   :  { %8653 = vmatprep.mubr.f32.mxu1 %v11670_v0  ;;  %11100 = vmatpush3.bf16.msra.mxu0 %v11097_v50  ;;  %v11127_v38 = vpack.c.bf16 %v8506_v1, %v8502_v41  ;;  %v8511_v50 = vld [vmem:[#allocation10 + $0x648] sm:$0xff]  ;;  %v11143_v41 = vpack.c.bf16 %v8538_v62, %v8534_v39  ;;  %v8536_v1 = vld [vmem:[#allocation10 + $0x710] sm:$0xff]  ;;  %v9173_v39 = vld [vmem:[%s12803_s6 + $0x3] ss:$0 sm:$0xff] }
0x384a   :  { %11102 = vmatprep.subr.bf16.mxu0 %v11101_v52 }
0x384b   :  { %11128 = vmatpush1.bf16.msra.mxu1 %v11127_v38 }
0x384d   :  { %11104 = vmatpush3.bf16.msra.mxu0 %v11101_v52  ;;  %v8517_v52 = vld [vmem:[#allocation10 + $0x678] sm:$0xff] }
0x384e   :  { %11106 = vmatprep.subr.bf16.mxu0 %v11105_v43 }
0x3851   :  { %11108 = vmatpush3.bf16.msra.mxu0 %v11105_v43  ;;  %v8514_v43 = vld [vmem:[#allocation10 + $0x660] sm:$0xff] }
0x3852   :  { %11110 = vmatprep.subr.bf16.mxu0 %v11109_v53  ;;  %v11131_v54 = vpack.c.bf16 %v8514_v43, %v8510_v12  ;;  %v8544_v12 = vld [vmem:[#allocation10 + $0x750] sm:$0xff] }
0x3853   :  { %v8548_v43 = vld [vmem:[#allocation10 + $0x770] sm:$0xff] }
0x3855   :  { %11112 = vmatpush3.bf16.msra.mxu0 %v11109_v53  ;;  %v8516_v53 = vld [vmem:[#allocation10 + $0x670] sm:$0xff] }
0x3856   :  { %11114 = vmatprep.subr.bf16.mxu0 %v11113_v29 }
0x3859   :  { %11116 = vmatpush3.bf16.msra.mxu0 %v11113_v29  ;;  %v11163_v29 = vpack.c.bf16 %v8516_v53, %v8512_v18  ;;  %v8551_v18 = vld [vmem:[#allocation10 + $0x788] sm:$0xff] }
0x385a   :  { %11118 = vmatprep.subr.bf16.mxu0 %v11117_v59  ;;  %v8555_v53 = vld [vmem:[#allocation10 + $0x7a8] sm:$0xff] }
0x385d   :  { %11120 = vmatpush3.bf16.msra.mxu0 %v11117_v59  ;;  %v8525_v59 = vld [vmem:[#allocation10 + $0x6b8] sm:$0xff] }
0x385e   :  { %11122 = vmatprep.subr.bf16.mxu0 %v11121_v2  ;;  %v11165_v63 = vpack.c.bf16 %v8525_v59, %v8521_v30  ;;  %v8550_v30 = vld [vmem:[#allocation10 + $0x780] sm:$0xff] }
0x385f   :  { %v8554_v59 = vld [vmem:[#allocation10 + $0x7a0] sm:$0xff] }
0x3861   :  { %11124 = vmatpush3.bf16.msra.mxu0 %v11121_v2  ;;  %v8522_v2 = vld [vmem:[#allocation10 + $0x6a0] sm:$0xff] }
0x3862   :  { %11158 = vmatprep.subr.bf16.mxu0 %v11157_v44  ;;  %v8540_v44 = vld [vmem:[#allocation10 + $0x730] sm:$0xff] }
0x3863   :  { %v11175_v38 = vpack.c.bf16 %v8540_v44, %v8536_v1  ;;  %v8784_v1 = vld [vmem:[#allocation11 + $0x700] sm:$0xff]  ;;  %v8785_v44 = vld [vmem:[#allocation11 + $0x708] sm:$0xff] }
0x3917   :  { %v8247_v19 = vpop.f32.mrb[100].mxu0 }
0x3918   :  { %v10316_v47 = vpop.f32.mrb[101].mxu0 }
0x3919   :  { %v8524_v47 = vld [vmem:[#allocation10 + $0x6b0] sm:$0xff] }
0x391b   :  { %v8323_v6 = vpop.f32.mrb[102].mxu1 }
0x391c   :  { %v11327_v48 = vpack.i.bf16 %v8323_v6, %v8247_v19  ;;  %v10321_v58 = vpop.f32.mrb[103].mxu1  ;;  %v8520_v19 = vld [vmem:[#allocation10 + $0x690] sm:$0xff]  ;;  %v11135_v6 = vpack.c.bf16 %v8522_v2, %v8518_v60 }
0x391d   :  { %v8552_v60 = vld [vmem:[#allocation10 + $0x790] sm:$0xff] }
0x391e   :  { %11328 = vrot.lane.b32.xlu1 %v11327_v48, %s11672_s9  ;;  %v11167_v48 = vpack.c.bf16 %v8524_v47, %v8520_v19  ;;  %v8556_v2 = vld [vmem:[#allocation10 + $0x7b0] sm:$0xff]  ;;  %v8559_v19 = vld [vmem:[#allocation10 + $0x7c8] sm:$0xff] }
0x391f   :  { %v8563_v47 = vld [vmem:[#allocation10 + $0x7e8] sm:$0xff] }
0x3990   :  { %v11329_v35 = vpop.permute.xlu1 %11328 }
0x3991   :  { %v11331_v23 = vunpack.i.h.bf16 %v11329_v35  ;;  %v11330_v15 = vunpack.i.l.bf16 %v11329_v35 }
0x3993   :  { %v8355_v36 = vsel %vm1691_vm4, %v8353_v32, %v11330_v15  ;;  %v8356_v26 = vsel %vm1691_vm4, %v8354_v34, %v11331_v23  ;;  %v8531_v23 = vld [vmem:[#allocation10 + $0x6e8] sm:$0xff]  ;;  %v8529_v15 = vld [vmem:[#allocation10 + $0x6d8] sm:$0xff]  ;;  %v8526_v34 = vld [vmem:[#allocation10 + $0x6c0] sm:$0xff] }
0x3994   :  { %10354 = vmatprep.mubr.f32.mxu0 %v8355_v36  ;;  %v11137_v28 = vpack.c.bf16 %v8531_v23, %v8527_v45  ;;  %v8533_v32 = vld [vmem:[#allocation10 + $0x6f8] sm:$0xff]  ;;  %v8530_v36 = vld [vmem:[#allocation10 + $0x6e0] sm:$0xff]  ;;  %v8564_v45 = vld [vmem:[#allocation10 + $0x7f0] sm:$0xff] }
0x3995   :  { %10355 = vmatmul.mubr.f32.vlgmr.msra.gmra.mrb[102].mxu0 %v8356_v26  ;;  %v11169_v26 = vpack.c.bf16 %v8533_v32, %v8529_v15  ;;  %v8769_v32 = vld [vmem:[#allocation11 + $0x688] sm:$0xff] }
0x3996   :  { %8730 = vmatprep.mubr.f32.mxu0 %v11670_v0  ;;  %11160 = vmatpush1.bf16.msra.mxu0 %v11159_v40  ;;  %v11145_v40 = vpack.c.bf16 %v8547_v49, %v8543_v46  ;;  %v8771_v49 = vld [vmem:[#allocation11 + $0x698] sm:$0xff] }
0x3a68   :  { %v10356_v61 = vpop.f32.mrb[102].mxu0 }
0x3a69   :  { %v8454_v20 = vadd.f32 %v10356_v61, %v9169_v5  ;;  %v8448_v37 = vpop.f32.mrb[103].mxu0  ;;  %v8528_v61 = vld [vmem:[#allocation10 + $0x6d0] sm:$0xff] }
0x3a6a   :  { %v8449_v21 = vadd.f32 %v9169_v5, %v8448_v37  ;;  %v11139_v5 = vpack.c.bf16 %v8530_v36, %v8526_v34  ;;  %v8800_v34 = vld [vmem:[#allocation11 + $0x780] sm:$0xff] }
0x3a6b   :  { %v8458_v17 = vadd.f32 %v8454_v20, %v12560_v7  ;;  %v8513_v7 = vld [vmem:[#allocation10 + $0x658] sm:$0xff]  ;;  %v8532_v20 = vld [vmem:[#allocation10 + $0x6f0] sm:$0xff] }
0x3a6c   :  { %v8457_v24 = vadd.f32 %v8449_v21, %v12554_v55  ;;  %v11129_v55 = vpack.c.bf16 %v8515_v51, %v8511_v50  ;;  %v11161_v4 = vpack.c.bf16 %v8517_v52, %v8513_v7  ;;  %v11171_v37 = vpack.c.bf16 %v8532_v20, %v8528_v61  ;;  %v8535_v21 = vld [vmem:[#allocation10 + $0x708] sm:$0xff]  ;;  %v8545_v50 = vld [vmem:[#allocation10 + $0x758] sm:$0xff]  ;;  %v8542_v7 = vld [vmem:[#allocation10 + $0x740] sm:$0xff] }
0x3a6d   :  { %8465 = vadd.xlane.f32.xlu1 %v8458_v17  ;;  %v8549_v51 = vld [vmem:[#allocation10 + $0x778] sm:$0xff]  ;;  %v8546_v52 = vld [vmem:[#allocation10 + $0x760] sm:$0xff] }
0x3a6e   :  { %8463 = vadd.xlane.f32.xlu0 %v8457_v24  ;;  %11130 = vmatprep.subr.bf16.mxu1 %v11129_v55  ;;  %v11177_v55 = vpack.c.bf16 %v8549_v51, %v8545_v50  ;;  %v8802_v50 = vld [vmem:[#allocation11 + $0x790] sm:$0xff] }
0x3a6f   :  { %11162 = vmatprep.subr.bf16.mxu0 %v11161_v4  ;;  %11132 = vmatpush1.bf16.msra.mxu1 %v11131_v54  ;;  %v11147_v4 = vpack.c.bf16 %v8546_v52, %v8542_v7  ;;  %v11179_v54 = vpack.c.bf16 %v8548_v43, %v8544_v12  ;;  %v8754_v12 = vld [vmem:[#allocation11 + $0x610] sm:$0xff]  ;;  %v8755_v43 = vld [vmem:[#allocation11 + $0x618] sm:$0xff] }
0x3a70   :  { %11164 = vmatpush1.bf16.msra.mxu0 %v11163_v29  ;;  %11134 = vmatprep.subr.bf16.mxu1 %v11133_v56  ;;  %v11149_v29 = vpack.c.bf16 %v8555_v53, %v8551_v18  ;;  %v11181_v56 = vpack.c.bf16 %v8557_v13, %v8553_v22  ;;  %v8787_v53 = vld [vmem:[#allocation11 + $0x718] sm:$0xff]  ;;  %v8772_v22 = vld [vmem:[#allocation11 + $0x6a0] sm:$0xff] }
0x3a71   :  { %11166 = vmatprep.subr.bf16.mxu0 %v11165_v63  ;;  %v11151_v63 = vpack.c.bf16 %v8554_v59, %v8550_v30  ;;  %v8805_v30 = vld [vmem:[#allocation11 + $0x7a8] sm:$0xff]  ;;  %v11195_v59 = vpack.c.bf16 %v8755_v43, %v8754_v12 }
0x3a72   :  { %v8813_v12 = vld [vmem:[#allocation11 + $0x7e8] sm:$0xff] }
0x3a73   :  { %11136 = vmatpush1.bf16.msra.mxu1 %v11135_v6  ;;  %v11183_v6 = vpack.c.bf16 %v8556_v2, %v8552_v60  ;;  %v8757_v2 = vld [vmem:[#allocation11 + $0x628] sm:$0xff] }
0x3a74   :  { %11168 = vmatpush1.bf16.msra.mxu0 %v11167_v48  ;;  %11138 = vmatprep.subr.bf16.mxu1 %v11137_v28  ;;  %v11153_v48 = vpack.c.bf16 %v8563_v47, %v8559_v19  ;;  %v8768_v28 = vld [vmem:[#allocation11 + $0x680] sm:$0xff] }
0x3a75   :  { %11170 = vmatprep.subr.bf16.mxu0 %v11169_v26  ;;  %v11189_v36 = vpack.c.bf16 %v8769_v32, %v8768_v28  ;;  %v8801_v26 = vld [vmem:[#allocation11 + $0x788] sm:$0xff]  ;;  %v8790_v28 = vld [vmem:[#allocation11 + $0x730] sm:$0xff]  ;;  %v8791_v32 = vld [vmem:[#allocation11 + $0x738] sm:$0xff] }
0x3a77   :  { %11140 = vmatpush1.bf16.msra.mxu1 %v11139_v5  ;;  %v11221_v5 = vpack.c.bf16 %v8801_v26, %v8800_v34  ;;  %v8776_v34 = vld [vmem:[#allocation11 + $0x6c0] sm:$0xff] }
0x3a78   :  { %11172 = vmatpush1.bf16.msra.mxu0 %v11171_v37  ;;  %v8808_v26 = vld [vmem:[#allocation11 + $0x7c0] sm:$0xff] }
0x3afa   :  { %v8466_v58 = vpop.xlane.xlu1 %8465 }
0x3afb   :  { %v8464_v57 = vpop.xlane.xlu0 %8463  ;;  %v8468_v8 = vmul.f32 0.0078125, %v8466_v58  ;;  %v8561_v58 = vld [vmem:[#allocation10 + $0x7d8] sm:$0xff] }
0x3afc   :  { %v8467_v9 = vmul.f32 0.0078125, %v8464_v57  ;;  %v8565_v57 = vld [vmem:[#allocation10 + $0x7f8] sm:$0xff] }
0x3afd   :  { %v12740_v11 = vsub.f32 %v8458_v17, %v8468_v8  ;;  %v8539_v17 = vld [vmem:[#allocation10 + $0x728] sm:$0xff]  ;;  %v8558_v8 = vld [vmem:[#allocation10 + $0x7c0] sm:$0xff] }
0x3afe   :  { %v12738_v10 = vsub.f32 %v8457_v24, %v8467_v9  ;;  %v8537_v24 = vld [vmem:[#allocation10 + $0x718] sm:$0xff]  ;;  %v11141_v27 = vpack.c.bf16 %v8539_v17, %v8535_v21  ;;  %v11185_v9 = vpack.c.bf16 %v8565_v57, %v8561_v58  ;;  %v8774_v58 = vld [vmem:[#allocation11 + $0x6b0] sm:$0xff] }
0x3aff   :  { %v8472_v35 = vmul.f32 %v12740_v11, %v12740_v11  ;;  %v11173_v3 = vpack.c.bf16 %v8541_v33, %v8537_v24  ;;  %v9172_v33 = vld [vmem:[%s12802_s5 + $0x3] ss:$0 sm:$0xff]  ;;  %v8806_v57 = vld [vmem:[#allocation11 + $0x7b0] sm:$0xff] }
0x3b00   :  { %v8471_v42 = vmul.f32 %v12738_v10, %v12738_v10  ;;  %11142 = vmatprep.subr.bf16.mxu1 %v11141_v27 }
0x3b01   :  { %11174 = vmatprep.subr.bf16.mxu0 %v11173_v3  ;;  %11144 = vmatpush1.bf16.msra.mxu1 %v11143_v41  ;;  %v8752_v3 = vld [vmem:[#allocation11 + $0x600] sm:$0xff]  ;;  %v8753_v41 = vld [vmem:[#allocation11 + $0x608] sm:$0xff] }
0x3b02   :  { %8473 = vadd.xlane.f32.xlu0 %v8471_v42  ;;  %11176 = vmatpush1.bf16.msra.mxu0 %v11175_v38  ;;  %v8562_v42 = vld [vmem:[#allocation10 + $0x7e0] sm:$0xff]  ;;  %v8770_v38 = vld [vmem:[#allocation11 + $0x690] sm:$0xff] }
0x3b03   :  { %11146 = vmatprep.subr.bf16.mxu1 %v11145_v40  ;;  %11178 = vmatprep.subr.bf16.mxu0 %v11177_v55  ;;  %v11155_v23 = vpack.c.bf16 %v8562_v42, %v8558_v8  ;;  %v8803_v40 = vld [vmem:[#allocation11 + $0x798] sm:$0xff]  ;;  %v11191_v55 = vpack.c.bf16 %v8753_v41, %v8752_v3  ;;  %v11193_v18 = vpack.c.bf16 %v8771_v49, %v8770_v38  ;;  %v8810_v3 = vld [vmem:[#allocation11 + $0x7d0] sm:$0xff] }
0x3b04   :  { %v8807_v8 = vld [vmem:[#allocation11 + $0x7b8] sm:$0xff]  ;;  %v8762_v38 = vld [vmem:[#allocation11 + $0x650] sm:$0xff] }
0x3b05   :  { %11148 = vmatpush1.bf16.msra.mxu1 %v11147_v4  ;;  %v11223_v4 = vpack.c.bf16 %v8785_v44, %v8784_v1  ;;  %v8811_v41 = vld [vmem:[#allocation11 + $0x7d8] sm:$0xff] }
0x3b06   :  { %8475 = vadd.xlane.f32.xlu0 %v8472_v35  ;;  %11180 = vmatpush1.bf16.msra.mxu0 %v11179_v54  ;;  %v8560_v35 = vld [vmem:[#allocation10 + $0x7d0] sm:$0xff] }
0x3b07   :  { %11150 = vmatprep.subr.bf16.mxu1 %v11149_v29  ;;  %11182 = vmatprep.subr.bf16.mxu0 %v11181_v56  ;;  %v11187_v15 = vpack.c.bf16 %v8564_v45, %v8560_v35  ;;  %v8786_v54 = vld [vmem:[#allocation11 + $0x710] sm:$0xff]  ;;  %v8773_v29 = vld [vmem:[#allocation11 + $0x6a8] sm:$0xff]  ;;  %v8804_v56 = vld [vmem:[#allocation11 + $0x7a0] sm:$0xff] }
0x3b08   :  { %v11227_v60 = vpack.c.bf16 %v8787_v53, %v8786_v54  ;;  %v11197_v19 = vpack.c.bf16 %v8773_v29, %v8772_v22  ;;  %v11229_v47 = vpack.c.bf16 %v8805_v30, %v8804_v56  ;;  %v8758_v35 = vld [vmem:[#allocation11 + $0x630] sm:$0xff]  ;;  %v8759_v45 = vld [vmem:[#allocation11 + $0x638] sm:$0xff]  ;;  %v8764_v53 = vld [vmem:[#allocation11 + $0x660] sm:$0xff] }
0x3b09   :  { %11152 = vmatpush1.bf16.msra.mxu1 %v11151_v63  ;;  %v8756_v63 = vld [vmem:[#allocation11 + $0x620] sm:$0xff]  ;;  %v8765_v22 = vld [vmem:[#allocation11 + $0x668] sm:$0xff] }
0x3b0a   :  { %11184 = vmatpush1.bf16.msra.mxu0 %v11183_v6  ;;  %11154 = vmatprep.subr.bf16.mxu1 %v11153_v48  ;;  %v8788_v6 = vld [vmem:[#allocation11 + $0x720] sm:$0xff]  ;;  %v8789_v48 = vld [vmem:[#allocation11 + $0x728] sm:$0xff]  ;;  %v11215_v29 = vpack.c.bf16 %v8765_v22, %v8764_v53 }
0x3b0b   :  { %11186 = vmatprep.subr.bf16.mxu0 %v11185_v9  ;;  %v11199_v9 = vpack.c.bf16 %v8757_v2, %v8756_v63  ;;  %v11231_v42 = vpack.c.bf16 %v8789_v48, %v8788_v6  ;;  %v8797_v56 = vld [vmem:[#allocation11 + $0x768] sm:$0xff]  ;;  %v8814_v63 = vld [vmem:[#allocation11 + $0x7f0] sm:$0xff]  ;;  %v8767_v6 = vld [vmem:[#allocation11 + $0x678] sm:$0xff] }
0x3b0d   :  { %11156 = vmatpush1.bf16.msra.mxu1 %v11155_v23 }
0x3b0e   :  { %11188 = vmatpush1.bf16.msra.mxu0 %v11187_v15  ;;  %11190 = vmatprep.subr.bf16.mxu1 %v11189_v36  ;;  %v11233_v15 = vpack.c.bf16 %v8807_v8, %v8806_v57  ;;  %v8777_v36 = vld [vmem:[#allocation11 + $0x6c8] sm:$0xff]  ;;  %v8799_v57 = vld [vmem:[#allocation11 + $0x778] sm:$0xff] }
0x3b0f   :  { %11222 = vmatprep.subr.bf16.mxu0 %v11221_v5  ;;  %v8809_v5 = vld [vmem:[#allocation11 + $0x7c8] sm:$0xff] }
0x3b8f   :  { %v8474_v61 = vpop.xlane.xlu0 %8473 }
0x3b90   :  { %v8477_v20 = vmul.f32 0.0078125, %v8474_v61  ;;  %v11203_v61 = vpack.c.bf16 %v8759_v45, %v8758_v35 }
0x3b92   :  { %v8479_v37 = vadd.f32 1e-05, %v8477_v20  ;;  %v11235_v20 = vpack.c.bf16 %v8791_v32, %v8790_v28 }
0x3b93   :  { %v8476_v21 = vpop.xlane.xlu0 %8475 }
0x3b94   :  { %11484 = vrsqrt.f32 %v8479_v37  ;;  %v8478_v17 = vmul.f32 0.0078125, %v8476_v21  ;;  %v8760_v37 = vld [vmem:[#allocation11 + $0x640] sm:$0xff]  ;;  %v8761_v21 = vld [vmem:[#allocation11 + $0x648] sm:$0xff] }
0x3b95   :  { %v11207_v1 = vpack.c.bf16 %v8761_v21, %v8760_v37 }
0x3b96   :  { %v8480_v24 = vadd.f32 1e-05, %v8478_v17  ;;  %v11205_v17 = vpack.c.bf16 %v8777_v36, %v8776_v34 }
0x3b98   :  { %11486 = vrsqrt.f32 %v8480_v24  ;;  %v11237_v24 = vpack.c.bf16 %v8809_v5, %v8808_v26 }
0x3b9e   :  { %v11485_v27 = vpop.eup %11484 }
0x3b9f   :  { %v8483_v62 = vmul.f32 %v11485_v27, %v12738_v10  ;;  %v11225_v10 = vpack.c.bf16 %v8803_v40, %v8802_v50  ;;  %v8792_v27 = vld [vmem:[#allocation11 + $0x740] sm:$0xff]  ;;  %v11241_v50 = vpack.c.bf16 %v8811_v41, %v8810_v3  ;;  %v8794_v40 = vld [vmem:[#allocation11 + $0x750] sm:$0xff] }
0x3ba1   :  { %v8491_v46 = vmul.f32 %v9172_v33, %v8483_v62  ;;  %v8779_v62 = vld [vmem:[#allocation11 + $0x6d8] sm:$0xff] }
0x3ba2   :  { %v11487_v51 = vpop.eup %11486 }
0x3ba3   :  { %v12753_v7 = vadd.f32 %v9173_v39, %v8491_v46  ;;  %v8484_v52 = vmul.f32 %v11487_v51, %v12740_v11  ;;  %v8763_v46 = vld [vmem:[#allocation11 + $0x658] sm:$0xff] }
0x3ba4   :  { %v8795_v51 = vld [vmem:[#allocation11 + $0x758] sm:$0xff]  ;;  %v11211_v43 = vpack.c.bf16 %v8763_v46, %v8762_v38  ;;  %v9176_v46 = vld [vmem:[%s12807_s10 + $0x3] ss:$0 sm:$0xff] }
0x3ba5   :  { %8654 = vmatmul.mubr.f32.vlgmr.msra.gmra.mrb[104].mxu1 %v12753_v7  ;;  %8731 = vmatmul.mubr.f32.vlgmr.msra.gmra.mrb[104].mxu0 %v12753_v7  ;;  %v8492_v13 = vmul.f32 %v9172_v33, %v8484_v52  ;;  %v8793_v33 = vld [vmem:[#allocation11 + $0x748] sm:$0xff]  ;;  %v8780_v52 = vld [vmem:[#allocation11 + $0x6e0] sm:$0xff] }
0x3ba6   :  { %8659 = vmatprep.mubr.f32.mxu1 %v11670_v0  ;;  %8736 = vmatprep.mubr.f32.mxu0 %v11670_v0  ;;  %v8775_v0 = vld [vmem:[#allocation11 + $0x6b8] sm:$0xff]  ;;  %v11239_v44 = vpack.c.bf16 %v8793_v33, %v8792_v27 }
0x3ba7   :  { %v12760_v11 = vadd.f32 %v9173_v39, %v8492_v13  ;;  %11192 = vmatpush3.bf16.msra.mxu1 %v11191_v55  ;;  %11224 = vmatpush3.bf16.msra.mxu0 %v11223_v4  ;;  %v11201_v23 = vpack.c.bf16 %v8775_v0, %v8774_v58  ;;  %v8778_v39 = vld [vmem:[#allocation11 + $0x6d0] sm:$0xff]  ;;  %v8781_v55 = vld [vmem:[#allocation11 + $0x6e8] sm:$0xff]  ;;  %v8812_v4 = vld [vmem:[#allocation11 + $0x7e0] sm:$0xff] }
0x3ba8   :  { %11194 = vmatprep.subr.bf16.mxu1 %v11193_v18  ;;  %11226 = vmatprep.subr.bf16.mxu0 %v11225_v10  ;;  %v11209_v49 = vpack.c.bf16 %v8779_v62, %v8778_v39  ;;  %v11243_v18 = vpack.c.bf16 %v8795_v51, %v8794_v40  ;;  %v11213_v10 = vpack.c.bf16 %v8781_v55, %v8780_v52  ;;  %v8796_v13 = vld [vmem:[#allocation11 + $0x760] sm:$0xff]  ;;  %v8798_v0 = vld [vmem:[#allocation11 + $0x770] sm:$0xff] }
0x3ba9   :  { %8660 = vmatmul.mubr.f32.gmra.mrb[106].mxu1 %v12760_v11  ;;  %8737 = vmatmul.mubr.f32.gmra.mrb[106].mxu0 %v12760_v11  ;;  %v11245_v54 = vpack.c.bf16 %v8813_v12, %v8812_v4  ;;  %v11247_v30 = vpack.c.bf16 %v8797_v56, %v8796_v13  ;;  %v11251_v8 = vpack.c.bf16 %v8799_v57, %v8798_v0 }
0x3bab   :  { %11196 = vmatpush3.bf16.msra.mxu1 %v11195_v59  ;;  %11228 = vmatpush3.bf16.msra.mxu0 %v11227_v60  ;;  %v8782_v59 = vld [vmem:[#allocation11 + $0x6f0] sm:$0xff]  ;;  %v8783_v60 = vld [vmem:[#allocation11 + $0x6f8] sm:$0xff] }
0x3bac   :  { %11198 = vmatprep.subr.bf16.mxu1 %v11197_v19  ;;  %11230 = vmatprep.subr.bf16.mxu0 %v11229_v47  ;;  %v11217_v2 = vpack.c.bf16 %v8783_v60, %v8782_v59  ;;  %v8815_v19 = vld [vmem:[#allocation11 + $0x7f8] sm:$0xff]  ;;  %v8766_v47 = vld [vmem:[#allocation11 + $0x670] sm:$0xff] }
0x3bad   :  { %v11249_v48 = vpack.c.bf16 %v8815_v19, %v8814_v63  ;;  %v11219_v58 = vpack.c.bf16 %v8767_v6, %v8766_v47 }
0x3baf   :  { %11200 = vmatpush3.bf16.msra.mxu1 %v11199_v9  ;;  %11232 = vmatpush3.bf16.msra.mxu0 %v11231_v42  ;;  %v9174_v9 = vld [vmem:[%s12805_s8 + $0xc] sm:$0xf] }
0x3bb0   :  { %11202 = vmatprep.subr.bf16.mxu1 %v11201_v23  ;;  %11234 = vmatprep.subr.bf16.mxu0 %v11233_v15  ;;  %v8572_v42 = vrot.slane %v9174_v9, %v11846_v14  ;;  %v8580_v35 = vrot.slane %v9174_v9, %v11860_v25  ;;  %v8576_v45 = vrot.slane %v9174_v9, %v11849_v16 }
0x3bb1   :  { %v8584_v23 = vrot.slane %v9174_v9, %v12045_v31 }
0x3bb3   :  { %11204 = vmatpush3.bf16.msra.mxu1 %v11203_v61  ;;  %11236 = vmatpush3.bf16.msra.mxu0 %v11235_v20 }
0x3bb4   :  { %11206 = vmatprep.subr.bf16.mxu1 %v11205_v17  ;;  %11238 = vmatprep.subr.bf16.mxu0 %v11237_v24 }
0x3bb7   :  { %11208 = vmatpush3.bf16.msra.mxu1 %v11207_v1  ;;  %11240 = vmatpush3.bf16.msra.mxu0 %v11239_v44 }
0x3bb8   :  { %11210 = vmatprep.subr.bf16.mxu1 %v11209_v49  ;;  %11242 = vmatprep.subr.bf16.mxu0 %v11241_v50 }
0x3bbb   :  { %11212 = vmatpush3.bf16.msra.mxu1 %v11211_v43  ;;  %11244 = vmatpush3.bf16.msra.mxu0 %v11243_v18 }
0x3bbc   :  { %11214 = vmatprep.subr.bf16.mxu1 %v11213_v10  ;;  %11246 = vmatprep.subr.bf16.mxu0 %v11245_v54 }
0x3bbf   :  { %11216 = vmatpush3.bf16.msra.mxu1 %v11215_v29  ;;  %11248 = vmatpush3.bf16.msra.mxu0 %v11247_v30 }
0x3bc0   :  { %11218 = vmatprep.subr.bf16.mxu1 %v11217_v2  ;;  %11250 = vmatprep.subr.bf16.mxu0 %v11249_v48 }
0x3bc3   :  { %11220 = vmatpush3.bf16.msra.mxu1 %v11219_v58  ;;  %11252 = vmatpush3.bf16.msra.mxu0 %v11251_v8  ;;  %v9179_v8 = vld [vmem:[%s12808_s11 + $0x3] ss:$0 sm:$0xff] }
0x3c78   :  { %v8655_v15 = vpop.f32.mrb[104].mxu1  ;;  %v8732_v28 = vpop.f32.mrb[104].mxu0 }
0x3c79   :  { %v8656_v32 = vadd.f32 %v8655_v15, %v8572_v42  ;;  %v8733_v34 = vadd.f32 %v8732_v28, %v8580_v35  ;;  %v8657_v36 = vpop.f32.mrb[105].mxu1  ;;  %v8734_v26 = vpop.f32.mrb[105].mxu0 }
0x3c7a   :  { %v8658_v5 = vadd.f32 %v8657_v36, %v8576_v45  ;;  %v8735_v61 = vadd.f32 %v8734_v26, %v8584_v23 }
0x3c7b   :  { %v8743_v24 = vmax.f32 %v8656_v32, 0.0  ;;  %v8745_v14 = vmax.f32 %v8733_v34, 0.0 }
0x3c7c   :  { %v8744_v20 = vmax.f32 %v8658_v5, 0.0  ;;  %v8746_v37 = vmax.f32 %v8735_v61, 0.0  ;;  %v8661_v21 = vpop.f32.mrb[106].mxu1  ;;  %v8738_v17 = vpop.f32.mrb[106].mxu0 }
0x3c7d   :  { %v8662_v27 = vadd.f32 %v8661_v21, %v8572_v42  ;;  %v8739_v25 = vadd.f32 %v8738_v17, %v8580_v35  ;;  %v8663_v33 = vpop.f32.mrb[107].mxu1  ;;  %v8740_v16 = vpop.f32.mrb[107].mxu0  ;;  %v9180_v42 = vld [vmem:[%s12809_s12 + $0x3] ss:$0 sm:$0xff] }
0x3c7e   :  { %v8664_v39 = vadd.f32 %v8663_v33, %v8576_v45  ;;  %v8741_v31 = vadd.f32 %v8740_v16, %v8584_v23  ;;  %8888 = vmatprep.mubr.f32.mxu1 %v8744_v20  ;;  %8963 = vmatprep.mubr.f32.mxu0 %v8746_v37 }
0x3c7f   :  { %8889 = vmatmul.mubr.f32.vlgmr.msra.gmra.mrb[108].mxu1 %v8743_v24  ;;  %8964 = vmatmul.mubr.f32.vlgmr.msra.gmra.mrb[108].mxu0 %v8745_v14  ;;  %v8747_v41 = vmax.f32 %v8662_v27, 0.0  ;;  %v8749_v1 = vmax.f32 %v8739_v25, 0.0 }
0x3c80   :  { %v8748_v62 = vmax.f32 %v8664_v39, 0.0  ;;  %v8750_v3 = vmax.f32 %v8741_v31, 0.0 }
0x3c82   :  { %8893 = vmatprep.mubr.f32.mxu1 %v8748_v62  ;;  %8968 = vmatprep.mubr.f32.mxu0 %v8750_v3 }
0x3c83   :  { %8894 = vmatmul.mubr.f32.gmra.mrb[110].mxu1 %v8747_v41  ;;  %8969 = vmatmul.mubr.f32.gmra.mrb[110].mxu0 %v8749_v1 }
0x3d52   :  { %v9713_v44 = vpop.f32.mrb[108].mxu1  ;;  %v9751_v38 = vpop.f32.mrb[108].mxu0 }
0x3d53   :  { %v9714_v49 = vpop.f32.mrb[109].mxu1  ;;  %v9752_v50 = vpop.f32.mrb[109].mxu0 }
0x3d54   :  { %v9715_v40 = vadd.f32 %v9714_v49, %v9713_v44  ;;  %v9753_v51 = vadd.f32 %v9752_v50, %v9751_v38 }
0x3d56   :  { %v8891_v52 = vadd.f32 %v9715_v40, %v9176_v46  ;;  %v9716_v55 = vpop.f32.mrb[110].mxu1  ;;  %v9754_v4 = vpop.f32.mrb[110].mxu0 }
0x3d57   :  { %v9717_v12 = vpop.f32.mrb[111].mxu1  ;;  %v9755_v43 = vpop.f32.mrb[111].mxu0 }
0x3d58   :  { %v8966_v18 = vadd.f32 %v9753_v51, %v8891_v52  ;;  %v9718_v10 = vadd.f32 %v9717_v12, %v9716_v55  ;;  %v9756_v54 = vadd.f32 %v9755_v43, %v9754_v4 }
0x3d5a   :  { %v8896_v53 = vadd.f32 %v9718_v10, %v9176_v46  ;;  %v8974_v22 = vadd.f32 %v8966_v18, %v12753_v7 }
0x3d5c   :  { %v8971_v13 = vadd.f32 %v9756_v54, %v8896_v53  ;;  %8980 = vadd.xlane.f32.xlu0 %v8974_v22 }
0x3d5e   :  { %v8975_v29 = vadd.f32 %v8971_v13, %v12760_v11 }
0x3d60   :  { %8982 = vadd.xlane.f32.xlu1 %v8975_v29 }
0x3de9   :  { %v8981_v56 = vpop.xlane.xlu0 %8980 }
0x3dea   :  { %v8984_v30 = vmul.f32 0.0078125, %v8981_v56 }
0x3dec   :  { %v8986_v59 = vsub.f32 %v8974_v22, %v8984_v30 }
0x3ded   :  { %v8983_v60 = vpop.xlane.xlu1 %8982 }
0x3dee   :  { %v8985_v63 = vmul.f32 0.0078125, %v8983_v60  ;;  %v8988_v2 = vmul.f32 %v8986_v59, %v8986_v59 }
0x3df0   :  { %v8987_v19 = vsub.f32 %v8975_v29, %v8985_v63  ;;  %8990 = vadd.xlane.f32.xlu0 %v8988_v2 }
0x3df2   :  { %v8989_v47 = vmul.f32 %v8987_v19, %v8987_v19 }
0x3df4   :  { %8992 = vadd.xlane.f32.xlu1 %v8989_v47 }
0x3e7d   :  { %v8991_v6 = vpop.xlane.xlu0 %8990 }
0x3e7e   :  { %v8994_v48 = vmul.f32 0.0078125, %v8991_v6 }
0x3e80   :  { %v8996_v58 = vadd.f32 1e-05, %v8994_v48 }
0x3e81   :  { %v8993_v0 = vpop.xlane.xlu1 %8992 }
0x3e82   :  { %11488 = vrsqrt.f32 %v8996_v58  ;;  %v8995_v7 = vmul.f32 0.0078125, %v8993_v0 }
0x3e84   :  { %v8997_v57 = vadd.f32 1e-05, %v8995_v7 }
0x3e86   :  { %11490 = vrsqrt.f32 %v8997_v57 }
0x3e8c   :  { %v11489_v11 = vpop.eup %11488 }
0x3e8d   :  { %v9000_v9 = vmul.f32 %v11489_v11, %v8986_v59 }
0x3e8f   :  { %v9008_v35 = vmul.f32 %v9179_v8, %v9000_v9 }
0x3e90   :  { %v11491_v45 = vpop.eup %11490 }
0x3e91   :  { %v9001_v23 = vmul.f32 %v11491_v45, %v8987_v19  ;;  %v9016_v15 = vadd.f32 %v9180_v42, %v9008_v35 }
0x3e93   :  { %v9009_v28 = vmul.f32 %v9179_v8, %v9001_v23  ;;  %9018 = vst [vmem:[#allocation13] sm:$0xff] %v9016_v15 }
0x3e95   :  { %v9017_v32 = vadd.f32 %v9180_v42, %v9009_v28 }
0x3e97   :  { %9019 = vst [vmem:[#allocation13 + $0x8] sm:$0xff] %v9017_v32 }
0x3e98   :  { %11635 = shalt.err (!%p11632_p10)
}
0x3e99   :  { %s11636_s16 = scalar_lea.hbm %s12810_s13, 256 }
0x3e9a   :  { %p11637_p11 = scmp.ne.s32.totalorder %s12810_s13, %s11636_s16  ;;  %p11640_p12 = scmp.lt.u32.totalorder %s11636_s16, %s12810_s13 }
0x3e9c   :  { %p11642_p13 = pnand %p11640_p12, %p11637_p11 }
0x3e9e   :  { %11645 = shalt.err (!%p11642_p13)
}
0x3e9f   :  { %9031 = dma.vmem_to_hbm [thread:$0]  %s9026_s23, 256, %s12810_s13, [#allocation4], %s11661_s26, %s11661_s26, %s11662_s17  }
0x3ea0   :  { %11654 = dma.done.wait [#allocation4], 256  }
0x3ea1   :  { %11655 = vsyncadd [#allocation4], 4294967040 }
0x3ea2   :  { %9035 = vsyncpa [#allocation3], 1 }
0x3ea3   :  { %9036 = vsyncpa [#allocation6], 1 }
0x3ea4   :  { %9037 = vsyncpa [#allocation9], 1 }
0x3ea5   :  { %9038 = vsyncpa [#allocation12], 1 }
0x3ea6   :  { %9039 = vsyncpa [#allocation4], 1 }

</bundles_post_ra>
